<compile_context>
chip_gen: v7x
topology: tpu7x:2x2x1
jax: 0.10.0
libtpu: 0.0.40
codegen_flags: <defaults>
</compile_context>

<pallas_src>
import numpy as np
import jax
import jax.numpy as jnp
from jax.experimental import pallas as pl
from jax.experimental.pallas import tpu as pltpu

# ---------------- CARAFE configuration (matches the PyTorch module) ----------
B = 2          # batch
C = 4          # input/output channels
C_MID = 64     # compressed channels
H = 16         # input height
W_SP = 16      # input width
SCALE = 2      # upsample scale
K_UP = 5       # reassembly kernel size
K_ENC = 3      # encoder kernel size

K2 = K_UP * K_UP
R = K_UP // 2
P_ENC = K_ENC // 2
ENC_OUT = (SCALE * K_UP) ** 2          # 100
BN_EPS = 1e-5
H_OUT, W_OUT = H * SCALE, W_SP * SCALE

HW = H * W_SP                          # 256 (lane-dense axis)
N_PHASE = SCALE * SCALE                # 4
ENC_PAD = 128                          # enc matmul N padded to a full lane group
PHASE_STRIDE = ENC_PAD // N_PHASE      # 32 columns per phase group
K_IM2COL = K_ENC * K_ENC * C_MID       # 576
PAD_T = 24                             # zero rows above y in the row buffer (8-aligned)
ROWS = PAD_T + HW + 24                 # 304 rows total (8-aligned)

assert ENC_OUT == K2 * N_PHASE
assert K2 <= PHASE_STRIDE


# --------------------------------- fused kernel -------------------------------
def carafe_fused_kernel(x_ref, xunf_ref, wc_ref, we_ref, o_ref, ybuf_ref, patch_ref):
    # x_ref:    (HW, C)            input pixels (rows) x channels
    # xunf_ref: (K2, C, HW)        25 shifted feature windows, lane-dense on HW
    # wc_ref:   (C, C_MID)         BN-folded 1x1 comp weight
    # we_ref:   (K_IM2COL, ENC_PAD) BN-folded, phase-grouped, zero-padded enc weight
    # o_ref:    (N_PHASE*C, HW)    output, row = phase*C + c, lane-dense on HW
    # ybuf_ref: (ROWS, C_MID)      zero-bordered row buffer (realizes enc spatial pad)
    # patch_ref:(HW, K_IM2COL)     im2col patch matrix

    # ---- comp: 1x1 conv + BN + ReLU (single MXU matmul) ----
    y = jnp.dot(x_ref[...], wc_ref[...], preferred_element_type=jnp.float32)
    y = jnp.maximum(y, 0.0)                                   # (HW, C_MID)

    # ---- enc: 3x3 conv + BN via im2col + one big-K matmul ----
    # Zero borders realize the h-direction padding (scratch persists across the
    # batch grid, so re-zero every step); w-direction handled by masks below.
    ybuf_ref[0:PAD_T, :] = jnp.zeros((PAD_T, C_MID), jnp.float32)
    ybuf_ref[PAD_T + HW:ROWS, :] = jnp.zeros((ROWS - PAD_T - HW, C_MID), jnp.float32)
    ybuf_ref[PAD_T:PAD_T + HW, :] = y

    wcol = jax.lax.broadcasted_iota(jnp.int32, (HW, C_MID), 0) % W_SP
    mask_l = wcol > 0              # valid rows for the kw=0 tap (w != 0)
    mask_r = wcol < (W_SP - 1)     # valid rows for the kw=K_ENC-1 tap (w != W-1)

    for kh in range(K_ENC):
        for kw in range(K_ENC):
            tap = kh * K_ENC + kw
            start = PAD_T + W_SP * (kh - 1) + (kw - 1)
            piece = ybuf_ref[start:start + HW, :]             # (HW, C_MID) row-shifted slice
            if kw == 0:
                piece = jnp.where(mask_l, piece, 0.0)
            elif kw == K_ENC - 1:
                piece = jnp.where(mask_r, piece, 0.0)
            patch_ref[:, tap * C_MID:(tap + 1) * C_MID] = piece

    e = jnp.dot(patch_ref[...], we_ref[...],
                preferred_element_type=jnp.float32)           # (HW, ENC_PAD)
    et = jnp.transpose(e)                                     # (ENC_PAD, HW) lane-dense

    # ---- per-phase softmax over K_up^2 + CARAFE reassembly ----
    outs = []
    for p in range(N_PHASE):
        logits = et[p * PHASE_STRIDE:p * PHASE_STRIDE + K2, :]   # (K2, HW), 8-aligned slice
        m = jnp.max(logits, axis=0, keepdims=True)
        ex = jnp.exp(logits - m)
        s = jnp.sum(ex, axis=0, keepdims=True)
        r = pl.reciprocal(s, approx=True)
        r = r * (2.0 - s * r)            # one Newton step -> f32-accurate 1/s
        wsm = ex * r                                             # softmax, (K2, HW)

        acc = jnp.zeros((C, HW), jnp.float32)
        for k in range(K2):
            acc = acc + wsm[k:k + 1, :] * xunf_ref[k]            # (C, HW) FMA
        outs.append(acc)

    o_ref[...] = jnp.concatenate(outs, axis=0)                   # (N_PHASE*C, HW), unmasked vst


# --------------------------------- wrapper ------------------------------------
def carafe_pallas(x, w_comp, w_enc):
    """x: (B, C, H, W) NCHW; w_comp: (C_MID, C, 1, 1); w_enc: (ENC_OUT, C_MID, 3, 3)."""
    b = x.shape[0]
    bnscale = 1.0 / np.sqrt(1.0 + BN_EPS)

    # Fold eval-mode BN (mean=0, var=1, gamma=1, beta=0) into the conv weights.
    wc = (w_comp[:, :, 0, 0] * bnscale).T                        # (C, C_MID)

    # enc weight -> im2col layout, columns phase-grouped and zero-padded to 128:
    # row = tap*C_MID + c ; col = phase*PHASE_STRIDE + k  (orig out-chan o = 4k+phase)
    we = jnp.transpose(w_enc, (2, 3, 1, 0)).reshape(K_IM2COL, ENC_OUT) * bnscale
    o_idx = np.arange(ENC_OUT)
    new_cols = (o_idx % N_PHASE) * PHASE_STRIDE + (o_idx // N_PHASE)
    we_pad = jnp.zeros((K_IM2COL, ENC_PAD), jnp.float32).at[:, new_cols].set(we)

    # Input prep (tiny, one-time): pixels-on-rows view for comp, and the
    # 25 shifted feature windows for the reassembly (lane-dense on HW).
    x_hwc = jnp.transpose(x, (0, 2, 3, 1)).reshape(b, HW, C)     # (B, HW, C)
    xpad = jnp.pad(x, ((0, 0), (0, 0), (R, R), (R, R)))          # (B, C, H+2R, W+2R)
    taps = [xpad[:, :, di:di + H, dj:dj + W_SP]
            for di in range(K_UP) for dj in range(K_UP)]
    xunf = jnp.stack(taps, axis=1).reshape(b, K2, C, HW)         # (B, K2, C, HW)

    out_flat = pl.pallas_call(
        carafe_fused_kernel,
        out_shape=jax.ShapeDtypeStruct((b, N_PHASE * C, HW), jnp.float32),
        grid=(b,),
        in_specs=[
            pl.BlockSpec((None, HW, C), lambda i: (i, 0, 0)),
            pl.BlockSpec((None, K2, C, HW), lambda i: (i, 0, 0, 0)),
            pl.BlockSpec((C, C_MID), lambda i: (0, 0)),
            pl.BlockSpec((K_IM2COL, ENC_PAD), lambda i: (0, 0)),
        ],
        out_specs=pl.BlockSpec((None, N_PHASE * C, HW), lambda i: (i, 0, 0)),
        scratch_shapes=[
            pltpu.VMEM((ROWS, C_MID), jnp.float32),      # zero-bordered comp output
            pltpu.VMEM((HW, K_IM2COL), jnp.float32),     # im2col patches
        ],
        compiler_params=pltpu.CompilerParams(dimension_semantics=("parallel",)),
    )(x_hwc, xunf, wc, we_pad)

    # un-shuffle phases back to NCHW: out[b,c,2h+py,2w+px] = out_flat[b, (2py+px)*C+c, h*W+w]
    out = out_flat.reshape(b, SCALE, SCALE, C, H, W_SP)
    out = jnp.transpose(out, (0, 3, 4, 1, 5, 2)).reshape(b, C, H_OUT, W_OUT)
    return out


# ------------------------- pure-JAX reference (for checking) ------------------
def carafe_ref(x, w_comp, w_enc):
    b, c, h, w = x.shape
    s, k_up = SCALE, K_UP
    bnscale = 1.0 / np.sqrt(1.0 + BN_EPS)
    y = jnp.einsum('bchw,oc->bohw', x, w_comp[:, :, 0, 0]) * bnscale
    y = jnp.maximum(y, 0.0)
    yp = jnp.pad(y, ((0, 0), (0, 0), (1, 1), (1, 1)))
    e = jnp.zeros((b, ENC_OUT, h, w), jnp.float32)
    for kh in range(K_ENC):
        for kw in range(K_ENC):
            e = e + jnp.einsum('bchw,oc->bohw',
                               yp[:, :, kh:kh + h, kw:kw + w], w_enc[:, :, kh, kw])
    e = e * bnscale
    e = e.reshape(b, K2, s, s, h, w)
    Wm = jnp.transpose(e, (0, 1, 4, 2, 5, 3)).reshape(b, K2, h * s, w * s)  # PixelShuffle
    Wm = jax.nn.softmax(Wm, axis=1)
    xpad = jnp.pad(x, ((0, 0), (0, 0), (R, R), (R, R)))
    ii = jnp.arange(h * s) // s
    jj = jnp.arange(w * s) // s
    out = jnp.zeros((b, c, h * s, w * s), jnp.float32)
    for di in range(k_up):
        for dj in range(k_up):
            k = di * k_up + dj
            g = xpad[:, :, ii + di, :][:, :, :, jj + dj]
            out = out + Wm[:, k][:, None, :, :] * g
    return out


# ------------------------------------ main ------------------------------------
if __name__ == "__main__":
    key = jax.random.PRNGKey(0)
    kx, k1, k2 = jax.random.split(key, 3)
    x = jax.random.normal(kx, (B, C, H, W_SP), jnp.float32)
    w_comp = jax.random.normal(k1, (C_MID, C, 1, 1), jnp.float32) * 0.1
    w_enc = jax.random.normal(k2, (ENC_OUT, C_MID, K_ENC, K_ENC), jnp.float32) * 0.1

    out = jax.jit(carafe_pallas)(x, w_comp, w_enc)
    out = jax.block_until_ready(out)

    ref = carafe_ref(x, w_comp, w_enc)
    ref = jax.block_until_ready(ref)

    assert out.shape == (B, C, H_OUT, W_OUT), out.shape
    if not np.allclose(np.asarray(out), np.asarray(ref), atol=1e-4, rtol=1e-4):
        raise AssertionError("Pallas CARAFE output does not match reference")

    print("KERNEL_OK")
</pallas_src>

<mosaic_0001>
module attributes {stable_mosaic.version = 11 : i64} {
  func.func @carafe_fused_kernel(%arg0: i32, %arg1: memref<1x256x4xf32, #tpu.memory_space<vmem>>, %arg2: memref<1x25x4x256xf32, #tpu.memory_space<vmem>>, %arg3: memref<4x64xf32, #tpu.memory_space<vmem>>, %arg4: memref<576x128xf32, #tpu.memory_space<vmem>>, %arg5: memref<1x16x256xf32, #tpu.memory_space<vmem>>, %arg6: memref<304x64xf32, #tpu.memory_space<vmem>>, %arg7: memref<256x576xf32, #tpu.memory_space<vmem>>) attributes {dimension_semantics = [#tpu.dimension_semantics<parallel>], iteration_bounds = array<i64: 2>, scalar_prefetch = 0 : i64, scratch_operands = 2 : i64, tpu.core_type = #tpu.core_type<tc>, window_params = [{transform_indices = @transform_0, window_bounds = array<i64: 1, 256, 4>}, {transform_indices = @transform_1, window_bounds = array<i64: 1, 25, 4, 256>}, {pipeline_mode = #tpu.pipeline_mode<synchronous>, transform_indices = @transform_2, window_bounds = array<i64: 4, 64>}, {pipeline_mode = #tpu.pipeline_mode<synchronous>, transform_indices = @transform_3, window_bounds = array<i64: 576, 128>}, {transform_indices = @transform_4, window_bounds = array<i64: 1, 16, 256>}]} {
    %c0 = arith.constant 0 : index
    %c0_0 = arith.constant 0 : index
    %c0_1 = arith.constant 0 : index
    %0 = vector.load %arg1[%c0, %c0_0, %c0_1] : memref<1x256x4xf32, #tpu.memory_space<vmem>>, vector<1x256x4xf32>
    %1 = vector.shape_cast %0 : vector<1x256x4xf32> to vector<256x4xf32>
    %c0_2 = arith.constant 0 : index
    %c0_3 = arith.constant 0 : index
    %2 = vector.load %arg3[%c0_2, %c0_3] : memref<4x64xf32, #tpu.memory_space<vmem>>, vector<4x64xf32>
    %cst = arith.constant dense<0.000000e+00> : vector<256x64xf32>
    %3 = tpu.matmul %1, %2, %cst {dimension_numbers = #tpu.dot_dimension_numbers<[1], [0], [0], [1], [0, 0, 1, 1], [], []>} : vector<256x4xf32>, vector<4x64xf32>, vector<256x64xf32> -> vector<256x64xf32>
    %cst_4 = arith.constant 0.000000e+00 : f32
    %4 = vector.broadcast %cst_4 : f32 to vector<256x64xf32>
    %5 = arith.maximumf %3, %4 : vector<256x64xf32>
    %cst_5 = arith.constant 0.000000e+00 : f32
    %6 = vector.broadcast %cst_5 : f32 to vector<24x64xf32>
    %c0_6 = arith.constant 0 : index
    %c0_7 = arith.constant 0 : index
    %7 = vector.load %arg6[%c0_6, %c0_7] : memref<304x64xf32, #tpu.memory_space<vmem>>, vector<24x64xf32>
    tpu.vector_store %arg6[%c0_6, %c0_7], %6 {strides = array<i32>} : memref<304x64xf32, #tpu.memory_space<vmem>>, vector<24x64xf32>,
    %cst_8 = arith.constant 0.000000e+00 : f32
    %8 = vector.broadcast %cst_8 : f32 to vector<24x64xf32>
    %c280 = arith.constant 280 : index
    %c0_9 = arith.constant 0 : index
    %9 = vector.load %arg6[%c280, %c0_9] : memref<304x64xf32, #tpu.memory_space<vmem>>, vector<24x64xf32>
    tpu.vector_store %arg6[%c280, %c0_9], %8 {strides = array<i32>} : memref<304x64xf32, #tpu.memory_space<vmem>>, vector<24x64xf32>,
    %c24 = arith.constant 24 : index
    %c0_10 = arith.constant 0 : index
    %10 = vector.load %arg6[%c24, %c0_10] : memref<304x64xf32, #tpu.memory_space<vmem>>, vector<256x64xf32>
    tpu.vector_store %arg6[%c24, %c0_10], %5 {strides = array<i32>} : memref<304x64xf32, #tpu.memory_space<vmem>>, vector<256x64xf32>,
    %11 = tpu.iota {dimensions = array<i32: 0>} : vector<256x64xi32>
    %c16_i32 = arith.constant 16 : i32
    %c0_i32 = arith.constant 0 : i32
    %12 = arith.cmpi eq, %c16_i32, %c0_i32 : i32
    %c1_i32 = arith.constant 1 : i32
    %13 = arith.select %12, %c1_i32, %c16_i32 : i32
    %14 = vector.broadcast %13 : i32 to vector<256x64xi32>
    %15 = arith.remsi %11, %14 : vector<256x64xi32>
    %c0_i32_11 = arith.constant 0 : i32
    %16 = vector.broadcast %c0_i32_11 : i32 to vector<256x64xi32>
    %17 = arith.cmpi ne, %15, %16 : vector<256x64xi32>
    %c0_i32_12 = arith.constant 0 : i32
    %18 = vector.broadcast %c0_i32_12 : i32 to vector<256x64xi32>
    %19 = arith.cmpi slt, %15, %18 : vector<256x64xi32>
    %c0_i32_13 = arith.constant 0 : i32
    %20 = arith.cmpi slt, %13, %c0_i32_13 : i32
    %21 = vector.broadcast %20 : i1 to vector<256x64xi1>
    %22 = vector.broadcast %21 : vector<256x64xi1> to vector<256x64xi1>
    %23 = arith.xori %19, %22 : vector<256x64xi1>
    %24 = arith.andi %23, %17 : vector<256x64xi1>
    %25 = vector.broadcast %13 : i32 to vector<256x64xi32>
    %26 = arith.addi %15, %25 : vector<256x64xi32>
    %27 = arith.select %24, %26, %15 : vector<256x64xi1>, vector<256x64xi32>
    %c0_i32_14 = arith.constant 0 : i32
    %28 = vector.broadcast %c0_i32_14 : i32 to vector<256x64xi32>
    %29 = arith.cmpi sgt, %27, %28 : vector<256x64xi32>
    %c15_i32 = arith.constant 15 : i32
    %30 = vector.broadcast %c15_i32 : i32 to vector<256x64xi32>
    %31 = arith.cmpi slt, %27, %30 : vector<256x64xi32>
    %c7 = arith.constant 7 : index
    %c0_15 = arith.constant 0 : index
    %32 = vector.load %arg6[%c7, %c0_15] : memref<304x64xf32, #tpu.memory_space<vmem>>, vector<256x64xf32>
    %cst_16 = arith.constant 0.000000e+00 : f32
    %33 = vector.broadcast %cst_16 : f32 to vector<256x64xf32>
    %34 = arith.select %29, %32, %33 : vector<256x64xi1>, vector<256x64xf32>
    %c0_17 = arith.constant 0 : index
    %c0_18 = arith.constant 0 : index
    %35 = vector.load %arg7[%c0_17, %c0_18] : memref<256x576xf32, #tpu.memory_space<vmem>>, vector<256x64xf32>
    tpu.vector_store %arg7[%c0_17, %c0_18], %34 {strides = array<i32>} : memref<256x576xf32, #tpu.memory_space<vmem>>, vector<256x64xf32>,
    %c8 = arith.constant 8 : index
    %c0_19 = arith.constant 0 : index
    %36 = vector.load %arg6[%c8, %c0_19] : memref<304x64xf32, #tpu.memory_space<vmem>>, vector<256x64xf32>
    %c0_20 = arith.constant 0 : index
    %c64 = arith.constant 64 : index
    %37 = vector.load %arg7[%c0_20, %c64] : memref<256x576xf32, #tpu.memory_space<vmem>>, vector<256x64xf32>
    tpu.vector_store %arg7[%c0_20, %c64], %36 {strides = array<i32>} : memref<256x576xf32, #tpu.memory_space<vmem>>, vector<256x64xf32>,
    %c9 = arith.constant 9 : index
    %c0_21 = arith.constant 0 : index
    %38 = vector.load %arg6[%c9, %c0_21] : memref<304x64xf32, #tpu.memory_space<vmem>>, vector<256x64xf32>
    %cst_22 = arith.constant 0.000000e+00 : f32
    %39 = vector.broadcast %cst_22 : f32 to vector<256x64xf32>
    %40 = arith.select %31, %38, %39 : vector<256x64xi1>, vector<256x64xf32>
    %c0_23 = arith.constant 0 : index
    %c128 = arith.constant 128 : index
    %41 = vector.load %arg7[%c0_23, %c128] : memref<256x576xf32, #tpu.memory_space<vmem>>, vector<256x64xf32>
    tpu.vector_store %arg7[%c0_23, %c128], %40 {strides = array<i32>} : memref<256x576xf32, #tpu.memory_space<vmem>>, vector<256x64xf32>,
    %c23 = arith.constant 23 : index
    %c0_24 = arith.constant 0 : index
    %42 = vector.load %arg6[%c23, %c0_24] : memref<304x64xf32, #tpu.memory_space<vmem>>, vector<256x64xf32>
    %cst_25 = arith.constant 0.000000e+00 : f32
    %43 = vector.broadcast %cst_25 : f32 to vector<256x64xf32>
    %44 = arith.select %29, %42, %43 : vector<256x64xi1>, vector<256x64xf32>
    %c0_26 = arith.constant 0 : index
    %c192 = arith.constant 192 : index
    %45 = vector.load %arg7[%c0_26, %c192] : memref<256x576xf32, #tpu.memory_space<vmem>>, vector<256x64xf32>
    tpu.vector_store %arg7[%c0_26, %c192], %44 {strides = array<i32>} : memref<256x576xf32, #tpu.memory_space<vmem>>, vector<256x64xf32>,
    %c24_27 = arith.constant 24 : index
    %c0_28 = arith.constant 0 : index
    %46 = vector.load %arg6[%c24_27, %c0_28] : memref<304x64xf32, #tpu.memory_space<vmem>>, vector<256x64xf32>
    %c0_29 = arith.constant 0 : index
    %c256 = arith.constant 256 : index
    %47 = vector.load %arg7[%c0_29, %c256] : memref<256x576xf32, #tpu.memory_space<vmem>>, vector<256x64xf32>
    tpu.vector_store %arg7[%c0_29, %c256], %46 {strides = array<i32>} : memref<256x576xf32, #tpu.memory_space<vmem>>, vector<256x64xf32>,
    %c25 = arith.constant 25 : index
    %c0_30 = arith.constant 0 : index
    %48 = vector.load %arg6[%c25, %c0_30] : memref<304x64xf32, #tpu.memory_space<vmem>>, vector<256x64xf32>
    %cst_31 = arith.constant 0.000000e+00 : f32
    %49 = vector.broadcast %cst_31 : f32 to vector<256x64xf32>
    %50 = arith.select %31, %48, %49 : vector<256x64xi1>, vector<256x64xf32>
    %c0_32 = arith.constant 0 : index
    %c320 = arith.constant 320 : index
    %51 = vector.load %arg7[%c0_32, %c320] : memref<256x576xf32, #tpu.memory_space<vmem>>, vector<256x64xf32>
    tpu.vector_store %arg7[%c0_32, %c320], %50 {strides = array<i32>} : memref<256x576xf32, #tpu.memory_space<vmem>>, vector<256x64xf32>,
    %c39 = arith.constant 39 : index
    %c0_33 = arith.constant 0 : index
    %52 = vector.load %arg6[%c39, %c0_33] : memref<304x64xf32, #tpu.memory_space<vmem>>, vector<256x64xf32>
    %cst_34 = arith.constant 0.000000e+00 : f32
    %53 = vector.broadcast %cst_34 : f32 to vector<256x64xf32>
    %54 = arith.select %29, %52, %53 : vector<256x64xi1>, vector<256x64xf32>
    %c0_35 = arith.constant 0 : index
    %c384 = arith.constant 384 : index
    %55 = vector.load %arg7[%c0_35, %c384] : memref<256x576xf32, #tpu.memory_space<vmem>>, vector<256x64xf32>
    tpu.vector_store %arg7[%c0_35, %c384], %54 {strides = array<i32>} : memref<256x576xf32, #tpu.memory_space<vmem>>, vector<256x64xf32>,
    %c40 = arith.constant 40 : index
    %c0_36 = arith.constant 0 : index
    %56 = vector.load %arg6[%c40, %c0_36] : memref<304x64xf32, #tpu.memory_space<vmem>>, vector<256x64xf32>
    %c0_37 = arith.constant 0 : index
    %c448 = arith.constant 448 : index
    %57 = vector.load %arg7[%c0_37, %c448] : memref<256x576xf32, #tpu.memory_space<vmem>>, vector<256x64xf32>
    tpu.vector_store %arg7[%c0_37, %c448], %56 {strides = array<i32>} : memref<256x576xf32, #tpu.memory_space<vmem>>, vector<256x64xf32>,
    %c41 = arith.constant 41 : index
    %c0_38 = arith.constant 0 : index
    %58 = vector.load %arg6[%c41, %c0_38] : memref<304x64xf32, #tpu.memory_space<vmem>>, vector<256x64xf32>
    %cst_39 = arith.constant 0.000000e+00 : f32
    %59 = vector.broadcast %cst_39 : f32 to vector<256x64xf32>
    %60 = arith.select %31, %58, %59 : vector<256x64xi1>, vector<256x64xf32>
    %c0_40 = arith.constant 0 : index
    %c512 = arith.constant 512 : index
    %61 = vector.load %arg7[%c0_40, %c512] : memref<256x576xf32, #tpu.memory_space<vmem>>, vector<256x64xf32>
    tpu.vector_store %arg7[%c0_40, %c512], %60 {strides = array<i32>} : memref<256x576xf32, #tpu.memory_space<vmem>>, vector<256x64xf32>,
    %c0_41 = arith.constant 0 : index
    %c0_42 = arith.constant 0 : index
    %62 = vector.load %arg7[%c0_41, %c0_42] : memref<256x576xf32, #tpu.memory_space<vmem>>, vector<256x576xf32>
    %c0_43 = arith.constant 0 : index
    %c0_44 = arith.constant 0 : index
    %63 = vector.load %arg4[%c0_43, %c0_44] : memref<576x128xf32, #tpu.memory_space<vmem>>, vector<576x128xf32>
    %cst_45 = arith.constant dense<0.000000e+00> : vector<256x128xf32>
    %64 = tpu.matmul %62, %63, %cst_45 {dimension_numbers = #tpu.dot_dimension_numbers<[1], [0], [0], [1], [0, 0, 1, 1], [], []>} : vector<256x576xf32>, vector<576x128xf32>, vector<256x128xf32> -> vector<256x128xf32>
    %65 = tpu.transpose %64, [1, 0] : vector<256x128xf32> -> vector<128x256xf32>
    %66 = vector.extract_strided_slice %65 {offsets = [0, 0], sizes = [25, 256], strides = [1, 1]} : vector<128x256xf32> to vector<25x256xf32>
    %cst_46 = arith.constant dense<0xFF800000> : vector<256xf32>
    %67 = vector.multi_reduction <maximumf>, %66, %cst_46 [0] : vector<25x256xf32> to vector<256xf32>
    %68 = vector.shape_cast %67 : vector<256xf32> to vector<1x256xf32>
    %69 = vector.broadcast %68 : vector<1x256xf32> to vector<25x256xf32>
    %70 = arith.subf %66, %69 : vector<25x256xf32>
    %71 = math.exp %70 : vector<25x256xf32>
    %cst_47 = arith.constant dense<0.000000e+00> : vector<256xf32>
    %72 = vector.multi_reduction <add>, %71, %cst_47 [0] : vector<25x256xf32> to vector<256xf32>
    %73 = vector.shape_cast %72 : vector<256xf32> to vector<1x256xf32>
    %74 = tpu.reciprocal %73 {approx = true} : vector<1x256xf32> -> vector<1x256xf32>
    %75 = arith.mulf %73, %74 : vector<1x256xf32>
    %cst_48 = arith.constant 2.000000e+00 : f32
    %76 = vector.broadcast %cst_48 : f32 to vector<1x256xf32>
    %77 = arith.subf %76, %75 : vector<1x256xf32>
    %78 = arith.mulf %74, %77 : vector<1x256xf32>
    %79 = vector.broadcast %78 : vector<1x256xf32> to vector<25x256xf32>
    %80 = arith.mulf %71, %79 : vector<25x256xf32>
    %cst_49 = arith.constant 0.000000e+00 : f32
    %81 = vector.broadcast %cst_49 : f32 to vector<4x256xf32>
    %82 = vector.extract_strided_slice %80 {offsets = [0, 0], sizes = [1, 256], strides = [1, 1]} : vector<25x256xf32> to vector<1x256xf32>
    %c0_50 = arith.constant 0 : index
    %c0_51 = arith.constant 0 : index
    %c0_52 = arith.constant 0 : index
    %c0_53 = arith.constant 0 : index
    %83 = vector.load %arg2[%c0_50, %c0_51, %c0_52, %c0_53] : memref<1x25x4x256xf32, #tpu.memory_space<vmem>>, vector<1x1x4x256xf32>
    %84 = vector.shape_cast %83 : vector<1x1x4x256xf32> to vector<4x256xf32>
    %85 = vector.broadcast %82 : vector<1x256xf32> to vector<4x256xf32>
    %86 = arith.mulf %85, %84 : vector<4x256xf32>
    %87 = arith.addf %81, %86 : vector<4x256xf32>
    %88 = vector.extract_strided_slice %80 {offsets = [1, 0], sizes = [1, 256], strides = [1, 1]} : vector<25x256xf32> to vector<1x256xf32>
    %c0_54 = arith.constant 0 : index
    %c1 = arith.constant 1 : index
    %c0_55 = arith.constant 0 : index
    %c0_56 = arith.constant 0 : index
    %89 = vector.load %arg2[%c0_54, %c1, %c0_55, %c0_56] : memref<1x25x4x256xf32, #tpu.memory_space<vmem>>, vector<1x1x4x256xf32>
    %90 = vector.shape_cast %89 : vector<1x1x4x256xf32> to vector<4x256xf32>
    %91 = vector.broadcast %88 : vector<1x256xf32> to vector<4x256xf32>
    %92 = arith.mulf %91, %90 : vector<4x256xf32>
    %93 = arith.addf %87, %92 : vector<4x256xf32>
    %94 = vector.extract_strided_slice %80 {offsets = [2, 0], sizes = [1, 256], strides = [1, 1]} : vector<25x256xf32> to vector<1x256xf32>
    %c0_57 = arith.constant 0 : index
    %c2 = arith.constant 2 : index
    %c0_58 = arith.constant 0 : index
    %c0_59 = arith.constant 0 : index
    %95 = vector.load %arg2[%c0_57, %c2, %c0_58, %c0_59] : memref<1x25x4x256xf32, #tpu.memory_space<vmem>>, vector<1x1x4x256xf32>
    %96 = vector.shape_cast %95 : vector<1x1x4x256xf32> to vector<4x256xf32>
    %97 = vector.broadcast %94 : vector<1x256xf32> to vector<4x256xf32>
    %98 = arith.mulf %97, %96 : vector<4x256xf32>
    %99 = arith.addf %93, %98 : vector<4x256xf32>
    %100 = vector.extract_strided_slice %80 {offsets = [3, 0], sizes = [1, 256], strides = [1, 1]} : vector<25x256xf32> to vector<1x256xf32>
    %c0_60 = arith.constant 0 : index
    %c3 = arith.constant 3 : index
    %c0_61 = arith.constant 0 : index
    %c0_62 = arith.constant 0 : index
    %101 = vector.load %arg2[%c0_60, %c3, %c0_61, %c0_62] : memref<1x25x4x256xf32, #tpu.memory_space<vmem>>, vector<1x1x4x256xf32>
    %102 = vector.shape_cast %101 : vector<1x1x4x256xf32> to vector<4x256xf32>
    %103 = vector.broadcast %100 : vector<1x256xf32> to vector<4x256xf32>
    %104 = arith.mulf %103, %102 : vector<4x256xf32>
    %105 = arith.addf %99, %104 : vector<4x256xf32>
    %106 = vector.extract_strided_slice %80 {offsets = [4, 0], sizes = [1, 256], strides = [1, 1]} : vector<25x256xf32> to vector<1x256xf32>
    %c0_63 = arith.constant 0 : index
    %c4 = arith.constant 4 : index
    %c0_64 = arith.constant 0 : index
    %c0_65 = arith.constant 0 : index
    %107 = vector.load %arg2[%c0_63, %c4, %c0_64, %c0_65] : memref<1x25x4x256xf32, #tpu.memory_space<vmem>>, vector<1x1x4x256xf32>
    %108 = vector.shape_cast %107 : vector<1x1x4x256xf32> to vector<4x256xf32>
    %109 = vector.broadcast %106 : vector<1x256xf32> to vector<4x256xf32>
    %110 = arith.mulf %109, %108 : vector<4x256xf32>
    %111 = arith.addf %105, %110 : vector<4x256xf32>
    %112 = vector.extract_strided_slice %80 {offsets = [5, 0], sizes = [1, 256], strides = [1, 1]} : vector<25x256xf32> to vector<1x256xf32>
    %c0_66 = arith.constant 0 : index
    %c5 = arith.constant 5 : index
    %c0_67 = arith.constant 0 : index
    %c0_68 = arith.constant 0 : index
    %113 = vector.load %arg2[%c0_66, %c5, %c0_67, %c0_68] : memref<1x25x4x256xf32, #tpu.memory_space<vmem>>, vector<1x1x4x256xf32>
    %114 = vector.shape_cast %113 : vector<1x1x4x256xf32> to vector<4x256xf32>
    %115 = vector.broadcast %112 : vector<1x256xf32> to vector<4x256xf32>
    %116 = arith.mulf %115, %114 : vector<4x256xf32>
    %117 = arith.addf %111, %116 : vector<4x256xf32>
    %118 = vector.extract_strided_slice %80 {offsets = [6, 0], sizes = [1, 256], strides = [1, 1]} : vector<25x256xf32> to vector<1x256xf32>
    %c0_69 = arith.constant 0 : index
    %c6 = arith.constant 6 : index
    %c0_70 = arith.constant 0 : index
    %c0_71 = arith.constant 0 : index
    %119 = vector.load %arg2[%c0_69, %c6, %c0_70, %c0_71] : memref<1x25x4x256xf32, #tpu.memory_space<vmem>>, vector<1x1x4x256xf32>
    %120 = vector.shape_cast %119 : vector<1x1x4x256xf32> to vector<4x256xf32>
    %121 = vector.broadcast %118 : vector<1x256xf32> to vector<4x256xf32>
    %122 = arith.mulf %121, %120 : vector<4x256xf32>
    %123 = arith.addf %117, %122 : vector<4x256xf32>
    %124 = vector.extract_strided_slice %80 {offsets = [7, 0], sizes = [1, 256], strides = [1, 1]} : vector<25x256xf32> to vector<1x256xf32>
    %c0_72 = arith.constant 0 : index
    %c7_73 = arith.constant 7 : index
    %c0_74 = arith.constant 0 : index
    %c0_75 = arith.constant 0 : index
    %125 = vector.load %arg2[%c0_72, %c7_73, %c0_74, %c0_75] : memref<1x25x4x256xf32, #tpu.memory_space<vmem>>, vector<1x1x4x256xf32>
    %126 = vector.shape_cast %125 : vector<1x1x4x256xf32> to vector<4x256xf32>
    %127 = vector.broadcast %124 : vector<1x256xf32> to vector<4x256xf32>
    %128 = arith.mulf %127, %126 : vector<4x256xf32>
    %129 = arith.addf %123, %128 : vector<4x256xf32>
    %130 = vector.extract_strided_slice %80 {offsets = [8, 0], sizes = [1, 256], strides = [1, 1]} : vector<25x256xf32> to vector<1x256xf32>
    %c0_76 = arith.constant 0 : index
    %c8_77 = arith.constant 8 : index
    %c0_78 = arith.constant 0 : index
    %c0_79 = arith.constant 0 : index
    %131 = vector.load %arg2[%c0_76, %c8_77, %c0_78, %c0_79] : memref<1x25x4x256xf32, #tpu.memory_space<vmem>>, vector<1x1x4x256xf32>
    %132 = vector.shape_cast %131 : vector<1x1x4x256xf32> to vector<4x256xf32>
    %133 = vector.broadcast %130 : vector<1x256xf32> to vector<4x256xf32>
    %134 = arith.mulf %133, %132 : vector<4x256xf32>
    %135 = arith.addf %129, %134 : vector<4x256xf32>
    %136 = vector.extract_strided_slice %80 {offsets = [9, 0], sizes = [1, 256], strides = [1, 1]} : vector<25x256xf32> to vector<1x256xf32>
    %c0_80 = arith.constant 0 : index
    %c9_81 = arith.constant 9 : index
    %c0_82 = arith.constant 0 : index
    %c0_83 = arith.constant 0 : index
    %137 = vector.load %arg2[%c0_80, %c9_81, %c0_82, %c0_83] : memref<1x25x4x256xf32, #tpu.memory_space<vmem>>, vector<1x1x4x256xf32>
    %138 = vector.shape_cast %137 : vector<1x1x4x256xf32> to vector<4x256xf32>
    %139 = vector.broadcast %136 : vector<1x256xf32> to vector<4x256xf32>
    %140 = arith.mulf %139, %138 : vector<4x256xf32>
    %141 = arith.addf %135, %140 : vector<4x256xf32>
    %142 = vector.extract_strided_slice %80 {offsets = [10, 0], sizes = [1, 256], strides = [1, 1]} : vector<25x256xf32> to vector<1x256xf32>
    %c0_84 = arith.constant 0 : index
    %c10 = arith.constant 10 : index
    %c0_85 = arith.constant 0 : index
    %c0_86 = arith.constant 0 : index
    %143 = vector.load %arg2[%c0_84, %c10, %c0_85, %c0_86] : memref<1x25x4x256xf32, #tpu.memory_space<vmem>>, vector<1x1x4x256xf32>
    %144 = vector.shape_cast %143 : vector<1x1x4x256xf32> to vector<4x256xf32>
    %145 = vector.broadcast %142 : vector<1x256xf32> to vector<4x256xf32>
    %146 = arith.mulf %145, %144 : vector<4x256xf32>
    %147 = arith.addf %141, %146 : vector<4x256xf32>
    %148 = vector.extract_strided_slice %80 {offsets = [11, 0], sizes = [1, 256], strides = [1, 1]} : vector<25x256xf32> to vector<1x256xf32>
    %c0_87 = arith.constant 0 : index
    %c11 = arith.constant 11 : index
    %c0_88 = arith.constant 0 : index
    %c0_89 = arith.constant 0 : index
    %149 = vector.load %arg2[%c0_87, %c11, %c0_88, %c0_89] : memref<1x25x4x256xf32, #tpu.memory_space<vmem>>, vector<1x1x4x256xf32>
    %150 = vector.shape_cast %149 : vector<1x1x4x256xf32> to vector<4x256xf32>
    %151 = vector.broadcast %148 : vector<1x256xf32> to vector<4x256xf32>
    %152 = arith.mulf %151, %150 : vector<4x256xf32>
    %153 = arith.addf %147, %152 : vector<4x256xf32>
    %154 = vector.extract_strided_slice %80 {offsets = [12, 0], sizes = [1, 256], strides = [1, 1]} : vector<25x256xf32> to vector<1x256xf32>
    %c0_90 = arith.constant 0 : index
    %c12 = arith.constant 12 : index
    %c0_91 = arith.constant 0 : index
    %c0_92 = arith.constant 0 : index
    %155 = vector.load %arg2[%c0_90, %c12, %c0_91, %c0_92] : memref<1x25x4x256xf32, #tpu.memory_space<vmem>>, vector<1x1x4x256xf32>
    %156 = vector.shape_cast %155 : vector<1x1x4x256xf32> to vector<4x256xf32>
    %157 = vector.broadcast %154 : vector<1x256xf32> to vector<4x256xf32>
    %158 = arith.mulf %157, %156 : vector<4x256xf32>
    %159 = arith.addf %153, %158 : vector<4x256xf32>
    %160 = vector.extract_strided_slice %80 {offsets = [13, 0], sizes = [1, 256], strides = [1, 1]} : vector<25x256xf32> to vector<1x256xf32>
    %c0_93 = arith.constant 0 : index
    %c13 = arith.constant 13 : index
    %c0_94 = arith.constant 0 : index
    %c0_95 = arith.constant 0 : index
    %161 = vector.load %arg2[%c0_93, %c13, %c0_94, %c0_95] : memref<1x25x4x256xf32, #tpu.memory_space<vmem>>, vector<1x1x4x256xf32>
    %162 = vector.shape_cast %161 : vector<1x1x4x256xf32> to vector<4x256xf32>
    %163 = vector.broadcast %160 : vector<1x256xf32> to vector<4x256xf32>
    %164 = arith.mulf %163, %162 : vector<4x256xf32>
    %165 = arith.addf %159, %164 : vector<4x256xf32>
    %166 = vector.extract_strided_slice %80 {offsets = [14, 0], sizes = [1, 256], strides = [1, 1]} : vector<25x256xf32> to vector<1x256xf32>
    %c0_96 = arith.constant 0 : index
    %c14 = arith.constant 14 : index
    %c0_97 = arith.constant 0 : index
    %c0_98 = arith.constant 0 : index
    %167 = vector.load %arg2[%c0_96, %c14, %c0_97, %c0_98] : memref<1x25x4x256xf32, #tpu.memory_space<vmem>>, vector<1x1x4x256xf32>
    %168 = vector.shape_cast %167 : vector<1x1x4x256xf32> to vector<4x256xf32>
    %169 = vector.broadcast %166 : vector<1x256xf32> to vector<4x256xf32>
    %170 = arith.mulf %169, %168 : vector<4x256xf32>
    %171 = arith.addf %165, %170 : vector<4x256xf32>
    %172 = vector.extract_strided_slice %80 {offsets = [15, 0], sizes = [1, 256], strides = [1, 1]} : vector<25x256xf32> to vector<1x256xf32>
    %c0_99 = arith.constant 0 : index
    %c15 = arith.constant 15 : index
    %c0_100 = arith.constant 0 : index
    %c0_101 = arith.constant 0 : index
    %173 = vector.load %arg2[%c0_99, %c15, %c0_100, %c0_101] : memref<1x25x4x256xf32, #tpu.memory_space<vmem>>, vector<1x1x4x256xf32>
    %174 = vector.shape_cast %173 : vector<1x1x4x256xf32> to vector<4x256xf32>
    %175 = vector.broadcast %172 : vector<1x256xf32> to vector<4x256xf32>
    %176 = arith.mulf %175, %174 : vector<4x256xf32>
    %177 = arith.addf %171, %176 : vector<4x256xf32>
    %178 = vector.extract_strided_slice %80 {offsets = [16, 0], sizes = [1, 256], strides = [1, 1]} : vector<25x256xf32> to vector<1x256xf32>
    %c0_102 = arith.constant 0 : index
    %c16 = arith.constant 16 : index
    %c0_103 = arith.constant 0 : index
    %c0_104 = arith.constant 0 : index
    %179 = vector.load %arg2[%c0_102, %c16, %c0_103, %c0_104] : memref<1x25x4x256xf32, #tpu.memory_space<vmem>>, vector<1x1x4x256xf32>
    %180 = vector.shape_cast %179 : vector<1x1x4x256xf32> to vector<4x256xf32>
    %181 = vector.broadcast %178 : vector<1x256xf32> to vector<4x256xf32>
    %182 = arith.mulf %181, %180 : vector<4x256xf32>
    %183 = arith.addf %177, %182 : vector<4x256xf32>
    %184 = vector.extract_strided_slice %80 {offsets = [17, 0], sizes = [1, 256], strides = [1, 1]} : vector<25x256xf32> to vector<1x256xf32>
    %c0_105 = arith.constant 0 : index
    %c17 = arith.constant 17 : index
    %c0_106 = arith.constant 0 : index
    %c0_107 = arith.constant 0 : index
    %185 = vector.load %arg2[%c0_105, %c17, %c0_106, %c0_107] : memref<1x25x4x256xf32, #tpu.memory_space<vmem>>, vector<1x1x4x256xf32>
    %186 = vector.shape_cast %185 : vector<1x1x4x256xf32> to vector<4x256xf32>
    %187 = vector.broadcast %184 : vector<1x256xf32> to vector<4x256xf32>
    %188 = arith.mulf %187, %186 : vector<4x256xf32>
    %189 = arith.addf %183, %188 : vector<4x256xf32>
    %190 = vector.extract_strided_slice %80 {offsets = [18, 0], sizes = [1, 256], strides = [1, 1]} : vector<25x256xf32> to vector<1x256xf32>
    %c0_108 = arith.constant 0 : index
    %c18 = arith.constant 18 : index
    %c0_109 = arith.constant 0 : index
    %c0_110 = arith.constant 0 : index
    %191 = vector.load %arg2[%c0_108, %c18, %c0_109, %c0_110] : memref<1x25x4x256xf32, #tpu.memory_space<vmem>>, vector<1x1x4x256xf32>
    %192 = vector.shape_cast %191 : vector<1x1x4x256xf32> to vector<4x256xf32>
    %193 = vector.broadcast %190 : vector<1x256xf32> to vector<4x256xf32>
    %194 = arith.mulf %193, %192 : vector<4x256xf32>
    %195 = arith.addf %189, %194 : vector<4x256xf32>
    %196 = vector.extract_strided_slice %80 {offsets = [19, 0], sizes = [1, 256], strides = [1, 1]} : vector<25x256xf32> to vector<1x256xf32>
    %c0_111 = arith.constant 0 : index
    %c19 = arith.constant 19 : index
    %c0_112 = arith.constant 0 : index
    %c0_113 = arith.constant 0 : index
    %197 = vector.load %arg2[%c0_111, %c19, %c0_112, %c0_113] : memref<1x25x4x256xf32, #tpu.memory_space<vmem>>, vector<1x1x4x256xf32>
    %198 = vector.shape_cast %197 : vector<1x1x4x256xf32> to vector<4x256xf32>
    %199 = vector.broadcast %196 : vector<1x256xf32> to vector<4x256xf32>
    %200 = arith.mulf %199, %198 : vector<4x256xf32>
    %201 = arith.addf %195, %200 : vector<4x256xf32>
    %202 = vector.extract_strided_slice %80 {offsets = [20, 0], sizes = [1, 256], strides = [1, 1]} : vector<25x256xf32> to vector<1x256xf32>
    %c0_114 = arith.constant 0 : index
    %c20 = arith.constant 20 : index
    %c0_115 = arith.constant 0 : index
    %c0_116 = arith.constant 0 : index
    %203 = vector.load %arg2[%c0_114, %c20, %c0_115, %c0_116] : memref<1x25x4x256xf32, #tpu.memory_space<vmem>>, vector<1x1x4x256xf32>
    %204 = vector.shape_cast %203 : vector<1x1x4x256xf32> to vector<4x256xf32>
    %205 = vector.broadcast %202 : vector<1x256xf32> to vector<4x256xf32>
    %206 = arith.mulf %205, %204 : vector<4x256xf32>
    %207 = arith.addf %201, %206 : vector<4x256xf32>
    %208 = vector.extract_strided_slice %80 {offsets = [21, 0], sizes = [1, 256], strides = [1, 1]} : vector<25x256xf32> to vector<1x256xf32>
    %c0_117 = arith.constant 0 : index
    %c21 = arith.constant 21 : index
    %c0_118 = arith.constant 0 : index
    %c0_119 = arith.constant 0 : index
    %209 = vector.load %arg2[%c0_117, %c21, %c0_118, %c0_119] : memref<1x25x4x256xf32, #tpu.memory_space<vmem>>, vector<1x1x4x256xf32>
    %210 = vector.shape_cast %209 : vector<1x1x4x256xf32> to vector<4x256xf32>
    %211 = vector.broadcast %208 : vector<1x256xf32> to vector<4x256xf32>
    %212 = arith.mulf %211, %210 : vector<4x256xf32>
    %213 = arith.addf %207, %212 : vector<4x256xf32>
    %214 = vector.extract_strided_slice %80 {offsets = [22, 0], sizes = [1, 256], strides = [1, 1]} : vector<25x256xf32> to vector<1x256xf32>
    %c0_120 = arith.constant 0 : index
    %c22 = arith.constant 22 : index
    %c0_121 = arith.constant 0 : index
    %c0_122 = arith.constant 0 : index
    %215 = vector.load %arg2[%c0_120, %c22, %c0_121, %c0_122] : memref<1x25x4x256xf32, #tpu.memory_space<vmem>>, vector<1x1x4x256xf32>
    %216 = vector.shape_cast %215 : vector<1x1x4x256xf32> to vector<4x256xf32>
    %217 = vector.broadcast %214 : vector<1x256xf32> to vector<4x256xf32>
    %218 = arith.mulf %217, %216 : vector<4x256xf32>
    %219 = arith.addf %213, %218 : vector<4x256xf32>
    %220 = vector.extract_strided_slice %80 {offsets = [23, 0], sizes = [1, 256], strides = [1, 1]} : vector<25x256xf32> to vector<1x256xf32>
    %c0_123 = arith.constant 0 : index
    %c23_124 = arith.constant 23 : index
    %c0_125 = arith.constant 0 : index
    %c0_126 = arith.constant 0 : index
    %221 = vector.load %arg2[%c0_123, %c23_124, %c0_125, %c0_126] : memref<1x25x4x256xf32, #tpu.memory_space<vmem>>, vector<1x1x4x256xf32>
    %222 = vector.shape_cast %221 : vector<1x1x4x256xf32> to vector<4x256xf32>
    %223 = vector.broadcast %220 : vector<1x256xf32> to vector<4x256xf32>
    %224 = arith.mulf %223, %222 : vector<4x256xf32>
    %225 = arith.addf %219, %224 : vector<4x256xf32>
    %226 = vector.extract_strided_slice %80 {offsets = [24, 0], sizes = [1, 256], strides = [1, 1]} : vector<25x256xf32> to vector<1x256xf32>
    %c0_127 = arith.constant 0 : index
    %c24_128 = arith.constant 24 : index
    %c0_129 = arith.constant 0 : index
    %c0_130 = arith.constant 0 : index
    %227 = vector.load %arg2[%c0_127, %c24_128, %c0_129, %c0_130] : memref<1x25x4x256xf32, #tpu.memory_space<vmem>>, vector<1x1x4x256xf32>
    %228 = vector.shape_cast %227 : vector<1x1x4x256xf32> to vector<4x256xf32>
    %229 = vector.broadcast %226 : vector<1x256xf32> to vector<4x256xf32>
    %230 = arith.mulf %229, %228 : vector<4x256xf32>
    %231 = arith.addf %225, %230 : vector<4x256xf32>
    %232 = vector.extract_strided_slice %65 {offsets = [32, 0], sizes = [25, 256], strides = [1, 1]} : vector<128x256xf32> to vector<25x256xf32>
    %cst_131 = arith.constant dense<0xFF800000> : vector<256xf32>
    %233 = vector.multi_reduction <maximumf>, %232, %cst_131 [0] : vector<25x256xf32> to vector<256xf32>
    %234 = vector.shape_cast %233 : vector<256xf32> to vector<1x256xf32>
    %235 = vector.broadcast %234 : vector<1x256xf32> to vector<25x256xf32>
    %236 = arith.subf %232, %235 : vector<25x256xf32>
    %237 = math.exp %236 : vector<25x256xf32>
    %cst_132 = arith.constant dense<0.000000e+00> : vector<256xf32>
    %238 = vector.multi_reduction <add>, %237, %cst_132 [0] : vector<25x256xf32> to vector<256xf32>
    %239 = vector.shape_cast %238 : vector<256xf32> to vector<1x256xf32>
    %240 = tpu.reciprocal %239 {approx = true} : vector<1x256xf32> -> vector<1x256xf32>
    %241 = arith.mulf %239, %240 : vector<1x256xf32>
    %cst_133 = arith.constant 2.000000e+00 : f32
    %242 = vector.broadcast %cst_133 : f32 to vector<1x256xf32>
    %243 = arith.subf %242, %241 : vector<1x256xf32>
    %244 = arith.mulf %240, %243 : vector<1x256xf32>
    %245 = vector.broadcast %244 : vector<1x256xf32> to vector<25x256xf32>
    %246 = arith.mulf %237, %245 : vector<25x256xf32>
    %cst_134 = arith.constant 0.000000e+00 : f32
    %247 = vector.broadcast %cst_134 : f32 to vector<4x256xf32>
    %248 = vector.extract_strided_slice %246 {offsets = [0, 0], sizes = [1, 256], strides = [1, 1]} : vector<25x256xf32> to vector<1x256xf32>
    %c0_135 = arith.constant 0 : index
    %c0_136 = arith.constant 0 : index
    %c0_137 = arith.constant 0 : index
    %c0_138 = arith.constant 0 : index
    %249 = vector.load %arg2[%c0_135, %c0_136, %c0_137, %c0_138] : memref<1x25x4x256xf32, #tpu.memory_space<vmem>>, vector<1x1x4x256xf32>
    %250 = vector.shape_cast %249 : vector<1x1x4x256xf32> to vector<4x256xf32>
    %251 = vector.broadcast %248 : vector<1x256xf32> to vector<4x256xf32>
    %252 = arith.mulf %251, %250 : vector<4x256xf32>
    %253 = arith.addf %247, %252 : vector<4x256xf32>
    %254 = vector.extract_strided_slice %246 {offsets = [1, 0], sizes = [1, 256], strides = [1, 1]} : vector<25x256xf32> to vector<1x256xf32>
    %c0_139 = arith.constant 0 : index
    %c1_140 = arith.constant 1 : index
    %c0_141 = arith.constant 0 : index
    %c0_142 = arith.constant 0 : index
    %255 = vector.load %arg2[%c0_139, %c1_140, %c0_141, %c0_142] : memref<1x25x4x256xf32, #tpu.memory_space<vmem>>, vector<1x1x4x256xf32>
    %256 = vector.shape_cast %255 : vector<1x1x4x256xf32> to vector<4x256xf32>
    %257 = vector.broadcast %254 : vector<1x256xf32> to vector<4x256xf32>
    %258 = arith.mulf %257, %256 : vector<4x256xf32>
    %259 = arith.addf %253, %258 : vector<4x256xf32>
    %260 = vector.extract_strided_slice %246 {offsets = [2, 0], sizes = [1, 256], strides = [1, 1]} : vector<25x256xf32> to vector<1x256xf32>
    %c0_143 = arith.constant 0 : index
    %c2_144 = arith.constant 2 : index
    %c0_145 = arith.constant 0 : index
    %c0_146 = arith.constant 0 : index
    %261 = vector.load %arg2[%c0_143, %c2_144, %c0_145, %c0_146] : memref<1x25x4x256xf32, #tpu.memory_space<vmem>>, vector<1x1x4x256xf32>
    %262 = vector.shape_cast %261 : vector<1x1x4x256xf32> to vector<4x256xf32>
    %263 = vector.broadcast %260 : vector<1x256xf32> to vector<4x256xf32>
    %264 = arith.mulf %263, %262 : vector<4x256xf32>
    %265 = arith.addf %259, %264 : vector<4x256xf32>
    %266 = vector.extract_strided_slice %246 {offsets = [3, 0], sizes = [1, 256], strides = [1, 1]} : vector<25x256xf32> to vector<1x256xf32>
    %c0_147 = arith.constant 0 : index
    %c3_148 = arith.constant 3 : index
    %c0_149 = arith.constant 0 : index
    %c0_150 = arith.constant 0 : index
    %267 = vector.load %arg2[%c0_147, %c3_148, %c0_149, %c0_150] : memref<1x25x4x256xf32, #tpu.memory_space<vmem>>, vector<1x1x4x256xf32>
    %268 = vector.shape_cast %267 : vector<1x1x4x256xf32> to vector<4x256xf32>
    %269 = vector.broadcast %266 : vector<1x256xf32> to vector<4x256xf32>
    %270 = arith.mulf %269, %268 : vector<4x256xf32>
    %271 = arith.addf %265, %270 : vector<4x256xf32>
    %272 = vector.extract_strided_slice %246 {offsets = [4, 0], sizes = [1, 256], strides = [1, 1]} : vector<25x256xf32> to vector<1x256xf32>
    %c0_151 = arith.constant 0 : index
    %c4_152 = arith.constant 4 : index
    %c0_153 = arith.constant 0 : index
    %c0_154 = arith.constant 0 : index
    %273 = vector.load %arg2[%c0_151, %c4_152, %c0_153, %c0_154] : memref<1x25x4x256xf32, #tpu.memory_space<vmem>>, vector<1x1x4x256xf32>
    %274 = vector.shape_cast %273 : vector<1x1x4x256xf32> to vector<4x256xf32>
    %275 = vector.broadcast %272 : vector<1x256xf32> to vector<4x256xf32>
    %276 = arith.mulf %275, %274 : vector<4x256xf32>
    %277 = arith.addf %271, %276 : vector<4x256xf32>
    %278 = vector.extract_strided_slice %246 {offsets = [5, 0], sizes = [1, 256], strides = [1, 1]} : vector<25x256xf32> to vector<1x256xf32>
    %c0_155 = arith.constant 0 : index
    %c5_156 = arith.constant 5 : index
    %c0_157 = arith.constant 0 : index
    %c0_158 = arith.constant 0 : index
    %279 = vector.load %arg2[%c0_155, %c5_156, %c0_157, %c0_158] : memref<1x25x4x256xf32, #tpu.memory_space<vmem>>, vector<1x1x4x256xf32>
    %280 = vector.shape_cast %279 : vector<1x1x4x256xf32> to vector<4x256xf32>
    %281 = vector.broadcast %278 : vector<1x256xf32> to vector<4x256xf32>
    %282 = arith.mulf %281, %280 : vector<4x256xf32>
    %283 = arith.addf %277, %282 : vector<4x256xf32>
    %284 = vector.extract_strided_slice %246 {offsets = [6, 0], sizes = [1, 256], strides = [1, 1]} : vector<25x256xf32> to vector<1x256xf32>
    %c0_159 = arith.constant 0 : index
    %c6_160 = arith.constant 6 : index
    %c0_161 = arith.constant 0 : index
    %c0_162 = arith.constant 0 : index
    %285 = vector.load %arg2[%c0_159, %c6_160, %c0_161, %c0_162] : memref<1x25x4x256xf32, #tpu.memory_space<vmem>>, vector<1x1x4x256xf32>
    %286 = vector.shape_cast %285 : vector<1x1x4x256xf32> to vector<4x256xf32>
    %287 = vector.broadcast %284 : vector<1x256xf32> to vector<4x256xf32>
    %288 = arith.mulf %287, %286 : vector<4x256xf32>
    %289 = arith.addf %283, %288 : vector<4x256xf32>
    %290 = vector.extract_strided_slice %246 {offsets = [7, 0], sizes = [1, 256], strides = [1, 1]} : vector<25x256xf32> to vector<1x256xf32>
    %c0_163 = arith.constant 0 : index
    %c7_164 = arith.constant 7 : index
    %c0_165 = arith.constant 0 : index
    %c0_166 = arith.constant 0 : index
    %291 = vector.load %arg2[%c0_163, %c7_164, %c0_165, %c0_166] : memref<1x25x4x256xf32, #tpu.memory_space<vmem>>, vector<1x1x4x256xf32>
    %292 = vector.shape_cast %291 : vector<1x1x4x256xf32> to vector<4x256xf32>
    %293 = vector.broadcast %290 : vector<1x256xf32> to vector<4x256xf32>
    %294 = arith.mulf %293, %292 : vector<4x256xf32>
    %295 = arith.addf %289, %294 : vector<4x256xf32>
    %296 = vector.extract_strided_slice %246 {offsets = [8, 0], sizes = [1, 256], strides = [1, 1]} : vector<25x256xf32> to vector<1x256xf32>
    %c0_167 = arith.constant 0 : index
    %c8_168 = arith.constant 8 : index
    %c0_169 = arith.constant 0 : index
    %c0_170 = arith.constant 0 : index
    %297 = vector.load %arg2[%c0_167, %c8_168, %c0_169, %c0_170] : memref<1x25x4x256xf32, #tpu.memory_space<vmem>>, vector<1x1x4x256xf32>
    %298 = vector.shape_cast %297 : vector<1x1x4x256xf32> to vector<4x256xf32>
    %299 = vector.broadcast %296 : vector<1x256xf32> to vector<4x256xf32>
    %300 = arith.mulf %299, %298 : vector<4x256xf32>
    %301 = arith.addf %295, %300 : vector<4x256xf32>
    %302 = vector.extract_strided_slice %246 {offsets = [9, 0], sizes = [1, 256], strides = [1, 1]} : vector<25x256xf32> to vector<1x256xf32>
    %c0_171 = arith.constant 0 : index
    %c9_172 = arith.constant 9 : index
    %c0_173 = arith.constant 0 : index
    %c0_174 = arith.constant 0 : index
    %303 = vector.load %arg2[%c0_171, %c9_172, %c0_173, %c0_174] : memref<1x25x4x256xf32, #tpu.memory_space<vmem>>, vector<1x1x4x256xf32>
    %304 = vector.shape_cast %303 : vector<1x1x4x256xf32> to vector<4x256xf32>
    %305 = vector.broadcast %302 : vector<1x256xf32> to vector<4x256xf32>
    %306 = arith.mulf %305, %304 : vector<4x256xf32>
    %307 = arith.addf %301, %306 : vector<4x256xf32>
    %308 = vector.extract_strided_slice %246 {offsets = [10, 0], sizes = [1, 256], strides = [1, 1]} : vector<25x256xf32> to vector<1x256xf32>
    %c0_175 = arith.constant 0 : index
    %c10_176 = arith.constant 10 : index
    %c0_177 = arith.constant 0 : index
    %c0_178 = arith.constant 0 : index
    %309 = vector.load %arg2[%c0_175, %c10_176, %c0_177, %c0_178] : memref<1x25x4x256xf32, #tpu.memory_space<vmem>>, vector<1x1x4x256xf32>
    %310 = vector.shape_cast %309 : vector<1x1x4x256xf32> to vector<4x256xf32>
    %311 = vector.broadcast %308 : vector<1x256xf32> to vector<4x256xf32>
    %312 = arith.mulf %311, %310 : vector<4x256xf32>
    %313 = arith.addf %307, %312 : vector<4x256xf32>
    %314 = vector.extract_strided_slice %246 {offsets = [11, 0], sizes = [1, 256], strides = [1, 1]} : vector<25x256xf32> to vector<1x256xf32>
    %c0_179 = arith.constant 0 : index
    %c11_180 = arith.constant 11 : index
    %c0_181 = arith.constant 0 : index
    %c0_182 = arith.constant 0 : index
    %315 = vector.load %arg2[%c0_179, %c11_180, %c0_181, %c0_182] : memref<1x25x4x256xf32, #tpu.memory_space<vmem>>, vector<1x1x4x256xf32>
    %316 = vector.shape_cast %315 : vector<1x1x4x256xf32> to vector<4x256xf32>
    %317 = vector.broadcast %314 : vector<1x256xf32> to vector<4x256xf32>
    %318 = arith.mulf %317, %316 : vector<4x256xf32>
    %319 = arith.addf %313, %318 : vector<4x256xf32>
    %320 = vector.extract_strided_slice %246 {offsets = [12, 0], sizes = [1, 256], strides = [1, 1]} : vector<25x256xf32> to vector<1x256xf32>
    %c0_183 = arith.constant 0 : index
    %c12_184 = arith.constant 12 : index
    %c0_185 = arith.constant 0 : index
    %c0_186 = arith.constant 0 : index
    %321 = vector.load %arg2[%c0_183, %c12_184, %c0_185, %c0_186] : memref<1x25x4x256xf32, #tpu.memory_space<vmem>>, vector<1x1x4x256xf32>
    %322 = vector.shape_cast %321 : vector<1x1x4x256xf32> to vector<4x256xf32>
    %323 = vector.broadcast %320 : vector<1x256xf32> to vector<4x256xf32>
    %324 = arith.mulf %323, %322 : vector<4x256xf32>
    %325 = arith.addf %319, %324 : vector<4x256xf32>
    %326 = vector.extract_strided_slice %246 {offsets = [13, 0], sizes = [1, 256], strides = [1, 1]} : vector<25x256xf32> to vector<1x256xf32>
    %c0_187 = arith.constant 0 : index
    %c13_188 = arith.constant 13 : index
    %c0_189 = arith.constant 0 : index
    %c0_190 = arith.constant 0 : index
    %327 = vector.load %arg2[%c0_187, %c13_188, %c0_189, %c0_190] : memref<1x25x4x256xf32, #tpu.memory_space<vmem>>, vector<1x1x4x256xf32>
    %328 = vector.shape_cast %327 : vector<1x1x4x256xf32> to vector<4x256xf32>
    %329 = vector.broadcast %326 : vector<1x256xf32> to vector<4x256xf32>
    %330 = arith.mulf %329, %328 : vector<4x256xf32>
    %331 = arith.addf %325, %330 : vector<4x256xf32>
    %332 = vector.extract_strided_slice %246 {offsets = [14, 0], sizes = [1, 256], strides = [1, 1]} : vector<25x256xf32> to vector<1x256xf32>
    %c0_191 = arith.constant 0 : index
    %c14_192 = arith.constant 14 : index
    %c0_193 = arith.constant 0 : index
    %c0_194 = arith.constant 0 : index
    %333 = vector.load %arg2[%c0_191, %c14_192, %c0_193, %c0_194] : memref<1x25x4x256xf32, #tpu.memory_space<vmem>>, vector<1x1x4x256xf32>
    %334 = vector.shape_cast %333 : vector<1x1x4x256xf32> to vector<4x256xf32>
    %335 = vector.broadcast %332 : vector<1x256xf32> to vector<4x256xf32>
    %336 = arith.mulf %335, %334 : vector<4x256xf32>
    %337 = arith.addf %331, %336 : vector<4x256xf32>
    %338 = vector.extract_strided_slice %246 {offsets = [15, 0], sizes = [1, 256], strides = [1, 1]} : vector<25x256xf32> to vector<1x256xf32>
    %c0_195 = arith.constant 0 : index
    %c15_196 = arith.constant 15 : index
    %c0_197 = arith.constant 0 : index
    %c0_198 = arith.constant 0 : index
    %339 = vector.load %arg2[%c0_195, %c15_196, %c0_197, %c0_198] : memref<1x25x4x256xf32, #tpu.memory_space<vmem>>, vector<1x1x4x256xf32>
    %340 = vector.shape_cast %339 : vector<1x1x4x256xf32> to vector<4x256xf32>
    %341 = vector.broadcast %338 : vector<1x256xf32> to vector<4x256xf32>
    %342 = arith.mulf %341, %340 : vector<4x256xf32>
    %343 = arith.addf %337, %342 : vector<4x256xf32>
    %344 = vector.extract_strided_slice %246 {offsets = [16, 0], sizes = [1, 256], strides = [1, 1]} : vector<25x256xf32> to vector<1x256xf32>
    %c0_199 = arith.constant 0 : index
    %c16_200 = arith.constant 16 : index
    %c0_201 = arith.constant 0 : index
    %c0_202 = arith.constant 0 : index
    %345 = vector.load %arg2[%c0_199, %c16_200, %c0_201, %c0_202] : memref<1x25x4x256xf32, #tpu.memory_space<vmem>>, vector<1x1x4x256xf32>
    %346 = vector.shape_cast %345 : vector<1x1x4x256xf32> to vector<4x256xf32>
    %347 = vector.broadcast %344 : vector<1x256xf32> to vector<4x256xf32>
    %348 = arith.mulf %347, %346 : vector<4x256xf32>
    %349 = arith.addf %343, %348 : vector<4x256xf32>
    %350 = vector.extract_strided_slice %246 {offsets = [17, 0], sizes = [1, 256], strides = [1, 1]} : vector<25x256xf32> to vector<1x256xf32>
    %c0_203 = arith.constant 0 : index
    %c17_204 = arith.constant 17 : index
    %c0_205 = arith.constant 0 : index
    %c0_206 = arith.constant 0 : index
    %351 = vector.load %arg2[%c0_203, %c17_204, %c0_205, %c0_206] : memref<1x25x4x256xf32, #tpu.memory_space<vmem>>, vector<1x1x4x256xf32>
    %352 = vector.shape_cast %351 : vector<1x1x4x256xf32> to vector<4x256xf32>
    %353 = vector.broadcast %350 : vector<1x256xf32> to vector<4x256xf32>
    %354 = arith.mulf %353, %352 : vector<4x256xf32>
    %355 = arith.addf %349, %354 : vector<4x256xf32>
    %356 = vector.extract_strided_slice %246 {offsets = [18, 0], sizes = [1, 256], strides = [1, 1]} : vector<25x256xf32> to vector<1x256xf32>
    %c0_207 = arith.constant 0 : index
    %c18_208 = arith.constant 18 : index
    %c0_209 = arith.constant 0 : index
    %c0_210 = arith.constant 0 : index
    %357 = vector.load %arg2[%c0_207, %c18_208, %c0_209, %c0_210] : memref<1x25x4x256xf32, #tpu.memory_space<vmem>>, vector<1x1x4x256xf32>
    %358 = vector.shape_cast %357 : vector<1x1x4x256xf32> to vector<4x256xf32>
    %359 = vector.broadcast %356 : vector<1x256xf32> to vector<4x256xf32>
    %360 = arith.mulf %359, %358 : vector<4x256xf32>
    %361 = arith.addf %355, %360 : vector<4x256xf32>
    %362 = vector.extract_strided_slice %246 {offsets = [19, 0], sizes = [1, 256], strides = [1, 1]} : vector<25x256xf32> to vector<1x256xf32>
    %c0_211 = arith.constant 0 : index
    %c19_212 = arith.constant 19 : index
    %c0_213 = arith.constant 0 : index
    %c0_214 = arith.constant 0 : index
    %363 = vector.load %arg2[%c0_211, %c19_212, %c0_213, %c0_214] : memref<1x25x4x256xf32, #tpu.memory_space<vmem>>, vector<1x1x4x256xf32>
    %364 = vector.shape_cast %363 : vector<1x1x4x256xf32> to vector<4x256xf32>
    %365 = vector.broadcast %362 : vector<1x256xf32> to vector<4x256xf32>
    %366 = arith.mulf %365, %364 : vector<4x256xf32>
    %367 = arith.addf %361, %366 : vector<4x256xf32>
    %368 = vector.extract_strided_slice %246 {offsets = [20, 0], sizes = [1, 256], strides = [1, 1]} : vector<25x256xf32> to vector<1x256xf32>
    %c0_215 = arith.constant 0 : index
    %c20_216 = arith.constant 20 : index
    %c0_217 = arith.constant 0 : index
    %c0_218 = arith.constant 0 : index
    %369 = vector.load %arg2[%c0_215, %c20_216, %c0_217, %c0_218] : memref<1x25x4x256xf32, #tpu.memory_space<vmem>>, vector<1x1x4x256xf32>
    %370 = vector.shape_cast %369 : vector<1x1x4x256xf32> to vector<4x256xf32>
    %371 = vector.broadcast %368 : vector<1x256xf32> to vector<4x256xf32>
    %372 = arith.mulf %371, %370 : vector<4x256xf32>
    %373 = arith.addf %367, %372 : vector<4x256xf32>
    %374 = vector.extract_strided_slice %246 {offsets = [21, 0], sizes = [1, 256], strides = [1, 1]} : vector<25x256xf32> to vector<1x256xf32>
    %c0_219 = arith.constant 0 : index
    %c21_220 = arith.constant 21 : index
    %c0_221 = arith.constant 0 : index
    %c0_222 = arith.constant 0 : index
    %375 = vector.load %arg2[%c0_219, %c21_220, %c0_221, %c0_222] : memref<1x25x4x256xf32, #tpu.memory_space<vmem>>, vector<1x1x4x256xf32>
    %376 = vector.shape_cast %375 : vector<1x1x4x256xf32> to vector<4x256xf32>
    %377 = vector.broadcast %374 : vector<1x256xf32> to vector<4x256xf32>
    %378 = arith.mulf %377, %376 : vector<4x256xf32>
    %379 = arith.addf %373, %378 : vector<4x256xf32>
    %380 = vector.extract_strided_slice %246 {offsets = [22, 0], sizes = [1, 256], strides = [1, 1]} : vector<25x256xf32> to vector<1x256xf32>
    %c0_223 = arith.constant 0 : index
    %c22_224 = arith.constant 22 : index
    %c0_225 = arith.constant 0 : index
    %c0_226 = arith.constant 0 : index
    %381 = vector.load %arg2[%c0_223, %c22_224, %c0_225, %c0_226] : memref<1x25x4x256xf32, #tpu.memory_space<vmem>>, vector<1x1x4x256xf32>
    %382 = vector.shape_cast %381 : vector<1x1x4x256xf32> to vector<4x256xf32>
    %383 = vector.broadcast %380 : vector<1x256xf32> to vector<4x256xf32>
    %384 = arith.mulf %383, %382 : vector<4x256xf32>
    %385 = arith.addf %379, %384 : vector<4x256xf32>
    %386 = vector.extract_strided_slice %246 {offsets = [23, 0], sizes = [1, 256], strides = [1, 1]} : vector<25x256xf32> to vector<1x256xf32>
    %c0_227 = arith.constant 0 : index
    %c23_228 = arith.constant 23 : index
    %c0_229 = arith.constant 0 : index
    %c0_230 = arith.constant 0 : index
    %387 = vector.load %arg2[%c0_227, %c23_228, %c0_229, %c0_230] : memref<1x25x4x256xf32, #tpu.memory_space<vmem>>, vector<1x1x4x256xf32>
    %388 = vector.shape_cast %387 : vector<1x1x4x256xf32> to vector<4x256xf32>
    %389 = vector.broadcast %386 : vector<1x256xf32> to vector<4x256xf32>
    %390 = arith.mulf %389, %388 : vector<4x256xf32>
    %391 = arith.addf %385, %390 : vector<4x256xf32>
    %392 = vector.extract_strided_slice %246 {offsets = [24, 0], sizes = [1, 256], strides = [1, 1]} : vector<25x256xf32> to vector<1x256xf32>
    %c0_231 = arith.constant 0 : index
    %c24_232 = arith.constant 24 : index
    %c0_233 = arith.constant 0 : index
    %c0_234 = arith.constant 0 : index
    %393 = vector.load %arg2[%c0_231, %c24_232, %c0_233, %c0_234] : memref<1x25x4x256xf32, #tpu.memory_space<vmem>>, vector<1x1x4x256xf32>
    %394 = vector.shape_cast %393 : vector<1x1x4x256xf32> to vector<4x256xf32>
    %395 = vector.broadcast %392 : vector<1x256xf32> to vector<4x256xf32>
    %396 = arith.mulf %395, %394 : vector<4x256xf32>
    %397 = arith.addf %391, %396 : vector<4x256xf32>
    %398 = vector.extract_strided_slice %65 {offsets = [64, 0], sizes = [25, 256], strides = [1, 1]} : vector<128x256xf32> to vector<25x256xf32>
    %cst_235 = arith.constant dense<0xFF800000> : vector<256xf32>
    %399 = vector.multi_reduction <maximumf>, %398, %cst_235 [0] : vector<25x256xf32> to vector<256xf32>
    %400 = vector.shape_cast %399 : vector<256xf32> to vector<1x256xf32>
    %401 = vector.broadcast %400 : vector<1x256xf32> to vector<25x256xf32>
    %402 = arith.subf %398, %401 : vector<25x256xf32>
    %403 = math.exp %402 : vector<25x256xf32>
    %cst_236 = arith.constant dense<0.000000e+00> : vector<256xf32>
    %404 = vector.multi_reduction <add>, %403, %cst_236 [0] : vector<25x256xf32> to vector<256xf32>
    %405 = vector.shape_cast %404 : vector<256xf32> to vector<1x256xf32>
    %406 = tpu.reciprocal %405 {approx = true} : vector<1x256xf32> -> vector<1x256xf32>
    %407 = arith.mulf %405, %406 : vector<1x256xf32>
    %cst_237 = arith.constant 2.000000e+00 : f32
    %408 = vector.broadcast %cst_237 : f32 to vector<1x256xf32>
    %409 = arith.subf %408, %407 : vector<1x256xf32>
    %410 = arith.mulf %406, %409 : vector<1x256xf32>
    %411 = vector.broadcast %410 : vector<1x256xf32> to vector<25x256xf32>
    %412 = arith.mulf %403, %411 : vector<25x256xf32>
    %cst_238 = arith.constant 0.000000e+00 : f32
    %413 = vector.broadcast %cst_238 : f32 to vector<4x256xf32>
    %414 = vector.extract_strided_slice %412 {offsets = [0, 0], sizes = [1, 256], strides = [1, 1]} : vector<25x256xf32> to vector<1x256xf32>
    %c0_239 = arith.constant 0 : index
    %c0_240 = arith.constant 0 : index
    %c0_241 = arith.constant 0 : index
    %c0_242 = arith.constant 0 : index
    %415 = vector.load %arg2[%c0_239, %c0_240, %c0_241, %c0_242] : memref<1x25x4x256xf32, #tpu.memory_space<vmem>>, vector<1x1x4x256xf32>
    %416 = vector.shape_cast %415 : vector<1x1x4x256xf32> to vector<4x256xf32>
    %417 = vector.broadcast %414 : vector<1x256xf32> to vector<4x256xf32>
    %418 = arith.mulf %417, %416 : vector<4x256xf32>
    %419 = arith.addf %413, %418 : vector<4x256xf32>
    %420 = vector.extract_strided_slice %412 {offsets = [1, 0], sizes = [1, 256], strides = [1, 1]} : vector<25x256xf32> to vector<1x256xf32>
    %c0_243 = arith.constant 0 : index
    %c1_244 = arith.constant 1 : index
    %c0_245 = arith.constant 0 : index
    %c0_246 = arith.constant 0 : index
    %421 = vector.load %arg2[%c0_243, %c1_244, %c0_245, %c0_246] : memref<1x25x4x256xf32, #tpu.memory_space<vmem>>, vector<1x1x4x256xf32>
    %422 = vector.shape_cast %421 : vector<1x1x4x256xf32> to vector<4x256xf32>
    %423 = vector.broadcast %420 : vector<1x256xf32> to vector<4x256xf32>
    %424 = arith.mulf %423, %422 : vector<4x256xf32>
    %425 = arith.addf %419, %424 : vector<4x256xf32>
    %426 = vector.extract_strided_slice %412 {offsets = [2, 0], sizes = [1, 256], strides = [1, 1]} : vector<25x256xf32> to vector<1x256xf32>
    %c0_247 = arith.constant 0 : index
    %c2_248 = arith.constant 2 : index
    %c0_249 = arith.constant 0 : index
    %c0_250 = arith.constant 0 : index
    %427 = vector.load %arg2[%c0_247, %c2_248, %c0_249, %c0_250] : memref<1x25x4x256xf32, #tpu.memory_space<vmem>>, vector<1x1x4x256xf32>
    %428 = vector.shape_cast %427 : vector<1x1x4x256xf32> to vector<4x256xf32>
    %429 = vector.broadcast %426 : vector<1x256xf32> to vector<4x256xf32>
    %430 = arith.mulf %429, %428 : vector<4x256xf32>
    %431 = arith.addf %425, %430 : vector<4x256xf32>
    %432 = vector.extract_strided_slice %412 {offsets = [3, 0], sizes = [1, 256], strides = [1, 1]} : vector<25x256xf32> to vector<1x256xf32>
    %c0_251 = arith.constant 0 : index
    %c3_252 = arith.constant 3 : index
    %c0_253 = arith.constant 0 : index
    %c0_254 = arith.constant 0 : index
    %433 = vector.load %arg2[%c0_251, %c3_252, %c0_253, %c0_254] : memref<1x25x4x256xf32, #tpu.memory_space<vmem>>, vector<1x1x4x256xf32>
    %434 = vector.shape_cast %433 : vector<1x1x4x256xf32> to vector<4x256xf32>
    %435 = vector.broadcast %432 : vector<1x256xf32> to vector<4x256xf32>
    %436 = arith.mulf %435, %434 : vector<4x256xf32>
    %437 = arith.addf %431, %436 : vector<4x256xf32>
    %438 = vector.extract_strided_slice %412 {offsets = [4, 0], sizes = [1, 256], strides = [1, 1]} : vector<25x256xf32> to vector<1x256xf32>
    %c0_255 = arith.constant 0 : index
    %c4_256 = arith.constant 4 : index
    %c0_257 = arith.constant 0 : index
    %c0_258 = arith.constant 0 : index
    %439 = vector.load %arg2[%c0_255, %c4_256, %c0_257, %c0_258] : memref<1x25x4x256xf32, #tpu.memory_space<vmem>>, vector<1x1x4x256xf32>
    %440 = vector.shape_cast %439 : vector<1x1x4x256xf32> to vector<4x256xf32>
    %441 = vector.broadcast %438 : vector<1x256xf32> to vector<4x256xf32>
    %442 = arith.mulf %441, %440 : vector<4x256xf32>
    %443 = arith.addf %437, %442 : vector<4x256xf32>
    %444 = vector.extract_strided_slice %412 {offsets = [5, 0], sizes = [1, 256], strides = [1, 1]} : vector<25x256xf32> to vector<1x256xf32>
    %c0_259 = arith.constant 0 : index
    %c5_260 = arith.constant 5 : index
    %c0_261 = arith.constant 0 : index
    %c0_262 = arith.constant 0 : index
    %445 = vector.load %arg2[%c0_259, %c5_260, %c0_261, %c0_262] : memref<1x25x4x256xf32, #tpu.memory_space<vmem>>, vector<1x1x4x256xf32>
    %446 = vector.shape_cast %445 : vector<1x1x4x256xf32> to vector<4x256xf32>
    %447 = vector.broadcast %444 : vector<1x256xf32> to vector<4x256xf32>
    %448 = arith.mulf %447, %446 : vector<4x256xf32>
    %449 = arith.addf %443, %448 : vector<4x256xf32>
    %450 = vector.extract_strided_slice %412 {offsets = [6, 0], sizes = [1, 256], strides = [1, 1]} : vector<25x256xf32> to vector<1x256xf32>
    %c0_263 = arith.constant 0 : index
    %c6_264 = arith.constant 6 : index
    %c0_265 = arith.constant 0 : index
    %c0_266 = arith.constant 0 : index
    %451 = vector.load %arg2[%c0_263, %c6_264, %c0_265, %c0_266] : memref<1x25x4x256xf32, #tpu.memory_space<vmem>>, vector<1x1x4x256xf32>
    %452 = vector.shape_cast %451 : vector<1x1x4x256xf32> to vector<4x256xf32>
    %453 = vector.broadcast %450 : vector<1x256xf32> to vector<4x256xf32>
    %454 = arith.mulf %453, %452 : vector<4x256xf32>
    %455 = arith.addf %449, %454 : vector<4x256xf32>
    %456 = vector.extract_strided_slice %412 {offsets = [7, 0], sizes = [1, 256], strides = [1, 1]} : vector<25x256xf32> to vector<1x256xf32>
    %c0_267 = arith.constant 0 : index
    %c7_268 = arith.constant 7 : index
    %c0_269 = arith.constant 0 : index
    %c0_270 = arith.constant 0 : index
    %457 = vector.load %arg2[%c0_267, %c7_268, %c0_269, %c0_270] : memref<1x25x4x256xf32, #tpu.memory_space<vmem>>, vector<1x1x4x256xf32>
    %458 = vector.shape_cast %457 : vector<1x1x4x256xf32> to vector<4x256xf32>
    %459 = vector.broadcast %456 : vector<1x256xf32> to vector<4x256xf32>
    %460 = arith.mulf %459, %458 : vector<4x256xf32>
    %461 = arith.addf %455, %460 : vector<4x256xf32>
    %462 = vector.extract_strided_slice %412 {offsets = [8, 0], sizes = [1, 256], strides = [1, 1]} : vector<25x256xf32> to vector<1x256xf32>
    %c0_271 = arith.constant 0 : index
    %c8_272 = arith.constant 8 : index
    %c0_273 = arith.constant 0 : index
    %c0_274 = arith.constant 0 : index
    %463 = vector.load %arg2[%c0_271, %c8_272, %c0_273, %c0_274] : memref<1x25x4x256xf32, #tpu.memory_space<vmem>>, vector<1x1x4x256xf32>
    %464 = vector.shape_cast %463 : vector<1x1x4x256xf32> to vector<4x256xf32>
    %465 = vector.broadcast %462 : vector<1x256xf32> to vector<4x256xf32>
    %466 = arith.mulf %465, %464 : vector<4x256xf32>
    %467 = arith.addf %461, %466 : vector<4x256xf32>
    %468 = vector.extract_strided_slice %412 {offsets = [9, 0], sizes = [1, 256], strides = [1, 1]} : vector<25x256xf32> to vector<1x256xf32>
    %c0_275 = arith.constant 0 : index
    %c9_276 = arith.constant 9 : index
    %c0_277 = arith.constant 0 : index
    %c0_278 = arith.constant 0 : index
    %469 = vector.load %arg2[%c0_275, %c9_276, %c0_277, %c0_278] : memref<1x25x4x256xf32, #tpu.memory_space<vmem>>, vector<1x1x4x256xf32>
    %470 = vector.shape_cast %469 : vector<1x1x4x256xf32> to vector<4x256xf32>
    %471 = vector.broadcast %468 : vector<1x256xf32> to vector<4x256xf32>
    %472 = arith.mulf %471, %470 : vector<4x256xf32>
    %473 = arith.addf %467, %472 : vector<4x256xf32>
    %474 = vector.extract_strided_slice %412 {offsets = [10, 0], sizes = [1, 256], strides = [1, 1]} : vector<25x256xf32> to vector<1x256xf32>
    %c0_279 = arith.constant 0 : index
    %c10_280 = arith.constant 10 : index
    %c0_281 = arith.constant 0 : index
    %c0_282 = arith.constant 0 : index
    %475 = vector.load %arg2[%c0_279, %c10_280, %c0_281, %c0_282] : memref<1x25x4x256xf32, #tpu.memory_space<vmem>>, vector<1x1x4x256xf32>
    %476 = vector.shape_cast %475 : vector<1x1x4x256xf32> to vector<4x256xf32>
    %477 = vector.broadcast %474 : vector<1x256xf32> to vector<4x256xf32>
    %478 = arith.mulf %477, %476 : vector<4x256xf32>
    %479 = arith.addf %473, %478 : vector<4x256xf32>
    %480 = vector.extract_strided_slice %412 {offsets = [11, 0], sizes = [1, 256], strides = [1, 1]} : vector<25x256xf32> to vector<1x256xf32>
    %c0_283 = arith.constant 0 : index
    %c11_284 = arith.constant 11 : index
    %c0_285 = arith.constant 0 : index
    %c0_286 = arith.constant 0 : index
    %481 = vector.load %arg2[%c0_283, %c11_284, %c0_285, %c0_286] : memref<1x25x4x256xf32, #tpu.memory_space<vmem>>, vector<1x1x4x256xf32>
    %482 = vector.shape_cast %481 : vector<1x1x4x256xf32> to vector<4x256xf32>
    %483 = vector.broadcast %480 : vector<1x256xf32> to vector<4x256xf32>
    %484 = arith.mulf %483, %482 : vector<4x256xf32>
    %485 = arith.addf %479, %484 : vector<4x256xf32>
    %486 = vector.extract_strided_slice %412 {offsets = [12, 0], sizes = [1, 256], strides = [1, 1]} : vector<25x256xf32> to vector<1x256xf32>
    %c0_287 = arith.constant 0 : index
    %c12_288 = arith.constant 12 : index
    %c0_289 = arith.constant 0 : index
    %c0_290 = arith.constant 0 : index
    %487 = vector.load %arg2[%c0_287, %c12_288, %c0_289, %c0_290] : memref<1x25x4x256xf32, #tpu.memory_space<vmem>>, vector<1x1x4x256xf32>
    %488 = vector.shape_cast %487 : vector<1x1x4x256xf32> to vector<4x256xf32>
    %489 = vector.broadcast %486 : vector<1x256xf32> to vector<4x256xf32>
    %490 = arith.mulf %489, %488 : vector<4x256xf32>
    %491 = arith.addf %485, %490 : vector<4x256xf32>
    %492 = vector.extract_strided_slice %412 {offsets = [13, 0], sizes = [1, 256], strides = [1, 1]} : vector<25x256xf32> to vector<1x256xf32>
    %c0_291 = arith.constant 0 : index
    %c13_292 = arith.constant 13 : index
    %c0_293 = arith.constant 0 : index
    %c0_294 = arith.constant 0 : index
    %493 = vector.load %arg2[%c0_291, %c13_292, %c0_293, %c0_294] : memref<1x25x4x256xf32, #tpu.memory_space<vmem>>, vector<1x1x4x256xf32>
    %494 = vector.shape_cast %493 : vector<1x1x4x256xf32> to vector<4x256xf32>
    %495 = vector.broadcast %492 : vector<1x256xf32> to vector<4x256xf32>
    %496 = arith.mulf %495, %494 : vector<4x256xf32>
    %497 = arith.addf %491, %496 : vector<4x256xf32>
    %498 = vector.extract_strided_slice %412 {offsets = [14, 0], sizes = [1, 256], strides = [1, 1]} : vector<25x256xf32> to vector<1x256xf32>
    %c0_295 = arith.constant 0 : index
    %c14_296 = arith.constant 14 : index
    %c0_297 = arith.constant 0 : index
    %c0_298 = arith.constant 0 : index
    %499 = vector.load %arg2[%c0_295, %c14_296, %c0_297, %c0_298] : memref<1x25x4x256xf32, #tpu.memory_space<vmem>>, vector<1x1x4x256xf32>
    %500 = vector.shape_cast %499 : vector<1x1x4x256xf32> to vector<4x256xf32>
    %501 = vector.broadcast %498 : vector<1x256xf32> to vector<4x256xf32>
    %502 = arith.mulf %501, %500 : vector<4x256xf32>
    %503 = arith.addf %497, %502 : vector<4x256xf32>
    %504 = vector.extract_strided_slice %412 {offsets = [15, 0], sizes = [1, 256], strides = [1, 1]} : vector<25x256xf32> to vector<1x256xf32>
    %c0_299 = arith.constant 0 : index
    %c15_300 = arith.constant 15 : index
    %c0_301 = arith.constant 0 : index
    %c0_302 = arith.constant 0 : index
    %505 = vector.load %arg2[%c0_299, %c15_300, %c0_301, %c0_302] : memref<1x25x4x256xf32, #tpu.memory_space<vmem>>, vector<1x1x4x256xf32>
    %506 = vector.shape_cast %505 : vector<1x1x4x256xf32> to vector<4x256xf32>
    %507 = vector.broadcast %504 : vector<1x256xf32> to vector<4x256xf32>
    %508 = arith.mulf %507, %506 : vector<4x256xf32>
    %509 = arith.addf %503, %508 : vector<4x256xf32>
    %510 = vector.extract_strided_slice %412 {offsets = [16, 0], sizes = [1, 256], strides = [1, 1]} : vector<25x256xf32> to vector<1x256xf32>
    %c0_303 = arith.constant 0 : index
    %c16_304 = arith.constant 16 : index
    %c0_305 = arith.constant 0 : index
    %c0_306 = arith.constant 0 : index
    %511 = vector.load %arg2[%c0_303, %c16_304, %c0_305, %c0_306] : memref<1x25x4x256xf32, #tpu.memory_space<vmem>>, vector<1x1x4x256xf32>
    %512 = vector.shape_cast %511 : vector<1x1x4x256xf32> to vector<4x256xf32>
    %513 = vector.broadcast %510 : vector<1x256xf32> to vector<4x256xf32>
    %514 = arith.mulf %513, %512 : vector<4x256xf32>
    %515 = arith.addf %509, %514 : vector<4x256xf32>
    %516 = vector.extract_strided_slice %412 {offsets = [17, 0], sizes = [1, 256], strides = [1, 1]} : vector<25x256xf32> to vector<1x256xf32>
    %c0_307 = arith.constant 0 : index
    %c17_308 = arith.constant 17 : index
    %c0_309 = arith.constant 0 : index
    %c0_310 = arith.constant 0 : index
    %517 = vector.load %arg2[%c0_307, %c17_308, %c0_309, %c0_310] : memref<1x25x4x256xf32, #tpu.memory_space<vmem>>, vector<1x1x4x256xf32>
    %518 = vector.shape_cast %517 : vector<1x1x4x256xf32> to vector<4x256xf32>
    %519 = vector.broadcast %516 : vector<1x256xf32> to vector<4x256xf32>
    %520 = arith.mulf %519, %518 : vector<4x256xf32>
    %521 = arith.addf %515, %520 : vector<4x256xf32>
    %522 = vector.extract_strided_slice %412 {offsets = [18, 0], sizes = [1, 256], strides = [1, 1]} : vector<25x256xf32> to vector<1x256xf32>
    %c0_311 = arith.constant 0 : index
    %c18_312 = arith.constant 18 : index
    %c0_313 = arith.constant 0 : index
    %c0_314 = arith.constant 0 : index
    %523 = vector.load %arg2[%c0_311, %c18_312, %c0_313, %c0_314] : memref<1x25x4x256xf32, #tpu.memory_space<vmem>>, vector<1x1x4x256xf32>
    %524 = vector.shape_cast %523 : vector<1x1x4x256xf32> to vector<4x256xf32>
    %525 = vector.broadcast %522 : vector<1x256xf32> to vector<4x256xf32>
    %526 = arith.mulf %525, %524 : vector<4x256xf32>
    %527 = arith.addf %521, %526 : vector<4x256xf32>
    %528 = vector.extract_strided_slice %412 {offsets = [19, 0], sizes = [1, 256], strides = [1, 1]} : vector<25x256xf32> to vector<1x256xf32>
    %c0_315 = arith.constant 0 : index
    %c19_316 = arith.constant 19 : index
    %c0_317 = arith.constant 0 : index
    %c0_318 = arith.constant 0 : index
    %529 = vector.load %arg2[%c0_315, %c19_316, %c0_317, %c0_318] : memref<1x25x4x256xf32, #tpu.memory_space<vmem>>, vector<1x1x4x256xf32>
    %530 = vector.shape_cast %529 : vector<1x1x4x256xf32> to vector<4x256xf32>
    %531 = vector.broadcast %528 : vector<1x256xf32> to vector<4x256xf32>
    %532 = arith.mulf %531, %530 : vector<4x256xf32>
    %533 = arith.addf %527, %532 : vector<4x256xf32>
    %534 = vector.extract_strided_slice %412 {offsets = [20, 0], sizes = [1, 256], strides = [1, 1]} : vector<25x256xf32> to vector<1x256xf32>
    %c0_319 = arith.constant 0 : index
    %c20_320 = arith.constant 20 : index
    %c0_321 = arith.constant 0 : index
    %c0_322 = arith.constant 0 : index
    %535 = vector.load %arg2[%c0_319, %c20_320, %c0_321, %c0_322] : memref<1x25x4x256xf32, #tpu.memory_space<vmem>>, vector<1x1x4x256xf32>
    %536 = vector.shape_cast %535 : vector<1x1x4x256xf32> to vector<4x256xf32>
    %537 = vector.broadcast %534 : vector<1x256xf32> to vector<4x256xf32>
    %538 = arith.mulf %537, %536 : vector<4x256xf32>
    %539 = arith.addf %533, %538 : vector<4x256xf32>
    %540 = vector.extract_strided_slice %412 {offsets = [21, 0], sizes = [1, 256], strides = [1, 1]} : vector<25x256xf32> to vector<1x256xf32>
    %c0_323 = arith.constant 0 : index
    %c21_324 = arith.constant 21 : index
    %c0_325 = arith.constant 0 : index
    %c0_326 = arith.constant 0 : index
    %541 = vector.load %arg2[%c0_323, %c21_324, %c0_325, %c0_326] : memref<1x25x4x256xf32, #tpu.memory_space<vmem>>, vector<1x1x4x256xf32>
    %542 = vector.shape_cast %541 : vector<1x1x4x256xf32> to vector<4x256xf32>
    %543 = vector.broadcast %540 : vector<1x256xf32> to vector<4x256xf32>
    %544 = arith.mulf %543, %542 : vector<4x256xf32>
    %545 = arith.addf %539, %544 : vector<4x256xf32>
    %546 = vector.extract_strided_slice %412 {offsets = [22, 0], sizes = [1, 256], strides = [1, 1]} : vector<25x256xf32> to vector<1x256xf32>
    %c0_327 = arith.constant 0 : index
    %c22_328 = arith.constant 22 : index
    %c0_329 = arith.constant 0 : index
    %c0_330 = arith.constant 0 : index
    %547 = vector.load %arg2[%c0_327, %c22_328, %c0_329, %c0_330] : memref<1x25x4x256xf32, #tpu.memory_space<vmem>>, vector<1x1x4x256xf32>
    %548 = vector.shape_cast %547 : vector<1x1x4x256xf32> to vector<4x256xf32>
    %549 = vector.broadcast %546 : vector<1x256xf32> to vector<4x256xf32>
    %550 = arith.mulf %549, %548 : vector<4x256xf32>
    %551 = arith.addf %545, %550 : vector<4x256xf32>
    %552 = vector.extract_strided_slice %412 {offsets = [23, 0], sizes = [1, 256], strides = [1, 1]} : vector<25x256xf32> to vector<1x256xf32>
    %c0_331 = arith.constant 0 : index
    %c23_332 = arith.constant 23 : index
    %c0_333 = arith.constant 0 : index
    %c0_334 = arith.constant 0 : index
    %553 = vector.load %arg2[%c0_331, %c23_332, %c0_333, %c0_334] : memref<1x25x4x256xf32, #tpu.memory_space<vmem>>, vector<1x1x4x256xf32>
    %554 = vector.shape_cast %553 : vector<1x1x4x256xf32> to vector<4x256xf32>
    %555 = vector.broadcast %552 : vector<1x256xf32> to vector<4x256xf32>
    %556 = arith.mulf %555, %554 : vector<4x256xf32>
    %557 = arith.addf %551, %556 : vector<4x256xf32>
    %558 = vector.extract_strided_slice %412 {offsets = [24, 0], sizes = [1, 256], strides = [1, 1]} : vector<25x256xf32> to vector<1x256xf32>
    %c0_335 = arith.constant 0 : index
    %c24_336 = arith.constant 24 : index
    %c0_337 = arith.constant 0 : index
    %c0_338 = arith.constant 0 : index
    %559 = vector.load %arg2[%c0_335, %c24_336, %c0_337, %c0_338] : memref<1x25x4x256xf32, #tpu.memory_space<vmem>>, vector<1x1x4x256xf32>
    %560 = vector.shape_cast %559 : vector<1x1x4x256xf32> to vector<4x256xf32>
    %561 = vector.broadcast %558 : vector<1x256xf32> to vector<4x256xf32>
    %562 = arith.mulf %561, %560 : vector<4x256xf32>
    %563 = arith.addf %557, %562 : vector<4x256xf32>
    %564 = vector.extract_strided_slice %65 {offsets = [96, 0], sizes = [25, 256], strides = [1, 1]} : vector<128x256xf32> to vector<25x256xf32>
    %cst_339 = arith.constant dense<0xFF800000> : vector<256xf32>
    %565 = vector.multi_reduction <maximumf>, %564, %cst_339 [0] : vector<25x256xf32> to vector<256xf32>
    %566 = vector.shape_cast %565 : vector<256xf32> to vector<1x256xf32>
    %567 = vector.broadcast %566 : vector<1x256xf32> to vector<25x256xf32>
    %568 = arith.subf %564, %567 : vector<25x256xf32>
    %569 = math.exp %568 : vector<25x256xf32>
    %cst_340 = arith.constant dense<0.000000e+00> : vector<256xf32>
    %570 = vector.multi_reduction <add>, %569, %cst_340 [0] : vector<25x256xf32> to vector<256xf32>
    %571 = vector.shape_cast %570 : vector<256xf32> to vector<1x256xf32>
    %572 = tpu.reciprocal %571 {approx = true} : vector<1x256xf32> -> vector<1x256xf32>
    %573 = arith.mulf %571, %572 : vector<1x256xf32>
    %cst_341 = arith.constant 2.000000e+00 : f32
    %574 = vector.broadcast %cst_341 : f32 to vector<1x256xf32>
    %575 = arith.subf %574, %573 : vector<1x256xf32>
    %576 = arith.mulf %572, %575 : vector<1x256xf32>
    %577 = vector.broadcast %576 : vector<1x256xf32> to vector<25x256xf32>
    %578 = arith.mulf %569, %577 : vector<25x256xf32>
    %cst_342 = arith.constant 0.000000e+00 : f32
    %579 = vector.broadcast %cst_342 : f32 to vector<4x256xf32>
    %580 = vector.extract_strided_slice %578 {offsets = [0, 0], sizes = [1, 256], strides = [1, 1]} : vector<25x256xf32> to vector<1x256xf32>
    %c0_343 = arith.constant 0 : index
    %c0_344 = arith.constant 0 : index
    %c0_345 = arith.constant 0 : index
    %c0_346 = arith.constant 0 : index
    %581 = vector.load %arg2[%c0_343, %c0_344, %c0_345, %c0_346] : memref<1x25x4x256xf32, #tpu.memory_space<vmem>>, vector<1x1x4x256xf32>
    %582 = vector.shape_cast %581 : vector<1x1x4x256xf32> to vector<4x256xf32>
    %583 = vector.broadcast %580 : vector<1x256xf32> to vector<4x256xf32>
    %584 = arith.mulf %583, %582 : vector<4x256xf32>
    %585 = arith.addf %579, %584 : vector<4x256xf32>
    %586 = vector.extract_strided_slice %578 {offsets = [1, 0], sizes = [1, 256], strides = [1, 1]} : vector<25x256xf32> to vector<1x256xf32>
    %c0_347 = arith.constant 0 : index
    %c1_348 = arith.constant 1 : index
    %c0_349 = arith.constant 0 : index
    %c0_350 = arith.constant 0 : index
    %587 = vector.load %arg2[%c0_347, %c1_348, %c0_349, %c0_350] : memref<1x25x4x256xf32, #tpu.memory_space<vmem>>, vector<1x1x4x256xf32>
    %588 = vector.shape_cast %587 : vector<1x1x4x256xf32> to vector<4x256xf32>
    %589 = vector.broadcast %586 : vector<1x256xf32> to vector<4x256xf32>
    %590 = arith.mulf %589, %588 : vector<4x256xf32>
    %591 = arith.addf %585, %590 : vector<4x256xf32>
    %592 = vector.extract_strided_slice %578 {offsets = [2, 0], sizes = [1, 256], strides = [1, 1]} : vector<25x256xf32> to vector<1x256xf32>
    %c0_351 = arith.constant 0 : index
    %c2_352 = arith.constant 2 : index
    %c0_353 = arith.constant 0 : index
    %c0_354 = arith.constant 0 : index
    %593 = vector.load %arg2[%c0_351, %c2_352, %c0_353, %c0_354] : memref<1x25x4x256xf32, #tpu.memory_space<vmem>>, vector<1x1x4x256xf32>
    %594 = vector.shape_cast %593 : vector<1x1x4x256xf32> to vector<4x256xf32>
    %595 = vector.broadcast %592 : vector<1x256xf32> to vector<4x256xf32>
    %596 = arith.mulf %595, %594 : vector<4x256xf32>
    %597 = arith.addf %591, %596 : vector<4x256xf32>
    %598 = vector.extract_strided_slice %578 {offsets = [3, 0], sizes = [1, 256], strides = [1, 1]} : vector<25x256xf32> to vector<1x256xf32>
    %c0_355 = arith.constant 0 : index
    %c3_356 = arith.constant 3 : index
    %c0_357 = arith.constant 0 : index
    %c0_358 = arith.constant 0 : index
    %599 = vector.load %arg2[%c0_355, %c3_356, %c0_357, %c0_358] : memref<1x25x4x256xf32, #tpu.memory_space<vmem>>, vector<1x1x4x256xf32>
    %600 = vector.shape_cast %599 : vector<1x1x4x256xf32> to vector<4x256xf32>
    %601 = vector.broadcast %598 : vector<1x256xf32> to vector<4x256xf32>
    %602 = arith.mulf %601, %600 : vector<4x256xf32>
    %603 = arith.addf %597, %602 : vector<4x256xf32>
    %604 = vector.extract_strided_slice %578 {offsets = [4, 0], sizes = [1, 256], strides = [1, 1]} : vector<25x256xf32> to vector<1x256xf32>
    %c0_359 = arith.constant 0 : index
    %c4_360 = arith.constant 4 : index
    %c0_361 = arith.constant 0 : index
    %c0_362 = arith.constant 0 : index
    %605 = vector.load %arg2[%c0_359, %c4_360, %c0_361, %c0_362] : memref<1x25x4x256xf32, #tpu.memory_space<vmem>>, vector<1x1x4x256xf32>
    %606 = vector.shape_cast %605 : vector<1x1x4x256xf32> to vector<4x256xf32>
    %607 = vector.broadcast %604 : vector<1x256xf32> to vector<4x256xf32>
    %608 = arith.mulf %607, %606 : vector<4x256xf32>
    %609 = arith.addf %603, %608 : vector<4x256xf32>
    %610 = vector.extract_strided_slice %578 {offsets = [5, 0], sizes = [1, 256], strides = [1, 1]} : vector<25x256xf32> to vector<1x256xf32>
    %c0_363 = arith.constant 0 : index
    %c5_364 = arith.constant 5 : index
    %c0_365 = arith.constant 0 : index
    %c0_366 = arith.constant 0 : index
    %611 = vector.load %arg2[%c0_363, %c5_364, %c0_365, %c0_366] : memref<1x25x4x256xf32, #tpu.memory_space<vmem>>, vector<1x1x4x256xf32>
    %612 = vector.shape_cast %611 : vector<1x1x4x256xf32> to vector<4x256xf32>
    %613 = vector.broadcast %610 : vector<1x256xf32> to vector<4x256xf32>
    %614 = arith.mulf %613, %612 : vector<4x256xf32>
    %615 = arith.addf %609, %614 : vector<4x256xf32>
    %616 = vector.extract_strided_slice %578 {offsets = [6, 0], sizes = [1, 256], strides = [1, 1]} : vector<25x256xf32> to vector<1x256xf32>
    %c0_367 = arith.constant 0 : index
    %c6_368 = arith.constant 6 : index
    %c0_369 = arith.constant 0 : index
    %c0_370 = arith.constant 0 : index
    %617 = vector.load %arg2[%c0_367, %c6_368, %c0_369, %c0_370] : memref<1x25x4x256xf32, #tpu.memory_space<vmem>>, vector<1x1x4x256xf32>
    %618 = vector.shape_cast %617 : vector<1x1x4x256xf32> to vector<4x256xf32>
    %619 = vector.broadcast %616 : vector<1x256xf32> to vector<4x256xf32>
    %620 = arith.mulf %619, %618 : vector<4x256xf32>
    %621 = arith.addf %615, %620 : vector<4x256xf32>
    %622 = vector.extract_strided_slice %578 {offsets = [7, 0], sizes = [1, 256], strides = [1, 1]} : vector<25x256xf32> to vector<1x256xf32>
    %c0_371 = arith.constant 0 : index
    %c7_372 = arith.constant 7 : index
    %c0_373 = arith.constant 0 : index
    %c0_374 = arith.constant 0 : index
    %623 = vector.load %arg2[%c0_371, %c7_372, %c0_373, %c0_374] : memref<1x25x4x256xf32, #tpu.memory_space<vmem>>, vector<1x1x4x256xf32>
    %624 = vector.shape_cast %623 : vector<1x1x4x256xf32> to vector<4x256xf32>
    %625 = vector.broadcast %622 : vector<1x256xf32> to vector<4x256xf32>
    %626 = arith.mulf %625, %624 : vector<4x256xf32>
    %627 = arith.addf %621, %626 : vector<4x256xf32>
    %628 = vector.extract_strided_slice %578 {offsets = [8, 0], sizes = [1, 256], strides = [1, 1]} : vector<25x256xf32> to vector<1x256xf32>
    %c0_375 = arith.constant 0 : index
    %c8_376 = arith.constant 8 : index
    %c0_377 = arith.constant 0 : index
    %c0_378 = arith.constant 0 : index
    %629 = vector.load %arg2[%c0_375, %c8_376, %c0_377, %c0_378] : memref<1x25x4x256xf32, #tpu.memory_space<vmem>>, vector<1x1x4x256xf32>
    %630 = vector.shape_cast %629 : vector<1x1x4x256xf32> to vector<4x256xf32>
    %631 = vector.broadcast %628 : vector<1x256xf32> to vector<4x256xf32>
    %632 = arith.mulf %631, %630 : vector<4x256xf32>
    %633 = arith.addf %627, %632 : vector<4x256xf32>
    %634 = vector.extract_strided_slice %578 {offsets = [9, 0], sizes = [1, 256], strides = [1, 1]} : vector<25x256xf32> to vector<1x256xf32>
    %c0_379 = arith.constant 0 : index
    %c9_380 = arith.constant 9 : index
    %c0_381 = arith.constant 0 : index
    %c0_382 = arith.constant 0 : index
    %635 = vector.load %arg2[%c0_379, %c9_380, %c0_381, %c0_382] : memref<1x25x4x256xf32, #tpu.memory_space<vmem>>, vector<1x1x4x256xf32>
    %636 = vector.shape_cast %635 : vector<1x1x4x256xf32> to vector<4x256xf32>
    %637 = vector.broadcast %634 : vector<1x256xf32> to vector<4x256xf32>
    %638 = arith.mulf %637, %636 : vector<4x256xf32>
    %639 = arith.addf %633, %638 : vector<4x256xf32>
    %640 = vector.extract_strided_slice %578 {offsets = [10, 0], sizes = [1, 256], strides = [1, 1]} : vector<25x256xf32> to vector<1x256xf32>
    %c0_383 = arith.constant 0 : index
    %c10_384 = arith.constant 10 : index
    %c0_385 = arith.constant 0 : index
    %c0_386 = arith.constant 0 : index
    %641 = vector.load %arg2[%c0_383, %c10_384, %c0_385, %c0_386] : memref<1x25x4x256xf32, #tpu.memory_space<vmem>>, vector<1x1x4x256xf32>
    %642 = vector.shape_cast %641 : vector<1x1x4x256xf32> to vector<4x256xf32>
    %643 = vector.broadcast %640 : vector<1x256xf32> to vector<4x256xf32>
    %644 = arith.mulf %643, %642 : vector<4x256xf32>
    %645 = arith.addf %639, %644 : vector<4x256xf32>
    %646 = vector.extract_strided_slice %578 {offsets = [11, 0], sizes = [1, 256], strides = [1, 1]} : vector<25x256xf32> to vector<1x256xf32>
    %c0_387 = arith.constant 0 : index
    %c11_388 = arith.constant 11 : index
    %c0_389 = arith.constant 0 : index
    %c0_390 = arith.constant 0 : index
    %647 = vector.load %arg2[%c0_387, %c11_388, %c0_389, %c0_390] : memref<1x25x4x256xf32, #tpu.memory_space<vmem>>, vector<1x1x4x256xf32>
    %648 = vector.shape_cast %647 : vector<1x1x4x256xf32> to vector<4x256xf32>
    %649 = vector.broadcast %646 : vector<1x256xf32> to vector<4x256xf32>
    %650 = arith.mulf %649, %648 : vector<4x256xf32>
    %651 = arith.addf %645, %650 : vector<4x256xf32>
    %652 = vector.extract_strided_slice %578 {offsets = [12, 0], sizes = [1, 256], strides = [1, 1]} : vector<25x256xf32> to vector<1x256xf32>
    %c0_391 = arith.constant 0 : index
    %c12_392 = arith.constant 12 : index
    %c0_393 = arith.constant 0 : index
    %c0_394 = arith.constant 0 : index
    %653 = vector.load %arg2[%c0_391, %c12_392, %c0_393, %c0_394] : memref<1x25x4x256xf32, #tpu.memory_space<vmem>>, vector<1x1x4x256xf32>
    %654 = vector.shape_cast %653 : vector<1x1x4x256xf32> to vector<4x256xf32>
    %655 = vector.broadcast %652 : vector<1x256xf32> to vector<4x256xf32>
    %656 = arith.mulf %655, %654 : vector<4x256xf32>
    %657 = arith.addf %651, %656 : vector<4x256xf32>
    %658 = vector.extract_strided_slice %578 {offsets = [13, 0], sizes = [1, 256], strides = [1, 1]} : vector<25x256xf32> to vector<1x256xf32>
    %c0_395 = arith.constant 0 : index
    %c13_396 = arith.constant 13 : index
    %c0_397 = arith.constant 0 : index
    %c0_398 = arith.constant 0 : index
    %659 = vector.load %arg2[%c0_395, %c13_396, %c0_397, %c0_398] : memref<1x25x4x256xf32, #tpu.memory_space<vmem>>, vector<1x1x4x256xf32>
    %660 = vector.shape_cast %659 : vector<1x1x4x256xf32> to vector<4x256xf32>
    %661 = vector.broadcast %658 : vector<1x256xf32> to vector<4x256xf32>
    %662 = arith.mulf %661, %660 : vector<4x256xf32>
    %663 = arith.addf %657, %662 : vector<4x256xf32>
    %664 = vector.extract_strided_slice %578 {offsets = [14, 0], sizes = [1, 256], strides = [1, 1]} : vector<25x256xf32> to vector<1x256xf32>
    %c0_399 = arith.constant 0 : index
    %c14_400 = arith.constant 14 : index
    %c0_401 = arith.constant 0 : index
    %c0_402 = arith.constant 0 : index
    %665 = vector.load %arg2[%c0_399, %c14_400, %c0_401, %c0_402] : memref<1x25x4x256xf32, #tpu.memory_space<vmem>>, vector<1x1x4x256xf32>
    %666 = vector.shape_cast %665 : vector<1x1x4x256xf32> to vector<4x256xf32>
    %667 = vector.broadcast %664 : vector<1x256xf32> to vector<4x256xf32>
    %668 = arith.mulf %667, %666 : vector<4x256xf32>
    %669 = arith.addf %663, %668 : vector<4x256xf32>
    %670 = vector.extract_strided_slice %578 {offsets = [15, 0], sizes = [1, 256], strides = [1, 1]} : vector<25x256xf32> to vector<1x256xf32>
    %c0_403 = arith.constant 0 : index
    %c15_404 = arith.constant 15 : index
    %c0_405 = arith.constant 0 : index
    %c0_406 = arith.constant 0 : index
    %671 = vector.load %arg2[%c0_403, %c15_404, %c0_405, %c0_406] : memref<1x25x4x256xf32, #tpu.memory_space<vmem>>, vector<1x1x4x256xf32>
    %672 = vector.shape_cast %671 : vector<1x1x4x256xf32> to vector<4x256xf32>
    %673 = vector.broadcast %670 : vector<1x256xf32> to vector<4x256xf32>
    %674 = arith.mulf %673, %672 : vector<4x256xf32>
    %675 = arith.addf %669, %674 : vector<4x256xf32>
    %676 = vector.extract_strided_slice %578 {offsets = [16, 0], sizes = [1, 256], strides = [1, 1]} : vector<25x256xf32> to vector<1x256xf32>
    %c0_407 = arith.constant 0 : index
    %c16_408 = arith.constant 16 : index
    %c0_409 = arith.constant 0 : index
    %c0_410 = arith.constant 0 : index
    %677 = vector.load %arg2[%c0_407, %c16_408, %c0_409, %c0_410] : memref<1x25x4x256xf32, #tpu.memory_space<vmem>>, vector<1x1x4x256xf32>
    %678 = vector.shape_cast %677 : vector<1x1x4x256xf32> to vector<4x256xf32>
    %679 = vector.broadcast %676 : vector<1x256xf32> to vector<4x256xf32>
    %680 = arith.mulf %679, %678 : vector<4x256xf32>
    %681 = arith.addf %675, %680 : vector<4x256xf32>
    %682 = vector.extract_strided_slice %578 {offsets = [17, 0], sizes = [1, 256], strides = [1, 1]} : vector<25x256xf32> to vector<1x256xf32>
    %c0_411 = arith.constant 0 : index
    %c17_412 = arith.constant 17 : index
    %c0_413 = arith.constant 0 : index
    %c0_414 = arith.constant 0 : index
    %683 = vector.load %arg2[%c0_411, %c17_412, %c0_413, %c0_414] : memref<1x25x4x256xf32, #tpu.memory_space<vmem>>, vector<1x1x4x256xf32>
    %684 = vector.shape_cast %683 : vector<1x1x4x256xf32> to vector<4x256xf32>
    %685 = vector.broadcast %682 : vector<1x256xf32> to vector<4x256xf32>
    %686 = arith.mulf %685, %684 : vector<4x256xf32>
    %687 = arith.addf %681, %686 : vector<4x256xf32>
    %688 = vector.extract_strided_slice %578 {offsets = [18, 0], sizes = [1, 256], strides = [1, 1]} : vector<25x256xf32> to vector<1x256xf32>
    %c0_415 = arith.constant 0 : index
    %c18_416 = arith.constant 18 : index
    %c0_417 = arith.constant 0 : index
    %c0_418 = arith.constant 0 : index
    %689 = vector.load %arg2[%c0_415, %c18_416, %c0_417, %c0_418] : memref<1x25x4x256xf32, #tpu.memory_space<vmem>>, vector<1x1x4x256xf32>
    %690 = vector.shape_cast %689 : vector<1x1x4x256xf32> to vector<4x256xf32>
    %691 = vector.broadcast %688 : vector<1x256xf32> to vector<4x256xf32>
    %692 = arith.mulf %691, %690 : vector<4x256xf32>
    %693 = arith.addf %687, %692 : vector<4x256xf32>
    %694 = vector.extract_strided_slice %578 {offsets = [19, 0], sizes = [1, 256], strides = [1, 1]} : vector<25x256xf32> to vector<1x256xf32>
    %c0_419 = arith.constant 0 : index
    %c19_420 = arith.constant 19 : index
    %c0_421 = arith.constant 0 : index
    %c0_422 = arith.constant 0 : index
    %695 = vector.load %arg2[%c0_419, %c19_420, %c0_421, %c0_422] : memref<1x25x4x256xf32, #tpu.memory_space<vmem>>, vector<1x1x4x256xf32>
    %696 = vector.shape_cast %695 : vector<1x1x4x256xf32> to vector<4x256xf32>
    %697 = vector.broadcast %694 : vector<1x256xf32> to vector<4x256xf32>
    %698 = arith.mulf %697, %696 : vector<4x256xf32>
    %699 = arith.addf %693, %698 : vector<4x256xf32>
    %700 = vector.extract_strided_slice %578 {offsets = [20, 0], sizes = [1, 256], strides = [1, 1]} : vector<25x256xf32> to vector<1x256xf32>
    %c0_423 = arith.constant 0 : index
    %c20_424 = arith.constant 20 : index
    %c0_425 = arith.constant 0 : index
    %c0_426 = arith.constant 0 : index
    %701 = vector.load %arg2[%c0_423, %c20_424, %c0_425, %c0_426] : memref<1x25x4x256xf32, #tpu.memory_space<vmem>>, vector<1x1x4x256xf32>
    %702 = vector.shape_cast %701 : vector<1x1x4x256xf32> to vector<4x256xf32>
    %703 = vector.broadcast %700 : vector<1x256xf32> to vector<4x256xf32>
    %704 = arith.mulf %703, %702 : vector<4x256xf32>
    %705 = arith.addf %699, %704 : vector<4x256xf32>
    %706 = vector.extract_strided_slice %578 {offsets = [21, 0], sizes = [1, 256], strides = [1, 1]} : vector<25x256xf32> to vector<1x256xf32>
    %c0_427 = arith.constant 0 : index
    %c21_428 = arith.constant 21 : index
    %c0_429 = arith.constant 0 : index
    %c0_430 = arith.constant 0 : index
    %707 = vector.load %arg2[%c0_427, %c21_428, %c0_429, %c0_430] : memref<1x25x4x256xf32, #tpu.memory_space<vmem>>, vector<1x1x4x256xf32>
    %708 = vector.shape_cast %707 : vector<1x1x4x256xf32> to vector<4x256xf32>
    %709 = vector.broadcast %706 : vector<1x256xf32> to vector<4x256xf32>
    %710 = arith.mulf %709, %708 : vector<4x256xf32>
    %711 = arith.addf %705, %710 : vector<4x256xf32>
    %712 = vector.extract_strided_slice %578 {offsets = [22, 0], sizes = [1, 256], strides = [1, 1]} : vector<25x256xf32> to vector<1x256xf32>
    %c0_431 = arith.constant 0 : index
    %c22_432 = arith.constant 22 : index
    %c0_433 = arith.constant 0 : index
    %c0_434 = arith.constant 0 : index
    %713 = vector.load %arg2[%c0_431, %c22_432, %c0_433, %c0_434] : memref<1x25x4x256xf32, #tpu.memory_space<vmem>>, vector<1x1x4x256xf32>
    %714 = vector.shape_cast %713 : vector<1x1x4x256xf32> to vector<4x256xf32>
    %715 = vector.broadcast %712 : vector<1x256xf32> to vector<4x256xf32>
    %716 = arith.mulf %715, %714 : vector<4x256xf32>
    %717 = arith.addf %711, %716 : vector<4x256xf32>
    %718 = vector.extract_strided_slice %578 {offsets = [23, 0], sizes = [1, 256], strides = [1, 1]} : vector<25x256xf32> to vector<1x256xf32>
    %c0_435 = arith.constant 0 : index
    %c23_436 = arith.constant 23 : index
    %c0_437 = arith.constant 0 : index
    %c0_438 = arith.constant 0 : index
    %719 = vector.load %arg2[%c0_435, %c23_436, %c0_437, %c0_438] : memref<1x25x4x256xf32, #tpu.memory_space<vmem>>, vector<1x1x4x256xf32>
    %720 = vector.shape_cast %719 : vector<1x1x4x256xf32> to vector<4x256xf32>
    %721 = vector.broadcast %718 : vector<1x256xf32> to vector<4x256xf32>
    %722 = arith.mulf %721, %720 : vector<4x256xf32>
    %723 = arith.addf %717, %722 : vector<4x256xf32>
    %724 = vector.extract_strided_slice %578 {offsets = [24, 0], sizes = [1, 256], strides = [1, 1]} : vector<25x256xf32> to vector<1x256xf32>
    %c0_439 = arith.constant 0 : index
    %c24_440 = arith.constant 24 : index
    %c0_441 = arith.constant 0 : index
    %c0_442 = arith.constant 0 : index
    %725 = vector.load %arg2[%c0_439, %c24_440, %c0_441, %c0_442] : memref<1x25x4x256xf32, #tpu.memory_space<vmem>>, vector<1x1x4x256xf32>
    %726 = vector.shape_cast %725 : vector<1x1x4x256xf32> to vector<4x256xf32>
    %727 = vector.broadcast %724 : vector<1x256xf32> to vector<4x256xf32>
    %728 = arith.mulf %727, %726 : vector<4x256xf32>
    %729 = arith.addf %723, %728 : vector<4x256xf32>
    %730 = tpu.concatenate %231, %397, %563, %729 in 0 : vector<4x256xf32>, vector<4x256xf32>, vector<4x256xf32>, vector<4x256xf32> -> vector<16x256xf32>
    %c0_443 = arith.constant 0 : index
    %c0_444 = arith.constant 0 : index
    %c0_445 = arith.constant 0 : index
    %731 = vector.load %arg5[%c0_443, %c0_444, %c0_445] : memref<1x16x256xf32, #tpu.memory_space<vmem>>, vector<1x16x256xf32>
    %732 = vector.shape_cast %731 : vector<1x16x256xf32> to vector<16x256xf32>
    %733 = vector.shape_cast %730 : vector<16x256xf32> to vector<1x16x256xf32>
    tpu.vector_store %arg5[%c0_443, %c0_444, %c0_445], %733 {strides = array<i32>} : memref<1x16x256xf32, #tpu.memory_space<vmem>>, vector<1x16x256xf32>,
    return
  }
  func.func @transform_0(%arg0: i32) -> (i32, i32, i32) {
    %c0_i32 = arith.constant 0 : i32
    %c0_i32_0 = arith.constant 0 : i32
    %c0_i32_1 = arith.constant 0 : i32
    return %arg0, %c0_i32, %c0_i32_0 : i32, i32, i32
  }
  func.func @transform_1(%arg0: i32) -> (i32, i32, i32, i32) {
    %c0_i32 = arith.constant 0 : i32
    %c0_i32_0 = arith.constant 0 : i32
    %c0_i32_1 = arith.constant 0 : i32
    %c0_i32_2 = arith.constant 0 : i32
    return %arg0, %c0_i32, %c0_i32_0, %c0_i32_1 : i32, i32, i32, i32
  }
  func.func @transform_2(%arg0: i32) -> (i32, i32) {
    %c0_i32 = arith.constant 0 : i32
    %c0_i32_0 = arith.constant 0 : i32
    %c0_i32_1 = arith.constant 0 : i32
    return %c0_i32, %c0_i32_0 : i32, i32
  }
  func.func @transform_3(%arg0: i32) -> (i32, i32) {
    %c0_i32 = arith.constant 0 : i32
    %c0_i32_0 = arith.constant 0 : i32
    %c0_i32_1 = arith.constant 0 : i32
    return %c0_i32, %c0_i32_0 : i32, i32
  }
  func.func @transform_4(%arg0: i32) -> (i32, i32, i32) {
    %c0_i32 = arith.constant 0 : i32
    %c0_i32_0 = arith.constant 0 : i32
    %c0_i32_1 = arith.constant 0 : i32
    return %arg0, %c0_i32, %c0_i32_0 : i32, i32, i32
  }
}

</mosaic_0001>

<bundles_post_ra>
// kernel: carafe_pallas.1
= control target key start
LH: loop header
LB: loop body
LE: loop exit
PB: predicated region body
PF: predicated region fallthrough
CT: control target
= control target key end

     0   :  { %s5838_s15 = smov 0   ;;  %s8713_s0 = inlined_call_operand.vmem [shape: f32[2,256,4], index: 0, kind: input, shape index: {}]   ;;  %s8714_s1 = inlined_call_operand.vmem [shape: f32[2,25,4,256], index: 1, kind: input, shape index: {}]   ;;  %s8715_s2 = inlined_call_operand.vmem [shape: f32[4,64], index: 2, kind: input, shape index: {}]   ;;  %s8716_s3 = inlined_call_operand.vmem [shape: f32[576,128], index: 3, kind: input, shape index: {}]   ;;  %s8717_s4 = inlined_call_operand.vmem [shape: f32[2,16,256], index: 4, kind: output, shape index: {}]  }
   0x1 LB: > { %s5209_s16 = sadd.s32 4294967295, %s5808_s15   ;;  %p5213_p0 = scmp.ge.s32.totalorder %s5808_s15, 1  ;;  %s5808_s15 = sphi %s5838_s15, %s14_s15  }
   0x2   : > { %p172_p1 = scmp.lt.s32.totalorder %s5808_s15, 3 }
   0x4   : > { %p173_p2 = pnand %p5213_p0, %p172_p1 }
   0x6   : > { %176 = sbr.rel (%p173_p2) target bundleno = 1245 (0x4dd), region = 36 }
   0xd   : > { %v250_v0 = vld [vmem:[%s8715_s2] sm:$0xf]  ;;  %vm8720_vm0 = vcmask 1043456   ;;  %p203_p3 = scmp.lt.s32.totalorder %s5209_s16, 1  ;;  %vm251_vm1 = vcmask 31744   ;;  %vm609_vm2 = vcmask 523264  }
   0xe   : > { %5385 = vmatprep.subr.msk.mxu0 %vm8720_vm0, %v250_v0  ;;  %v5810_v33 = vmov 0.0   ;;  %s5811_s23 = smov 64   ;;  %v8718_v36 = vmov 0.0|0.0   ;;  %v2570_v37 = vld [vmem:[%s8716_s3] sm:$0xff]  ;;  %v2571_v38 = vld [vmem:[%s8716_s3 + $0x8] sm:$0xff]  ;;  %v2572_v40 = vld [vmem:[%s8716_s3 + $0x10] sm:$0xff] }
   0xf   : > { %5386 = vmatpush3.msk.msra.mxu0 %vm8720_vm0, %v250_v0  ;;  %s9155_s16 = smov (!%p203_p3, %s5209_s16), 1  ;;  %612 = vst.msk [vmem:[#allocation2 + $0x10] sm:$0xff] %vm609_vm2, %v5810_v33  ;;  %610 = vst.msk [vmem:[#allocation2] sm:$0xff] %vm609_vm2, %v5810_v33  ;;  %5499 = vmatprep.subr.bf16.mxu1 %v8718_v36  ;;  %v5500_v39 = vpack.c.bf16 %v2571_v38, %v2570_v37  ;;  %v2573_v41 = vld [vmem:[%s8716_s3 + $0x18] sm:$0xff]  ;;  %v2574_v43 = vld [vmem:[%s8716_s3 + $0x20] sm:$0xff]  ;;  %vm8721_vm3 = vcmask 1048064  }
  0x10   : > { %s5310_s19 = sshll.u32 %s9155_s16, 8  ;;  %611 = vst.msk [vmem:[#allocation2 + $0x8] sm:$0xff] %vm609_vm2, %v5810_v33  ;;  %613 = vst.msk [vmem:[#allocation2 + $0x118] sm:$0xff] %vm609_vm2, %v5810_v33  ;;  %5547 = vmatprep.subr.bf16.mxu0 %v8718_v36  ;;  %v5503_v42 = vpack.c.bf16 %v2573_v41, %v2572_v40  ;;  %v2575_v44 = vld [vmem:[%s8716_s3 + $0x28] sm:$0xff]  ;;  %v2602_v45 = vld [vmem:[%s8716_s3 + $0x100] sm:$0xff]  ;;  %s5311_s7 = sshll.u32 %s9155_s16, 5 }
  0x11   : > { %s5857_s22 = scalar_lea.vmem %s8713_s0, %s5310_s19  ;;  %614 = vst.msk [vmem:[#allocation2 + $0x120] sm:$0xff] %vm609_vm2, %v5810_v33  ;;  %615 = vst.msk [vmem:[#allocation2 + $0x128] sm:$0xff] %vm609_vm2, %v5810_v33  ;;  %5501 = vmatpush1.bf16.msra.mxu1 %v5500_v39  ;;  %v5506_v46 = vpack.c.bf16 %v2575_v44, %v2574_v43  ;;  %v2603_v47 = vld [vmem:[%s8716_s3 + $0x108] sm:$0xff]  ;;  %v2576_v49 = vld [vmem:[%s8716_s3 + $0x30] sm:$0xff]  ;;  %s8025_s9 = scalar_lea.vmem %s8717_s4, %s5311_s7 }
  0x12   : > { %v218_v1 = vld [vmem:[%s5857_s22] sm:$0xff]  ;;  %v219_v2 = vld [vmem:[%s5857_s22 + $0x8] sm:$0xff]  ;;  %v220_v3 = vld [vmem:[%s5857_s22 + $0x10] sm:$0xff]  ;;  %5502 = vmatprep.subr.bf16.mxu1 %v8718_v36  ;;  %v5959_v48 = vpack.c.bf16 %v2603_v47, %v2602_v45 }
  0x13   : > { %5387 = vmatprep.mubr.msk.f32.mxu0 %vm251_vm1, %v218_v1  ;;  %v221_v4 = vld [vmem:[%s5857_s22 + $0x18] sm:$0xff]  ;;  %v222_v5 = vld [vmem:[%s5857_s22 + $0x20] sm:$0xff]  ;;  %v223_v6 = vld [vmem:[%s5857_s22 + $0x28] sm:$0xff] }
  0x14   : > { %5388 = vmatmul.mubr.msk.f32.vlgmr.msra.gmra.mrb[0].mxu0 %vm251_vm1, %v219_v2  ;;  %v224_v7 = vld [vmem:[%s5857_s22 + $0x30] sm:$0xff]  ;;  %v225_v8 = vld [vmem:[%s5857_s22 + $0x38] sm:$0xff]  ;;  %v226_v9 = vld [vmem:[%s5857_s22 + $0x40] sm:$0xff] }
  0x15   : > { %5390 = vmatprep.mubr.msk.f32.mxu0 %vm251_vm1, %v220_v3  ;;  %v227_v10 = vld [vmem:[%s5857_s22 + $0x48] sm:$0xff]  ;;  %v228_v11 = vld [vmem:[%s5857_s22 + $0x50] sm:$0xff]  ;;  %v229_v12 = vld [vmem:[%s5857_s22 + $0x58] sm:$0xff]  ;;  %5504 = vmatpush1.bf16.msra.mxu1 %v5503_v42 }
  0x16   : > { %v230_v13 = vld [vmem:[%s5857_s22 + $0x60] sm:$0xff]  ;;  %v231_v14 = vld [vmem:[%s5857_s22 + $0x68] sm:$0xff]  ;;  %v232_v15 = vld [vmem:[%s5857_s22 + $0x70] sm:$0xff]  ;;  %5505 = vmatprep.subr.bf16.mxu1 %v8718_v36  ;;  %5549 = vmatpush1.bf16.msra.mxu0 %v5959_v48 }
  0x17   : > { %v233_v16 = vld [vmem:[%s5857_s22 + $0x78] sm:$0xff]  ;;  %v234_v17 = vld [vmem:[%s5857_s22 + $0x80] sm:$0xff]  ;;  %v235_v18 = vld [vmem:[%s5857_s22 + $0x88] sm:$0xff]  ;;  %5550 = vmatprep.subr.bf16.mxu0 %v8718_v36 }
  0x18   : > { %5391 = vmatmul.mubr.msk.f32.gmra.mrb[2].mxu0 %vm251_vm1, %v221_v4  ;;  %v236_v19 = vld [vmem:[%s5857_s22 + $0x90] sm:$0xff]  ;;  %v237_v20 = vld [vmem:[%s5857_s22 + $0x98] sm:$0xff]  ;;  %v238_v21 = vld [vmem:[%s5857_s22 + $0xa0] sm:$0xff] }
  0x19   : > { %5393 = vmatprep.mubr.msk.f32.mxu0 %vm251_vm1, %v222_v5  ;;  %v239_v22 = vld [vmem:[%s5857_s22 + $0xa8] sm:$0xff]  ;;  %v240_v23 = vld [vmem:[%s5857_s22 + $0xb0] sm:$0xff]  ;;  %v241_v24 = vld [vmem:[%s5857_s22 + $0xb8] sm:$0xff]  ;;  %5507 = vmatpush1.bf16.msra.mxu1 %v5506_v46 }
  0x1a   : > { %v242_v25 = vld [vmem:[%s5857_s22 + $0xc0] sm:$0xff]  ;;  %v243_v26 = vld [vmem:[%s5857_s22 + $0xc8] sm:$0xff]  ;;  %v244_v27 = vld [vmem:[%s5857_s22 + $0xd0] sm:$0xff]  ;;  %5508 = vmatprep.subr.bf16.mxu1 %v8718_v36 }
  0x1b   : > { %v245_v28 = vld [vmem:[%s5857_s22 + $0xd8] sm:$0xff]  ;;  %v246_v29 = vld [vmem:[%s5857_s22 + $0xe0] sm:$0xff]  ;;  %v247_v30 = vld [vmem:[%s5857_s22 + $0xe8] sm:$0xff] }
  0x1c   : > { %5394 = vmatmul.mubr.msk.f32.gmra.mrb[4].mxu0 %vm251_vm1, %v223_v6  ;;  %v248_v31 = vld [vmem:[%s5857_s22 + $0xf0] sm:$0xff]  ;;  %v249_v32 = vld [vmem:[%s5857_s22 + $0xf8] sm:$0xff]  ;;  %v1225_v35 = vld [vmem:[#allocation2 + $0x8] sm:$0xff] }
  0x1d   : > { %5396 = vmatprep.mubr.msk.f32.mxu0 %vm251_vm1, %v224_v7  ;;  %v1226_v34 = vld [vmem:[#allocation2 + $0x10] sm:$0xff]  ;;  %1289 = vrot.lane.b32.xlu0 %v1225_v35, %s5811_s23  ;;  %v2577_v50 = vld [vmem:[%s8716_s3 + $0x38] sm:$0xff]  ;;  %v2578_v55 = vld [vmem:[%s8716_s3 + $0x40] sm:$0xff] }
  0x1e   : > { %1291 = vrot.lane.b32.xlu1 %v1226_v34, %s5811_s23  ;;  %v2604_v51 = vld [vmem:[%s8716_s3 + $0x110] sm:$0xff]  ;;  %v5509_v52 = vpack.c.bf16 %v2577_v50, %v2576_v49  ;;  %v2605_v53 = vld [vmem:[%s8716_s3 + $0x118] sm:$0xff]  ;;  %v2579_v56 = vld [vmem:[%s8716_s3 + $0x48] sm:$0xff] }
  0x1f   : > { %v5976_v54 = vpack.c.bf16 %v2605_v53, %v2604_v51  ;;  %v2606_v57 = vld [vmem:[%s8716_s3 + $0x120] sm:$0xff]  ;;  %v5512_v58 = vpack.c.bf16 %v2579_v56, %v2578_v55  ;;  %v2607_v59 = vld [vmem:[%s8716_s3 + $0x128] sm:$0xff]  ;;  %v2580_v61 = vld [vmem:[%s8716_s3 + $0x50] sm:$0xff] }
  0x20   : > { %5397 = vmatmul.mubr.msk.f32.gmra.mrb[6].mxu0 %vm251_vm1, %v225_v8  ;;  %5510 = vmatpush1.bf16.msra.mxu1 %v5509_v52  ;;  %v5993_v60 = vpack.c.bf16 %v2607_v59, %v2606_v57  ;;  %v2581_v62 = vld [vmem:[%s8716_s3 + $0x58] sm:$0xff]  ;;  %v2608_v63 = vld [vmem:[%s8716_s3 + $0x130] sm:$0xff]  ;;  %v2582_v3 = vld [vmem:[%s8716_s3 + $0x60] sm:$0xff] }
  0x21   : > { %5399 = vmatprep.mubr.msk.f32.mxu0 %vm251_vm1, %v226_v9  ;;  %5552 = vmatpush1.bf16.msra.mxu0 %v5976_v54  ;;  %v5515_v0 = vpack.c.bf16 %v2581_v62, %v2580_v61  ;;  %v2609_v1 = vld [vmem:[%s8716_s3 + $0x138] sm:$0xff]  ;;  %v2583_v4 = vld [vmem:[%s8716_s3 + $0x68] sm:$0xff]  ;;  %v2610_v5 = vld [vmem:[%s8716_s3 + $0x140] sm:$0xff] }
  0x22   : > { %5511 = vmatprep.subr.bf16.mxu1 %v8718_v36  ;;  %5553 = vmatprep.subr.bf16.mxu0 %v8718_v36  ;;  %v6010_v2 = vpack.c.bf16 %v2609_v1, %v2608_v63  ;;  %v5518_v6 = vpack.c.bf16 %v2583_v4, %v2582_v3  ;;  %v2611_v7 = vld [vmem:[%s8716_s3 + $0x148] sm:$0xff]  ;;  %v2584_v9 = vld [vmem:[%s8716_s3 + $0x70] sm:$0xff]  ;;  %v2593_v37 = vld [vmem:[%s8716_s3 + $0xb8] sm:$0xff] }
  0x23   : > { %v6027_v8 = vpack.c.bf16 %v2611_v7, %v2610_v5  ;;  %v2592_v35 = vld [vmem:[%s8716_s3 + $0xb0] sm:$0xff]  ;;  %v2621_v41 = vld [vmem:[%s8716_s3 + $0x198] sm:$0xff]  ;;  %v2594_v44 = vld [vmem:[%s8716_s3 + $0xc0] sm:$0xff] }
  0x24   : > { %5400 = vmatmul.mubr.msk.f32.gmra.mrb[8].mxu0 %vm251_vm1, %v227_v10  ;;  %5513 = vmatpush1.bf16.msra.mxu1 %v5512_v58  ;;  %v2585_v10 = vld [vmem:[%s8716_s3 + $0x78] sm:$0xff]  ;;  %v2620_v38 = vld [vmem:[%s8716_s3 + $0x190] sm:$0xff]  ;;  %v5533_v40 = vpack.c.bf16 %v2593_v37, %v2592_v35  ;;  %v2595_v45 = vld [vmem:[%s8716_s3 + $0xc8] sm:$0xff] }
  0x25   : > { %5402 = vmatprep.mubr.msk.f32.mxu0 %vm251_vm1, %v228_v11  ;;  %5555 = vmatpush1.bf16.msra.mxu0 %v5993_v60  ;;  %v2612_v11 = vld [vmem:[%s8716_s3 + $0x150] sm:$0xff]  ;;  %v6115_v42 = vpack.c.bf16 %v2621_v41, %v2620_v38  ;;  %v2622_v46 = vld [vmem:[%s8716_s3 + $0x1a0] sm:$0xff]  ;;  %v5536_v50 = vpack.c.bf16 %v2595_v45, %v2594_v44  ;;  %v2623_v51 = vld [vmem:[%s8716_s3 + $0x1a8] sm:$0xff] }
  0x26   : > { %5514 = vmatprep.subr.bf16.mxu1 %v8718_v36  ;;  %5556 = vmatprep.subr.bf16.mxu0 %v8718_v36  ;;  %v1130_v43 = vld [vmem:[#allocation2 + $0xf] sm:$0xff]  ;;  %v1129_v52 = vld [vmem:[#allocation2 + $0x7] sm:$0xff]  ;;  %v6138_v53 = vpack.c.bf16 %v2623_v51, %v2622_v46  ;;  %v2597_v58 = vld [vmem:[%s8716_s3 + $0xd8] sm:$0xff]  ;;  %v8855_v46 = vmov 0 }
  0x27   : > { %1194 = vst.msk [vmem:[#allocation3 + $0x28] sm:$0xff] %vm609_vm2, %v1130_v43  ;;  %v2596_v57 = vld [vmem:[%s8716_s3 + $0xd0] sm:$0xff]  ;;  %v2625_v62 = vld [vmem:[%s8716_s3 + $0x1b8] sm:$0xff]  ;;  %v2598_v3 = vld [vmem:[%s8716_s3 + $0xe0] sm:$0xff] }
  0x28   : > { %5403 = vmatmul.mubr.msk.f32.gmra.mrb[10].mxu0 %vm251_vm1, %v229_v12  ;;  %5516 = vmatpush1.bf16.msra.mxu1 %v5515_v0  ;;  %v5521_v12 = vpack.c.bf16 %v2585_v10, %v2584_v9  ;;  %8821 = vst [vmem:[#allocation4_spill] sm:$0xff] %v6138_v53  ;;  %v2624_v59 = vld [vmem:[%s8716_s3 + $0x1b0] sm:$0xff]  ;;  %v5539_v61 = vpack.c.bf16 %v2597_v58, %v2596_v57  ;;  %v2599_v4 = vld [vmem:[%s8716_s3 + $0xe8] sm:$0xff]  ;;  %v2626_v5 = vld [vmem:[%s8716_s3 + $0x1c0] sm:$0xff] }
  0x29   : > { %5405 = vmatprep.mubr.msk.f32.mxu0 %vm251_vm1, %v230_v13  ;;  %5558 = vmatpush1.bf16.msra.mxu0 %v6010_v2  ;;  %v2613_v13 = vld [vmem:[%s8716_s3 + $0x158] sm:$0xff]  ;;  %v6159_v63 = vpack.c.bf16 %v2625_v62, %v2624_v59  ;;  %v1418_v0 = vld [vmem:[#allocation2 + $0x9] sm:$0xff]  ;;  %v5542_v10 = vpack.c.bf16 %v2599_v4, %v2598_v3  ;;  %v2630_v37 = vld [vmem:[%s8716_s3 + $0x1e0] sm:$0xff] }
  0x2a   : > { %5517 = vmatprep.subr.bf16.mxu1 %v8718_v36  ;;  %5559 = vmatprep.subr.bf16.mxu0 %v8718_v36  ;;  %1482 = vst.msk [vmem:[#allocation3 + $0x8] sm:$0xff] %vm609_vm2, %v1418_v0  ;;  %v2631_v38 = vld [vmem:[%s8716_s3 + $0x1e8] sm:$0xff] }
  0x2b   : > { %8822 = vst [vmem:[#allocation5_spill] sm:$0xff] %v6159_v63  ;;  %v6220_v43 = vpack.c.bf16 %v2631_v38, %v2630_v37 }
  0x2c   : > { %5406 = vmatmul.mubr.msk.f32.gmra.mrb[12].mxu0 %vm251_vm1, %v231_v14  ;;  %5519 = vmatpush1.bf16.msra.mxu1 %v5518_v6  ;;  %v6044_v14 = vpack.c.bf16 %v2613_v13, %v2612_v11  ;;  %v2627_v11 = vld [vmem:[%s8716_s3 + $0x1c8] sm:$0xff] }
  0x2d   : > { %5408 = vmatprep.mubr.msk.f32.mxu0 %vm251_vm1, %v232_v15  ;;  %5561 = vmatpush1.bf16.msra.mxu0 %v6027_v8  ;;  %v2586_v15 = vld [vmem:[%s8716_s3 + $0x80] sm:$0xff]  ;;  %8827 = vst [vmem:[#allocation8_spill] sm:$0xff] %v6220_v43 }
  0x2e   : > { %5520 = vmatprep.subr.bf16.mxu1 %v8718_v36  ;;  %5562 = vmatprep.subr.bf16.mxu0 %v8718_v36 }
  0x30   : > { %5409 = vmatmul.mubr.msk.f32.gmra.mrb[14].mxu0 %vm251_vm1, %v233_v16  ;;  %5522 = vmatpush1.bf16.msra.mxu1 %v5521_v12  ;;  %v2587_v16 = vld [vmem:[%s8716_s3 + $0x88] sm:$0xff] }
  0x31   : > { %5411 = vmatprep.mubr.msk.f32.mxu0 %vm251_vm1, %v234_v17  ;;  %5564 = vmatpush1.bf16.msra.mxu0 %v6044_v14  ;;  %v2614_v17 = vld [vmem:[%s8716_s3 + $0x160] sm:$0xff] }
  0x32   : > { %5523 = vmatprep.subr.bf16.mxu1 %v8718_v36  ;;  %5565 = vmatprep.subr.bf16.mxu0 %v8718_v36 }
  0x34   : > { %5412 = vmatmul.mubr.msk.f32.gmra.mrb[16].mxu0 %vm251_vm1, %v235_v18  ;;  %v5524_v18 = vpack.c.bf16 %v2587_v16, %v2586_v15  ;;  %v6179_v15 = vpack.c.bf16 %v2627_v11, %v2626_v5 }
  0x35   : > { %5414 = vmatprep.mubr.msk.f32.mxu0 %vm251_vm1, %v236_v19  ;;  %v2615_v19 = vld [vmem:[%s8716_s3 + $0x168] sm:$0xff] }
  0x36   : > { %5525 = vmatpush1.bf16.msra.mxu1 %v5524_v18  ;;  %8823 = vst [vmem:[#allocation6_spill] sm:$0xff] %v6179_v15  ;;  %v2601_v18 = vld [vmem:[%s8716_s3 + $0xf8] sm:$0xff] }
  0x37   : > { %5526 = vmatprep.subr.bf16.mxu1 %v8718_v36 }
  0x38   : > { %5415 = vmatmul.mubr.msk.f32.gmra.mrb[18].mxu0 %vm251_vm1, %v237_v20  ;;  %v6061_v20 = vpack.c.bf16 %v2615_v19, %v2614_v17  ;;  %v2600_v17 = vld [vmem:[%s8716_s3 + $0xf0] sm:$0xff] }
  0x39   : > { %5417 = vmatprep.mubr.msk.f32.mxu0 %vm251_vm1, %v238_v21  ;;  %v2588_v21 = vld [vmem:[%s8716_s3 + $0x90] sm:$0xff] }
  0x3a   : > { %5567 = vmatpush1.bf16.msra.mxu0 %v6061_v20  ;;  %v2628_v19 = vld [vmem:[%s8716_s3 + $0x1d0] sm:$0xff] }
  0x3b   : > { %5568 = vmatprep.subr.bf16.mxu0 %v8718_v36 }
  0x3c   : > { %5418 = vmatmul.mubr.msk.f32.gmra.mrb[20].mxu0 %vm251_vm1, %v239_v22  ;;  %v2589_v22 = vld [vmem:[%s8716_s3 + $0x98] sm:$0xff] }
  0x3d   : > { %5420 = vmatprep.mubr.msk.f32.mxu0 %vm251_vm1, %v240_v23  ;;  %v2616_v23 = vld [vmem:[%s8716_s3 + $0x170] sm:$0xff] }
  0x40   : > { %5421 = vmatmul.mubr.msk.f32.gmra.mrb[22].mxu0 %vm251_vm1, %v241_v24  ;;  %v5527_v24 = vpack.c.bf16 %v2589_v22, %v2588_v21 }
  0x41   : > { %5423 = vmatprep.mubr.msk.f32.mxu0 %vm251_vm1, %v242_v25  ;;  %v2617_v25 = vld [vmem:[%s8716_s3 + $0x178] sm:$0xff] }
  0x42   : > { %5528 = vmatpush1.bf16.msra.mxu1 %v5527_v24  ;;  %v5545_v24 = vpack.c.bf16 %v2601_v18, %v2600_v17 }
  0x43   : > { %5529 = vmatprep.subr.bf16.mxu1 %v8718_v36 }
  0x44   : > { %5424 = vmatmul.mubr.msk.f32.gmra.mrb[24].mxu0 %vm251_vm1, %v243_v26  ;;  %v6078_v26 = vpack.c.bf16 %v2617_v25, %v2616_v23  ;;  %v2629_v25 = vld [vmem:[%s8716_s3 + $0x1d8] sm:$0xff] }
  0x45   : > { %5426 = vmatprep.mubr.msk.f32.mxu0 %vm251_vm1, %v244_v27  ;;  %v648_v27 = vlaneseq }
  0x46   : > { %5570 = vmatpush1.bf16.msra.mxu0 %v6078_v26 }
  0x47   : > { %5571 = vmatprep.subr.bf16.mxu0 %v8718_v36  ;;  %v6097_v34 = vshrl.u32 %v648_v27, 7 }
  0x48   : > { %5427 = vmatmul.mubr.msk.f32.gmra.mrb[26].mxu0 %vm251_vm1, %v245_v28  ;;  %v2590_v28 = vld [vmem:[%s8716_s3 + $0xa0] sm:$0xff] }
  0x49   : > { %5429 = vmatprep.mubr.msk.f32.mxu0 %vm251_vm1, %v246_v29  ;;  %v2591_v29 = vld [vmem:[%s8716_s3 + $0xa8] sm:$0xff]  ;;  %v685_v39 = vand.u32 15, %v6097_v34  ;;  %v651_v9 = vadd.s32 16, %v6097_v34  ;;  %v650_v13 = vadd.s32 8, %v6097_v34  ;;  %v6205_v35 = vadd.s32 40, %v6097_v34 }
  0x4a   : > { %v6231_v57 = vadd.s32 48, %v6097_v34  ;;  %v6248_v5 = vadd.s32 64, %v6097_v34 }
  0x4b   : > { %vm6129_vm4 = vcmp.gt.s32.totalorder %v685_v39, 0  ;;  %v699_v23 = vand.u32 15, %v651_v9  ;;  %v720_v62 = vand.u32 15, %v6205_v35  ;;  %v2633_v9 = vld [vmem:[%s8716_s3 + $0x1f8] sm:$0xff] }
  0x4c   : > { %5430 = vmatmul.mubr.msk.f32.gmra.mrb[28].mxu0 %vm251_vm1, %v247_v30  ;;  %v2618_v30 = vld [vmem:[%s8716_s3 + $0x180] sm:$0xff]  ;;  %v1161_v55 = vsel %vm6129_vm4, %v1129_v52, 0.0  ;;  %v741_v35 = vand.u32 15, %v6248_v5 }
  0x4d   : > { %5432 = vmatprep.mubr.msk.f32.mxu0 %vm251_vm1, %v248_v31  ;;  %v5530_v31 = vpack.c.bf16 %v2591_v29, %v2590_v28  ;;  %1193 = vst.msk [vmem:[#allocation3] sm:$0xff] %vm609_vm2, %v1161_v55  ;;  %v692_v28 = vand.u32 15, %v650_v13  ;;  %v6198_v29 = vpack.c.bf16 %v2629_v25, %v2628_v19  ;;  %vm6215_vm5 = vcmp.gt.s32.totalorder %v699_v23, 0 }
  0x4e   : > { %vm6304_vm9 = vcmp.lt.s32.totalorder %v720_v62, 15  ;;  %vm6363_vm11 = vcmp.gt.s32.totalorder %v741_v35, 0 }
  0x4f   : > { %5531 = vmatpush1.bf16.msra.mxu1 %v5530_v31  ;;  %8824 = vst [vmem:[#allocation7_spill] sm:$0xff] %v6198_v29  ;;  %v652_v31 = vadd.s32 24, %v6097_v34  ;;  %vm6222_vm6 = vcmp.lt.s32.totalorder %v692_v28, 15 }
  0x50   : > { %5433 = vmatmul.mubr.msk.f32.gmra.mrb[30].mxu0 %vm251_vm1, %v249_v32  ;;  %v2619_v32 = vld [vmem:[%s8716_s3 + $0x188] sm:$0xff]  ;;  %5532 = vmatprep.subr.bf16.mxu1 %v8718_v36 }
  0x51   : > { %v6095_v33 = vpack.c.bf16 %v2619_v32, %v2618_v30  ;;  %v653_v30 = vadd.s32 32, %v6097_v34 }
  0x53   : > { %5573 = vmatpush1.bf16.msra.mxu0 %v6095_v33  ;;  %5534 = vmatpush1.bf16.msra.mxu1 %v5533_v40  ;;  %v713_v55 = vand.u32 15, %v653_v30 }
  0x54   : > { %5574 = vmatprep.subr.bf16.mxu0 %v8718_v36  ;;  %5535 = vmatprep.subr.bf16.mxu1 %v8718_v36 }
  0x55   : > { %vm6278_vm7 = vcmp.gt.s32.totalorder %v713_v55, 0 }
  0x57   : > { %5576 = vmatpush1.bf16.msra.mxu0 %v6115_v42  ;;  %5537 = vmatpush1.bf16.msra.mxu1 %v5536_v50 }
  0x58   : > { %5577 = vmatprep.subr.bf16.mxu0 %v8718_v36  ;;  %5538 = vmatprep.subr.bf16.mxu1 %v8718_v36 }
  0x5b   : > { %5579 = vmatpush1.bf16.msra.mxu0 %v6138_v53  ;;  %5540 = vmatpush1.bf16.msra.mxu1 %v5539_v61 }
  0x5c   : > { %5580 = vmatprep.subr.bf16.mxu0 %v8718_v36  ;;  %5541 = vmatprep.subr.bf16.mxu1 %v8718_v36 }
  0x5f   : > { %5582 = vmatpush1.bf16.msra.mxu0 %v6159_v63  ;;  %5543 = vmatpush1.bf16.msra.mxu1 %v5542_v10  ;;  %v6730_v63 = vadd.s32 200, %v6097_v34 }
  0x60   : > { %5583 = vmatprep.subr.bf16.mxu0 %v8718_v36  ;;  %5544 = vmatprep.subr.bf16.mxu1 %v8718_v36 }
  0x63   : > { %5585 = vmatpush1.bf16.msra.mxu0 %v6179_v15  ;;  %5546 = vmatpush1.bf16.msra.mxu1 %v5545_v24 }
  0x64   : > { %5586 = vmatprep.subr.bf16.mxu0 %v8718_v36  ;;  %5611 = vmatprep.subr.bf16.mxu1 %v8718_v36 }
  0x67   : > { %5588 = vmatpush1.bf16.msra.mxu0 %v6198_v29 }
  0x68   : > { %5589 = vmatprep.subr.bf16.mxu0 %v8718_v36 }
  0x6b   : > { %5591 = vmatpush1.bf16.msra.mxu0 %v6220_v43 }
  0x6c   : > { %5592 = vmatprep.subr.bf16.mxu0 %v8718_v36 }
  0x8f   : > { %v1290_v56 = vpop.permute.xlu0 %1289 }
  0x90   : > { %v1292_v49 = vpop.permute.xlu1 %1291  ;;  %1386 = vst.msk [vmem:[#allocation3] sm:$0xff] %vm8721_vm3, %v1290_v56  ;;  %v706_v56 = vand.u32 15, %v652_v31 }
  0x91   : > { %1387 = vst.msk [vmem:[#allocation3 + $0x28] sm:$0xff] %vm8721_vm3, %v1292_v49 }
  0x92   : > { %vm6282_vm8 = vcmp.lt.s32.totalorder %v706_v56, 15 }
  0xe7   : > { %v5389_v1 = vpop.f32.mrb[0].mxu0 }
  0xe8   : > { %v578_v6 = vmax.f32 %v5389_v1, 0.0  ;;  %v418_v7 = vpop.f32.mrb[1].mxu0 }
  0xe9   : > { %v577_v12 = vmax.f32 %v418_v7, 0.0  ;;  %v2632_v7 = vld [vmem:[%s8716_s3 + $0x1f0] sm:$0xff] }
  0xea   : > { %617 = vst.msk [vmem:[#allocation2 + $0x20] sm:$0xff] %vm609_vm2, %v578_v6  ;;  %v6268_v13 = vpack.c.bf16 %v2633_v9, %v2632_v7 }
  0xeb   : > { %616 = vst.msk [vmem:[#allocation2 + $0x18] sm:$0xff] %vm609_vm2, %v577_v12  ;;  %v5392_v16 = vpop.f32.mrb[2].mxu0  ;;  %v6265_v12 = vadd.s32 56, %v6097_v34 }
  0xec   : > { %v580_v21 = vmax.f32 %v5392_v16, 0.0  ;;  %v428_v22 = vpop.f32.mrb[3].mxu0  ;;  %8830 = vst [vmem:[#allocation9_spill] sm:$0xff] %v6268_v13  ;;  %5594 = vmatpush1.bf16.msra.mxu0 %v6268_v13 }
  0xed   : > { %v579_v27 = vmax.f32 %v428_v22, 0.0 }
  0xee   : > { %619 = vst.msk [vmem:[#allocation2 + $0x30] sm:$0xff] %vm609_vm2, %v580_v21 }
  0xef   : > { %618 = vst.msk [vmem:[#allocation2 + $0x28] sm:$0xff] %vm609_vm2, %v579_v27  ;;  %v5395_v32 = vpop.f32.mrb[4].mxu0  ;;  %v727_v27 = vand.u32 15, %v6231_v57 }
  0xf0   : > { %v582_v39 = vmax.f32 %v5395_v32, 0.0  ;;  %v438_v40 = vpop.f32.mrb[5].mxu0 }
  0xf1   : > { %v581_v44 = vmax.f32 %v438_v40, 0.0  ;;  %v1228_v45 = vld [vmem:[#allocation2 + $0x20] sm:$0xff]  ;;  %vm6347_vm10 = vcmp.gt.s32.totalorder %v727_v27, 0 }
  0xf2   : > { %v1739_v49 = vld [vmem:[#allocation2 + $0x20] sm:$0xff]  ;;  %621 = vst.msk [vmem:[#allocation2 + $0x40] sm:$0xff] %vm609_vm2, %v582_v39  ;;  %1295 = vrot.lane.b32.xlu1 %v1228_v45, %s5811_s23  ;;  %v1514_v50 = vld [vmem:[#allocation2 + $0x17] sm:$0xff]  ;;  %v734_v39 = vand.u32 15, %v6265_v12 }
  0xf3   : > { %v1515_v51 = vld [vmem:[#allocation2 + $0x1f] sm:$0xff]  ;;  %1771 = vst.msk [vmem:[#allocation3 + $0x38] sm:$0xff] %vm609_vm2, %v1739_v49  ;;  %620 = vst.msk [vmem:[#allocation2 + $0x38] sm:$0xff] %vm609_vm2, %v581_v44  ;;  %v1546_v58 = vsel %vm6129_vm4, %v1514_v50, 0.0  ;;  %v5398_v59 = vpop.f32.mrb[6].mxu0  ;;  %v1419_v0 = vld [vmem:[#allocation2 + $0x11] sm:$0xff] }
  0xf4   : > { %v6228_v52 = vld [vmem:[#allocation2 + $0x19] sm:$0xff]  ;;  %1196 = vst.msk [vmem:[#allocation3 + $0x78] sm:$0xff] %vm609_vm2, %v1515_v51  ;;  %v1163_v1 = vsel %vm6215_vm5, %v1514_v50, 0.0  ;;  %1610 = vrot.lane.b32.xlu0 %v1546_v58, %s5811_s23  ;;  %v584_v3 = vmax.f32 %v5398_v59, 0.0  ;;  %v448_v4 = vpop.f32.mrb[7].mxu0  ;;  %v1451_v6 = vsel %vm6222_vm6, %v1419_v0, 0.0 }
  0xf5   : > { %v6237_v61 = vld [vmem:[#allocation2 + $0x18] sm:$0xff]  ;;  %1484 = vst.msk [vmem:[#allocation3 + $0x58] sm:$0xff] %vm609_vm2, %v6228_v52  ;;  %1195 = vst.msk [vmem:[#allocation3 + $0x50] sm:$0xff] %vm609_vm2, %v1163_v1  ;;  %v6262_v10 = vld [vmem:[#allocation2 + $0x30] sm:$0xff]  ;;  %v583_v11 = vmax.f32 %v448_v4, 0.0  ;;  %v6329_v50 = vadd.s32 80, %v6097_v34 }
  0xf6   : > { %1770 = vst.msk [vmem:[#allocation3 + $0x10] sm:$0xff] %vm609_vm2, %v6237_v61  ;;  %1483 = vst.msk [vmem:[#allocation3 + $0x30] sm:$0xff] %vm609_vm2, %v1451_v6  ;;  %v1741_v16 = vld [vmem:[#allocation2 + $0x30] sm:$0xff]  ;;  %1612 = vrot.lane.b32.xlu1 %v1515_v51, %s5811_s23  ;;  %v6273_v18 = vld [vmem:[#allocation2 + $0x28] sm:$0xff]  ;;  %v6332_v51 = vadd.s32 72, %v6097_v34  ;;  %vm6367_vm12 = vcmp.lt.s32.totalorder %v734_v39, 15 }
  0xf7   : > { %v6270_v17 = vld [vmem:[#allocation2 + $0x29] sm:$0xff]  ;;  %623 = vst.msk [vmem:[#allocation2 + $0x50] sm:$0xff] %vm609_vm2, %v584_v3  ;;  %1773 = vst.msk [vmem:[#allocation3 + $0x88] sm:$0xff] %vm609_vm2, %v1741_v16  ;;  %v5401_v24 = vpop.f32.mrb[8].mxu0  ;;  %v6292_v25 = vld [vmem:[#allocation2 + $0x21] sm:$0xff] }
  0xf8   : > { %v6276_v19 = vld [vmem:[#allocation2 + $0x2f] sm:$0xff]  ;;  %2378 = vst.msk [vmem:[#allocation3 + $0x20] sm:$0xff] %vm609_vm2, %v6270_v17  ;;  %622 = vst.msk [vmem:[#allocation2 + $0x48] sm:$0xff] %vm609_vm2, %v583_v11  ;;  %v6290_v23 = vld [vmem:[#allocation2 + $0x27] sm:$0xff]  ;;  %2188 = vrot.lane.b32.xlu0 %v6262_v10, %s5811_s23  ;;  %v586_v30 = vmax.f32 %v5401_v24, 0.0  ;;  %v458_v31 = vpop.f32.mrb[9].mxu0 }
  0xf9   : > { %2091 = vst.msk [vmem:[#allocation3 + $0x40] sm:$0xff] %vm609_vm2, %v6276_v19  ;;  %1198 = vst.msk [vmem:[#allocation3 + $0xc8] sm:$0xff] %vm609_vm2, %v6276_v19  ;;  %v1422_v28 = vld [vmem:[#allocation2 + $0x29] sm:$0xff]  ;;  %v2058_v37 = vsel %vm6129_vm4, %v6290_v23, 0.0  ;;  %v585_v38 = vmax.f32 %v458_v31, 0.0  ;;  %v1453_v40 = vsel %vm6282_vm8, %v6292_v25, 0.0 }
  0xfa   : > { %1772 = vst.msk [vmem:[#allocation3 + $0x60] sm:$0xff] %vm609_vm2, %v6273_v18  ;;  %1486 = vst.msk [vmem:[#allocation3 + $0xa8] sm:$0xff] %vm609_vm2, %v1422_v28  ;;  %v1165_v44 = vsel %vm6278_vm7, %v6290_v23, 0.0  ;;  %v1743_v45 = vld [vmem:[#allocation2 + $0x40] sm:$0xff]  ;;  %1898 = vrot.lane.b32.xlu1 %v6228_v52, %s5811_s23  ;;  %v6326_v47 = vld [vmem:[#allocation2 + $0x31] sm:$0xff]  ;;  %v755_v24 = vand.u32 15, %v6329_v50 }
  0xfb   : > { %2090 = vst.msk [vmem:[#allocation3 + $0x18] sm:$0xff] %vm609_vm2, %v2058_v37  ;;  %v6321_v49 = vld [vmem:[#allocation2 + $0x39] sm:$0xff]  ;;  %625 = vst.msk [vmem:[#allocation2 + $0x60] sm:$0xff] %vm609_vm2, %v586_v30  ;;  %v2347_v52 = vsel %vm6222_vm6, %v6326_v47, 0.0  ;;  %v5404_v57 = vpop.f32.mrb[10].mxu0  ;;  %v1455_v59 = vsel %vm6304_vm9, %v6326_v47, 0.0 }
  0xfc   : > { %1485 = vst.msk [vmem:[#allocation3 + $0x80] sm:$0xff] %vm609_vm2, %v1453_v40  ;;  %1197 = vst.msk [vmem:[#allocation3 + $0xa0] sm:$0xff] %vm609_vm2, %v1165_v44  ;;  %v6343_v55 = vld [vmem:[#allocation2 + $0x3f] sm:$0xff]  ;;  %v6345_v56 = vld [vmem:[#allocation2 + $0x37] sm:$0xff]  ;;  %2186 = vrot.lane.b32.xlu0 %v6273_v18, %s5811_s23  ;;  %v588_v62 = vmax.f32 %v5404_v57, 0.0  ;;  %v468_v0 = vpop.f32.mrb[11].mxu0 }
  0xfd   : > { %1775 = vst.msk [vmem:[#allocation3 + $0xd8] sm:$0xff] %vm609_vm2, %v1743_v45  ;;  %2380 = vst.msk [vmem:[#allocation3 + $0x70] sm:$0xff] %vm609_vm2, %v6321_v49  ;;  %v2060_v1 = vsel %vm6215_vm5, %v6345_v56, 0.0  ;;  %v1136_v3 = vld [vmem:[#allocation2 + $0x3f] sm:$0xff]  ;;  %v587_v5 = vmax.f32 %v468_v0, 0.0  ;;  %v1135_v9 = vld [vmem:[#allocation2 + $0x37] sm:$0xff] }
  0xfe   : > { %624 = vst.msk [vmem:[#allocation2 + $0x58] sm:$0xff] %vm609_vm2, %v585_v38  ;;  %2379 = vst.msk [vmem:[#allocation3 + $0x48] sm:$0xff] %vm609_vm2, %v2347_v52  ;;  %v1742_v4 = vld [vmem:[#allocation2 + $0x38] sm:$0xff]  ;;  %1293 = vrot.lane.b32.xlu1 %v6237_v61, %s5811_s23  ;;  %v748_v27 = vand.u32 15, %v6332_v51  ;;  %v6384_v28 = vadd.s32 88, %v6097_v34  ;;  %v1167_v30 = vsel %vm6347_vm10, %v1135_v9, 0.0 }
  0xff   : > { %2093 = vst.msk [vmem:[#allocation3 + $0x90] sm:$0xff] %vm609_vm2, %v6343_v55  ;;  %1487 = vst.msk [vmem:[#allocation3 + $0xd0] sm:$0xff] %vm609_vm2, %v1455_v59  ;;  %v1424_v11 = vld [vmem:[#allocation2 + $0x39] sm:$0xff]  ;;  %v6374_v12 = vld [vmem:[#allocation2 + $0x49] sm:$0xff]  ;;  %v5407_v35 = vpop.f32.mrb[12].mxu0  ;;  %v6398_v37 = vadd.s32 96, %v6097_v34 }
 0x100   : > { %2092 = vst.msk [vmem:[#allocation3 + $0x68] sm:$0xff] %vm609_vm2, %v2060_v1  ;;  %1200 = vst.msk [vmem:[#allocation3 + $0x118] sm:$0xff] %vm609_vm2, %v1136_v3  ;;  %v6379_v16 = vld [vmem:[#allocation2 + $0x41] sm:$0xff]  ;;  %v6395_v31 = vld [vmem:[#allocation2 + $0x4f] sm:$0xff]  ;;  %1616 = vrot.lane.b32.xlu0 %v6276_v19, %s5811_s23  ;;  %v590_v39 = vmax.f32 %v5407_v35, 0.0  ;;  %v478_v40 = vpop.f32.mrb[13].mxu0 }
 0x101   : > { %1774 = vst.msk [vmem:[#allocation3 + $0xb0] sm:$0xff] %vm609_vm2, %v1742_v4  ;;  %627 = vst.msk [vmem:[#allocation2 + $0x70] sm:$0xff] %vm609_vm2, %v588_v62  ;;  %v2349_v61 = vsel %vm6282_vm8, %v6379_v16, 0.0  ;;  %v2030_v38 = vld [vmem:[#allocation2 + $0x47] sm:$0xff]  ;;  %v6405_v44 = vadd.s32 112, %v6097_v34  ;;  %v1138_v51 = vld [vmem:[#allocation2 + $0x4f] sm:$0xff] }
 0x102   : > { %1488 = vst.msk [vmem:[#allocation3 + $0xf8] sm:$0xff] %vm609_vm2, %v1424_v11  ;;  %2382 = vst.msk [vmem:[#allocation3 + $0xc0] sm:$0xff] %vm609_vm2, %v6374_v12  ;;  %v2062_v45 = vsel %vm6278_vm7, %v2030_v38, 0.0  ;;  %v1425_v50 = vld [vmem:[#allocation2 + $0x41] sm:$0xff]  ;;  %v589_v52 = vmax.f32 %v478_v40, 0.0  ;;  %v1169_v59 = vsel %vm6363_vm11, %v2030_v38, 0.0  ;;  %1299 = vrot.lane.b32.xlu1 %v6262_v10, %s5811_s23 }
 0x103   : > { %626 = vst.msk [vmem:[#allocation2 + $0x68] sm:$0xff] %vm609_vm2, %v587_v5  ;;  %1199 = vst.msk [vmem:[#allocation3 + $0xf0] sm:$0xff] %vm609_vm2, %v1167_v30  ;;  %v1457_v19 = vsel %vm6367_vm12, %v1425_v50, 0.0  ;;  %v1744_v57 = vld [vmem:[#allocation2 + $0x48] sm:$0xff]  ;;  %vm6424_vm13 = vcmp.gt.s32.totalorder %v755_v24, 0  ;;  %vm6428_vm14 = vcmp.lt.s32.totalorder %v748_v27, 15 }
 0x104   : > { %2381 = vst.msk [vmem:[#allocation3 + $0x98] sm:$0xff] %vm609_vm2, %v2349_v61  ;;  %2095 = vst.msk [vmem:[#allocation3 + $0xe0] sm:$0xff] %vm609_vm2, %v6395_v31  ;;  %v1426_v62 = vld [vmem:[#allocation2 + $0x49] sm:$0xff]  ;;  %v762_v5 = vand.u32 15, %v6384_v28  ;;  %v6434_v9 = vadd.s32 104, %v6097_v34  ;;  %v1548_v10 = vsel %vm6215_vm5, %v6290_v23, 0.0 }
 0x105   : > { %2094 = vst.msk [vmem:[#allocation3 + $0xb8] sm:$0xff] %vm609_vm2, %v2062_v45  ;;  %1202 = vst.msk [vmem:[#allocation3 + $0x168] sm:$0xff] %vm609_vm2, %v1138_v51  ;;  %v6419_v0 = vld [vmem:[#allocation2 + $0x59] sm:$0xff]  ;;  %v6422_v1 = vld [vmem:[#allocation2 + $0x51] sm:$0xff]  ;;  %v5410_v24 = vpop.f32.mrb[14].mxu0  ;;  %v769_v27 = vand.u32 15, %v6398_v37  ;;  %1614 = vrot.lane.b32.xlu0 %v1548_v10, %s5811_s23 }
 0x106   : > { %629 = vst.msk [vmem:[#allocation2 + $0x80] sm:$0xff] %vm609_vm2, %v590_v39  ;;  %1489 = vst.msk [vmem:[#allocation3 + $0x120] sm:$0xff] %vm609_vm2, %v1457_v19  ;;  %v2351_v11 = vsel %vm6304_vm9, %v6422_v1, 0.0  ;;  %v2033_v28 = vld [vmem:[#allocation2 + $0x5f] sm:$0xff]  ;;  %v592_v30 = vmax.f32 %v5410_v24, 0.0  ;;  %v488_v41 = vpop.f32.mrb[15].mxu0  ;;  %1902 = vrot.lane.b32.xlu1 %v6270_v17, %s5811_s23 }
 0x107   : > { %1776 = vst.msk [vmem:[#allocation3 + $0x100] sm:$0xff] %vm609_vm2, %v1744_v57  ;;  %1201 = vst.msk [vmem:[#allocation3 + $0x140] sm:$0xff] %vm609_vm2, %v1169_v59  ;;  %v783_v23 = vand.u32 15, %v6405_v44  ;;  %v2032_v61 = vld [vmem:[#allocation2 + $0x57] sm:$0xff]  ;;  %v6455_v39 = vld [vmem:[#allocation2 + $0x40] sm:$0xff]  ;;  %v591_v40 = vmax.f32 %v488_v41, 0.0 }
 0x108   : > { %1490 = vst.msk [vmem:[#allocation3 + $0x148] sm:$0xff] %vm609_vm2, %v1426_v62  ;;  %2384 = vst.msk [vmem:[#allocation3 + $0x110] sm:$0xff] %vm609_vm2, %v6419_v0  ;;  %v1427_v35 = vld [vmem:[#allocation2 + $0x51] sm:$0xff]  ;;  %v2064_v37 = vsel %vm6347_vm10, %v2032_v61, 0.0  ;;  %v1171_v44 = vsel %vm6424_vm13, %v2032_v61, 0.0  ;;  %vm6471_vm15 = vcmp.lt.s32.totalorder %v762_v5, 15 }
 0x109   : > { %628 = vst.msk [vmem:[#allocation2 + $0x78] sm:$0xff] %vm609_vm2, %v589_v52  ;;  %2383 = vst.msk [vmem:[#allocation3 + $0xe8] sm:$0xff] %vm609_vm2, %v2351_v11  ;;  %v1746_v38 = vld [vmem:[#allocation2 + $0x58] sm:$0xff]  ;;  %v1459_v45 = vsel %vm6428_vm14, %v1427_v35, 0.0  ;;  %v1745_v50 = vld [vmem:[#allocation2 + $0x50] sm:$0xff]  ;;  %v8847_v19 = vmov 0  ;;  %2192 = vrot.lane.b32.xlu0 %v6455_v39, %s5811_s23 }
 0x10a   : > { %2097 = vst.msk [vmem:[#allocation3 + $0x130] sm:$0xff] %vm609_vm2, %v2033_v28  ;;  %1204 = vst.msk [vmem:[#allocation3 + $0x1b8] sm:$0xff] %vm609_vm2, %v2033_v28  ;;  %v6466_v51 = vld [vmem:[#allocation2 + $0x69] sm:$0xff]  ;;  %v6469_v52 = vld [vmem:[#allocation2 + $0x61] sm:$0xff]  ;;  %v8848_v19 = vsel %vm6471_vm15, 4294967295, %v8847_v19  ;;  %v776_v57 = vand.u32 15, %v6434_v9  ;;  %1297 = vrot.lane.b32.xlu1 %v6273_v18, %s5811_s23 }
 0x10b   : > { %1778 = vst.msk [vmem:[#allocation3 + $0x150] sm:$0xff] %vm609_vm2, %v1746_v38  ;;  %631 = vst.msk [vmem:[#allocation2 + $0x90] sm:$0xff] %vm609_vm2, %v592_v30  ;;  %v6477_v59 = vadd.s32 128, %v6097_v34  ;;  %v6480_v62 = vadd.s32 120, %v6097_v34  ;;  %v2353_v17 = vsel %vm6367_vm12, %v6469_v52, 0.0  ;;  %v5413_v5 = vpop.f32.mrb[16].mxu0 }
 0x10c   : > { %2096 = vst.msk [vmem:[#allocation3 + $0x108] sm:$0xff] %vm609_vm2, %v2064_v37  ;;  %1491 = vst.msk [vmem:[#allocation3 + $0x170] sm:$0xff] %vm609_vm2, %v1459_v45  ;;  %vm6495_vm1 = vcmp.gt.s32.totalorder %v769_v27, 0  ;;  %v6500_v11 = vadd.s32 144, %v6097_v34  ;;  %v2035_v24 = vld [vmem:[#allocation2 + $0x6f] sm:$0xff]  ;;  %v594_v28 = vmax.f32 %v5413_v5, 0.0 }
 0x10d   : > { %1203 = vst.msk [vmem:[#allocation3 + $0x190] sm:$0xff] %vm609_vm2, %v1171_v44  ;;  %1777 = vst.msk [vmem:[#allocation3 + $0x128] sm:$0xff] %vm609_vm2, %v1745_v50  ;;  %v498_v30 = vpop.f32.mrb[17].mxu0  ;;  %v6506_v41 = vadd.s32 136, %v6097_v34  ;;  %v2034_v27 = vld [vmem:[#allocation2 + $0x67] sm:$0xff]  ;;  %vm6510_vm4 = vcmp.gt.s32.totalorder %v783_v23, 0 }
 0x10e   : > { %2386 = vst.msk [vmem:[#allocation3 + $0x160] sm:$0xff] %vm609_vm2, %v6466_v51  ;;  %630 = vst.msk [vmem:[#allocation2 + $0x88] sm:$0xff] %vm609_vm2, %v591_v40  ;;  %v1429_v61 = vld [vmem:[#allocation2 + $0x61] sm:$0xff]  ;;  %v593_v35 = vmax.f32 %v498_v30, 0.0  ;;  %v8851_v38 = vmov 0  ;;  %v2066_v40 = vsel %vm6363_vm11, %v2034_v27, 0.0 }
 0x10f   : > { %2385 = vst.msk [vmem:[#allocation3 + $0x138] sm:$0xff] %vm609_vm2, %v2353_v17  ;;  %2099 = vst.msk [vmem:[#allocation3 + $0x180] sm:$0xff] %vm609_vm2, %v2035_v24  ;;  %v8852_v38 = vsel %vm6510_vm4, 4294967295, %v8851_v38  ;;  %v1461_v37 = vsel %vm6471_vm15, %v1429_v61, 0.0  ;;  %v1428_v45 = vld [vmem:[#allocation2 + $0x59] sm:$0xff]  ;;  %v1748_v44 = vld [vmem:[#allocation2 + $0x68] sm:$0xff] }
 0x110   : > { %1206 = vst.msk [vmem:[#allocation3 + $0x208] sm:$0xff] %vm609_vm2, %v2035_v24  ;;  %v6520_v50 = vld [vmem:[#allocation2 + $0x79] sm:$0xff]  ;;  %633 = vst.msk [vmem:[#allocation2 + $0xa0] sm:$0xff] %vm609_vm2, %v594_v28  ;;  %v6523_v17 = vld [vmem:[#allocation2 + $0x71] sm:$0xff]  ;;  %vm6525_vm5 = vcmp.lt.s32.totalorder %v776_v57, 15  ;;  %v8853_v23 = vmov 0 }
 0x111   : > { %v8854_v23 = vsel %vm6525_vm5, 4294967295, %v8853_v23  ;;  %v797_v5 = vand.u32 15, %v6477_v59  ;;  %v790_v24 = vand.u32 15, %v6480_v62  ;;  %2098 = vst.msk [vmem:[#allocation3 + $0x158] sm:$0xff] %vm609_vm2, %v2066_v40  ;;  %1493 = vst.msk [vmem:[#allocation3 + $0x1c0] sm:$0xff] %vm609_vm2, %v1461_v37  ;;  %v1173_v18 = vsel %vm6495_vm1, %v2034_v27, 0.0 }
 0x112   : > { %1492 = vst.msk [vmem:[#allocation3 + $0x198] sm:$0xff] %vm609_vm2, %v1428_v45  ;;  %1780 = vst.msk [vmem:[#allocation3 + $0x1a0] sm:$0xff] %vm609_vm2, %v1748_v44  ;;  %v6537_v28 = vld [vmem:[#allocation2 + $0x38] sm:$0xff]  ;;  %v2355_v57 = vsel %vm6428_vm14, %v6523_v17, 0.0  ;;  %v5416_v59 = vpop.f32.mrb[18].mxu0  ;;  %v811_v30 = vand.u32 15, %v6500_v11 }
 0x113   : > { %2388 = vst.msk [vmem:[#allocation3 + $0x1b0] sm:$0xff] %vm609_vm2, %v6520_v50  ;;  %632 = vst.msk [vmem:[#allocation2 + $0x98] sm:$0xff] %vm609_vm2, %v593_v35  ;;  %v2037_v61 = vld [vmem:[#allocation2 + $0x7f] sm:$0xff]  ;;  %2190 = vrot.lane.b32.xlu0 %v6537_v28, %s5811_s23  ;;  %v596_v27 = vmax.f32 %v5416_v59, 0.0  ;;  %v508_v35 = vpop.f32.mrb[19].mxu0  ;;  %v804_v40 = vand.u32 15, %v6506_v41 }
 0x114   : > { %1205 = vst.msk [vmem:[#allocation3 + $0x1e0] sm:$0xff] %vm609_vm2, %v1173_v18  ;;  %2387 = vst.msk [vmem:[#allocation3 + $0x188] sm:$0xff] %vm609_vm2, %v2355_v57  ;;  %v2036_v37 = vld [vmem:[#allocation2 + $0x77] sm:$0xff]  ;;  %v1747_v45 = vld [vmem:[#allocation2 + $0x60] sm:$0xff]  ;;  %v1835_v11 = vsel %vm6222_vm6, %v6292_v25, 0.0  ;;  %v595_v18 = vmax.f32 %v508_v35, 0.0 }
 0x115   : > { %2101 = vst.msk [vmem:[#allocation3 + $0x1d0] sm:$0xff] %vm609_vm2, %v2037_v61  ;;  %v1431_v44 = vld [vmem:[#allocation2 + $0x71] sm:$0xff]  ;;  %1208 = vst.msk [vmem:[#allocation3 + $0x258] sm:$0xff] %vm609_vm2, %v2037_v61  ;;  %v2068_v36 = vsel %vm6424_vm13, %v2036_v37, 0.0  ;;  %v1430_v57 = vld [vmem:[#allocation2 + $0x69] sm:$0xff]  ;;  %1900 = vrot.lane.b32.xlu1 %v1835_v11, %s5811_s23  ;;  %vm6570_vm6 = vcmp.lt.s32.totalorder %v790_v24, 15 }
 0x116   : > { %1779 = vst.msk [vmem:[#allocation3 + $0x178] sm:$0xff] %vm609_vm2, %v1747_v45  ;;  %v1463_v41 = vsel %vm6525_vm5, %v1431_v44, 0.0  ;;  %v1750_v59 = vld [vmem:[#allocation2 + $0x78] sm:$0xff]  ;;  %v6565_v62 = vld [vmem:[#allocation2 + $0x89] sm:$0xff]  ;;  %635 = vst.msk [vmem:[#allocation2 + $0xb0] sm:$0xff] %vm609_vm2, %v596_v27  ;;  %v8856_v46 = vsel %vm6570_vm6, 4294967295, %v8855_v46 }
 0x117   : > { %v6568_v61 = vld [vmem:[#allocation2 + $0x81] sm:$0xff]  ;;  %v6575_v25 = vadd.s32 160, %v6097_v34  ;;  %2100 = vst.msk [vmem:[#allocation3 + $0x1a8] sm:$0xff] %vm609_vm2, %v2068_v36  ;;  %1495 = vst.msk [vmem:[#allocation3 + $0x210] sm:$0xff] %vm609_vm2, %v1463_v41  ;;  %v1175_v27 = vsel %vm6510_vm4, %v2036_v37, 0.0  ;;  %v5419_v35 = vpop.f32.mrb[20].mxu0  ;;  %1620 = vrot.lane.b32.xlu0 %v6343_v55, %s5811_s23 }
 0x118   : > { %1494 = vst.msk [vmem:[#allocation3 + $0x1e8] sm:$0xff] %vm609_vm2, %v1430_v57  ;;  %1782 = vst.msk [vmem:[#allocation3 + $0x1f0] sm:$0xff] %vm609_vm2, %v1750_v59  ;;  %v2357_v24 = vsel %vm6471_vm15, %v6568_v61, 0.0  ;;  %vm6592_vm0 = vcmp.gt.s32.totalorder %v797_v5, 0  ;;  %v6597_v37 = vadd.s32 152, %v6097_v34  ;;  %v2039_v44 = vld [vmem:[#allocation2 + $0x8f] sm:$0xff] }
 0x119   : > { %2390 = vst.msk [vmem:[#allocation3 + $0x200] sm:$0xff] %vm609_vm2, %v6565_v62  ;;  %634 = vst.msk [vmem:[#allocation2 + $0xa8] sm:$0xff] %vm609_vm2, %v595_v18  ;;  %v598_v11 = vmax.f32 %v5419_v35, 0.0  ;;  %v518_v18 = vpop.f32.mrb[21].mxu0  ;;  %vm6603_vm3 = vcmp.gt.s32.totalorder %v811_v30, 0  ;;  %v2038_v5 = vld [vmem:[#allocation2 + $0x87] sm:$0xff]  ;;  %1303 = vrot.lane.b32.xlu1 %v6455_v39, %s5811_s23 }
 0x11a   : > { %1207 = vst.msk [vmem:[#allocation3 + $0x230] sm:$0xff] %vm609_vm2, %v1175_v27  ;;  %2389 = vst.msk [vmem:[#allocation3 + $0x1d8] sm:$0xff] %vm609_vm2, %v2357_v24  ;;  %v1749_v57 = vld [vmem:[#allocation2 + $0x70] sm:$0xff]  ;;  %v1433_v59 = vld [vmem:[#allocation2 + $0x81] sm:$0xff]  ;;  %v597_v36 = vmax.f32 %v518_v18, 0.0  ;;  %vm6609_vm15 = vcmp.lt.s32.totalorder %v804_v40, 15 }
 0x11b   : > { %2103 = vst.msk [vmem:[#allocation3 + $0x220] sm:$0xff] %vm609_vm2, %v2039_v44  ;;  %1210 = vst.msk [vmem:[#allocation3 + $0x2a8] sm:$0xff] %vm609_vm2, %v2039_v44  ;;  %v8861_v27 = vmov 0  ;;  %v2070_v55 = vsel %vm6495_vm1, %v2038_v5, 0.0  ;;  %v1465_v30 = vsel %vm6570_vm6, %v1433_v59, 0.0  ;;  %v1432_v24 = vld [vmem:[#allocation2 + $0x79] sm:$0xff] }
 0x11c   : > { %v8862_v27 = vsel %vm6609_vm15, 4294967295, %v8861_v27  ;;  %1781 = vst.msk [vmem:[#allocation3 + $0x1c8] sm:$0xff] %vm609_vm2, %v1749_v57  ;;  %v1752_v35 = vld [vmem:[#allocation2 + $0x88] sm:$0xff]  ;;  %v6620_v9 = vld [vmem:[#allocation2 + $0x99] sm:$0xff]  ;;  %637 = vst.msk [vmem:[#allocation2 + $0xc0] sm:$0xff] %vm609_vm2, %v598_v11  ;;  %v825_v44 = vand.u32 15, %v6575_v25 }
 0x11d   : > { %v6623_v40 = vld [vmem:[#allocation2 + $0x91] sm:$0xff]  ;;  %v6627_v18 = vadd.s32 168, %v6097_v34  ;;  %v6630_v57 = vadd.s32 176, %v6097_v34  ;;  %2102 = vst.msk [vmem:[#allocation3 + $0x1f8] sm:$0xff] %vm609_vm2, %v2070_v55  ;;  %1497 = vst.msk [vmem:[#allocation3 + $0x260] sm:$0xff] %vm609_vm2, %v1465_v30  ;;  %v1177_v39 = vsel %vm6592_vm0, %v2038_v5, 0.0  ;;  %1906 = vrot.lane.b32.xlu1 %v6321_v49, %s5811_s23 }
 0x11e   : > { %1496 = vst.msk [vmem:[#allocation3 + $0x238] sm:$0xff] %vm609_vm2, %v1432_v24  ;;  %1784 = vst.msk [vmem:[#allocation3 + $0x240] sm:$0xff] %vm609_vm2, %v1752_v35  ;;  %v1550_v25 = vsel %vm6278_vm7, %v6345_v56, 0.0  ;;  %v2359_v11 = vsel %vm6525_vm5, %v6623_v40, 0.0  ;;  %v5422_v59 = vpop.f32.mrb[22].mxu0  ;;  %v818_v5 = vand.u32 15, %v6597_v37 }
 0x11f   : > { %2392 = vst.msk [vmem:[#allocation3 + $0x250] sm:$0xff] %vm609_vm2, %v6620_v9  ;;  %636 = vst.msk [vmem:[#allocation2 + $0xb8] sm:$0xff] %vm609_vm2, %v597_v36  ;;  %v2041_v30 = vld [vmem:[#allocation2 + $0x9f] sm:$0xff]  ;;  %1618 = vrot.lane.b32.xlu0 %v1550_v25, %s5811_s23  ;;  %v600_v21 = vmax.f32 %v5422_v59, 0.0  ;;  %v528_v56 = vpop.f32.mrb[23].mxu0  ;;  %v2040_v36 = vld [vmem:[#allocation2 + $0x97] sm:$0xff] }
 0x120   : > { %1209 = vst.msk [vmem:[#allocation3 + $0x280] sm:$0xff] %vm609_vm2, %v1177_v39  ;;  %2391 = vst.msk [vmem:[#allocation3 + $0x228] sm:$0xff] %vm609_vm2, %v2359_v11  ;;  %v1751_v24 = vld [vmem:[#allocation2 + $0x80] sm:$0xff]  ;;  %v1435_v35 = vld [vmem:[#allocation2 + $0x91] sm:$0xff]  ;;  %v599_v55 = vmax.f32 %v528_v56, 0.0  ;;  %v2072_v37 = vsel %vm6510_vm4, %v2040_v36, 0.0 }
 0x121   : > { %2105 = vst.msk [vmem:[#allocation3 + $0x270] sm:$0xff] %vm609_vm2, %v2041_v30  ;;  %1212 = vst.msk [vmem:[#allocation3 + $0x2f8] sm:$0xff] %vm609_vm2, %v2041_v30  ;;  %v6656_v13 = vld [vmem:[#allocation2 + $0x50] sm:$0xff]  ;;  %v1467_v39 = vsel %vm6609_vm15, %v1435_v35, 0.0  ;;  %v1754_v11 = vld [vmem:[#allocation2 + $0x98] sm:$0xff]  ;;  %vm6670_vm7 = vcmp.gt.s32.totalorder %v825_v44, 0  ;;  %1301 = vrot.lane.b32.xlu1 %v6537_v28, %s5811_s23 }
 0x122   : > { %1783 = vst.msk [vmem:[#allocation3 + $0x218] sm:$0xff] %vm609_vm2, %v1751_v24  ;;  %v1434_v25 = vld [vmem:[#allocation2 + $0x89] sm:$0xff]  ;;  %639 = vst.msk [vmem:[#allocation2 + $0xd0] sm:$0xff] %vm609_vm2, %v600_v21  ;;  %v6668_v30 = vld [vmem:[#allocation2 + $0xa1] sm:$0xff]  ;;  %v8863_v56 = vmov 0  ;;  %v832_v24 = vand.u32 15, %v6627_v18 }
 0x123   : > { %v6665_v59 = vld [vmem:[#allocation2 + $0xa9] sm:$0xff]  ;;  %v8864_v56 = vsel %vm6670_vm7, 4294967295, %v8863_v56  ;;  %v839_v43 = vand.u32 15, %v6630_v57  ;;  %2104 = vst.msk [vmem:[#allocation3 + $0x248] sm:$0xff] %vm609_vm2, %v2072_v37  ;;  %1499 = vst.msk [vmem:[#allocation3 + $0x2b0] sm:$0xff] %vm609_vm2, %v1467_v39  ;;  %v1179_v49 = vsel %vm6603_vm3, %v2040_v36, 0.0  ;;  %2196 = vrot.lane.b32.xlu0 %v6656_v13, %s5811_s23 }
 0x124   : > { %1498 = vst.msk [vmem:[#allocation3 + $0x288] sm:$0xff] %vm609_vm2, %v1434_v25  ;;  %1786 = vst.msk [vmem:[#allocation3 + $0x290] sm:$0xff] %vm609_vm2, %v1754_v11  ;;  %v2361_v44 = vsel %vm6570_vm6, %v6668_v30, 0.0  ;;  %v5425_v18 = vpop.f32.mrb[24].mxu0  ;;  %vm6691_vm5 = vcmp.lt.s32.totalorder %v818_v5, 15  ;;  %v8865_v21 = vmov 0 }
 0x125   : > { %2394 = vst.msk [vmem:[#allocation3 + $0x2a0] sm:$0xff] %vm609_vm2, %v6665_v59  ;;  %638 = vst.msk [vmem:[#allocation2 + $0xc8] sm:$0xff] %vm609_vm2, %v599_v55  ;;  %v8866_v21 = vsel %vm6691_vm5, 4294967295, %v8865_v21  ;;  %v6696_v36 = vadd.s32 184, %v6097_v34  ;;  %v2043_v35 = vld [vmem:[#allocation2 + $0xaf] sm:$0xff]  ;;  %v602_v55 = vmax.f32 %v5425_v18, 0.0 }
 0x126   : > { %1211 = vst.msk [vmem:[#allocation3 + $0x2d0] sm:$0xff] %vm609_vm2, %v1179_v49  ;;  %2393 = vst.msk [vmem:[#allocation3 + $0x278] sm:$0xff] %vm609_vm2, %v2361_v44  ;;  %v538_v37 = vpop.f32.mrb[25].mxu0  ;;  %v6703_v39 = vadd.s32 192, %v6097_v34  ;;  %v2042_v5 = vld [vmem:[#allocation2 + $0xa7] sm:$0xff]  ;;  %v6708_v11 = vadd.s32 208, %v6097_v34 }
 0x127   : > { %2107 = vst.msk [vmem:[#allocation3 + $0x2c0] sm:$0xff] %vm609_vm2, %v2043_v35  ;;  %1214 = vst.msk [vmem:[#allocation3 + $0x348] sm:$0xff] %vm609_vm2, %v2043_v35  ;;  %v601_v25 = vmax.f32 %v538_v37, 0.0  ;;  %v2074_v49 = vsel %vm6592_vm0, %v2042_v5, 0.0  ;;  %v1753_v57 = vld [vmem:[#allocation2 + $0x90] sm:$0xff]  ;;  %v1437_v29 = vld [vmem:[#allocation2 + $0xa1] sm:$0xff] }
 0x128   : > { %v1181_v44 = vsel %vm6670_vm7, %v2042_v5, 0.0  ;;  %v6716_v18 = vld [vmem:[#allocation2 + $0xb9] sm:$0xff]  ;;  %641 = vst.msk [vmem:[#allocation2 + $0xe0] sm:$0xff] %vm609_vm2, %v602_v55  ;;  %v6719_v35 = vld [vmem:[#allocation2 + $0xb1] sm:$0xff]  ;;  %vm6721_vm6 = vcmp.lt.s32.totalorder %v832_v24, 15  ;;  %vm6725_vm4 = vcmp.gt.s32.totalorder %v839_v43, 0 }
 0x129   : > { %8867 = vst [vmem:[#allocation10_spill] sm:$0xff] %v6719_v35  ;;  %2106 = vst.msk [vmem:[#allocation3 + $0x298] sm:$0xff] %vm609_vm2, %v2074_v49  ;;  %v1469_v28 = vsel %vm6691_vm5, %v1437_v29, 0.0  ;;  %v6737_v24 = vld [vmem:[#allocation2 + $0x48] sm:$0xff]  ;;  %v2363_v43 = vsel %vm6609_vm15, %v6719_v35, 0.0  ;;  %v5428_v55 = vpop.f32.mrb[26].mxu0 }
 0x12a   : > { %1785 = vst.msk [vmem:[#allocation3 + $0x268] sm:$0xff] %vm609_vm2, %v1753_v57  ;;  %1213 = vst.msk [vmem:[#allocation3 + $0x320] sm:$0xff] %vm609_vm2, %v1181_v44  ;;  %v846_v29 = vand.u32 15, %v6696_v36  ;;  %v1436_v5 = vld [vmem:[#allocation2 + $0x99] sm:$0xff]  ;;  %2194 = vrot.lane.b32.xlu0 %v6737_v24, %s5811_s23  ;;  %v604_v49 = vmax.f32 %v5428_v55, 0.0  ;;  %v853_v44 = vand.u32 15, %v6703_v39 }
 0x12b   : > { %2396 = vst.msk [vmem:[#allocation3 + $0x2f0] sm:$0xff] %vm609_vm2, %v6716_v18  ;;  %640 = vst.msk [vmem:[#allocation2 + $0xd8] sm:$0xff] %vm609_vm2, %v601_v25  ;;  %v1837_v25 = vsel %vm6282_vm8, %v6326_v47, 0.0  ;;  %v1756_v57 = vld [vmem:[#allocation2 + $0xa8] sm:$0xff]  ;;  %v2045_v53 = vld [vmem:[#allocation2 + $0xbf] sm:$0xff]  ;;  %v548_v35 = vpop.f32.mrb[27].mxu0 }
 0x12c   : > { %1501 = vst.msk [vmem:[#allocation3 + $0x300] sm:$0xff] %vm609_vm2, %v1469_v28  ;;  %2395 = vst.msk [vmem:[#allocation3 + $0x2c8] sm:$0xff] %vm609_vm2, %v2363_v43  ;;  %v2044_v36 = vld [vmem:[#allocation2 + $0xb7] sm:$0xff]  ;;  %v867_v28 = vand.u32 15, %v6708_v11  ;;  %v1755_v47 = vld [vmem:[#allocation2 + $0xa0] sm:$0xff]  ;;  %1904 = vrot.lane.b32.xlu1 %v1837_v25, %s5811_s23  ;;  %v603_v11 = vmax.f32 %v548_v35, 0.0 }
 0x12d   : > { %1500 = vst.msk [vmem:[#allocation3 + $0x2d8] sm:$0xff] %vm609_vm2, %v1436_v5  ;;  %1788 = vst.msk [vmem:[#allocation3 + $0x2e0] sm:$0xff] %vm609_vm2, %v1756_v57  ;;  %v2076_v22 = vsel %vm6603_vm3, %v2044_v36, 0.0  ;;  %v1439_v43 = vld [vmem:[#allocation2 + $0xb1] sm:$0xff]  ;;  %v1183_v39 = vsel %vm6725_vm4, %v2044_v36, 0.0  ;;  %v6767_v55 = vld [vmem:[#allocation2 + $0xc9] sm:$0xff] }
 0x12e   : > { %2109 = vst.msk [vmem:[#allocation3 + $0x310] sm:$0xff] %vm609_vm2, %v2045_v53  ;;  %1216 = vst.msk [vmem:[#allocation3 + $0x398] sm:$0xff] %vm609_vm2, %v2045_v53  ;;  %v6769_v5 = vld [vmem:[#allocation2 + $0xc1] sm:$0xff]  ;;  %v860_v57 = vand.u32 15, %v6730_v63  ;;  %v1471_v36 = vsel %vm6721_vm6, %v1439_v43, 0.0  ;;  %vm6788_vm8 = vcmp.lt.s32.totalorder %v846_v29, 15  ;;  %1624 = vrot.lane.b32.xlu0 %v6395_v31, %s5811_s23 }
 0x12f   : > { %643 = vst.msk [vmem:[#allocation2 + $0xf0] sm:$0xff] %vm609_vm2, %v604_v49  ;;  %2108 = vst.msk [vmem:[#allocation3 + $0x2e8] sm:$0xff] %vm609_vm2, %v2076_v22  ;;  %v1520_v53 = vld [vmem:[#allocation2 + $0x47] sm:$0xff]  ;;  %v2365_v25 = vsel %vm6691_vm5, %v6769_v5, 0.0  ;;  %v1758_v22 = vld [vmem:[#allocation2 + $0xb8] sm:$0xff]  ;;  %vm6804_vm5 = vcmp.gt.s32.totalorder %v853_v44, 0 }
 0x130   : > { %1787 = vst.msk [vmem:[#allocation3 + $0x2b8] sm:$0xff] %vm609_vm2, %v1755_v47  ;;  %1215 = vst.msk [vmem:[#allocation3 + $0x370] sm:$0xff] %vm609_vm2, %v1183_v39  ;;  %v6786_v35 = vld [vmem:[#allocation2 + $0xc7] sm:$0xff]  ;;  %v2047_v43 = vld [vmem:[#allocation2 + $0xcf] sm:$0xff]  ;;  %vm6808_vm15 = vcmp.gt.s32.totalorder %v867_v28, 0  ;;  %1307 = vrot.lane.b32.xlu1 %v6656_v13, %s5811_s23 }
 0x131   : > { %2398 = vst.msk [vmem:[#allocation3 + $0x340] sm:$0xff] %vm609_vm2, %v6767_v55  ;;  %1503 = vst.msk [vmem:[#allocation3 + $0x350] sm:$0xff] %vm609_vm2, %v1471_v36  ;;  %v1438_v29 = vld [vmem:[#allocation2 + $0xa9] sm:$0xff]  ;;  %v2078_v36 = vsel %vm6670_vm7, %v6786_v35, 0.0  ;;  %vm6823_vm7 = vcmp.lt.s32.totalorder %v860_v57, 15  ;;  %v2129_v57 = vld [vmem:[#allocation2 + $0x60] sm:$0xff] }
 0x132   : > { %2397 = vst.msk [vmem:[#allocation3 + $0x318] sm:$0xff] %vm609_vm2, %v2365_v25  ;;  %642 = vst.msk [vmem:[#allocation2 + $0xe8] sm:$0xff] %vm609_vm2, %v603_v11  ;;  %v1757_v39 = vld [vmem:[#allocation2 + $0xb0] sm:$0xff]  ;;  %v1441_v11 = vld [vmem:[#allocation2 + $0xc1] sm:$0xff] }
 0x133   : > { %1790 = vst.msk [vmem:[#allocation3 + $0x330] sm:$0xff] %vm609_vm2, %v1758_v22  ;;  %1502 = vst.msk [vmem:[#allocation3 + $0x328] sm:$0xff] %vm609_vm2, %v1438_v29  ;;  %v1759_v25 = vld [vmem:[#allocation2 + $0xc0] sm:$0xff]  ;;  %v6821_v28 = vld [vmem:[#allocation2 + $0xd1] sm:$0xff] }
 0x134   : > { %2111 = vst.msk [vmem:[#allocation3 + $0x360] sm:$0xff] %vm609_vm2, %v2047_v43  ;;  %1789 = vst.msk [vmem:[#allocation3 + $0x308] sm:$0xff] %vm609_vm2, %v1757_v39  ;;  %v1440_v22 = vld [vmem:[#allocation2 + $0xb9] sm:$0xff]  ;;  %v1473_v39 = vsel %vm6788_vm8, %v1441_v11, 0.0  ;;  %v2367_v13 = vsel %vm6721_vm6, %v6821_v28, 0.0  ;;  %v1443_v47 = vld [vmem:[#allocation2 + $0xd1] sm:$0xff]  ;;  %1910 = vrot.lane.b32.xlu1 %v6374_v12, %s5811_s23 }
 0x135   : > { %2110 = vst.msk [vmem:[#allocation3 + $0x338] sm:$0xff] %vm609_vm2, %v2078_v36  ;;  %1218 = vst.msk [vmem:[#allocation3 + $0x3e8] sm:$0xff] %vm609_vm2, %v2047_v43  ;;  %v6819_v44 = vld [vmem:[#allocation2 + $0xd9] sm:$0xff]  ;;  %v1552_v43 = vsel %vm6347_vm10, %v1520_v53, 0.0  ;;  %v1760_v36 = vld [vmem:[#allocation2 + $0xc8] sm:$0xff] }
 0x136   : > { %1791 = vst.msk [vmem:[#allocation3 + $0x358] sm:$0xff] %vm609_vm2, %v1759_v25  ;;  %1504 = vst.msk [vmem:[#allocation3 + $0x378] sm:$0xff] %vm609_vm2, %v1440_v22  ;;  %v2048_v11 = vld [vmem:[#allocation2 + $0xd7] sm:$0xff]  ;;  %v1153_v25 = vld [vmem:[#allocation2 + $0xc7] sm:$0xff]  ;;  %1622 = vrot.lane.b32.xlu0 %v1552_v43, %s5811_s23  ;;  %v1475_v43 = vsel %vm6823_vm7, %v1443_v47, 0.0 }
 0x137   : > { %2400 = vst.msk [vmem:[#allocation3 + $0x390] sm:$0xff] %vm609_vm2, %v6819_v44  ;;  %1505 = vst.msk [vmem:[#allocation3 + $0x3a0] sm:$0xff] %vm609_vm2, %v1473_v39  ;;  %v2080_v58 = vsel %vm6725_vm4, %v2048_v11, 0.0  ;;  %v1185_v53 = vsel %vm6804_vm5, %v1153_v25, 0.0  ;;  %v1442_v22 = vld [vmem:[#allocation2 + $0xc9] sm:$0xff]  ;;  %v1187_v39 = vsel %vm6808_vm15, %v2048_v11, 0.0 }
 0x138   : > { %2399 = vst.msk [vmem:[#allocation3 + $0x368] sm:$0xff] %vm609_vm2, %v2367_v13  ;;  %1792 = vst.msk [vmem:[#allocation3 + $0x380] sm:$0xff] %vm609_vm2, %v1760_v36  ;;  %1305 = vrot.lane.b32.xlu1 %v6737_v24, %s5811_s23  ;;  %v2128_v47 = vld [vmem:[#allocation2 + $0x58] sm:$0xff]  ;;  %v1839_v25 = vsel %vm6304_vm9, %v6379_v16, 0.0  ;;  %v2131_v32 = vld [vmem:[#allocation2 + $0x70] sm:$0xff] }
 0x139   : > { %2112 = vst.msk [vmem:[#allocation3 + $0x388] sm:$0xff] %vm609_vm2, %v2080_v58  ;;  %1217 = vst.msk [vmem:[#allocation3 + $0x3c0] sm:$0xff] %vm609_vm2, %v1185_v53  ;;  %v6860_v13 = vld [vmem:[#allocation2 + $0xe9] sm:$0xff]  ;;  %v6867_v36 = vld [vmem:[#allocation2 + $0xe1] sm:$0xff]  ;;  %v5431_v58 = vpop.f32.mrb[28].mxu0 }
 0x13a   : > { %1506 = vst.msk [vmem:[#allocation3 + $0x3c8] sm:$0xff] %vm609_vm2, %v1442_v22  ;;  %1219 = vst.msk [vmem:[#allocation3 + $0x410] sm:$0xff] %vm609_vm2, %v1187_v39  ;;  %2200 = vrot.lane.b32.xlu0 %v2129_v57, %s5811_s23  ;;  %v2369_v11 = vsel %vm6788_vm8, %v6867_v36, 0.0  ;;  %v1859_v12 = vsel %vm6823_vm7, %v6867_v36, 0.0  ;;  %v1523_v24 = vld [vmem:[#allocation2 + $0x5f] sm:$0xff]  ;;  %v1522_v53 = vld [vmem:[#allocation2 + $0x57] sm:$0xff] }
 0x13b   : > { %1507 = vst.msk [vmem:[#allocation3 + $0x3f0] sm:$0xff] %vm609_vm2, %v1475_v43  ;;  %2402 = vst.msk [vmem:[#allocation3 + $0x3e0] sm:$0xff] %vm609_vm2, %v6860_v13  ;;  %v606_v22 = vmax.f32 %v5431_v58, 0.0  ;;  %v558_v39 = vpop.f32.mrb[29].mxu0  ;;  %v2130_v6 = vld [vmem:[#allocation2 + $0x68] sm:$0xff]  ;;  %v2133_v7 = vld [vmem:[#allocation2 + $0x80] sm:$0xff] }
 0x13c   : > { %2401 = vst.msk [vmem:[#allocation3 + $0x3b8] sm:$0xff] %vm609_vm2, %v2369_v11  ;;  %1908 = vrot.lane.b32.xlu1 %v1839_v25, %s5811_s23  ;;  %v605_v43 = vmax.f32 %v558_v39, 0.0  ;;  %v1554_v11 = vsel %vm6363_vm11, %v1522_v53, 0.0  ;;  %v5434_v16 = vpop.f32.mrb[30].mxu0  ;;  %v1841_v53 = vsel %vm6367_vm12, %v6422_v1, 0.0  ;;  %v676_v39 = vadd.s32 216, %v6097_v34 }
 0x13d   : > { %645 = vst.msk [vmem:[#allocation2 + $0x100] sm:$0xff] %vm609_vm2, %v606_v22  ;;  %v608_v25 = vmax.f32 %v5434_v16, 0.0  ;;  %v1524_v22 = vld [vmem:[#allocation2 + $0x67] sm:$0xff]  ;;  %v2132_v3 = vld [vmem:[#allocation2 + $0x78] sm:$0xff]  ;;  %vm8887_vm12 = vnez %v8848_v19 }
 0x13e   : > { %2198 = vrot.lane.b32.xlu0 %v2128_v47, %s5811_s23  ;;  %644 = vst.msk [vmem:[#allocation2 + $0xf8] sm:$0xff] %vm609_vm2, %v605_v43  ;;  %v677_v43 = vadd.s32 224, %v6097_v34  ;;  %v874_v1 = vand.u32 15, %v676_v39  ;;  %v1762_v39 = vld [vmem:[#allocation2 + $0xd8] sm:$0xff] }
 0x13f   : > { %647 = vst.msk [vmem:[#allocation2 + $0x110] sm:$0xff] %vm609_vm2, %v608_v25  ;;  %1794 = vst.msk [vmem:[#allocation3 + $0x3d0] sm:$0xff] %vm609_vm2, %v1762_v39 }
 0x140   : > { %1311 = vrot.lane.b32.xlu1 %v2129_v57, %s5811_s23  ;;  %v881_v25 = vand.u32 15, %v677_v43  ;;  %vm6918_vm9 = vcmp.lt.s32.totalorder %v874_v1, 15  ;;  %v1763_v1 = vld [vmem:[#allocation2 + $0xe0] sm:$0xff] }
 0x141   : > { %1795 = vst.msk [vmem:[#allocation3 + $0x3f8] sm:$0xff] %vm609_vm2, %v1763_v1  ;;  %v2134_v1 = vld [vmem:[#allocation2 + $0x88] sm:$0xff] }
 0x142   : > { %1628 = vrot.lane.b32.xlu0 %v1523_v24, %s5811_s23  ;;  %v568_v24 = vpop.f32.mrb[31].mxu0  ;;  %vm6923_vm10 = vcmp.gt.s32.totalorder %v881_v25, 0  ;;  %v8884_v25 = vsel %vm6428_vm14, %v6469_v52, 0.0  ;;  %vm8891_vm14 = vnez %v8852_v38  ;;  %v2137_v38 = vld [vmem:[#allocation2 + $0xa0] sm:$0xff] }
 0x143   : > { %v607_v57 = vmax.f32 %v568_v24, 0.0 }
 0x144   : > { %1914 = vrot.lane.b32.xlu1 %v6419_v0, %s5811_s23  ;;  %v1761_v0 = vld [vmem:[#allocation2 + $0xd0] sm:$0xff] }
 0x145   : > { %v6893_v58 = vld [vmem:[#allocation2 + $0xf9] sm:$0xff]  ;;  %646 = vst.msk [vmem:[#allocation2 + $0x108] sm:$0xff] %vm609_vm2, %v607_v57  ;;  %1793 = vst.msk [vmem:[#allocation3 + $0x3a8] sm:$0xff] %vm609_vm2, %v1761_v0 }
 0x146   : > { %1626 = vrot.lane.b32.xlu0 %v1554_v11, %s5811_s23  ;;  %2404 = vst.msk [vmem:[#allocation3 + $0x430] sm:$0xff] %vm609_vm2, %v6893_v58  ;;  %v1556_v11 = vsel %vm6424_vm13, %v1524_v22, 0.0  ;;  %v2634_v57 = vld [vmem:[%s8716_s3 + $0x200] sm:$0xff] }
 0x147   : > { %v1444_v0 = vld [vmem:[#allocation2 + $0xd9] sm:$0xff]  ;;  %v1157_v22 = vld [vmem:[#allocation2 + $0xe7] sm:$0xff] }
 0x148   : > { %1309 = vrot.lane.b32.xlu1 %v2128_v47, %s5811_s23  ;;  %v1525_v47 = vld [vmem:[#allocation2 + $0x6f] sm:$0xff]  ;;  %1508 = vst.msk [vmem:[#allocation3 + $0x418] sm:$0xff] %vm609_vm2, %v1444_v0  ;;  %v1189_v43 = vsel %vm6923_vm10, %v1157_v22, 0.0 }
 0x149   : > { %1221 = vst.msk [vmem:[#allocation3 + $0x460] sm:$0xff] %vm609_vm2, %v1189_v43  ;;  %v6958_v0 = vld [vmem:[#allocation2 + $0xf1] sm:$0xff] }
 0x14a   : > { %2204 = vrot.lane.b32.xlu0 %v2131_v32, %s5811_s23  ;;  %v2371_v4 = vsel %vm6823_vm7, %v6958_v0, 0.0  ;;  %v1861_v52 = vsel %vm6918_vm9, %v6958_v0, 0.0 }
 0x14b   : > { %2403 = vst.msk [vmem:[#allocation3 + $0x408] sm:$0xff] %vm609_vm2, %v2371_v4  ;;  %v7000_v4 = vld [vmem:[#allocation2 + $0x110] sm:$0xff] }
 0x14c   : > { %1912 = vrot.lane.b32.xlu1 %v1841_v53, %s5811_s23  ;;  %v6910_v16 = vld [vmem:[#allocation2 + $0x109] sm:$0xff]  ;;  %1801 = vst.msk [vmem:[#allocation3 + $0x4e8] sm:$0xff] %vm609_vm2, %v7000_v4 }
 0x14d   : > { %2406 = vst.msk [vmem:[#allocation3 + $0x480] sm:$0xff] %vm609_vm2, %v6910_v16 }
 0x14e   : > { %2202 = vrot.lane.b32.xlu0 %v2130_v6, %s5811_s23 }
 0x150   : > { %1315 = vrot.lane.b32.xlu1 %v2131_v32, %s5811_s23 }
 0x152   : > { %1632 = vrot.lane.b32.xlu0 %v1525_v47, %s5811_s23  ;;  %v1477_v47 = vsel %vm6918_vm9, %v6867_v36, 0.0 }
 0x153   : > { %1509 = vst.msk [vmem:[#allocation3 + $0x440] sm:$0xff] %vm609_vm2, %v1477_v47 }
 0x154   : > { %1918 = vrot.lane.b32.xlu1 %v6466_v51, %s5811_s23  ;;  %v2635_v51 = vld [vmem:[%s8716_s3 + $0x208] sm:$0xff] }
 0x155   : > { %v6934_v53 = vpack.c.bf16 %v2635_v51, %v2634_v57  ;;  %v1527_v57 = vld [vmem:[#allocation2 + $0x7f] sm:$0xff]  ;;  %v1526_v51 = vld [vmem:[#allocation2 + $0x77] sm:$0xff] }
 0x156   : > { %1630 = vrot.lane.b32.xlu0 %v1556_v11, %s5811_s23  ;;  %v2082_v11 = vsel %vm6804_vm5, %v1157_v22, 0.0  ;;  %v1558_v47 = vsel %vm6495_vm1, %v1526_v51, 0.0  ;;  %v2135_v22 = vld [vmem:[#allocation2 + $0x90] sm:$0xff]  ;;  %v1528_v51 = vld [vmem:[#allocation2 + $0x87] sm:$0xff]  ;;  %vm8892_vm1 = vcmask 1048064  }
 0x157   : > { %5596 = vmatprep.subr.bf16.mxu0 %v6934_v53  ;;  %2114 = vst.msk [vmem:[#allocation3 + $0x3d8] sm:$0xff] %vm609_vm2, %v2082_v11  ;;  %v1560_v19 = vsel %vm8891_vm14, %v1528_v51, 0.0  ;;  %vm8894_vm14 = vmmov %vm8892_vm1  ;;  %v2345_v51 = vld [vmem:[#allocation2 + $0x121] sm:$0xff] }
 0x158   : > { %1313 = vrot.lane.b32.xlu1 %v2130_v6, %s5811_s23  ;;  %v1156_v6 = vld [vmem:[#allocation2 + $0xdf] sm:$0xff] }
 0x159   : > { %1220 = vst.msk [vmem:[#allocation3 + $0x438] sm:$0xff] %vm609_vm2, %v1156_v6  ;;  %2113 = vst.msk [vmem:[#allocation3 + $0x3b0] sm:$0xff] %vm609_vm2, %v1156_v6  ;;  %v678_v6 = vadd.s32 232, %v6097_v34 }
 0x15a   : > { %2208 = vrot.lane.b32.xlu0 %v2133_v7, %s5811_s23 }
 0x15b   : > { %v888_v39 = vand.u32 15, %v678_v6  ;;  %v6998_v6 = vld [vmem:[#allocation2 + $0x111] sm:$0xff] }
 0x15c   : > { %1916 = vrot.lane.b32.xlu1 %v8884_v25, %s5811_s23 }
 0x15d   : > { %vm6977_vm11 = vcmp.lt.s32.totalorder %v888_v39, 15 }
 0x15e   : > { %2206 = vrot.lane.b32.xlu0 %v2132_v3, %s5811_s23  ;;  %v1479_v45 = vsel %vm6977_vm11, %v6958_v0, 0.0 }
 0x15f   : > { %1511 = vst.msk [vmem:[#allocation3 + $0x490] sm:$0xff] %vm609_vm2, %v1479_v45  ;;  %v7095_v45 = vld [vmem:[#allocation2 + $0xa8] sm:$0xff] }
 0x160   : > { %1319 = vrot.lane.b32.xlu1 %v2133_v7, %s5811_s23  ;;  %v6975_v7 = vld [vmem:[#allocation2 + $0x101] sm:$0xff] }
 0x161   : > { %v2373_v10 = vsel %vm6918_vm9, %v6975_v7, 0.0  ;;  %v1863_v11 = vsel %vm6977_vm11, %v6975_v7, 0.0  ;;  %vm8895_vm9 = vmmov %vm8892_vm1 }
 0x162   : > { %1636 = vrot.lane.b32.xlu0 %v1527_v57, %s5811_s23  ;;  %2405 = vst.msk [vmem:[#allocation3 + $0x458] sm:$0xff] %vm609_vm2, %v2373_v10  ;;  %v1529_v57 = vld [vmem:[#allocation2 + $0x8f] sm:$0xff] }
 0x164   : > { %1922 = vrot.lane.b32.xlu1 %v6520_v50, %s5811_s23  ;;  %v680_v50 = vadd.s32 248, %v6097_v34 }
 0x166   : > { %1634 = vrot.lane.b32.xlu0 %v1558_v47, %s5811_s23  ;;  %v902_v25 = vand.u32 15, %v680_v50  ;;  %v1611_v10 = vpop.permute.xlu0 %1610 }
 0x168   : > { %1317 = vrot.lane.b32.xlu1 %v2132_v3, %s5811_s23  ;;  %v8888_v3 = vsel %vm8887_vm12, %v6523_v17, 0.0  ;;  %vm7002_vm13 = vcmp.lt.s32.totalorder %v902_v25, 15  ;;  %v2375_v17 = vsel %vm6977_vm11, %v6998_v6, 0.0  ;;  %vm8893_vm12 = vmmov %vm8892_vm1  ;;  %v7026_v25 = vld [vmem:[#allocation2 + $0x98] sm:$0xff] }
 0x169   : > { %v1865_v39 = vsel %vm7002_vm13, %v6998_v6, 0.0  ;;  %2407 = vst.msk [vmem:[#allocation3 + $0x4a8] sm:$0xff] %vm609_vm2, %v2375_v17 }
 0x16a   : > { %2212 = vrot.lane.b32.xlu0 %v2135_v22, %s5811_s23  ;;  %1706 = vst.msk [vmem:[#allocation3 + $0x8] sm:$0xff] %vm8893_vm12, %v1611_v10  ;;  %vm8898_vm12 = vmmov %vm8892_vm1  ;;  %v2410_v10 = vld [vmem:[#allocation3] sm:$0xff] }
 0x16c   : > { %1920 = vrot.lane.b32.xlu1 %v8888_v3, %s5811_s23  ;;  %v2189_v3 = vpop.permute.xlu0 %2188 }
 0x16d   : > { %2283 = vst.msk [vmem:[#allocation3 + $0x40] sm:$0xff] %vm8895_vm9, %v2189_v3  ;;  %vm8896_vm9 = vnez %v8854_v23 }
 0x16e   : > { %2210 = vrot.lane.b32.xlu0 %v2134_v1, %s5811_s23 }
 0x170   : > { %1323 = vrot.lane.b32.xlu1 %v2135_v22, %s5811_s23  ;;  %v1296_v22 = vpop.permute.xlu1 %1295  ;;  %v2187_v17 = vpop.permute.xlu0 %2186 }
 0x171   : > { %1389 = vst.msk [vmem:[#allocation3 + $0x78] sm:$0xff] %vm8892_vm1, %v1296_v22  ;;  %v2411_v22 = vld [vmem:[#allocation3 + $0x8] sm:$0xff] }
 0x172   : > { %1640 = vrot.lane.b32.xlu0 %v1529_v57, %s5811_s23  ;;  %v679_v57 = vadd.s32 240, %v6097_v34  ;;  %2282 = vst.msk [vmem:[#allocation3 + $0x18] sm:$0xff] %vm8898_vm12, %v2187_v17  ;;  %2802 = vmatprep.mubr.f32.mxu1 %v2411_v22  ;;  %v2636_v17 = vld [vmem:[%s8716_s3 + $0x210] sm:$0xff] }
 0x173   : > { %2803 = vmatmul.mubr.f32.vlgmr.msra.gmra.mrb[0].mxu1 %v2410_v10  ;;  %v1158_v10 = vld [vmem:[#allocation2 + $0xef] sm:$0xff] }
 0x174   : > { %1926 = vrot.lane.b32.xlu1 %v6565_v62, %s5811_s23  ;;  %v1613_v50 = vpop.permute.xlu1 %1612  ;;  %v2377_v62 = vsel %vm7002_vm13, %v2345_v51, 0.0  ;;  %v895_v3 = vand.u32 15, %v679_v57  ;;  %5627 = vmatpush1.bf16.msra.mxu1 %v5959_v48  ;;  %v1617_v23 = vpop.permute.xlu0 %1616  ;;  %v2637_v57 = vld [vmem:[%s8716_s3 + $0x218] sm:$0xff]  ;;  %1222 = vst.msk [vmem:[#allocation3 + $0x488] sm:$0xff] %vm609_vm2, %v1158_v10  ;;  %2115 = vst.msk [vmem:[#allocation3 + $0x400] sm:$0xff] %vm609_vm2, %v1158_v10 }
 0x175   : > { %1707 = vst.msk [vmem:[#allocation3 + $0x30] sm:$0xff] %vm8894_vm14, %v1613_v50  ;;  %v1531_v50 = vld [vmem:[#allocation2 + $0x9f] sm:$0xff]  ;;  %vm8899_vm14 = vmmov %vm8892_vm1  ;;  %v5599_v10 = vpack.c.bf16 %v2637_v57, %v2636_v17  ;;  %v2639_v17 = vld [vmem:[%s8716_s3 + $0x228] sm:$0xff] }
 0x176   : > { %1638 = vrot.lane.b32.xlu0 %v1560_v19, %s5811_s23  ;;  %2409 = vst.msk [vmem:[#allocation3 + $0x4f8] sm:$0xff] %vm609_vm2, %v2377_v62  ;;  %v1530_v62 = vld [vmem:[#allocation2 + $0x97] sm:$0xff] }
 0x177   : > { %1709 = vst.msk [vmem:[#allocation3 + $0x80] sm:$0xff] %vm8892_vm1, %v1617_v23  ;;  %v1562_v22 = vsel %vm6592_vm0, %v1530_v62, 0.0  ;;  %v1765_v23 = vld [vmem:[#allocation2 + $0xf0] sm:$0xff]  ;;  %vm8903_vm0 = vmmov %vm8892_vm1 }
 0x178   : > { %1321 = vrot.lane.b32.xlu1 %v2134_v1, %s5811_s23  ;;  %v1899_v19 = vpop.permute.xlu1 %1898  ;;  %v8897_v1 = vsel %vm8896_vm9, %v6568_v61, 0.0  ;;  %v2415_v61 = vld [vmem:[#allocation3 + $0x28] sm:$0xff]  ;;  %vm7055_vm9 = vcmp.gt.s32.totalorder %v895_v3, 0  ;;  %1797 = vst.msk [vmem:[#allocation3 + $0x448] sm:$0xff] %vm609_vm2, %v1765_v23  ;;  %vm8904_vm12 = vmmov %vm8903_vm0 }
 0x179   : > { %1994 = vst.msk [vmem:[#allocation3 + $0x10] sm:$0xff] %vm8892_vm1, %v1899_v19  ;;  %vm8906_vm1 = vmmov %vm8903_vm0 }
 0x17a   : > { %2216 = vrot.lane.b32.xlu0 %v2137_v38, %s5811_s23 }
 0x17c   : > { %1924 = vrot.lane.b32.xlu1 %v8897_v1, %s5811_s23  ;;  %v1294_v51 = vpop.permute.xlu1 %1293  ;;  %v2416_v19 = vld [vmem:[#allocation3 + $0x30] sm:$0xff]  ;;  %v8900_v1 = vmov 0.0|0.0  }
 0x17d   : > { %1388 = vst.msk [vmem:[#allocation3 + $0x50] sm:$0xff] %vm8899_vm14, %v1294_v51  ;;  %2807 = vmatprep.mubr.f32.mxu1 %v2416_v19  ;;  %5612 = vmatprep.subr.bf16.mxu1 %v8900_v1  ;;  %v1764_v19 = vld [vmem:[#allocation2 + $0xe8] sm:$0xff]  ;;  %vm8905_vm14 = vmmov %vm8903_vm0 }
 0x17e   : > { %2214 = vrot.lane.b32.xlu0 %v7026_v25, %s5811_s23  ;;  %2808 = vmatmul.mubr.f32.gmra.mrb[2].mxu1 %v2415_v61  ;;  %v7071_v61 = vld [vmem:[#allocation2 + $0xb0] sm:$0xff]  ;;  %1796 = vst.msk [vmem:[#allocation3 + $0x420] sm:$0xff] %vm609_vm2, %v1764_v19  ;;  %v1160_v19 = vld [vmem:[#allocation2 + $0xff] sm:$0xff] }
 0x17f   : > { %5628 = vmatpush1.bf16.msra.mxu1 %v5976_v54  ;;  %1224 = vst.msk [vmem:[#allocation3 + $0x4d8] sm:$0xff] %vm609_vm2, %v1160_v19  ;;  %2117 = vst.msk [vmem:[#allocation3 + $0x450] sm:$0xff] %vm609_vm2, %v1160_v19  ;;  %v2055_v19 = vld [vmem:[#allocation2 + $0x10f] sm:$0xff] }
 0x180   : > { %1327 = vrot.lane.b32.xlu1 %v2137_v38, %s5811_s23  ;;  %v1446_v38 = vld [vmem:[#allocation2 + $0xe9] sm:$0xff]  ;;  %v1300_v51 = vpop.permute.xlu1 %1299  ;;  %5613 = vmatprep.subr.bf16.mxu1 %v8900_v1  ;;  %v2412_v54 = vld [vmem:[#allocation3 + $0x10] sm:$0xff]  ;;  %2119 = vst.msk [vmem:[#allocation3 + $0x4a0] sm:$0xff] %vm609_vm2, %v2055_v19 }
 0x181   : > { %1510 = vst.msk [vmem:[#allocation3 + $0x468] sm:$0xff] %vm609_vm2, %v1446_v38  ;;  %v2413_v38 = vld [vmem:[#allocation3 + $0x18] sm:$0xff] }
 0x182   : > { %1644 = vrot.lane.b32.xlu0 %v1531_v50, %s5811_s23  ;;  %v1159_v50 = vld [vmem:[#allocation2 + $0xf7] sm:$0xff]  ;;  %1391 = vst.msk [vmem:[#allocation3 + $0xc8] sm:$0xff] %vm8903_vm0, %v1300_v51  ;;  %3027 = vmatprep.mubr.f32.mxu0 %v2413_v38 }
 0x183   : > { %v1191_v3 = vsel %vm7055_vm9, %v1159_v50, 0.0  ;;  %v2084_v62 = vsel %vm6808_vm15, %v1159_v50, 0.0  ;;  %3028 = vmatmul.mubr.f32.vlgmr.msra.gmra.mrb[32].mxu0 %v2412_v54  ;;  %v2418_v51 = vld [vmem:[#allocation3 + $0x40] sm:$0xff]  ;;  %5629 = vmatpush1.bf16.msra.mxu1 %v5993_v60  ;;  %v2054_v60 = vld [vmem:[#allocation2 + $0x107] sm:$0xff] }
 0x184   : > { %1223 = vst.msk [vmem:[#allocation3 + $0x4b0] sm:$0xff] %vm609_vm2, %v1191_v3  ;;  %2116 = vst.msk [vmem:[#allocation3 + $0x428] sm:$0xff] %vm609_vm2, %v2084_v62  ;;  %1930 = vrot.lane.b32.xlu1 %v6620_v9, %s5811_s23  ;;  %v1903_v50 = vpop.permute.xlu1 %1902  ;;  %3032 = vmatprep.mubr.f32.mxu0 %v2418_v51  ;;  %v2638_v9 = vld [vmem:[%s8716_s3 + $0x220] sm:$0xff]  ;;  %v1766_v62 = vld [vmem:[#allocation2 + $0xf8] sm:$0xff]  ;;  %v2086_v38 = vsel %vm6923_vm10, %v2054_v60, 0.0 }
 0x185   : > { %1996 = vst.msk [vmem:[#allocation3 + $0x60] sm:$0xff] %vm8905_vm14, %v1903_v50  ;;  %5598 = vmatpush3.bf16.msra.mxu0 %v6934_v53  ;;  %v5603_v3 = vpack.c.bf16 %v2639_v17, %v2638_v9  ;;  %v1448_v53 = vld [vmem:[#allocation2 + $0xf9] sm:$0xff]  ;;  %5614 = vmatprep.subr.bf16.mxu1 %v8900_v1  ;;  %vm8909_vm14 = vmmov %vm8903_vm0  ;;  %v1533_v9 = vld [vmem:[#allocation2 + $0xaf] sm:$0xff] }
 0x186   : > { %1642 = vrot.lane.b32.xlu0 %v1562_v22, %s5811_s23  ;;  %v1615_v22 = vpop.permute.xlu0 %1614  ;;  %5600 = vmatprep.subr.bf16.mxu0 %v5599_v10  ;;  %1512 = vst.msk [vmem:[#allocation3 + $0x4b8] sm:$0xff] %vm609_vm2, %v1448_v53  ;;  %1798 = vst.msk [vmem:[#allocation3 + $0x470] sm:$0xff] %vm609_vm2, %v1766_v62  ;;  %v2425_v53 = vld [vmem:[#allocation3 + $0x78] sm:$0xff] }
 0x187   : > { %1708 = vst.msk [vmem:[#allocation3 + $0x58] sm:$0xff] %vm8904_vm12, %v1615_v22  ;;  %v1767_v22 = vld [vmem:[#allocation2 + $0x100] sm:$0xff]  ;;  %vm8907_vm12 = vnez %v8856_v46  ;;  %5630 = vmatpush1.bf16.msra.mxu1 %v6010_v2  ;;  %v1768_v62 = vld [vmem:[#allocation2 + $0x108] sm:$0xff] }
 0x188   : > { %1325 = vrot.lane.b32.xlu1 %v7026_v25, %s5811_s23  ;;  %v1298_v23 = vpop.permute.xlu1 %1297  ;;  %v1481_v25 = vsel %vm7002_vm13, %v6975_v7, 0.0  ;;  %1799 = vst.msk [vmem:[#allocation3 + $0x498] sm:$0xff] %vm609_vm2, %v1767_v22  ;;  %v8908_v50 = vsel %vm8907_vm12, %v6623_v40, 0.0  ;;  %2118 = vst.msk [vmem:[#allocation3 + $0x478] sm:$0xff] %vm609_vm2, %v2086_v38  ;;  %v1532_v46 = vld [vmem:[#allocation2 + $0xa7] sm:$0xff]  ;;  %5615 = vmatprep.subr.bf16.mxu1 %v8900_v1 }
 0x189   : > { %1390 = vst.msk [vmem:[#allocation3 + $0xa0] sm:$0xff] %vm8903_vm0, %v1298_v23  ;;  %5602 = vmatpush3.bf16.msra.mxu0 %v5599_v10  ;;  %v2420_v10 = vld [vmem:[#allocation3 + $0x50] sm:$0xff]  ;;  %v1564_v2 = vsel %vm6603_vm3, %v1532_v46, 0.0  ;;  %vm8911_vm12 = vmmov %vm8903_vm0 }
 0x18a   : > { %2220 = vrot.lane.b32.xlu0 %v7071_v61, %s5811_s23  ;;  %v2193_v57 = vpop.permute.xlu0 %2192  ;;  %1513 = vst.msk [vmem:[#allocation3 + $0x4e0] sm:$0xff] %vm609_vm2, %v1481_v25  ;;  %5604 = vmatprep.subr.bf16.mxu0 %v5603_v3  ;;  %1800 = vst.msk [vmem:[#allocation3 + $0x4c0] sm:$0xff] %vm609_vm2, %v1768_v62  ;;  %v7180_v62 = vld [vmem:[#allocation2 + $0xd0] sm:$0xff] }
 0x18b   : > { %2285 = vst.msk [vmem:[#allocation3 + $0x90] sm:$0xff] %vm8906_vm1, %v2193_v57  ;;  %v2426_v57 = vld [vmem:[#allocation3 + $0x80] sm:$0xff]  ;;  %vm8910_vm1 = vmmov %vm8903_vm0  ;;  %5631 = vmatpush1.bf16.msra.mxu1 %v6027_v8 }
 0x18c   : > { %1928 = vrot.lane.b32.xlu1 %v8908_v50, %s5811_s23  ;;  %v1901_v17 = vpop.permute.xlu1 %1900  ;;  %5616 = vmatprep.subr.bf16.mxu1 %v8900_v1  ;;  %vm8912_vm3 = vmmov %vm8903_vm0 }
 0x18d   : > { %1995 = vst.msk [vmem:[#allocation3 + $0x38] sm:$0xff] %vm8910_vm1, %v1901_v17  ;;  %5606 = vmatpush3.bf16.msra.mxu0 %v5603_v3  ;;  %v7135_v3 = vld [vmem:[#allocation2 + $0xc0] sm:$0xff]  ;;  %vm8914_vm1 = vmmov %vm8903_vm0  ;;  %v1534_v17 = vld [vmem:[#allocation2 + $0xb7] sm:$0xff] }
 0x18e   : > { %2218 = vrot.lane.b32.xlu0 %v7095_v45, %s5811_s23  ;;  %v2191_v54 = vpop.permute.xlu0 %2190  ;;  %v2421_v51 = vld [vmem:[#allocation3 + $0x58] sm:$0xff] }
 0x18f   : > { %2284 = vst.msk [vmem:[#allocation3 + $0x68] sm:$0xff] %vm8909_vm14, %v2191_v54  ;;  %2812 = vmatprep.mubr.f32.mxu1 %v2421_v51  ;;  %5632 = vmatpush1.bf16.msra.mxu1 %v6044_v14  ;;  %vm8913_vm14 = vmmov %vm8903_vm0  ;;  %v2422_v54 = vld [vmem:[#allocation3 + $0x60] sm:$0xff] }
 0x190   : > { %2813 = vmatmul.mubr.f32.gmra.mrb[4].mxu1 %v2420_v10  ;;  %1331 = vrot.lane.b32.xlu1 %v7071_v61, %s5811_s23  ;;  %v1304_v23 = vpop.permute.xlu1 %1303  ;;  %v2056_v61 = vld [vmem:[#allocation2 + $0x117] sm:$0xff] }
 0x191   : > { %2817 = vmatprep.mubr.f32.mxu1 %v2426_v57  ;;  %1393 = vst.msk [vmem:[#allocation3 + $0x118] sm:$0xff] %vm8911_vm12, %v1304_v23  ;;  %v2088_v8 = vsel %vm7055_vm9, %v2056_v61, 0.0  ;;  %5617 = vmatprep.subr.bf16.mxu1 %v8900_v1  ;;  %vm8915_vm12 = vnez %v8862_v27  ;;  %v2640_v27 = vld [vmem:[%s8716_s3 + $0x230] sm:$0xff] }
 0x192   : > { %1648 = vrot.lane.b32.xlu0 %v1533_v9, %s5811_s23  ;;  %v1621_v40 = vpop.permute.xlu0 %1620  ;;  %2120 = vst.msk [vmem:[#allocation3 + $0x4c8] sm:$0xff] %vm609_vm2, %v2088_v8  ;;  %v2428_v50 = vld [vmem:[#allocation3 + $0x90] sm:$0xff] }
 0x193   : > { %1711 = vst.msk [vmem:[#allocation3 + $0xd0] sm:$0xff] %vm8903_vm0, %v1621_v40  ;;  %5633 = vmatpush1.bf16.msra.mxu1 %v6061_v20  ;;  %v2430_v20 = vld [vmem:[#allocation3 + $0xa0] sm:$0xff]  ;;  %v1535_v9 = vld [vmem:[#allocation2 + $0xbf] sm:$0xff] }
 0x194   : > { %2818 = vmatmul.mubr.f32.gmra.mrb[6].mxu1 %v2425_v53  ;;  %1934 = vrot.lane.b32.xlu1 %v6665_v59, %s5811_s23  ;;  %v1907_v25 = vpop.permute.xlu1 %1906  ;;  %v2417_v60 = vld [vmem:[#allocation3 + $0x38] sm:$0xff]  ;;  %v2140_v59 = vld [vmem:[#allocation2 + $0xb8] sm:$0xff]  ;;  %v8925_v8 = vld [vmem:[#allocation10_spill] sm:$0xff] }
 0x195   : > { %1998 = vst.msk [vmem:[#allocation3 + $0xb0] sm:$0xff] %vm8913_vm14, %v1907_v25  ;;  %3033 = vmatmul.mubr.f32.gmra.mrb[34].mxu0 %v2417_v60  ;;  %5618 = vmatprep.subr.bf16.mxu1 %v8900_v1  ;;  %vm8918_vm14 = vmmov %vm8903_vm0  ;;  %v2435_v53 = vld [vmem:[#allocation3 + $0xc8] sm:$0xff]  ;;  %v8928_v25 = vld [vmem:[#allocation4_spill] sm:$0xff] }
 0x196   : > { %1646 = vrot.lane.b32.xlu0 %v1564_v2, %s5811_s23  ;;  %v1619_v41 = vpop.permute.xlu0 %1618  ;;  %v2423_v22 = vld [vmem:[#allocation3 + $0x68] sm:$0xff] }
 0x197   : > { %1710 = vst.msk [vmem:[#allocation3 + $0xa8] sm:$0xff] %vm8912_vm3, %v1619_v41  ;;  %3037 = vmatprep.mubr.f32.mxu0 %v2423_v22  ;;  %vm8917_vm3 = vmmov %vm8903_vm0  ;;  %5634 = vmatpush1.bf16.msra.mxu1 %v6078_v26 }
 0x198   : > { %1329 = vrot.lane.b32.xlu1 %v7095_v45, %s5811_s23  ;;  %v1302_v14 = vpop.permute.xlu1 %1301  ;;  %v8916_v45 = vsel %vm8915_vm12, %v6668_v30, 0.0  ;;  %v2641_v30 = vld [vmem:[%s8716_s3 + $0x238] sm:$0xff]  ;;  %5619 = vmatprep.subr.bf16.mxu1 %v8900_v1 }
 0x199   : > { %1392 = vst.msk [vmem:[#allocation3 + $0xf0] sm:$0xff] %vm8903_vm0, %v1302_v14  ;;  %3038 = vmatmul.mubr.f32.gmra.mrb[36].mxu0 %v2422_v54  ;;  %v5607_v40 = vpack.c.bf16 %v2641_v30, %v2640_v27  ;;  %v1537_v54 = vld [vmem:[#allocation2 + $0xcf] sm:$0xff]  ;;  %v1538_v30 = vld [vmem:[#allocation2 + $0xd7] sm:$0xff] }
 0x19a   : > { %2224 = vrot.lane.b32.xlu0 %v7135_v3, %s5811_s23  ;;  %v2197_v38 = vpop.permute.xlu0 %2196  ;;  %3042 = vmatprep.mubr.f32.mxu0 %v2428_v50  ;;  %v2436_v46 = vld [vmem:[#allocation3 + $0xd0] sm:$0xff]  ;;  %v8931_v50 = vld [vmem:[#allocation5_spill] sm:$0xff] }
 0x19b   : > { %2287 = vst.msk [vmem:[#allocation3 + $0xe0] sm:$0xff] %vm8914_vm1, %v2197_v38  ;;  %vm8919_vm1 = vmmov %vm8903_vm0  ;;  %vm8920_vm0 = vnez %v8864_v56  ;;  %5608 = vmatprep.subr.bf16.mxu0 %v5607_v40  ;;  %5635 = vmatpush1.bf16.msra.mxu1 %v6095_v33 }
 0x19c   : > { %1932 = vrot.lane.b32.xlu1 %v8916_v45, %s5811_s23  ;;  %v1566_v2 = vsel %vm8920_vm0, %v1534_v17, 0.0  ;;  %vm8921_vm12 = vmmov %vm8919_vm1  ;;  %5610 = vmatpush3.bf16.msra.mxu0 %v5607_v40  ;;  %v2432_v22 = vld [vmem:[#allocation3 + $0xb0] sm:$0xff] }
 0x19d   : > { %5620 = vmatprep.subr.bf16.mxu1 %v8900_v1 }
 0x19e   : > { %2222 = vrot.lane.b32.xlu0 %v2140_v59, %s5811_s23  ;;  %v2195_v51 = vpop.permute.xlu0 %2194  ;;  %v2431_v10 = vld [vmem:[#allocation3 + $0xa8] sm:$0xff]  ;;  %v1905_v57 = vpop.permute.xlu1 %1904 }
 0x19f   : > { %2286 = vst.msk [vmem:[#allocation3 + $0xb8] sm:$0xff] %vm8917_vm3, %v2195_v51  ;;  %2822 = vmatprep.mubr.f32.mxu1 %v2431_v10  ;;  %vm8922_vm3 = vmmov %vm8919_vm1  ;;  %5636 = vmatpush1.bf16.msra.mxu1 %v6115_v42  ;;  %v2142_v42 = vld [vmem:[#allocation2 + $0xc8] sm:$0xff] }
 0x1a0   : > { %2823 = vmatmul.mubr.f32.gmra.mrb[8].mxu1 %v2430_v20  ;;  %1997 = vst.msk [vmem:[#allocation3 + $0x88] sm:$0xff] %vm8918_vm14, %v1905_v57  ;;  %1938 = vrot.lane.b32.xlu1 %v6716_v18, %s5811_s23  ;;  %vm8923_vm14 = vmmov %vm8919_vm1  ;;  %v2440_v14 = vld [vmem:[#allocation3 + $0xf0] sm:$0xff]  ;;  %v2445_v20 = vld [vmem:[#allocation3 + $0x118] sm:$0xff]  ;;  %v8936_v57 = vsel %vm6725_vm4, %v6786_v35, 0.0 }
 0x1a1   : > { %2827 = vmatprep.mubr.f32.mxu1 %v2436_v46  ;;  %5621 = vmatprep.subr.bf16.mxu1 %v8900_v1  ;;  %vm8927_vm0 = vmmov %vm8922_vm3  ;;  %v2144_v46 = vld [vmem:[#allocation2 + $0xd8] sm:$0xff] }
 0x1a2   : > { %1652 = vrot.lane.b32.xlu0 %v1535_v9, %s5811_s23  ;;  %v1625_v26 = vpop.permute.xlu0 %1624  ;;  %v1308_v19 = vpop.permute.xlu1 %1307  ;;  %v2438_v38 = vld [vmem:[#allocation3 + $0xe0] sm:$0xff]  ;;  %v8935_v9 = vld [vmem:[#allocation6_spill] sm:$0xff]  ;;  %vm8939_vm4 = vmmov %vm8927_vm0 }
 0x1a3   : > { %1713 = vst.msk [vmem:[#allocation3 + $0x120] sm:$0xff] %vm8919_vm1, %v1625_v26  ;;  %vm8924_vm1 = vnez %v8866_v21  ;;  %5637 = vmatpush1.bf16.msra.mxu1 %v8928_v25  ;;  %v8941_v26 = vld [vmem:[#allocation8_spill] sm:$0xff]  ;;  %vm8964_vm7 = vmmov %vm8927_vm0 }
 0x1a4   : > { %2828 = vmatmul.mubr.f32.gmra.mrb[10].mxu1 %v2435_v53  ;;  %1395 = vst.msk [vmem:[#allocation3 + $0x168] sm:$0xff] %vm8921_vm12, %v1308_v19  ;;  %1333 = vrot.lane.b32.xlu1 %v2140_v59, %s5811_s23  ;;  %v8926_v41 = vsel %vm8924_vm1, %v8925_v8, 0.0  ;;  %vm8929_vm12 = vmmov %vm8927_vm0  ;;  %v1540_v8 = vld [vmem:[#allocation2 + $0xe7] sm:$0xff] }
 0x1a5   : > { %5622 = vmatprep.subr.bf16.mxu1 %v8900_v1  ;;  %vm8934_vm1 = vmmov %vm8927_vm0 }
 0x1a6   : > { %1650 = vrot.lane.b32.xlu0 %v1566_v2, %s5811_s23  ;;  %v1911_v56 = vpop.permute.xlu1 %1910  ;;  %v2433_v23 = vld [vmem:[#allocation3 + $0xb8] sm:$0xff]  ;;  %vm8971_vm11 = vmmov %vm8927_vm0 }
 0x1a7   : > { %v2427_v33 = vld [vmem:[#allocation3 + $0x88] sm:$0xff]  ;;  %2000 = vst.msk [vmem:[#allocation3 + $0x100] sm:$0xff] %vm8923_vm14, %v1911_v56  ;;  %5638 = vmatpush1.bf16.msra.mxu1 %v8931_v50  ;;  %vm8932_vm14 = vmmov %vm8927_vm0 }
 0x1a8   : > { %v1623_v18 = vpop.permute.xlu0 %1622  ;;  %3043 = vmatmul.mubr.f32.gmra.mrb[38].mxu0 %v2427_v33  ;;  %1936 = vrot.lane.b32.xlu1 %v8926_v41, %s5811_s23  ;;  %v1539_v33 = vld [vmem:[#allocation2 + $0xdf] sm:$0xff]  ;;  %vm8976_vm13 = vmmov %vm8927_vm0 }
 0x1a9   : > { %1712 = vst.msk [vmem:[#allocation3 + $0xf8] sm:$0xff] %vm8922_vm3, %v1623_v18  ;;  %3047 = vmatprep.mubr.f32.mxu0 %v2433_v23  ;;  %vm8930_vm3 = vmmov %vm8927_vm0  ;;  %5623 = vmatprep.subr.bf16.mxu1 %v8900_v1  ;;  %v8944_v23 = vld [vmem:[#allocation9_spill] sm:$0xff] }
 0x1aa   : > { %2228 = vrot.lane.b32.xlu0 %v7180_v62, %s5811_s23  ;;  %v1306_v60 = vpop.permute.xlu1 %1305  ;;  %v2446_v45 = vld [vmem:[#allocation3 + $0x120] sm:$0xff] }
 0x1ab   : > { %1394 = vst.msk [vmem:[#allocation3 + $0x140] sm:$0xff] %vm8929_vm12, %v1306_v60  ;;  %5639 = vmatpush1.bf16.msra.mxu1 %v8935_v9  ;;  %vm8940_vm12 = vmmov %vm8927_vm0  ;;  %v7248_v60 = vld [vmem:[#allocation2 + $0xe0] sm:$0xff] }
 0x1ac   : > { %v2201_v61 = vpop.permute.xlu0 %2200  ;;  %3048 = vmatmul.mubr.f32.gmra.mrb[40].mxu0 %v2432_v22  ;;  %1335 = vrot.lane.b32.xlu1 %v7135_v3, %s5811_s23  ;;  %v8933_v3 = vsel %vm6721_vm6, %v6769_v5, 0.0  ;;  %vm8937_vm6 = vmmov %vm8927_vm0  ;;  %v8938_v5 = vld [vmem:[#allocation7_spill] sm:$0xff]  ;;  %v1543_v9 = vld [vmem:[#allocation2 + $0xff] sm:$0xff] }
 0x1ad   : > { %2289 = vst.msk [vmem:[#allocation3 + $0x130] sm:$0xff] %vm8927_vm0, %v2201_v61  ;;  %3052 = vmatprep.mubr.f32.mxu0 %v2438_v38  ;;  %5624 = vmatprep.subr.bf16.mxu1 %v8900_v1  ;;  %v1541_v22 = vld [vmem:[#allocation2 + $0xef] sm:$0xff] }
 0x1ae   : > { %2226 = vrot.lane.b32.xlu0 %v2142_v42, %s5811_s23  ;;  %v1909_v51 = vpop.permute.xlu1 %1908  ;;  %v2442_v2 = vld [vmem:[#allocation3 + $0x100] sm:$0xff] }
 0x1af   : > { %1999 = vst.msk [vmem:[#allocation3 + $0xd8] sm:$0xff] %vm8932_vm14, %v1909_v51  ;;  %5640 = vmatpush1.bf16.msra.mxu1 %v8938_v5  ;;  %vm8943_vm14 = vmmov %vm8927_vm0 }
 0x1b0   : > { %v2199_v21 = vpop.permute.xlu0 %2198  ;;  %v2441_v59 = vld [vmem:[#allocation3 + $0xf8] sm:$0xff]  ;;  %1940 = vrot.lane.b32.xlu1 %v8933_v3, %s5811_s23  ;;  %5625 = vmatprep.subr.bf16.mxu1 %v8900_v1 }
 0x1b1   : > { %2288 = vst.msk [vmem:[#allocation3 + $0x108] sm:$0xff] %vm8930_vm3, %v2199_v21  ;;  %2832 = vmatprep.mubr.f32.mxu1 %v2441_v59  ;;  %vm8942_vm3 = vmmov %vm8927_vm0  ;;  %v1542_v21 = vld [vmem:[#allocation2 + $0xf7] sm:$0xff]  ;;  %v7253_v59 = vld [vmem:[#allocation2 + $0xe8] sm:$0xff] }
 0x1b2   : > { %2833 = vmatmul.mubr.f32.gmra.mrb[12].mxu1 %v2440_v14  ;;  %1656 = vrot.lane.b32.xlu0 %v1537_v54, %s5811_s23  ;;  %v1312_v17 = vpop.permute.xlu1 %1311  ;;  %v2450_v63 = vld [vmem:[#allocation3 + $0x140] sm:$0xff]  ;;  %v1574_v50 = vsel %vm6923_vm10, %v1542_v21, 0.0  ;;  %vm8951_vm10 = vmmov %vm8927_vm0  ;;  %v2057_v21 = vld [vmem:[#allocation2 + $0x11f] sm:$0xff] }
 0x1b3   : > { %2837 = vmatprep.mubr.f32.mxu1 %v2446_v45  ;;  %1397 = vst.msk [vmem:[#allocation3 + $0x1b8] sm:$0xff] %vm8927_vm0, %v1312_v17  ;;  %5641 = vmatpush1.bf16.msra.mxu1 %v8941_v26  ;;  %v7262_v45 = vld [vmem:[#allocation2 + $0xf0] sm:$0xff] }
 0x1b4   : > { %v1629_v10 = vpop.permute.xlu0 %1628  ;;  %1942 = vrot.lane.b32.xlu1 %v6767_v55, %s5811_s23  ;;  %v1570_v55 = vsel %vm6804_vm5, %v1538_v30, 0.0  ;;  %5626 = vmatprep.subr.bf16.mxu1 %v8900_v1  ;;  %v2448_v19 = vld [vmem:[#allocation3 + $0x130] sm:$0xff]  ;;  %vm8945_vm5 = vmmov %vm8927_vm0  ;;  %v1545_v26 = vld [vmem:[#allocation2 + $0x10f] sm:$0xff]  ;;  %2121 = vst.msk [vmem:[#allocation3 + $0x4f0] sm:$0xff] %vm609_vm2, %v2057_v21 }
 0x1b5   : > { %1715 = vst.msk [vmem:[#allocation3 + $0x170] sm:$0xff] %vm8934_vm1, %v1629_v10  ;;  %vm8946_vm1 = vmmov %vm8927_vm0 }
 0x1b6   : > { %2838 = vmatmul.mubr.f32.gmra.mrb[14].mxu1 %v2445_v20  ;;  %1654 = vrot.lane.b32.xlu0 %v8936_v57, %s5811_s23  ;;  %v1915_v27 = vpop.permute.xlu1 %1914  ;;  %v2437_v15 = vld [vmem:[#allocation3 + $0xd8] sm:$0xff] }
 0x1b7   : > { %2002 = vst.msk [vmem:[#allocation3 + $0x150] sm:$0xff] %vm8939_vm4, %v1915_v27  ;;  %3053 = vmatmul.mubr.f32.gmra.mrb[42].mxu0 %v2437_v15  ;;  %5642 = vmatpush1.bf16.msra.mxu1 %v8944_v23  ;;  %vm8949_vm4 = vmmov %vm8927_vm0  ;;  %v1544_v57 = vld [vmem:[#allocation2 + $0x107] sm:$0xff] }
 0x1b8   : > { %v1627_v37 = vpop.permute.xlu0 %1626  ;;  %v2443_v35 = vld [vmem:[#allocation3 + $0x108] sm:$0xff]  ;;  %1337 = vrot.lane.b32.xlu1 %v2142_v42, %s5811_s23  ;;  %v1572_v42 = vsel %vm6808_vm15, %v1540_v8, 0.0  ;;  %vm8948_vm15 = vmmov %vm8927_vm0  ;;  %v1576_v15 = vsel %vm7055_vm9, %v1544_v57, 0.0 }
 0x1b9   : > { %1714 = vst.msk [vmem:[#allocation3 + $0x148] sm:$0xff] %vm8937_vm6, %v1627_v37  ;;  %3057 = vmatprep.mubr.f32.mxu0 %v2443_v35  ;;  %vm8947_vm6 = vmmov %vm8927_vm0  ;;  %v1255_v37 = vld [vmem:[#allocation2 + $0xf8] sm:$0xff] }
 0x1ba   : > { %2230 = vrot.lane.b32.xlu0 %v2144_v46, %s5811_s23  ;;  %v1310_v53 = vpop.permute.xlu1 %1309  ;;  %v2465_v35 = vld [vmem:[#allocation3 + $0x1b8] sm:$0xff]  ;;  %vm8956_vm9 = vmmov %vm8927_vm0 }
 0x1bb   : > { %1396 = vst.msk [vmem:[#allocation3 + $0x190] sm:$0xff] %vm8942_vm3, %v1310_v53  ;;  %3058 = vmatmul.mubr.f32.gmra.mrb[44].mxu0 %v2442_v2  ;;  %vm8952_vm3 = vmmov %vm8927_vm0 }
 0x1bc   : > { %v2205_v40 = vpop.permute.xlu0 %2204  ;;  %3062 = vmatprep.mubr.f32.mxu0 %v2448_v19  ;;  %1339 = vrot.lane.b32.xlu1 %v7180_v62, %s5811_s23  ;;  %v2456_v1 = vld [vmem:[#allocation3 + $0x170] sm:$0xff]  ;;  %v2455_v62 = vld [vmem:[#allocation3 + $0x168] sm:$0xff] }
 0x1bd   : > { %2291 = vst.msk [vmem:[#allocation3 + $0x180] sm:$0xff] %vm8940_vm12, %v2205_v40  ;;  %vm8950_vm12 = vmmov %vm8927_vm0  ;;  %v1256_v40 = vld [vmem:[#allocation2 + $0x100] sm:$0xff] }
 0x1be   : > { %1658 = vrot.lane.b32.xlu0 %v1570_v55, %s5811_s23  ;;  %v1913_v61 = vpop.permute.xlu1 %1912  ;;  %v2452_v3 = vld [vmem:[#allocation3 + $0x150] sm:$0xff] }
 0x1bf   : > { %2001 = vst.msk [vmem:[#allocation3 + $0x128] sm:$0xff] %vm8945_vm5, %v1913_v61  ;;  %vm8954_vm5 = vmmov %vm8927_vm0 }
 0x1c0   : > { %v2203_v18 = vpop.permute.xlu0 %2202  ;;  %v2451_v56 = vld [vmem:[#allocation3 + $0x148] sm:$0xff]  ;;  %1341 = vrot.lane.b32.xlu1 %v2144_v46, %s5811_s23 }
 0x1c1   : > { %2290 = vst.msk [vmem:[#allocation3 + $0x158] sm:$0xff] %vm8943_vm14, %v2203_v18  ;;  %2842 = vmatprep.mubr.f32.mxu1 %v2451_v56  ;;  %vm8953_vm14 = vmmov %vm8927_vm0  ;;  %v8957_v56 = vsel %vm6788_vm8, %v6821_v28, 0.0 }
 0x1c2   : > { %2843 = vmatmul.mubr.f32.gmra.mrb[16].mxu1 %v2450_v63  ;;  %1660 = vrot.lane.b32.xlu0 %v1539_v33, %s5811_s23  ;;  %v1316_v25 = vpop.permute.xlu1 %1315  ;;  %v2460_v46 = vld [vmem:[#allocation3 + $0x190] sm:$0xff]  ;;  %vm8960_vm8 = vmmov %vm8927_vm0 }
 0x1c3   : > { %2847 = vmatprep.mubr.f32.mxu1 %v2456_v1  ;;  %1399 = vst.msk [vmem:[#allocation3 + $0x208] sm:$0xff] %vm8927_vm0, %v1316_v25 }
 0x1c4   : > { %v1633_v41 = vpop.permute.xlu0 %1632  ;;  %1343 = vrot.lane.b32.xlu1 %v7248_v60, %s5811_s23  ;;  %v2458_v20 = vld [vmem:[#allocation3 + $0x180] sm:$0xff] }
 0x1c5   : > { %1717 = vst.msk [vmem:[#allocation3 + $0x1c0] sm:$0xff] %vm8946_vm1, %v1633_v41  ;;  %vm8955_vm1 = vmmov %vm8927_vm0 }
 0x1c6   : > { %2848 = vmatmul.mubr.f32.gmra.mrb[18].mxu1 %v2455_v62  ;;  %1662 = vrot.lane.b32.xlu0 %v1572_v42, %s5811_s23  ;;  %v1919_v31 = vpop.permute.xlu1 %1918  ;;  %v2447_v14 = vld [vmem:[#allocation3 + $0x128] sm:$0xff] }
 0x1c7   : > { %2004 = vst.msk [vmem:[#allocation3 + $0x1a0] sm:$0xff] %vm8948_vm15, %v1919_v31  ;;  %3063 = vmatmul.mubr.f32.gmra.mrb[46].mxu0 %v2447_v14  ;;  %vm8959_vm15 = vmmov %vm8927_vm0 }
 0x1c8   : > { %v1631_v38 = vpop.permute.xlu0 %1630  ;;  %v2453_v54 = vld [vmem:[#allocation3 + $0x158] sm:$0xff]  ;;  %1345 = vrot.lane.b32.xlu1 %v7253_v59, %s5811_s23 }
 0x1c9   : > { %1716 = vst.msk [vmem:[#allocation3 + $0x198] sm:$0xff] %vm8947_vm6, %v1631_v38  ;;  %3067 = vmatprep.mubr.f32.mxu0 %v2453_v54  ;;  %vm8958_vm6 = vmmov %vm8927_vm0  ;;  %v2150_v38 = vld [vmem:[#allocation2 + $0x108] sm:$0xff]  ;;  %v2344_v54 = vld [vmem:[#allocation2 + $0x119] sm:$0xff] }
 0x1ca   : > { %1664 = vrot.lane.b32.xlu0 %v1541_v22, %s5811_s23  ;;  %v1314_v10 = vpop.permute.xlu1 %1313  ;;  %2408 = vst.msk [vmem:[#allocation3 + $0x4d0] sm:$0xff] %vm609_vm2, %v2344_v54 }
 0x1cb   : > { %1398 = vst.msk [vmem:[#allocation3 + $0x1e0] sm:$0xff] %vm8950_vm12, %v1314_v10  ;;  %3068 = vmatmul.mubr.f32.gmra.mrb[48].mxu0 %v2452_v3  ;;  %vm8962_vm12 = vmmov %vm8927_vm0 }
 0x1cc   : > { %v2209_v51 = vpop.permute.xlu0 %2208  ;;  %3072 = vmatprep.mubr.f32.mxu0 %v2458_v20  ;;  %1347 = vrot.lane.b32.xlu1 %v7262_v45, %s5811_s23  ;;  %v2466_v27 = vld [vmem:[#allocation3 + $0x1c0] sm:$0xff] }
 0x1cd   : > { %2293 = vst.msk [vmem:[#allocation3 + $0x1d0] sm:$0xff] %vm8949_vm4, %v2209_v51  ;;  %vm8961_vm4 = vmmov %vm8927_vm0  ;;  %v2152_v51 = vld [vmem:[#allocation2 + $0x118] sm:$0xff] }
 0x1ce   : > { %1666 = vrot.lane.b32.xlu0 %v1574_v50, %s5811_s23  ;;  %v1917_v5 = vpop.permute.xlu1 %1916  ;;  %v2462_v33 = vld [vmem:[#allocation3 + $0x1a0] sm:$0xff] }
 0x1cf   : > { %2003 = vst.msk [vmem:[#allocation3 + $0x178] sm:$0xff] %vm8952_vm3, %v1917_v5  ;;  %vm8979_vm3 = vmmov %vm8927_vm0 }
 0x1d0   : > { %v2207_v24 = vpop.permute.xlu0 %2206  ;;  %v2461_v17 = vld [vmem:[#allocation3 + $0x198] sm:$0xff]  ;;  %1349 = vrot.lane.b32.xlu1 %v1255_v37, %s5811_s23 }
 0x1d1   : > { %2292 = vst.msk [vmem:[#allocation3 + $0x1a8] sm:$0xff] %vm8951_vm10, %v2207_v24  ;;  %2852 = vmatprep.mubr.f32.mxu1 %v2461_v17  ;;  %vm8963_vm10 = vmmov %vm8927_vm0 }
 0x1d2   : > { %2853 = vmatmul.mubr.f32.gmra.mrb[20].mxu1 %v2460_v46  ;;  %1668 = vrot.lane.b32.xlu0 %v1543_v9, %s5811_s23  ;;  %v1320_v55 = vpop.permute.xlu1 %1319  ;;  %v2470_v28 = vld [vmem:[#allocation3 + $0x1e0] sm:$0xff] }
 0x1d3   : > { %2857 = vmatprep.mubr.f32.mxu1 %v2466_v27  ;;  %1401 = vst.msk [vmem:[#allocation3 + $0x258] sm:$0xff] %vm8954_vm5, %v1320_v55  ;;  %vm8967_vm5 = vmmov %vm8927_vm0 }
 0x1d4   : > { %v1637_v30 = vpop.permute.xlu0 %1636  ;;  %1351 = vrot.lane.b32.xlu1 %v1256_v40, %s5811_s23  ;;  %v2468_v23 = vld [vmem:[#allocation3 + $0x1d0] sm:$0xff] }
 0x1d5   : > { %1719 = vst.msk [vmem:[#allocation3 + $0x210] sm:$0xff] %vm8953_vm14, %v1637_v30  ;;  %vm8966_vm14 = vmmov %vm8927_vm0 }
 0x1d6   : > { %2858 = vmatmul.mubr.f32.gmra.mrb[22].mxu1 %v2465_v35  ;;  %1670 = vrot.lane.b32.xlu0 %v1576_v15, %s5811_s23  ;;  %v1923_v48 = vpop.permute.xlu1 %1922  ;;  %v2457_v2 = vld [vmem:[#allocation3 + $0x178] sm:$0xff] }
 0x1d7   : > { %2006 = vst.msk [vmem:[#allocation3 + $0x1f0] sm:$0xff] %vm8956_vm9, %v1923_v48  ;;  %3073 = vmatmul.mubr.f32.gmra.mrb[50].mxu0 %v2457_v2  ;;  %vm8969_vm9 = vmmov %vm8927_vm0 }
 0x1d8   : > { %v1635_v53 = vpop.permute.xlu0 %1634  ;;  %v2463_v19 = vld [vmem:[#allocation3 + $0x1a8] sm:$0xff]  ;;  %1944 = vrot.lane.b32.xlu1 %v8957_v56, %s5811_s23 }
 0x1d9   : > { %1718 = vst.msk [vmem:[#allocation3 + $0x1e8] sm:$0xff] %vm8955_vm1, %v1635_v53  ;;  %3077 = vmatprep.mubr.f32.mxu0 %v2463_v19  ;;  %vm8968_vm1 = vmmov %vm8927_vm0 }
 0x1da   : > { %1672 = vrot.lane.b32.xlu0 %v1545_v26, %s5811_s23  ;;  %v1318_v63 = vpop.permute.xlu1 %1317 }
 0x1db   : > { %1400 = vst.msk [vmem:[#allocation3 + $0x230] sm:$0xff] %vm8958_vm6, %v1318_v63  ;;  %3078 = vmatmul.mubr.f32.gmra.mrb[52].mxu0 %v2462_v33  ;;  %vm8970_vm6 = vmmov %vm8927_vm0 }
 0x1dc   : > { %v2213_v18 = vpop.permute.xlu0 %2212  ;;  %3082 = vmatprep.mubr.f32.mxu0 %v2468_v23  ;;  %1946 = vrot.lane.b32.xlu1 %v6819_v44, %s5811_s23  ;;  %v2476_v8 = vld [vmem:[#allocation3 + $0x210] sm:$0xff]  ;;  %v2475_v44 = vld [vmem:[#allocation3 + $0x208] sm:$0xff] }
 0x1dd   : > { %2295 = vst.msk [vmem:[#allocation3 + $0x220] sm:$0xff] %vm8927_vm0, %v2213_v18 }
 0x1de   : > { %2232 = vrot.lane.b32.xlu0 %v7248_v60, %s5811_s23  ;;  %v1921_v1 = vpop.permute.xlu1 %1920  ;;  %v2472_v60 = vld [vmem:[#allocation3 + $0x1f0] sm:$0xff] }
 0x1df   : > { %2005 = vst.msk [vmem:[#allocation3 + $0x1c8] sm:$0xff] %vm8960_vm8, %v1921_v1  ;;  %vm8973_vm8 = vmmov %vm8927_vm0 }
 0x1e0   : > { %v2211_v61 = vpop.permute.xlu0 %2210  ;;  %v2471_v49 = vld [vmem:[#allocation3 + $0x1e8] sm:$0xff]  ;;  %1948 = vrot.lane.b32.xlu1 %v1859_v12, %s5811_s23 }
 0x1e1   : > { %2294 = vst.msk [vmem:[#allocation3 + $0x1f8] sm:$0xff] %vm8959_vm15, %v2211_v61  ;;  %2862 = vmatprep.mubr.f32.mxu1 %v2471_v49  ;;  %vm8972_vm15 = vmmov %vm8927_vm0 }
 0x1e2   : > { %2863 = vmatmul.mubr.f32.gmra.mrb[24].mxu1 %v2470_v28  ;;  %2234 = vrot.lane.b32.xlu0 %v7253_v59, %s5811_s23  ;;  %v1324_v62 = vpop.permute.xlu1 %1323  ;;  %v2480_v0 = vld [vmem:[#allocation3 + $0x230] sm:$0xff] }
 0x1e3   : > { %2867 = vmatprep.mubr.f32.mxu1 %v2476_v8  ;;  %1403 = vst.msk [vmem:[#allocation3 + $0x2a8] sm:$0xff] %vm8962_vm12, %v1324_v62  ;;  %vm8975_vm12 = vmmov %vm8927_vm0 }
 0x1e4   : > { %v1641_v41 = vpop.permute.xlu0 %1640  ;;  %1950 = vrot.lane.b32.xlu1 %v6860_v13, %s5811_s23  ;;  %v2478_v22 = vld [vmem:[#allocation3 + $0x220] sm:$0xff] }
 0x1e5   : > { %1721 = vst.msk [vmem:[#allocation3 + $0x260] sm:$0xff] %vm8961_vm4, %v1641_v41  ;;  %vm8974_vm4 = vmmov %vm8927_vm0 }
 0x1e6   : > { %2868 = vmatmul.mubr.f32.gmra.mrb[26].mxu1 %v2475_v44  ;;  %2236 = vrot.lane.b32.xlu0 %v7262_v45, %s5811_s23  ;;  %v1927_v29 = vpop.permute.xlu1 %1926  ;;  %v2467_v36 = vld [vmem:[#allocation3 + $0x1c8] sm:$0xff] }
 0x1e7   : > { %2008 = vst.msk [vmem:[#allocation3 + $0x240] sm:$0xff] %vm8964_vm7, %v1927_v29  ;;  %3083 = vmatmul.mubr.f32.gmra.mrb[54].mxu0 %v2467_v36  ;;  %vm8978_vm7 = vmmov %vm8927_vm0 }
 0x1e8   : > { %v1639_v42 = vpop.permute.xlu0 %1638  ;;  %v2473_v12 = vld [vmem:[#allocation3 + $0x1f8] sm:$0xff]  ;;  %1952 = vrot.lane.b32.xlu1 %v1861_v52, %s5811_s23 }
 0x1e9   : > { %1720 = vst.msk [vmem:[#allocation3 + $0x238] sm:$0xff] %vm8963_vm10, %v1639_v42  ;;  %3087 = vmatprep.mubr.f32.mxu0 %v2473_v12  ;;  %vm8977_vm10 = vmmov %vm8927_vm0 }
 0x1ea   : > { %2238 = vrot.lane.b32.xlu0 %v1255_v37, %s5811_s23  ;;  %v1322_v13 = vpop.permute.xlu1 %1321  ;;  %v2495_v57 = vld [vmem:[#allocation3 + $0x2a8] sm:$0xff] }
 0x1eb   : > { %1402 = vst.msk [vmem:[#allocation3 + $0x280] sm:$0xff] %vm8967_vm5, %v1322_v13  ;;  %3088 = vmatmul.mubr.f32.gmra.mrb[56].mxu0 %v2472_v60  ;;  %vm8981_vm5 = vmmov %vm8927_vm0 }
 0x1ec   : > { %v2217_v25 = vpop.permute.xlu0 %2216  ;;  %3092 = vmatprep.mubr.f32.mxu0 %v2478_v22  ;;  %1954 = vrot.lane.b32.xlu1 %v6893_v58, %s5811_s23  ;;  %v2486_v31 = vld [vmem:[#allocation3 + $0x260] sm:$0xff]  ;;  %v2485_v58 = vld [vmem:[#allocation3 + $0x258] sm:$0xff] }
 0x1ed   : > { %2297 = vst.msk [vmem:[#allocation3 + $0x270] sm:$0xff] %vm8966_vm14, %v2217_v25  ;;  %vm8980_vm14 = vmmov %vm8927_vm0 }
 0x1ee   : > { %2240 = vrot.lane.b32.xlu0 %v1256_v40, %s5811_s23  ;;  %v1925_v52 = vpop.permute.xlu1 %1924  ;;  %v2482_v3 = vld [vmem:[#allocation3 + $0x240] sm:$0xff] }
 0x1ef   : > { %2007 = vst.msk [vmem:[#allocation3 + $0x218] sm:$0xff] %vm8969_vm9, %v1925_v52  ;;  %vm8983_vm9 = vmmov %vm8927_vm0 }
 0x1f0   : > { %v2215_v59 = vpop.permute.xlu0 %2214  ;;  %v2481_v32 = vld [vmem:[#allocation3 + $0x238] sm:$0xff]  ;;  %1956 = vrot.lane.b32.xlu1 %v1863_v11, %s5811_s23 }
 0x1f1   : > { %2296 = vst.msk [vmem:[#allocation3 + $0x248] sm:$0xff] %vm8968_vm1, %v2215_v59  ;;  %2872 = vmatprep.mubr.f32.mxu1 %v2481_v32  ;;  %vm8982_vm1 = vmmov %vm8927_vm0 }
 0x1f2   : > { %2873 = vmatmul.mubr.f32.gmra.mrb[28].mxu1 %v2480_v0  ;;  %2242 = vrot.lane.b32.xlu0 %v2150_v38, %s5811_s23  ;;  %v1328_v50 = vpop.permute.xlu1 %1327  ;;  %v2490_v47 = vld [vmem:[#allocation3 + $0x280] sm:$0xff] }
 0x1f3   : > { %2877 = vmatprep.mubr.f32.mxu1 %v2486_v31  ;;  %1405 = vst.msk [vmem:[#allocation3 + $0x2f8] sm:$0xff] %vm8970_vm6, %v1328_v50  ;;  %vm8984_vm6 = vmmov %vm8927_vm0 }
 0x1f4   : > { %v1645_v14 = vpop.permute.xlu0 %1644  ;;  %1958 = vrot.lane.b32.xlu1 %v6910_v16, %s5811_s23  ;;  %v2488_v20 = vld [vmem:[#allocation3 + $0x270] sm:$0xff] }
 0x1f5   : > { %1723 = vst.msk [vmem:[#allocation3 + $0x2b0] sm:$0xff] %vm8927_vm0, %v1645_v14 }
 0x1f6   : > { %2878 = vmatmul.mubr.f32.gmra.mrb[30].mxu1 %v2485_v58  ;;  %2244 = vrot.lane.b32.xlu0 %v7000_v4, %s5811_s23  ;;  %v1931_v7 = vpop.permute.xlu1 %1930  ;;  %v2477_v43 = vld [vmem:[#allocation3 + $0x218] sm:$0xff]  ;;  %v2153_v4 = vld [vmem:[#allocation2 + $0x120] sm:$0xff] }
 0x1f7   : > { %2010 = vst.msk [vmem:[#allocation3 + $0x290] sm:$0xff] %vm8972_vm15, %v1931_v7  ;;  %3093 = vmatmul.mubr.f32.gmra.mrb[58].mxu0 %v2477_v43  ;;  %vm8986_vm15 = vmmov %vm8927_vm0 }
 0x1f8   : > { %v1643_v45 = vpop.permute.xlu0 %1642  ;;  %v2483_v11 = vld [vmem:[#allocation3 + $0x248] sm:$0xff]  ;;  %1960 = vrot.lane.b32.xlu1 %v1865_v39, %s5811_s23 }
 0x1f9   : > { %1722 = vst.msk [vmem:[#allocation3 + $0x288] sm:$0xff] %vm8971_vm11, %v1643_v45  ;;  %3097 = vmatprep.mubr.f32.mxu0 %v2483_v11  ;;  %vm8985_vm11 = vmmov %vm8927_vm0 }
 0x1fa   : > { %2246 = vrot.lane.b32.xlu0 %v2152_v51, %s5811_s23  ;;  %v1326_v16 = vpop.permute.xlu1 %1325  ;;  %v2505_v56 = vld [vmem:[#allocation3 + $0x2f8] sm:$0xff] }
 0x1fb   : > { %1404 = vst.msk [vmem:[#allocation3 + $0x2d0] sm:$0xff] %vm8974_vm4, %v1326_v16  ;;  %3098 = vmatmul.mubr.f32.gmra.mrb[60].mxu0 %v2482_v3  ;;  %vm8988_vm4 = vmmov %vm8927_vm0 }
 0x1fc   : > { %v2221_v10 = vpop.permute.xlu0 %2220  ;;  %3102 = vmatprep.mubr.f32.mxu0 %v2488_v20  ;;  %v2496_v39 = vld [vmem:[#allocation3 + $0x2b0] sm:$0xff] }
 0x1fd   : > { %2299 = vst.msk [vmem:[#allocation3 + $0x2c0] sm:$0xff] %vm8973_vm8, %v2221_v10  ;;  %vm8987_vm8 = vmmov %vm8927_vm0  ;;  %v2414_v10 = vld [vmem:[#allocation3 + $0x20] sm:$0xff] }
 0x1fe   : > { %2248 = vrot.lane.b32.xlu0 %v2153_v4, %s5811_s23  ;;  %v1929_v6 = vpop.permute.xlu1 %1928  ;;  %v2492_v40 = vld [vmem:[#allocation3 + $0x290] sm:$0xff]  ;;  %s5684_s23 = smul.u32 200, %s9155_s16 }
 0x1ff   : > { %2009 = vst.msk [vmem:[#allocation3 + $0x268] sm:$0xff] %vm8976_vm13, %v1929_v6  ;;  %vm8990_vm13 = vmmov %vm8927_vm0 }
 0x200   : > { %v2219_v9 = vpop.permute.xlu0 %2218  ;;  %v2491_v24 = vld [vmem:[#allocation3 + $0x288] sm:$0xff]  ;;  %s7599_s6 = scalar_lea.vmem %s8714_s1, %s5684_s23 }
 0x201   : > { %2298 = vst.msk [vmem:[#allocation3 + $0x298] sm:$0xff] %vm8975_vm12, %v2219_v9  ;;  %2882 = vmatprep.mubr.f32.mxu1 %v2491_v24  ;;  %vm8989_vm12 = vmmov %vm8927_vm0  ;;  %v2419_v9 = vld [vmem:[#allocation3 + $0x48] sm:$0xff] }
 0x202   : > { %2883 = vmatmul.mubr.f32.gmra.mrb[32].mxu1 %v2490_v47  ;;  %v1332_v46 = vpop.permute.xlu1 %1331  ;;  %v2500_v48 = vld [vmem:[#allocation3 + $0x2d0] sm:$0xff] }
 0x203   : > { %2887 = vmatprep.mubr.f32.mxu1 %v2496_v39  ;;  %1407 = vst.msk [vmem:[#allocation3 + $0x348] sm:$0xff] %vm8978_vm7, %v1332_v46  ;;  %vm8992_vm7 = vmmov %vm8927_vm0  ;;  %v2424_v47 = vld [vmem:[#allocation3 + $0x70] sm:$0xff] }
 0x204   : > { %v1649_v17 = vpop.permute.xlu0 %1648  ;;  %v2498_v55 = vld [vmem:[#allocation3 + $0x2c0] sm:$0xff] }
 0x205   : > { %1725 = vst.msk [vmem:[#allocation3 + $0x300] sm:$0xff] %vm8977_vm10, %v1649_v17  ;;  %vm8991_vm10 = vmmov %vm8927_vm0 }
 0x206   : > { %2888 = vmatmul.mubr.f32.gmra.mrb[34].mxu1 %v2495_v57  ;;  %v1935_v5 = vpop.permute.xlu1 %1934  ;;  %v2487_v27 = vld [vmem:[#allocation3 + $0x268] sm:$0xff]  ;;  %v2429_v57 = vld [vmem:[#allocation3 + $0x98] sm:$0xff] }
 0x207   : > { %2012 = vst.msk [vmem:[#allocation3 + $0x2e0] sm:$0xff] %vm8980_vm14, %v1935_v5  ;;  %3103 = vmatmul.mubr.f32.gmra.mrb[62].mxu0 %v2487_v27  ;;  %vm8994_vm14 = vmmov %vm8927_vm0 }
 0x208   : > { %v1647_v37 = vpop.permute.xlu0 %1646  ;;  %v2493_v15 = vld [vmem:[#allocation3 + $0x298] sm:$0xff] }
 0x209   : > { %1724 = vst.msk [vmem:[#allocation3 + $0x2d8] sm:$0xff] %vm8979_vm3, %v1647_v37  ;;  %3107 = vmatprep.mubr.f32.mxu0 %v2493_v15  ;;  %vm8993_vm3 = vmmov %vm8927_vm0  ;;  %v2434_v37 = vld [vmem:[#allocation3 + $0xc0] sm:$0xff] }
 0x20a   : > { %v1330_v35 = vpop.permute.xlu1 %1329  ;;  %v2515_v25 = vld [vmem:[#allocation3 + $0x348] sm:$0xff] }
 0x20b   : > { %1406 = vst.msk [vmem:[#allocation3 + $0x320] sm:$0xff] %vm8982_vm1, %v1330_v35  ;;  %3108 = vmatmul.mubr.f32.gmra.mrb[64].mxu0 %v2492_v40  ;;  %vm8996_vm1 = vmmov %vm8927_vm0  ;;  %v2444_v40 = vld [vmem:[#allocation3 + $0x110] sm:$0xff] }
 0x20c   : > { %v2225_v30 = vpop.permute.xlu0 %2224  ;;  %3112 = vmatprep.mubr.f32.mxu0 %v2498_v55  ;;  %v2506_v19 = vld [vmem:[#allocation3 + $0x300] sm:$0xff] }
 0x20d   : > { %2301 = vst.msk [vmem:[#allocation3 + $0x310] sm:$0xff] %vm8981_vm5, %v2225_v30  ;;  %vm8995_vm5 = vmmov %vm8927_vm0  ;;  %v2439_v30 = vld [vmem:[#allocation3 + $0xe8] sm:$0xff] }
 0x20e   : > { %v1933_v2 = vpop.permute.xlu1 %1932  ;;  %v2502_v8 = vld [vmem:[#allocation3 + $0x2e0] sm:$0xff] }
 0x20f   : > { %2011 = vst.msk [vmem:[#allocation3 + $0x2b8] sm:$0xff] %vm8927_vm0, %v1933_v2 }
 0x210   : > { %v2223_v26 = vpop.permute.xlu0 %2222  ;;  %v2501_v53 = vld [vmem:[#allocation3 + $0x2d8] sm:$0xff] }
 0x211   : > { %2300 = vst.msk [vmem:[#allocation3 + $0x2e8] sm:$0xff] %vm8983_vm9, %v2223_v26  ;;  %2892 = vmatprep.mubr.f32.mxu1 %v2501_v53  ;;  %vm8997_vm9 = vmmov %vm8927_vm0 }
 0x212   : > { %2893 = vmatmul.mubr.f32.gmra.mrb[36].mxu1 %v2500_v48  ;;  %v1939_v63 = vpop.permute.xlu1 %1938  ;;  %v2510_v42 = vld [vmem:[#allocation3 + $0x320] sm:$0xff]  ;;  %v2449_v48 = vld [vmem:[#allocation3 + $0x138] sm:$0xff] }
 0x213   : > { %2897 = vmatprep.mubr.f32.mxu1 %v2506_v19  ;;  %2014 = vst.msk [vmem:[#allocation3 + $0x330] sm:$0xff] %vm8985_vm11, %v1939_v63  ;;  %vm8999_vm11 = vmmov %vm8927_vm0  ;;  %v2454_v19 = vld [vmem:[#allocation3 + $0x160] sm:$0xff] }
 0x214   : > { %v1653_v18 = vpop.permute.xlu0 %1652  ;;  %v2508_v41 = vld [vmem:[#allocation3 + $0x310] sm:$0xff] }
 0x215   : > { %1727 = vst.msk [vmem:[#allocation3 + $0x350] sm:$0xff] %vm8984_vm6, %v1653_v18  ;;  %vm8998_vm6 = vmmov %vm8927_vm0 }
 0x216   : > { %2898 = vmatmul.mubr.f32.gmra.mrb[38].mxu1 %v2505_v56  ;;  %v1334_v23 = vpop.permute.xlu1 %1333  ;;  %v2497_v61 = vld [vmem:[#allocation3 + $0x2b8] sm:$0xff] }
 0x217   : > { %1408 = vst.msk [vmem:[#allocation3 + $0x370] sm:$0xff] %vm8987_vm8, %v1334_v23  ;;  %3113 = vmatmul.mubr.f32.gmra.mrb[66].mxu0 %v2497_v61  ;;  %vm9001_vm8 = vmmov %vm8927_vm0  ;;  %v2464_v61 = vld [vmem:[#allocation3 + $0x1b0] sm:$0xff] }
 0x218   : > { %v1651_v33 = vpop.permute.xlu0 %1650  ;;  %v2503_v49 = vld [vmem:[#allocation3 + $0x2e8] sm:$0xff] }
 0x219   : > { %1726 = vst.msk [vmem:[#allocation3 + $0x328] sm:$0xff] %vm8986_vm15, %v1651_v33  ;;  %3117 = vmatprep.mubr.f32.mxu0 %v2503_v49  ;;  %vm9000_vm15 = vmmov %vm8927_vm0  ;;  %v2459_v33 = vld [vmem:[#allocation3 + $0x188] sm:$0xff] }
 0x21a   : > { %v1937_v1 = vpop.permute.xlu1 %1936  ;;  %v2512_v59 = vld [vmem:[#allocation3 + $0x330] sm:$0xff] }
 0x21b   : > { %2013 = vst.msk [vmem:[#allocation3 + $0x308] sm:$0xff] %vm8989_vm12, %v1937_v1  ;;  %3118 = vmatmul.mubr.f32.gmra.mrb[68].mxu0 %v2502_v8  ;;  %vm9003_vm12 = vmmov %vm8927_vm0  ;;  %v2469_v8 = vld [vmem:[#allocation3 + $0x1d8] sm:$0xff] }
 0x21c   : > { %v2229_v28 = vpop.permute.xlu0 %2228  ;;  %3122 = vmatprep.mubr.f32.mxu0 %v2508_v41  ;;  %v2516_v36 = vld [vmem:[#allocation3 + $0x350] sm:$0xff] }
 0x21d   : > { %2303 = vst.msk [vmem:[#allocation3 + $0x360] sm:$0xff] %vm8988_vm4, %v2229_v28  ;;  %vm9002_vm4 = vmmov %vm8927_vm0 }
 0x21e   : > { %v1336_v29 = vpop.permute.xlu1 %1335  ;;  %v2520_v54 = vld [vmem:[#allocation3 + $0x370] sm:$0xff] }
 0x21f   : > { %1409 = vst.msk [vmem:[#allocation3 + $0x398] sm:$0xff] %vm8991_vm10, %v1336_v29  ;;  %vm9005_vm10 = vmmov %vm8927_vm0 }
 0x220   : > { %v2227_v44 = vpop.permute.xlu0 %2226  ;;  %v2511_v62 = vld [vmem:[#allocation3 + $0x328] sm:$0xff] }
 0x221   : > { %2302 = vst.msk [vmem:[#allocation3 + $0x338] sm:$0xff] %vm8990_vm13, %v2227_v44  ;;  %2902 = vmatprep.mubr.f32.mxu1 %v2511_v62  ;;  %vm9004_vm13 = vmmov %vm8927_vm0  ;;  %v2474_v44 = vld [vmem:[#allocation3 + $0x200] sm:$0xff] }
 0x222   : > { %2903 = vmatmul.mubr.f32.gmra.mrb[40].mxu1 %v2510_v42  ;;  %v1941_v13 = vpop.permute.xlu1 %1940  ;;  %v2507_v60 = vld [vmem:[#allocation3 + $0x308] sm:$0xff] }
 0x223   : > { %2907 = vmatprep.mubr.f32.mxu1 %v2516_v36  ;;  %2015 = vst.msk [vmem:[#allocation3 + $0x358] sm:$0xff] %vm8993_vm3, %v1941_v13  ;;  %3123 = vmatmul.mubr.f32.gmra.mrb[70].mxu0 %v2507_v60  ;;  %vm9007_vm3 = vmmov %vm8927_vm0  ;;  %v2479_v36 = vld [vmem:[#allocation3 + $0x228] sm:$0xff] }
 0x224   : > { %v1657_v12 = vpop.permute.xlu0 %1656  ;;  %v2518_v32 = vld [vmem:[#allocation3 + $0x360] sm:$0xff] }
 0x225   : > { %1729 = vst.msk [vmem:[#allocation3 + $0x3a0] sm:$0xff] %vm8992_vm7, %v1657_v12  ;;  %vm9006_vm7 = vmmov %vm8927_vm0 }
 0x226   : > { %2908 = vmatmul.mubr.f32.gmra.mrb[42].mxu1 %v2515_v25  ;;  %v1943_v21 = vpop.permute.xlu1 %1942  ;;  %v2525_v43 = vld [vmem:[#allocation3 + $0x398] sm:$0xff]  ;;  %v2484_v25 = vld [vmem:[#allocation3 + $0x250] sm:$0xff] }
 0x227   : > { %2016 = vst.msk [vmem:[#allocation3 + $0x380] sm:$0xff] %vm8995_vm5, %v1943_v21  ;;  %vm9009_vm5 = vmmov %vm8927_vm0  ;;  %v2489_v21 = vld [vmem:[#allocation3 + $0x278] sm:$0xff] }
 0x228   : > { %v1655_v22 = vpop.permute.xlu0 %1654  ;;  %v2513_v38 = vld [vmem:[#allocation3 + $0x338] sm:$0xff] }
 0x229   : > { %1728 = vst.msk [vmem:[#allocation3 + $0x378] sm:$0xff] %vm8994_vm14, %v1655_v22  ;;  %3127 = vmatprep.mubr.f32.mxu0 %v2513_v38  ;;  %vm9008_vm14 = vmmov %vm8927_vm0 }
 0x22a   : > { %3128 = vmatmul.mubr.f32.gmra.mrb[72].mxu0 %v2512_v59  ;;  %v1338_v52 = vpop.permute.xlu1 %1337  ;;  %v2517_v31 = vld [vmem:[#allocation3 + $0x358] sm:$0xff] }
 0x22b   : > { %3132 = vmatprep.mubr.f32.mxu0 %v2518_v32  ;;  %1410 = vst.msk [vmem:[#allocation3 + $0x3c0] sm:$0xff] %vm8997_vm9, %v1338_v52  ;;  %vm9011_vm9 = vmmov %vm8927_vm0 }
 0x22c   : > { %v2231_v0 = vpop.permute.xlu0 %2230  ;;  %v2526_v51 = vld [vmem:[#allocation3 + $0x3a0] sm:$0xff] }
 0x22d   : > { %2304 = vst.msk [vmem:[#allocation3 + $0x388] sm:$0xff] %vm8996_vm1, %v2231_v0  ;;  %vm9010_vm1 = vmmov %vm8927_vm0  ;;  %v2494_v0 = vld [vmem:[#allocation3 + $0x2a0] sm:$0xff] }
 0x22e   : > { %3133 = vmatmul.mubr.f32.gmra.mrb[74].mxu0 %v2517_v31  ;;  %v1340_v50 = vpop.permute.xlu1 %1339  ;;  %v2522_v11 = vld [vmem:[#allocation3 + $0x380] sm:$0xff] }
 0x22f   : > { %1411 = vst.msk [vmem:[#allocation3 + $0x3e8] sm:$0xff] %vm8998_vm6, %v1340_v50  ;;  %vm9012_vm6 = vmmov %vm8927_vm0 }
 0x230   : > { %v1659_v14 = vpop.permute.xlu0 %1658  ;;  %v2521_v58 = vld [vmem:[#allocation3 + $0x378] sm:$0xff] }
 0x231   : > { %1730 = vst.msk [vmem:[#allocation3 + $0x3c8] sm:$0xff] %vm8927_vm0, %v1659_v14  ;;  %2912 = vmatprep.mubr.f32.mxu1 %v2521_v58  ;;  %v2499_v58 = vld [vmem:[#allocation3 + $0x2c8] sm:$0xff] }
 0x232   : > { %2913 = vmatmul.mubr.f32.gmra.mrb[44].mxu1 %v2520_v54  ;;  %v1342_v4 = vpop.permute.xlu1 %1341  ;;  %v2530_v20 = vld [vmem:[#allocation3 + $0x3c0] sm:$0xff] }
 0x233   : > { %2917 = vmatprep.mubr.f32.mxu1 %v2526_v51  ;;  %1412 = vst.msk [vmem:[#allocation3 + $0x410] sm:$0xff] %vm9000_vm15, %v1342_v4  ;;  %vm9014_vm15 = vmmov %vm8927_vm0  ;;  %v2509_v4 = vld [vmem:[#allocation3 + $0x318] sm:$0xff] }
 0x234   : > { %v1661_v45 = vpop.permute.xlu0 %1660  ;;  %v2523_v7 = vld [vmem:[#allocation3 + $0x388] sm:$0xff] }
 0x235   : > { %1731 = vst.msk [vmem:[#allocation3 + $0x3f0] sm:$0xff] %vm8999_vm11, %v1661_v45  ;;  %3137 = vmatprep.mubr.f32.mxu0 %v2523_v7  ;;  %vm9013_vm11 = vmmov %vm8927_vm0  ;;  %v2504_v45 = vld [vmem:[#allocation3 + $0x2f0] sm:$0xff] }
 0x236   : > { %2918 = vmatmul.mubr.f32.gmra.mrb[46].mxu1 %v2525_v43  ;;  %3138 = vmatmul.mubr.f32.gmra.mrb[76].mxu0 %v2522_v11  ;;  %v1344_v24 = vpop.permute.xlu1 %1343  ;;  %v2535_v17 = vld [vmem:[#allocation3 + $0x3e8] sm:$0xff] }
 0x237   : > { %5451 = vmatprep.mubr.msk.f32.mxu0 %vm609_vm2, %v2414_v10  ;;  %1413 = vst.msk [vmem:[#allocation3 + $0x438] sm:$0xff] %vm9002_vm4, %v1344_v24  ;;  %vm9016_vm4 = vmmov %vm8927_vm0 }
 0x238   : > { %v1663_v16 = vpop.permute.xlu0 %1662  ;;  %v2531_v3 = vld [vmem:[#allocation3 + $0x3c8] sm:$0xff] }
 0x239   : > { %1732 = vst.msk [vmem:[#allocation3 + $0x418] sm:$0xff] %vm9001_vm8, %v1663_v16  ;;  %2922 = vmatprep.mubr.f32.mxu1 %v2531_v3  ;;  %vm9015_vm8 = vmmov %vm8927_vm0 }
 0x23a   : > { %2923 = vmatmul.mubr.f32.gmra.mrb[48].mxu1 %v2530_v20  ;;  %5452 = vmatmul.mubr.msk.f32.vlgmr.msra.gmra.mrb[78].mxu0 %vm609_vm2, %v2419_v9  ;;  %v1346_v46 = vpop.permute.xlu1 %1345  ;;  %v2540_v15 = vld [vmem:[#allocation3 + $0x410] sm:$0xff]  ;;  %v2514_v9 = vld [vmem:[#allocation3 + $0x340] sm:$0xff] }
 0x23b   : > { %5454 = vmatprep.mubr.msk.f32.mxu0 %vm609_vm2, %v2424_v47  ;;  %1414 = vst.msk [vmem:[#allocation3 + $0x460] sm:$0xff] %vm9004_vm13, %v1346_v46  ;;  %vm9018_vm13 = vmmov %vm8927_vm0 }
 0x23c   : > { %v1665_v6 = vpop.permute.xlu0 %1664  ;;  %v2536_v39 = vld [vmem:[#allocation3 + $0x3f0] sm:$0xff] }
 0x23d   : > { %1733 = vst.msk [vmem:[#allocation3 + $0x440] sm:$0xff] %vm9003_vm12, %v1665_v6  ;;  %2927 = vmatprep.mubr.f32.mxu1 %v2536_v39  ;;  %vm9017_vm12 = vmmov %vm8927_vm0  ;;  %v2519_v6 = vld [vmem:[#allocation3 + $0x368] sm:$0xff] }
 0x23e   : > { %2928 = vmatmul.mubr.f32.gmra.mrb[50].mxu1 %v2535_v17  ;;  %5455 = vmatmul.mubr.msk.f32.gmra.mrb[80].mxu0 %vm609_vm2, %v2429_v57  ;;  %v1348_v35 = vpop.permute.xlu1 %1347  ;;  %v2545_v53 = vld [vmem:[#allocation3 + $0x438] sm:$0xff]  ;;  %v2524_v57 = vld [vmem:[#allocation3 + $0x390] sm:$0xff] }
 0x23f   : > { %5457 = vmatprep.mubr.msk.f32.mxu0 %vm609_vm2, %v2434_v37  ;;  %1415 = vst.msk [vmem:[#allocation3 + $0x488] sm:$0xff] %vm9006_vm7, %v1348_v35  ;;  %vm9020_vm7 = vmmov %vm8927_vm0 }
 0x240   : > { %v1667_v5 = vpop.permute.xlu0 %1666  ;;  %v2541_v27 = vld [vmem:[#allocation3 + $0x418] sm:$0xff] }
 0x241   : > { %1734 = vst.msk [vmem:[#allocation3 + $0x468] sm:$0xff] %vm9005_vm10, %v1667_v5  ;;  %2932 = vmatprep.mubr.f32.mxu1 %v2541_v27  ;;  %vm9019_vm10 = vmmov %vm8927_vm0  ;;  %v2529_v27 = vld [vmem:[#allocation3 + $0x3b8] sm:$0xff] }
 0x242   : > { %2933 = vmatmul.mubr.f32.gmra.mrb[52].mxu1 %v2540_v15  ;;  %5458 = vmatmul.mubr.msk.f32.gmra.mrb[82].mxu0 %vm609_vm2, %v2439_v30  ;;  %v1350_v2 = vpop.permute.xlu1 %1349  ;;  %v2550_v18 = vld [vmem:[#allocation3 + $0x460] sm:$0xff] }
 0x243   : > { %5460 = vmatprep.mubr.msk.f32.mxu0 %vm609_vm2, %v2444_v40  ;;  %1416 = vst.msk [vmem:[#allocation3 + $0x4b0] sm:$0xff] %vm9008_vm14, %v1350_v2  ;;  %vm9022_vm14 = vmmov %vm8927_vm0  ;;  %v2534_v40 = vld [vmem:[#allocation3 + $0x3e0] sm:$0xff] }
 0x244   : > { %v1669_v55 = vpop.permute.xlu0 %1668  ;;  %v2546_v26 = vld [vmem:[#allocation3 + $0x440] sm:$0xff] }
 0x245   : > { %1735 = vst.msk [vmem:[#allocation3 + $0x490] sm:$0xff] %vm9007_vm3, %v1669_v55  ;;  %2937 = vmatprep.mubr.f32.mxu1 %v2546_v26  ;;  %vm9021_vm3 = vmmov %vm8927_vm0 }
 0x246   : > { %2938 = vmatmul.mubr.f32.gmra.mrb[54].mxu1 %v2545_v53  ;;  %5461 = vmatmul.mubr.msk.f32.gmra.mrb[84].mxu0 %vm609_vm2, %v2449_v48  ;;  %v1352_v23 = vpop.permute.xlu1 %1351  ;;  %v2555_v49 = vld [vmem:[#allocation3 + $0x488] sm:$0xff]  ;;  %v2804_v38 = vpop.f32.mrb[0].mxu1 }
 0x247   : > { %5463 = vmatprep.mubr.msk.f32.mxu0 %vm609_vm2, %v2454_v19  ;;  %1417 = vst.msk [vmem:[#allocation3 + $0x4d8] sm:$0xff] %vm9010_vm1, %v1352_v23  ;;  %v2806_v59 = vpop.f32.mrb[1].mxu1  ;;  %vm9024_vm1 = vmmov %vm8927_vm0  ;;  %v2539_v48 = vld [vmem:[#allocation3 + $0x408] sm:$0xff]  ;;  %v2549_v23 = vld [vmem:[#allocation3 + $0x458] sm:$0xff] }
 0x248   : > { %v1671_v56 = vpop.permute.xlu0 %1670  ;;  %v2551_v63 = vld [vmem:[#allocation3 + $0x468] sm:$0xff] }
 0x249   : > { %1736 = vst.msk [vmem:[#allocation3 + $0x4b8] sm:$0xff] %vm9009_vm5, %v1671_v56  ;;  %2942 = vmatprep.mubr.f32.mxu1 %v2551_v63  ;;  %vm9023_vm5 = vmmov %vm8927_vm0  ;;  %v2544_v56 = vld [vmem:[#allocation3 + $0x430] sm:$0xff] }
 0x24a   : > { %2943 = vmatmul.mubr.f32.gmra.mrb[56].mxu1 %v2550_v18  ;;  %5464 = vmatmul.mubr.msk.f32.gmra.mrb[86].mxu0 %vm609_vm2, %v2459_v33  ;;  %v1945_v41 = vpop.permute.xlu1 %1944  ;;  %v2560_v62 = vld [vmem:[#allocation3 + $0x4b0] sm:$0xff] }
 0x24b   : > { %5466 = vmatprep.mubr.msk.f32.mxu0 %vm609_vm2, %v2464_v61  ;;  %2017 = vst.msk [vmem:[#allocation3 + $0x3a8] sm:$0xff] %vm8927_vm0, %v1945_v41 }
 0x24c   : > { %v1673_v28 = vpop.permute.xlu0 %1672  ;;  %v2556_v1 = vld [vmem:[#allocation3 + $0x490] sm:$0xff] }
 0x24d   : > { %1737 = vst.msk [vmem:[#allocation3 + $0x4e0] sm:$0xff] %vm9011_vm9, %v1673_v28  ;;  %2947 = vmatprep.mubr.f32.mxu1 %v2556_v1  ;;  %vm9025_vm9 = vmmov %vm8927_vm0  ;;  %v2554_v1 = vld [vmem:[#allocation3 + $0x480] sm:$0xff] }
 0x24e   : > { %2948 = vmatmul.mubr.f32.gmra.mrb[58].mxu1 %v2555_v49  ;;  %5467 = vmatmul.mubr.msk.f32.gmra.mrb[88].mxu0 %vm609_vm2, %v2469_v8  ;;  %v1947_v12 = vpop.permute.xlu1 %1946  ;;  %v2565_v13 = vld [vmem:[#allocation3 + $0x4d8] sm:$0xff] }
 0x24f   : > { %5469 = vmatprep.mubr.msk.f32.mxu0 %vm609_vm2, %v2474_v44  ;;  %2018 = vst.msk [vmem:[#allocation3 + $0x3d0] sm:$0xff] %vm9013_vm11, %v1947_v12  ;;  %vm9027_vm11 = vmmov %vm8927_vm0 }
 0x250   : > { %v2233_v42 = vpop.permute.xlu0 %2232  ;;  %v2561_v29 = vld [vmem:[#allocation3 + $0x4b8] sm:$0xff] }
 0x251   : > { %2305 = vst.msk [vmem:[#allocation3 + $0x3b0] sm:$0xff] %vm9012_vm6, %v2233_v42  ;;  %2952 = vmatprep.mubr.f32.mxu1 %v2561_v29  ;;  %v7409_v14 = vpop.f32.mrb[2].mxu1  ;;  %vm9026_vm6 = vmmov %vm8927_vm0  ;;  %v2564_v42 = vld [vmem:[#allocation3 + $0x4d0] sm:$0xff] }
 0x252   : > { %5470 = vmatmul.mubr.msk.f32.gmra.mrb[90].mxu0 %vm609_vm2, %v2479_v36  ;;  %2953 = vmatmul.mubr.f32.gmra.mrb[60].mxu1 %v2560_v62  ;;  %v1949_v32 = vpop.permute.xlu1 %1948  ;;  %v2527_v54 = vld [vmem:[#allocation3 + $0x3a8] sm:$0xff]  ;;  %v2811_v50 = vpop.f32.mrb[3].mxu1 }
 0x253   : > { %5472 = vmatprep.mubr.msk.f32.mxu0 %vm609_vm2, %v2484_v25  ;;  %2019 = vst.msk [vmem:[#allocation3 + $0x3f8] sm:$0xff] %vm9015_vm8, %v1949_v32  ;;  %v2559_v36 = vld [vmem:[#allocation3 + $0x4a8] sm:$0xff] }
 0x254   : > { %v2235_v60 = vpop.permute.xlu0 %2234  ;;  %v2566_v22 = vld [vmem:[#allocation3 + $0x4e0] sm:$0xff] }
 0x255   : > { %2306 = vst.msk [vmem:[#allocation3 + $0x3d8] sm:$0xff] %vm9014_vm15, %v2235_v60  ;;  %2957 = vmatprep.mubr.f32.mxu1 %v2566_v22  ;;  %v2569_v60 = vld [vmem:[#allocation3 + $0x4f8] sm:$0xff]  ;;  %vm9069_vm15 = vcmask 1043456  }
 0x256   : > { %5473 = vmatmul.mubr.msk.f32.gmra.mrb[92].mxu0 %vm609_vm2, %v2489_v21  ;;  %2958 = vmatmul.mubr.f32.gmra.mrb[62].mxu1 %v2565_v13  ;;  %v1951_v51 = vpop.permute.xlu1 %1950  ;;  %v3029_v11 = vpop.f32.mrb[32].mxu0  ;;  %v2532_v10 = vld [vmem:[#allocation3 + $0x3d0] sm:$0xff]  ;;  %vm9138_vm8 = vmmov %vm9069_vm15 }
 0x257   : > { %5475 = vmatprep.mubr.msk.f32.mxu0 %vm609_vm2, %v2494_v0  ;;  %2020 = vst.msk [vmem:[#allocation3 + $0x420] sm:$0xff] %vm9017_vm12, %v1951_v51  ;;  %v7415_v16 = vadd.f32 %v3029_v11, %v2804_v38  ;;  %v3031_v20 = vpop.f32.mrb[33].mxu0 }
 0x258   : > { %v2237_v52 = vpop.permute.xlu0 %2236  ;;  %v2528_v31 = vld [vmem:[#allocation3 + $0x3b0] sm:$0xff] }
 0x259   : > { %2307 = vst.msk [vmem:[#allocation3 + $0x400] sm:$0xff] %vm9016_vm4, %v2237_v52  ;;  %3142 = vmatprep.mubr.f32.mxu1 %v2528_v31  ;;  %vm9150_vm4 = vmmov %vm9138_vm8 }
 0x25a   : > { %5476 = vmatmul.mubr.msk.f32.gmra.mrb[94].mxu0 %vm609_vm2, %v2499_v58  ;;  %3143 = vmatmul.mubr.f32.vlgmr.msra.gmra.mrb[46].mxu1 %v2527_v54  ;;  %v1953_v3 = vpop.permute.xlu1 %1952  ;;  %v2537_v39 = vld [vmem:[#allocation3 + $0x3f8] sm:$0xff]  ;;  %vm9153_vm12 = vmmov %vm9150_vm4 }
 0x25b   : > { %5478 = vmatprep.mubr.msk.f32.mxu0 %vm609_vm2, %v2504_v45  ;;  %2021 = vst.msk [vmem:[#allocation3 + $0x448] sm:$0xff] %vm9019_vm10, %v1953_v3 }
 0x25c   : > { %v2239_v7 = vpop.permute.xlu0 %2238  ;;  %v2533_v43 = vld [vmem:[#allocation3 + $0x3d8] sm:$0xff] }
 0x25d   : > { %2308 = vst.msk [vmem:[#allocation3 + $0x428] sm:$0xff] %vm9018_vm13, %v2239_v7  ;;  %3147 = vmatprep.mubr.f32.mxu1 %v2533_v43 }
 0x25e   : > { %5479 = vmatmul.mubr.msk.f32.gmra.mrb[96].mxu0 %vm609_vm2, %v2509_v4  ;;  %3148 = vmatmul.mubr.f32.gmra.mrb[48].mxu1 %v2532_v10  ;;  %v1955_v17 = vpop.permute.xlu1 %1954  ;;  %v2542_v15 = vld [vmem:[#allocation3 + $0x420] sm:$0xff] }
 0x25f   : > { %5481 = vmatprep.mubr.msk.f32.mxu0 %vm609_vm2, %v2514_v9  ;;  %2022 = vst.msk [vmem:[#allocation3 + $0x470] sm:$0xff] %vm9021_vm3, %v1955_v17 }
 0x260   : > { %v2241_v24 = vpop.permute.xlu0 %2240  ;;  %v2538_v47 = vld [vmem:[#allocation3 + $0x400] sm:$0xff] }
 0x261   : > { %2309 = vst.msk [vmem:[#allocation3 + $0x450] sm:$0xff] %vm9020_vm7, %v2241_v24  ;;  %3152 = vmatprep.mubr.f32.mxu1 %v2538_v47 }
 0x262   : > { %5482 = vmatmul.mubr.msk.f32.gmra.mrb[98].mxu0 %vm609_vm2, %v2519_v6  ;;  %3153 = vmatmul.mubr.f32.gmra.mrb[50].mxu1 %v2537_v39  ;;  %v1957_v35 = vpop.permute.xlu1 %1956  ;;  %v2547_v2 = vld [vmem:[#allocation3 + $0x448] sm:$0xff] }
 0x263   : > { %5484 = vmatprep.mubr.msk.f32.mxu0 %vm609_vm2, %v2524_v57  ;;  %v2814_v5 = vpop.f32.mrb[4].mxu1  ;;  %2023 = vst.msk [vmem:[#allocation3 + $0x498] sm:$0xff] %vm9023_vm5, %v1957_v35 }
 0x264   : > { %v2243_v46 = vpop.permute.xlu0 %2242  ;;  %v2543_v37 = vld [vmem:[#allocation3 + $0x428] sm:$0xff]  ;;  %v2816_v30 = vpop.f32.mrb[5].mxu1 }
 0x265   : > { %2310 = vst.msk [vmem:[#allocation3 + $0x478] sm:$0xff] %vm9022_vm14, %v2243_v46  ;;  %3157 = vmatprep.mubr.f32.mxu1 %v2543_v37 }
 0x266   : > { %5485 = vmatmul.mubr.msk.f32.gmra.mrb[100].mxu0 %vm609_vm2, %v2529_v27  ;;  %3158 = vmatmul.mubr.f32.gmra.mrb[52].mxu1 %v2542_v15  ;;  %v1959_v18 = vpop.permute.xlu1 %1958  ;;  %v2552_v61 = vld [vmem:[#allocation3 + $0x470] sm:$0xff] }
 0x267   : > { %5487 = vmatprep.mubr.msk.f32.mxu0 %vm609_vm2, %v2534_v40  ;;  %v2819_v53 = vpop.f32.mrb[6].mxu1  ;;  %2024 = vst.msk [vmem:[#allocation3 + $0x4c0] sm:$0xff] %vm9025_vm9, %v1959_v18 }
 0x268   : > { %v2245_v55 = vpop.permute.xlu0 %2244  ;;  %v2548_v26 = vld [vmem:[#allocation3 + $0x450] sm:$0xff]  ;;  %v2821_v19 = vpop.f32.mrb[7].mxu1 }
 0x269   : > { %2311 = vst.msk [vmem:[#allocation3 + $0x4a0] sm:$0xff] %vm9024_vm1, %v2245_v55  ;;  %3162 = vmatprep.mubr.f32.mxu1 %v2548_v26  ;;  %v3034_v49 = vpop.f32.mrb[34].mxu0 }
 0x26a   : > { %5488 = vmatmul.mubr.msk.f32.gmra.mrb[102].mxu0 %vm609_vm2, %v2539_v48  ;;  %3163 = vmatmul.mubr.f32.gmra.mrb[54].mxu1 %v2547_v2  ;;  %v1961_v28 = vpop.permute.xlu1 %1960  ;;  %v7435_v8 = vadd.f32 %v3034_v49, %v7409_v14  ;;  %v3036_v41 = vpop.f32.mrb[35].mxu0  ;;  %v2557_v29 = vld [vmem:[#allocation3 + $0x498] sm:$0xff] }
 0x26b   : > { %5490 = vmatprep.mubr.msk.f32.mxu0 %vm609_vm2, %v2544_v56  ;;  %2025 = vst.msk [vmem:[#allocation3 + $0x4e8] sm:$0xff] %vm9026_vm6, %v1961_v28 }
 0x26c   : > { %v2247_v63 = vpop.permute.xlu0 %2246  ;;  %v2553_v33 = vld [vmem:[#allocation3 + $0x478] sm:$0xff]  ;;  %v3039_v12 = vpop.f32.mrb[36].mxu0 }
 0x26d   : > { %2312 = vst.msk [vmem:[#allocation3 + $0x4c8] sm:$0xff] %vm8927_vm0, %v2247_v63  ;;  %3167 = vmatprep.mubr.f32.mxu1 %v2553_v33  ;;  %v7441_v25 = vadd.f32 %v3039_v12, %v2814_v5  ;;  %v3041_v13 = vpop.f32.mrb[37].mxu0 }
 0x26e   : > { %5491 = vmatmul.mubr.msk.f32.gmra.mrb[104].mxu0 %vm609_vm2, %v2549_v23  ;;  %3168 = vmatmul.mubr.f32.gmra.mrb[56].mxu1 %v2552_v61  ;;  %v2562_v21 = vld [vmem:[#allocation3 + $0x4c0] sm:$0xff] }
 0x26f   : > { %5493 = vmatprep.mubr.msk.f32.mxu0 %vm609_vm2, %v2554_v1 }
 0x270   : > { %v2249_v44 = vpop.permute.xlu0 %2248  ;;  %v2558_v62 = vld [vmem:[#allocation3 + $0x4a0] sm:$0xff] }
 0x271   : > { %2313 = vst.msk [vmem:[#allocation3 + $0x4f0] sm:$0xff] %vm9027_vm11, %v2249_v44  ;;  %3172 = vmatprep.mubr.f32.mxu1 %v2558_v62 }
 0x272   : > { %3173 = vmatmul.mubr.f32.gmra.mrb[58].mxu1 %v2557_v29  ;;  %5494 = vmatmul.mubr.msk.f32.gmra.mrb[106].mxu0 %vm609_vm2, %v2559_v36  ;;  %v2567_v52 = vld [vmem:[#allocation3 + $0x4e8] sm:$0xff] }
 0x273   : > { %5496 = vmatprep.mubr.msk.f32.mxu0 %vm609_vm2, %v2564_v42  ;;  %v2824_v38 = vpop.f32.mrb[8].mxu1 }
 0x274   : > { %v2563_v22 = vld [vmem:[#allocation3 + $0x4c8] sm:$0xff]  ;;  %v2826_v59 = vpop.f32.mrb[9].mxu1 }
 0x275   : > { %3177 = vmatprep.mubr.f32.mxu1 %v2563_v22 }
 0x276   : > { %3178 = vmatmul.mubr.f32.gmra.mrb[60].mxu1 %v2562_v21  ;;  %5497 = vmatmul.mubr.msk.f32.gmra.mrb[108].mxu0 %vm609_vm2, %v2569_v60  ;;  %vm3478_vm2 = vcmask 1040384  }
 0x277   : > { %v2829_v0 = vpop.f32.mrb[10].mxu1 }
 0x278   : > { %v2568_v32 = vld [vmem:[#allocation3 + $0x4f0] sm:$0xff]  ;;  %v2831_v31 = vpop.f32.mrb[11].mxu1 }
 0x279   : > { %3182 = vmatprep.mubr.f32.mxu1 %v2568_v32 }
 0x27a   : > { %3183 = vmatmul.mubr.f32.gmra.mrb[62].mxu1 %v2567_v52 }
 0x27b   : > { %v3044_v14 = vpop.f32.mrb[38].mxu0 }
 0x27c   : > { %v7445_v58 = vadd.f32 %v3044_v14, %v2819_v53  ;;  %v3046_v54 = vpop.f32.mrb[39].mxu0 }
 0x27f   : > { %v3049_v50 = vpop.f32.mrb[40].mxu0 }
 0x280   : > { %v7447_v51 = vadd.f32 %v3049_v50, %v2824_v38  ;;  %v3051_v45 = vpop.f32.mrb[41].mxu0 }
 0x285   : > { %v2834_v7 = vpop.f32.mrb[12].mxu1 }
 0x286   : > { %v2836_v43 = vpop.f32.mrb[13].mxu1 }
 0x289   : > { %v2839_v11 = vpop.f32.mrb[14].mxu1 }
 0x28a   : > { %v2841_v4 = vpop.f32.mrb[15].mxu1  ;;  %v3054_v10 = vpop.f32.mrb[42].mxu0 }
 0x28b   : > { %v7449_v3 = vadd.f32 %v3054_v10, %v2829_v0  ;;  %v3056_v20 = vpop.f32.mrb[43].mxu0 }
 0x28e   : > { %v3059_v9 = vpop.f32.mrb[44].mxu0 }
 0x28f   : > { %v7451_v24 = vadd.f32 %v3059_v9, %v2834_v7  ;;  %v3061_v47 = vpop.f32.mrb[45].mxu0 }
 0x295   : > { %v2844_v6 = vpop.f32.mrb[16].mxu1 }
 0x296   : > { %v2846_v39 = vpop.f32.mrb[17].mxu1 }
 0x299   : > { %v2849_v17 = vpop.f32.mrb[18].mxu1 }
 0x29a   : > { %v2851_v57 = vpop.f32.mrb[19].mxu1  ;;  %v3064_v46 = vpop.f32.mrb[46].mxu0 }
 0x29b   : > { %v7453_v37 = vadd.f32 %v3064_v46, %v2839_v11  ;;  %v3066_v5 = vpop.f32.mrb[47].mxu0 }
 0x29e   : > { %v3069_v27 = vpop.f32.mrb[48].mxu0 }
 0x29f   : > { %v7455_v15 = vadd.f32 %v3069_v27, %v2844_v6  ;;  %v3071_v30 = vpop.f32.mrb[49].mxu0 }
 0x2a5   : > { %v2854_v35 = vpop.f32.mrb[20].mxu1 }
 0x2a6   : > { %v2856_v40 = vpop.f32.mrb[21].mxu1 }
 0x2a9   : > { %v2859_v55 = vpop.f32.mrb[22].mxu1 }
 0x2aa   : > { %v2861_v26 = vpop.f32.mrb[23].mxu1  ;;  %v3074_v53 = vpop.f32.mrb[50].mxu0 }
 0x2ab   : > { %v7457_v48 = vadd.f32 %v3074_v53, %v2849_v17  ;;  %v3076_v2 = vpop.f32.mrb[51].mxu0 }
 0x2ae   : > { %v3079_v19 = vpop.f32.mrb[52].mxu0 }
 0x2af   : > { %v7459_v18 = vadd.f32 %v3079_v19, %v2854_v35  ;;  %v3081_v56 = vpop.f32.mrb[53].mxu0 }
 0x2b5   : > { %v2864_v63 = vpop.f32.mrb[24].mxu1 }
 0x2b6   : > { %v2866_v33 = vpop.f32.mrb[25].mxu1 }
 0x2b9   : > { %v2869_v23 = vpop.f32.mrb[26].mxu1 }
 0x2ba   : > { %v2871_v61 = vpop.f32.mrb[27].mxu1  ;;  %v3084_v49 = vpop.f32.mrb[54].mxu0 }
 0x2bb   : > { %v7461_v28 = vadd.f32 %v3084_v49, %v2859_v55  ;;  %v3086_v1 = vpop.f32.mrb[55].mxu0 }
 0x2be   : > { %v3089_v41 = vpop.f32.mrb[56].mxu0 }
 0x2bf   : > { %v7463_v44 = vadd.f32 %v3089_v41, %v2864_v63  ;;  %v3091_v62 = vpop.f32.mrb[57].mxu0 }
 0x2c5   : > { %v2874_v42 = vpop.f32.mrb[28].mxu1 }
 0x2c6   : > { %v2876_v29 = vpop.f32.mrb[29].mxu1 }
 0x2c9   : > { %v2879_v36 = vpop.f32.mrb[30].mxu1 }
 0x2ca   : > { %v2881_v12 = vpop.f32.mrb[31].mxu1  ;;  %v3094_v13 = vpop.f32.mrb[58].mxu0 }
 0x2cb   : > { %v7465_v60 = vadd.f32 %v3094_v13, %v2869_v23  ;;  %v3096_v22 = vpop.f32.mrb[59].mxu0 }
 0x2ce   : > { %v3099_v38 = vpop.f32.mrb[60].mxu0 }
 0x2cf   : > { %v7467_v21 = vadd.f32 %v3099_v38, %v2874_v42  ;;  %v3101_v59 = vpop.f32.mrb[61].mxu0 }
 0x2d5   : > { %v2884_v32 = vpop.f32.mrb[32].mxu1 }
 0x2d6   : > { %v2886_v0 = vpop.f32.mrb[33].mxu1 }
 0x2d9   : > { %v2889_v52 = vpop.f32.mrb[34].mxu1 }
 0x2da   : > { %v2891_v31 = vpop.f32.mrb[35].mxu1  ;;  %v3104_v14 = vpop.f32.mrb[62].mxu0 }
 0x2db   : > { %v7469_v54 = vadd.f32 %v3104_v14, %v2879_v36  ;;  %v3106_v50 = vpop.f32.mrb[63].mxu0 }
 0x2de   : > { %v3109_v45 = vpop.f32.mrb[64].mxu0 }
 0x2df   : > { %v7471_v7 = vadd.f32 %v3109_v45, %v2884_v32  ;;  %v3111_v43 = vpop.f32.mrb[65].mxu0 }
 0x2e5   : > { %v2894_v11 = vpop.f32.mrb[36].mxu1 }
 0x2e6   : > { %v2896_v4 = vpop.f32.mrb[37].mxu1 }
 0x2e9   : > { %v2899_v10 = vpop.f32.mrb[38].mxu1 }
 0x2ea   : > { %v2901_v20 = vpop.f32.mrb[39].mxu1  ;;  %v3114_v9 = vpop.f32.mrb[66].mxu0 }
 0x2eb   : > { %v7473_v47 = vadd.f32 %v3114_v9, %v2889_v52  ;;  %v3116_v6 = vpop.f32.mrb[67].mxu0 }
 0x2ee   : > { %v3119_v39 = vpop.f32.mrb[68].mxu0 }
 0x2ef   : > { %v7475_v17 = vadd.f32 %v3119_v39, %v2894_v11  ;;  %v3121_v57 = vpop.f32.mrb[69].mxu0 }
 0x2f5   : > { %v2904_v46 = vpop.f32.mrb[40].mxu1 }
 0x2f6   : > { %v2906_v5 = vpop.f32.mrb[41].mxu1  ;;  %v3124_v35 = vpop.f32.mrb[70].mxu0 }
 0x2f7   : > { %v7477_v40 = vadd.f32 %v3124_v35, %v2899_v10  ;;  %v3126_v55 = vpop.f32.mrb[71].mxu0 }
 0x2f9   : > { %v2909_v27 = vpop.f32.mrb[42].mxu1 }
 0x2fa   : > { %v2911_v30 = vpop.f32.mrb[43].mxu1 }
 0x2fd   : > { %v3129_v26 = vpop.f32.mrb[72].mxu0 }
 0x2fe   : > { %v7479_v53 = vadd.f32 %v3129_v26, %v2904_v46  ;;  %v3131_v2 = vpop.f32.mrb[73].mxu0 }
 0x301   : > { %v3134_v19 = vpop.f32.mrb[74].mxu0 }
 0x302   : > { %v7481_v56 = vadd.f32 %v3134_v19, %v2909_v27  ;;  %v3136_v63 = vpop.f32.mrb[75].mxu0 }
 0x305   : > { %v2914_v33 = vpop.f32.mrb[44].mxu1 }
 0x306   : > { %v2916_v23 = vpop.f32.mrb[45].mxu1 }
 0x309   : > { %v3139_v61 = vpop.f32.mrb[76].mxu0 }
 0x30a   : > { %v7483_v49 = vadd.f32 %v3139_v61, %v2914_v33  ;;  %v3141_v1 = vpop.f32.mrb[77].mxu0 }
 0x30d   : > { %v5453_v41 = vpop.f32.mrb[78].mxu0 }
 0x30e   : > { %v3260_v62 = vadd.f32 %v5453_v41, %v7435_v8  ;;  %v3254_v42 = vpop.f32.mrb[79].mxu0 }
 0x30f   : > { %v3255_v29 = vadd.f32 %v3254_v42, %v7415_v16 }
 0x311   : > { %v5456_v36 = vpop.f32.mrb[80].mxu0  ;;  %3413 = vxpose.xlu0.b32.start [1/16] %v3255_v29, 128 }
 0x312   : > { %v3270_v12 = vadd.f32 %v5456_v36, %v7445_v58  ;;  %v3264_v13 = vpop.f32.mrb[81].mxu0 }
 0x313   : > { %v3265_v22 = vadd.f32 %v3264_v13, %v7441_v25 }
 0x315   : > { %v5459_v38 = vpop.f32.mrb[82].mxu0  ;;  %3414 = vxpose.xlu0.b32.cont [2/16] %v3260_v62, 128 }
 0x316   : > { %v3280_v59 = vadd.f32 %v5459_v38, %v7449_v3  ;;  %v3274_v32 = vpop.f32.mrb[83].mxu0 }
 0x317   : > { %v3275_v0 = vadd.f32 %v3274_v32, %v7447_v51 }
 0x319   : > { %v5462_v52 = vpop.f32.mrb[84].mxu0  ;;  %3415 = vxpose.xlu0.b32.cont [3/16] %v3265_v22, 128 }
 0x31a   : > { %v3290_v8 = vadd.f32 %v5462_v52, %v7453_v37  ;;  %v3284_v31 = vpop.f32.mrb[85].mxu0 }
 0x31b   : > { %v3285_v16 = vadd.f32 %v3284_v31, %v7451_v24 }
 0x31d   : > { %v5465_v14 = vpop.f32.mrb[86].mxu0  ;;  %3416 = vxpose.xlu0.b32.cont [4/16] %v3270_v12, 128 }
 0x31e   : > { %v3300_v58 = vadd.f32 %v5465_v14, %v7457_v48  ;;  %v3294_v50 = vpop.f32.mrb[87].mxu0 }
 0x31f   : > { %v3295_v25 = vadd.f32 %v3294_v50, %v7455_v15 }
 0x321   : > { %v5468_v45 = vpop.f32.mrb[88].mxu0  ;;  %3417 = vxpose.xlu0.b32.cont [5/16] %v3275_v0, 128 }
 0x322   : > { %v3310_v3 = vadd.f32 %v5468_v45, %v7461_v28  ;;  %v3304_v43 = vpop.f32.mrb[89].mxu0 }
 0x323   : > { %v3305_v51 = vadd.f32 %v3304_v43, %v7459_v18 }
 0x325   : > { %v5471_v11 = vpop.f32.mrb[90].mxu0  ;;  %3418 = vxpose.xlu0.b32.cont [6/16] %v3280_v59, 128 }
 0x326   : > { %v3320_v37 = vadd.f32 %v5471_v11, %v7465_v60  ;;  %v3314_v4 = vpop.f32.mrb[91].mxu0 }
 0x327   : > { %v3315_v24 = vadd.f32 %v3314_v4, %v7463_v44 }
 0x329   : > { %v5474_v10 = vpop.f32.mrb[92].mxu0  ;;  %3419 = vxpose.xlu0.b32.cont [7/16] %v3285_v16, 128 }
 0x32a   : > { %v7500_v48 = vadd.f32 %v5474_v10, %v7469_v54  ;;  %v3324_v15 = vpop.f32.mrb[93].mxu0 }
 0x32b   : > { %v3325_v20 = vadd.f32 %v3324_v15, %v7467_v21 }
 0x32d   : > { %v5477_v9 = vpop.f32.mrb[94].mxu0  ;;  %3420 = vxpose.xlu0.b32.cont [8/16] %v3290_v8, 128  ;;  %v3144_v28 = vpop.f32.mrb[46].mxu1 }
 0x32e   : > { %v3340_v18 = vadd.f32 %v5477_v9, %v7473_v47  ;;  %v3146_v6 = vpop.f32.mrb[47].mxu1  ;;  %v3334_v39 = vpop.f32.mrb[95].mxu0 }
 0x32f   : > { %v3335_v60 = vadd.f32 %v3334_v39, %v7471_v7 }
 0x331   : > { %v5480_v57 = vpop.f32.mrb[96].mxu0  ;;  %3445 = vxpose.xlu1.b32.start [1/16] %v3335_v60, 128  ;;  %3421 = vxpose.xlu0.b32.cont [9/16] %v3295_v25, 128  ;;  %v3149_v44 = vpop.f32.mrb[48].mxu1 }
 0x332   : > { %v3350_v46 = vadd.f32 %v5480_v57, %v7477_v40  ;;  %v3151_v54 = vpop.f32.mrb[49].mxu1  ;;  %v3344_v5 = vpop.f32.mrb[97].mxu0 }
 0x333   : > { %v3345_v27 = vadd.f32 %v3344_v5, %v7475_v17 }
 0x335   : > { %v5483_v21 = vpop.f32.mrb[98].mxu0  ;;  %3446 = vxpose.xlu1.b32.cont [2/16] %v3340_v18, 128  ;;  %3422 = vxpose.xlu0.b32.cont [10/16] %v3300_v58, 128  ;;  %v3154_v30 = vpop.f32.mrb[50].mxu1 }
 0x336   : > { %v3360_v47 = vadd.f32 %v5483_v21, %v7481_v56  ;;  %v3156_v35 = vpop.f32.mrb[51].mxu1  ;;  %v3354_v55 = vpop.f32.mrb[99].mxu0 }
 0x337   : > { %v3355_v7 = vadd.f32 %v3354_v55, %v7479_v53 }
 0x339   : > { %v5486_v26 = vpop.f32.mrb[100].mxu0  ;;  %3447 = vxpose.xlu1.b32.cont [3/16] %v3345_v27, 128  ;;  %3423 = vxpose.xlu0.b32.cont [11/16] %v3305_v51, 128  ;;  %v3159_v2 = vpop.f32.mrb[52].mxu1 }
 0x33a   : > { %v3370_v19 = vadd.f32 %v5486_v26, %v3144_v28  ;;  %v3161_v40 = vpop.f32.mrb[53].mxu1  ;;  %v3364_v63 = vpop.f32.mrb[101].mxu0 }
 0x33b   : > { %v3365_v33 = vadd.f32 %v3364_v63, %v7483_v49 }
 0x33d   : > { %v5489_v17 = vpop.f32.mrb[102].mxu0  ;;  %3448 = vxpose.xlu1.b32.cont [4/16] %v3350_v46, 128  ;;  %3424 = vxpose.xlu0.b32.cont [12/16] %v3310_v3, 128  ;;  %v3164_v23 = vpop.f32.mrb[54].mxu1 }
 0x33e   : > { %v3380_v61 = vadd.f32 %v5489_v17, %v3154_v30  ;;  %v3166_v1 = vpop.f32.mrb[55].mxu1  ;;  %v3374_v56 = vpop.f32.mrb[103].mxu0 }
 0x33f   : > { %v3375_v41 = vadd.f32 %v3374_v56, %v3149_v44 }
 0x341   : > { %v5492_v62 = vpop.f32.mrb[104].mxu0  ;;  %3449 = vxpose.xlu1.b32.cont [5/16] %v3355_v7, 128  ;;  %3425 = vxpose.xlu0.b32.cont [13/16] %v3315_v24, 128  ;;  %v3169_v53 = vpop.f32.mrb[56].mxu1 }
 0x342   : > { %v3390_v42 = vadd.f32 %v5492_v62, %v3164_v23  ;;  %v3171_v29 = vpop.f32.mrb[57].mxu1  ;;  %v3384_v36 = vpop.f32.mrb[105].mxu0 }
 0x343   : > { %v3385_v12 = vadd.f32 %v3384_v36, %v3159_v2 }
 0x345   : > { %v5495_v13 = vpop.f32.mrb[106].mxu0  ;;  %3450 = vxpose.xlu1.b32.cont [6/16] %v3360_v47, 128  ;;  %3426 = vxpose.xlu0.b32.cont [14/16] %v3320_v37, 128  ;;  %v3174_v49 = vpop.f32.mrb[58].mxu1 }
 0x346   : > { %v3400_v22 = vadd.f32 %v5495_v13, %v3174_v49  ;;  %v3176_v38 = vpop.f32.mrb[59].mxu1  ;;  %v3394_v59 = vpop.f32.mrb[107].mxu0 }
 0x347   : > { %v3395_v32 = vadd.f32 %v3394_v59, %v3169_v53 }
 0x349   : > { %v5498_v0 = vpop.f32.mrb[108].mxu0  ;;  %3451 = vxpose.xlu1.b32.cont [7/16] %v3365_v33, 128  ;;  %3427 = vxpose.xlu0.b32.cont [15/16] %v3325_v20, 128  ;;  %v3179_v52 = vpop.f32.mrb[60].mxu1 }
 0x34a   : > { %v3181_v8 = vpop.f32.mrb[61].mxu1  ;;  %v3404_v31 = vpop.f32.mrb[109].mxu0 }
 0x34b   : > { %v3405_v16 = vadd.f32 %v3404_v31, %v3179_v52 }
 0x34d   : > { %3428 = vxpose.xlu0.b32.end [16/16] %v7500_v48, 128  ;;  %3452 = vxpose.xlu1.b32.cont [8/16] %v3370_v19, 128  ;;  %v3184_v14 = vpop.f32.mrb[62].mxu1 }
 0x34e   : > { %v3410_v58 = vadd.f32 %v5498_v0, %v3184_v14  ;;  %v3186_v50 = vpop.f32.mrb[63].mxu1 }
 0x351   : > { %3453 = vxpose.xlu1.b32.cont [9/16] %v3375_v41, 128 }
 0x355   : > { %3454 = vxpose.xlu1.b32.cont [10/16] %v3380_v61, 128 }
 0x359   : > { %3455 = vxpose.xlu1.b32.cont [11/16] %v3385_v12, 128 }
 0x35d   : > { %3456 = vxpose.xlu1.b32.cont [12/16] %v3390_v42, 128 }
 0x361   : > { %3457 = vxpose.xlu1.b32.cont [13/16] %v3395_v32, 128 }
 0x365   : > { %3458 = vxpose.xlu1.b32.cont [14/16] %v3400_v22, 128 }
 0x369   : > { %3459 = vxpose.xlu1.b32.cont [15/16] %v3405_v16, 128 }
 0x36d   : > { %3460 = vxpose.xlu1.b32.end [16/16] %v3410_v58, 128 }
 0x391   : > { %v3429_v25 = vpop.trf.xlu0 }
 0x395   : > { %v3430_v45 = vpop.trf.xlu0 }
 0x399   : > { %v3431_v3 = vpop.trf.xlu0 }
 0x39a   : > { %v3477_v43 = vmax.f32 %v3429_v25, %v3431_v3 }
 0x39d   : > { %v3432_v51 = vpop.trf.xlu0 }
 0x39e   : > { %v3479_v11 = vsel %vm3478_vm2, %v3432_v51, -inf }
 0x39f   : > { %v3480_v37 = vmax.f32 %v3430_v45, %v3479_v11 }
 0x3a1   : > { %v3481_v4 = vmax.f32 %v3477_v43, %v3480_v37  ;;  %v3433_v24 = vpop.trf.xlu0 }
 0x3a3   : > { %v3482_v10 = vrot.slane %v3481_v4, 4 }
 0x3a5   : > { %v3483_v48 = vmax.f32 %v3481_v4, %v3482_v10  ;;  %v3434_v15 = vpop.trf.xlu0 }
 0x3a7   : > { %v3484_v20 = vrot.slane %v3483_v48, 2 }
 0x3a9   : > { %v3485_v9 = vmax.f32 %v3483_v48, %v3484_v20  ;;  %v3435_v28 = vpop.trf.xlu0 }
 0x3aa   : > { %v3982_v60 = vmax.f32 %v3433_v24, %v3435_v28 }
 0x3ab   : > { %v3486_v18 = vrot.slane %v3485_v9, 1 }
 0x3ad   : > { %v3487_v6 = vmax.f32 %v3485_v9, %v3486_v18  ;;  %v3436_v39 = vpop.trf.xlu0 }
 0x3ae   : > { %v3983_v57 = vsel %vm3478_vm2, %v3436_v39, -inf }
 0x3af   : > { %v3498_v44 = vsub.f32 %v3429_v25, %v3487_v6  ;;  %v3500_v46 = vsub.f32 %v3430_v45, %v3487_v6  ;;  %v3502_v54 = vsub.f32 %v3431_v3, %v3487_v6  ;;  %v3504_v5 = vsub.f32 %v3432_v51, %v3487_v6 }
 0x3b0   : > { %v3984_v27 = vmax.f32 %v3434_v15, %v3983_v57 }
 0x3b1   : > { %v3506_v21 = vmul.f32 1.442695, %v3498_v44  ;;  %v3510_v30 = vmul.f32 1.442695, %v3500_v46  ;;  %v3514_v47 = vmul.f32 1.442695, %v3502_v54  ;;  %v7513_v35 = vpop.trf.xlu0  ;;  %v7515_v55 = vpop.trf.xlu1 }
 0x3b2   : > { %v3518_v7 = vmul.f32 1.442695, %v3504_v5  ;;  %v3985_v26 = vmax.f32 %v3982_v60, %v3984_v27 }
 0x3b3   : > { %5721 = vpow2.f32 %v3506_v21 }
 0x3b4   : > { %5723 = vpow2.f32 %v3510_v30  ;;  %v3986_v2 = vrot.slane %v3985_v26, 4 }
 0x3b5   : > { %5725 = vpow2.f32 %v3514_v47  ;;  %v7517_v19 = vpop.trf.xlu0  ;;  %v7519_v40 = vpop.trf.xlu1 }
 0x3b6   : > { %5727 = vpow2.f32 %v3518_v7  ;;  %v3987_v63 = vmax.f32 %v3985_v26, %v3986_v2 }
 0x3b8   : > { %v3988_v33 = vrot.slane %v3987_v63, 2 }
 0x3b9   : > { %v7521_v17 = vpop.trf.xlu0  ;;  %v7523_v23 = vpop.trf.xlu1 }
 0x3ba   : > { %v3989_v61 = vmax.f32 %v3987_v63, %v3988_v33  ;;  %v4362_v41 = vmax.f32 %v7513_v35, %v7521_v17  ;;  %v3488_v14 = vmax.f32 %v7515_v55, %v7523_v23 }
 0x3bc   : > { %v3990_v1 = vrot.slane %v3989_v61, 1 }
 0x3bd   : > { %v7525_v56 = vpop.eup %5721  ;;  %v7529_v62 = vpop.trf.xlu0 }
 0x3be   : > { %v7531_v53 = vpop.trf.xlu1  ;;  %v7533_v42 = vpop.eup %5723  ;;  %v3991_v29 = vmax.f32 %v3989_v61, %v3990_v1  ;;  %v4363_v36 = vsel %vm3478_vm2, %v7529_v62, -inf }
 0x3bf   : > { %v3489_v12 = vsel %vm3478_vm2, %v7531_v53, -inf  ;;  %v7539_v13 = vpop.eup %5725  ;;  %v3522_v49 = vadd.f32 %v7533_v42, %v7525_v56  ;;  %v4364_v22 = vmax.f32 %v7517_v19, %v4363_v36 }
 0x3c0   : > { %v3490_v38 = vmax.f32 %v7519_v40, %v3489_v12  ;;  %v7545_v59 = vpop.eup %5727  ;;  %v4002_v32 = vsub.f32 %v3433_v24, %v3991_v29  ;;  %v4004_v0 = vsub.f32 %v3434_v15, %v3991_v29  ;;  %v4006_v52 = vsub.f32 %v3435_v28, %v3991_v29 }
 0x3c1   : > { %v4008_v8 = vsub.f32 %v3436_v39, %v3991_v29  ;;  %v3523_v31 = vadd.f32 %v7539_v13, %v3522_v49  ;;  %v3524_v16 = vsel %vm3478_vm2, %v7545_v59, 0.0  ;;  %v4365_v58 = vmax.f32 %v4362_v41, %v4364_v22  ;;  %v7552_v18 = vpop.trf.xlu0 }
 0x3c2   : > { %v4010_v50 = vmul.f32 1.442695, %v4002_v32  ;;  %v4014_v25 = vmul.f32 1.442695, %v4004_v0  ;;  %v4018_v45 = vmul.f32 1.442695, %v4006_v52  ;;  %v3491_v11 = vmax.f32 %v3488_v14, %v3490_v38  ;;  %v7554_v6 = vpop.trf.xlu1 }
 0x3c3   : > { %v3525_v3 = vadd.f32 %v3524_v16, %v3523_v31  ;;  %v4022_v43 = vmul.f32 1.442695, %v4008_v8  ;;  %v4366_v51 = vrot.slane %v4365_v58, 4  ;;  %9028 = vst [vmem:[#allocation10_spill] sm:$0xff] %v7554_v6 }
 0x3c4   : > { %5729 = vpow2.f32 %v4010_v50  ;;  %v3492_v48 = vrot.slane %v3491_v11, 4 }
 0x3c5   : > { %v3526_v37 = vrot.slane %v3525_v3, 4  ;;  %5731 = vpow2.f32 %v4014_v25  ;;  %v4367_v4 = vmax.f32 %v4365_v58, %v4366_v51  ;;  %v7566_v47 = vpop.trf.xlu0 }
 0x3c6   : > { %5733 = vpow2.f32 %v4018_v45  ;;  %v3493_v28 = vmax.f32 %v3491_v11, %v3492_v48  ;;  %v7571_v2 = vpop.trf.xlu1  ;;  %v7592_v45 = vsub.s32 1, %v6097_v34 }
 0x3c7   : > { %v3527_v24 = vadd.f32 %v3526_v37, %v3525_v3  ;;  %5735 = vpow2.f32 %v4022_v43  ;;  %v4368_v10 = vrot.slane %v4367_v4, 2  ;;  %9029 = vst [vmem:[#allocation4_spill] sm:$0xff] %v7571_v2  ;;  %v7602_v43 = vsub.s32 2, %v6097_v34 }
 0x3c8   : > { %v3494_v54 = vrot.slane %v3493_v28, 2 }
 0x3c9   : > { %v3528_v15 = vrot.slane %v3527_v24, 2  ;;  %v4369_v20 = vmax.f32 %v4367_v4, %v4368_v10  ;;  %v7575_v36 = vpop.trf.xlu0  ;;  %v7611_v4 = vsub.s32 3, %v6097_v34 }
 0x3ca   : > { %v3495_v63 = vmax.f32 %v3493_v28, %v3494_v54  ;;  %v7577_v49 = vpop.trf.xlu1  ;;  %v4742_v48 = vmax.f32 %v7552_v18, %v7575_v36  ;;  %v7643_v54 = vld [vmem:[%s7599_s6 + $0x10] sm:$0xff] }
 0x3cb   : > { %v3529_v9 = vadd.f32 %v3528_v15, %v3527_v24  ;;  %v4370_v60 = vrot.slane %v4369_v20, 1  ;;  %9030 = vst [vmem:[#allocation5_spill] sm:$0xff] %v7577_v49  ;;  %v7616_v24 = vsub.s32 4, %v6097_v34  ;;  %v7625_v15 = vld [vmem:[%s7599_s6] sm:$0xff]  ;;  %9034 = vst [vmem:[#allocation9_spill] sm:$0xff] %v7643_v54 }
 0x3cc   : > { %v3496_v29 = vrot.slane %v3495_v63, 1  ;;  %9032 = vst [vmem:[#allocation7_spill] sm:$0xff] %v7625_v15 }
 0x3cd   : > { %v3530_v39 = vrot.slane %v3529_v9, 1  ;;  %v4371_v30 = vmax.f32 %v4369_v20, %v4370_v60  ;;  %v7628_v20 = vld [vmem:[%s7599_s6 + $0x8] sm:$0xff] }
 0x3ce   : > { %v7556_v57 = vpop.eup %5729  ;;  %v7581_v31 = vmax.f32 %v3495_v63, %v3496_v29  ;;  %v7586_v25 = vpop.trf.xlu1  ;;  %9033 = vst [vmem:[#allocation8_spill] sm:$0xff] %v7628_v20 }
 0x3cf   : > { %v7558_v44 = vpop.eup %5731  ;;  %v3531_v46 = vadd.f32 %v3530_v39, %v3529_v9  ;;  %v4382_v61 = vsub.f32 %v7513_v35, %v4371_v30  ;;  %v4384_v41 = vsub.f32 %v7517_v19, %v4371_v30  ;;  %v4386_v32 = vsub.f32 %v7521_v17, %v4371_v30  ;;  %v7584_v19 = vpop.trf.xlu0  ;;  %9031 = vst [vmem:[#allocation6_spill] sm:$0xff] %v7586_v25 }
 0x3d0   : > { %v7560_v5 = vpop.eup %5733  ;;  %v4026_v27 = vadd.f32 %v7558_v44, %v7556_v57  ;;  %v4388_v8 = vsub.f32 %v7529_v62, %v4371_v30  ;;  %v7589_v17 = vsub.s32 0, %v6097_v34  ;;  %v3499_v3 = vsub.f32 %v7515_v55, %v7581_v31 }
 0x3d1   : > { %v7564_v21 = vpop.eup %5735  ;;  %5737 = vrcp.f32 %v3531_v46  ;;  %v4390_v22 = vmul.f32 1.442695, %v4382_v61  ;;  %v4394_v0 = vmul.f32 1.442695, %v4384_v41  ;;  %v4398_v50 = vmul.f32 1.442695, %v4386_v32 }
 0x3d2   : > { %v4027_v7 = vadd.f32 %v7560_v5, %v4026_v27  ;;  %v4028_v26 = vsel %vm3478_vm2, %v7564_v21, 0.0  ;;  %v4402_v62 = vmul.f32 1.442695, %v4388_v8  ;;  %v4743_v37 = vsel %vm3478_vm2, %v7584_v19, -inf }
 0x3d3   : > { %5739 = vpow2.f32 %v4390_v22  ;;  %v3501_v55 = vsub.f32 %v7519_v40, %v7581_v31  ;;  %v3508_v9 = vmul.f32 1.442695, %v3499_v3  ;;  %v4744_v40 = vmax.f32 %v7566_v47, %v4743_v37 }
 0x3d4   : > { %v4029_v33 = vadd.f32 %v4028_v26, %v4027_v7  ;;  %5741 = vpow2.f32 %v4394_v0  ;;  %v3993_v28 = vsel %vm3478_vm2, %v7586_v25, -inf  ;;  %v7646_v27 = vsub.s32 5, %v6097_v34 }
 0x3d5   : > { %5743 = vpow2.f32 %v4398_v50  ;;  %v3512_v30 = vmul.f32 1.442695, %v3501_v55  ;;  %v7660_v41 = vsub.s32 6, %v6097_v34  ;;  %v3505_v29 = vsub.f32 %v7531_v53, %v7581_v31  ;;  %v7684_v50 = vld [vmem:[%s7599_s6 + $0x28] sm:$0xff] }
 0x3d6   : > { %v4030_v1 = vrot.slane %v4029_v33, 4  ;;  %5745 = vpow2.f32 %v4402_v62  ;;  %v3994_v22 = vmax.f32 %v7571_v2, %v3993_v28  ;;  %v7674_v8 = vsub.s32 7, %v6097_v34  ;;  %9038 = vst [vmem:[#allocation14_spill] sm:$0xff] %v7684_v50 }
 0x3d7   : > { %v3992_v53 = vmax.f32 %v7554_v6, %v7577_v49  ;;  %v3520_v62 = vmul.f32 1.442695, %v3505_v29  ;;  %v7796_v49 = vld [vmem:[%s7599_s6 + $0x70] sm:$0xff] }
 0x3d8   : > { %v4031_v12 = vadd.f32 %v4030_v1, %v4029_v33  ;;  %v3503_v33 = vsub.f32 %v7523_v23, %v7581_v31  ;;  %v7657_v1 = vld [vmem:[%s7599_s6 + $0x18] sm:$0xff] }
 0x3d9   : > { %9035 = vst [vmem:[#allocation11_spill] sm:$0xff] %v7657_v1  ;;  %v3995_v37 = vmax.f32 %v3992_v53, %v3994_v22  ;;  %v7715_v53 = vld [vmem:[%s7599_s6 + $0x40] sm:$0xff] }
 0x3da   : > { %v4032_v38 = vrot.slane %v4031_v12, 2 }
 0x3db   : > { %v5738_v52 = vpop.eup %5737 }
 0x3dc   : > { %v3544_v35 = vmul.f32 %v5738_v52, %v3531_v46  ;;  %v4033_v16 = vadd.f32 %v4032_v38, %v4031_v12  ;;  %v7640_v46 = vpop.trf.xlu1  ;;  %v4745_v12 = vmax.f32 %v4742_v48, %v4744_v40 }
 0x3dd   : > { %v7654_v61 = vpop.eup %5739 }
 0x3de   : > { %v3546_v14 = vsub.f32 2.0, %v3544_v35  ;;  %v4034_v58 = vrot.slane %v4033_v16, 1  ;;  %v7665_v38 = vpop.eup %5741  ;;  %v4746_v3 = vrot.slane %v4745_v12, 4 }
 0x3df   : > { %9036 = vst [vmem:[#allocation12_spill] sm:$0xff] %v7665_v38  ;;  %v4406_v34 = vadd.f32 %v7665_v38, %v7654_v61  ;;  %v7688_v55 = vpop.eup %5743 }
 0x3e0   : > { %v7604_v51 = vmul.f32 %v5738_v52, %v3546_v14  ;;  %v7606_v11 = vadd.f32 %v4034_v58, %v4033_v16  ;;  %v7671_v52 = vld [vmem:[%s7599_s6 + $0x20] sm:$0xff]  ;;  %v3516_v14 = vmul.f32 1.442695, %v3503_v33  ;;  %v7681_v58 = vpop.trf.xlu1  ;;  %9039 = vst [vmem:[#allocation15_spill] sm:$0xff] %v7688_v55  ;;  %v3996_v33 = vrot.slane %v3995_v37, 4 }
 0x3e1   : > { %9037 = vst [vmem:[#allocation13_spill] sm:$0xff] %v7671_v52 }
 0x3e2   : > { %v7620_v10 = vmul.f32 %v7525_v56, %v7604_v51  ;;  %5747 = vrcp.f32 %v7606_v11  ;;  %v7692_v48 = vmul.f32 %v7533_v42, %v7604_v51  ;;  %v7706_v42 = vld [vmem:[%s7599_s6 + $0x38] sm:$0xff]  ;;  %v7786_v25 = vmul.f32 %v7539_v13, %v7604_v51 }
 0x3e3   : > { %5749 = vpow2.f32 %v3508_v9 }
 0x3e4   : > { %v3562_v56 = vrot.slane %v7620_v10, %v7589_v17  ;;  %v3579_v39 = vrot.slane %v7620_v10, %v7592_v45  ;;  %v3596_v60 = vrot.slane %v7620_v10, %v7602_v43  ;;  %v3613_v63 = vrot.slane %v7620_v10, %v7611_v4 }
 0x3e5   : > { %v3630_v23 = vrot.slane %v7620_v10, %v7616_v24  ;;  %5751 = vpow2.f32 %v3512_v30  ;;  %v3647_v16 = vrot.slane %v7620_v10, %v7646_v27  ;;  %v3664_v28 = vrot.slane %v7620_v10, %v7660_v41 }
 0x3e6   : > { %v3570_v7 = vmul.f32 %v3562_v56, %v7625_v15  ;;  %v3587_v26 = vmul.f32 %v7628_v20, %v3579_v39  ;;  %v3604_v0 = vmul.f32 %v7643_v54, %v3596_v60  ;;  %v3621_v35 = vmul.f32 %v7657_v1, %v3613_v63  ;;  %v7697_v56 = vpop.eup %5745  ;;  %v7700_v39 = vld [vmem:[%s7599_s6 + $0x30] sm:$0xff] }
 0x3e7   : > { %v3638_v40 = vmul.f32 %v7671_v52, %v3630_v23  ;;  %9040 = vst [vmem:[#allocation16_spill] sm:$0xff] %v7697_v56  ;;  %5753 = vpow2.f32 %v3516_v14  ;;  %v4747_v63 = vmax.f32 %v4745_v12, %v4746_v3  ;;  %v3672_v22 = vmul.f32 %v7700_v39, %v3664_v28  ;;  %v7712_v23 = vpop.trf.xlu1 }
 0x3e8   : > { %v3589_v32 = vadd.f32 %v3587_v26, %v3570_v7  ;;  %v3655_v7 = vmul.f32 %v7684_v50, %v3647_v16  ;;  %v3681_v26 = vrot.slane %v7620_v10, %v7674_v8  ;;  %5755 = vpow2.f32 %v3520_v62 }
 0x3e9   : > { %v3715_v14 = vrot.slane %v7692_v48, %v7592_v45 }
 0x3ea   : > { %v3606_v31 = vadd.f32 %v3604_v0, %v3589_v32  ;;  %v3698_v32 = vrot.slane %v7692_v48, %v7589_v17  ;;  %v4407_v0 = vadd.f32 %v7688_v55, %v4406_v34  ;;  %v3689_v16 = vmul.f32 %v7706_v42, %v3681_v26  ;;  %v7728_v34 = vld [vmem:[%s7599_s6 + $0x48] sm:$0xff]  ;;  %v7736_v26 = vld [vmem:[%s7599_s6 + $0x50] sm:$0xff] }
 0x3ec   : > { %v3623_v9 = vadd.f32 %v3621_v35, %v3606_v31  ;;  %v5748_v60 = vpop.eup %5747  ;;  %v4408_v31 = vsel %vm3478_vm2, %v7697_v56, 0.0  ;;  %v3706_v28 = vmul.f32 %v7715_v53, %v3698_v32  ;;  %v3723_v56 = vmul.f32 %v7728_v34, %v3715_v14  ;;  %v7748_v32 = vld [vmem:[%s7599_s6 + $0x58] sm:$0xff] }
 0x3ed   : > { %v4048_v10 = vmul.f32 %v5748_v60, %v7606_v11  ;;  %v7720_v12 = vpop.eup %5749 }
 0x3ee   : > { %v3640_v30 = vadd.f32 %v3638_v40, %v3623_v9  ;;  %9041 = vst [vmem:[#allocation17_spill] sm:$0xff] %v7720_v12  ;;  %v4748_v9 = vrot.slane %v4747_v63, 2  ;;  %v7730_v40 = vmax.f32 %v3995_v37, %v3996_v33  ;;  %v7745_v33 = vpop.trf.xlu1 }
 0x3ef   : > { %v7725_v62 = vpop.eup %5751  ;;  %v4050_v3 = vsub.f32 2.0, %v4048_v10  ;;  %v3749_v10 = vrot.slane %v7692_v48, %v7611_v4  ;;  %9043 = vst [vmem:[#allocation19_spill] sm:$0xff] %v7745_v33 }
 0x3f0   : > { %v3657_v29 = vadd.f32 %v3655_v7, %v3640_v30  ;;  %9042 = vst [vmem:[#allocation18_spill] sm:$0xff] %v7725_v62  ;;  %v3732_v30 = vrot.slane %v7692_v48, %v7602_v43  ;;  %v4409_v7 = vadd.f32 %v4408_v31, %v4407_v0  ;;  %v3532_v37 = vadd.f32 %v7725_v62, %v7720_v12  ;;  %v7765_v62 = vld [vmem:[%s7599_s6 + $0x60] sm:$0xff]  ;;  %v7782_v12 = vld [vmem:[%s7599_s6 + $0x68] sm:$0xff] }
 0x3f1   : > { %v3783_v31 = vrot.slane %v7692_v48, %v7646_v27 }
 0x3f2   : > { %v3674_v35 = vadd.f32 %v3672_v22, %v3657_v29  ;;  %v7738_v29 = vmul.f32 %v5748_v60, %v4050_v3  ;;  %v7754_v60 = vmax.f32 %v4747_v63, %v4748_v9  ;;  %v3740_v14 = vmul.f32 %v7736_v26, %v3732_v30 }
 0x3f3   : > { %v3766_v3 = vrot.slane %v7692_v48, %v7616_v24  ;;  %v7775_v9 = vsel %vm3478_vm2, %v7745_v33, -inf }
 0x3f4   : > { %v3691_v11 = vadd.f32 %v3689_v16, %v3674_v35  ;;  %v7752_v0 = vmul.f32 %v7556_v57, %v7738_v29  ;;  %v7757_v35 = vpop.eup %5753 }
 0x3f5   : > { %9044 = vst [vmem:[#allocation20_spill] sm:$0xff] %v7757_v35  ;;  %v3533_v55 = vadd.f32 %v7757_v35, %v3532_v37  ;;  %v3800_v37 = vrot.slane %v7692_v48, %v7660_v41 }
 0x3f6   : > { %v3708_v22 = vadd.f32 %v3706_v28, %v3691_v11  ;;  %v4410_v11 = vrot.slane %v4409_v7, 4  ;;  %v7762_v28 = vpop.eup %5755  ;;  %v4065_v57 = vrot.slane %v7752_v0, %v7589_v17  ;;  %v4077_v63 = vrot.slane %v7752_v0, %v7592_v45 }
 0x3f7   : > { %9045 = vst [vmem:[#allocation21_spill] sm:$0xff] %v7762_v28 }
 0x3f8   : > { %v3725_v16 = vadd.f32 %v3723_v56, %v3708_v22  ;;  %v4089_v56 = vrot.slane %v7752_v0, %v7602_v43  ;;  %v3757_v22 = vmul.f32 %v7748_v32, %v3749_v10  ;;  %v4070_v38 = vmul.f32 %v4065_v57, %v7625_v15 }
 0x3f9   : > { %v4082_v33 = vmul.f32 %v7628_v20, %v4077_v63  ;;  %v4411_v35 = vadd.f32 %v4410_v11, %v4409_v7  ;;  %v4113_v57 = vrot.slane %v7752_v0, %v7616_v24  ;;  %v3534_v63 = vsel %vm3478_vm2, %v7762_v28, 0.0  ;;  %v7807_v7 = vld [vmem:[%s7599_s6 + $0x78] sm:$0xff]  ;;  %v7830_v28 = vld [vmem:[%s7599_s6 + $0x88] sm:$0xff] }
 0x3fa   : > { %v3742_v30 = vadd.f32 %v3740_v14, %v3725_v16  ;;  %v4101_v16 = vrot.slane %v7752_v0, %v7611_v4  ;;  %v3774_v14 = vmul.f32 %v7765_v62, %v3766_v3  ;;  %v4094_v13 = vmul.f32 %v7643_v54, %v4089_v56 }
 0x3fb   : > { %v4084_v2 = vadd.f32 %v4082_v33, %v4070_v38  ;;  %v3817_v3 = vrot.slane %v7692_v48, %v7674_v8  ;;  %v4125_v33 = vrot.slane %v7752_v0, %v7646_v27  ;;  %v4750_v56 = vrot.slane %v7754_v60, 1  ;;  %v7817_v48 = vld [vmem:[%s7599_s6 + $0x80] sm:$0xff] }
 0x3fc   : > { %v3759_v10 = vadd.f32 %v3757_v22, %v3742_v30  ;;  %v3791_v30 = vmul.f32 %v7782_v12, %v3783_v31  ;;  %v3535_v22 = vadd.f32 %v3534_v63, %v3533_v55  ;;  %v4106_v38 = vmul.f32 %v7657_v1, %v4101_v16  ;;  %v7845_v1 = vld [vmem:[%s7599_s6 + $0x90] sm:$0xff] }
 0x3fd   : > { %v4096_v11 = vadd.f32 %v4094_v13, %v4084_v2  ;;  %v3834_v31 = vrot.slane %v7786_v25, %v7589_v17  ;;  %v7821_v2 = vmul.f32 %v7558_v44, %v7738_v29  ;;  %v4118_v16 = vmul.f32 %v7671_v52, %v4113_v57  ;;  %9046 = vst [vmem:[#allocation22_spill] sm:$0xff] %v7845_v1 }
 0x3fe   : > { %v3776_v20 = vadd.f32 %v3774_v14, %v3759_v10  ;;  %v3808_v10 = vmul.f32 %v7796_v49, %v3800_v37  ;;  %v4412_v14 = vrot.slane %v4411_v35, 2  ;;  %v3825_v37 = vmul.f32 %v7807_v7, %v3817_v3 }
 0x3ff   : > { %v4108_v55 = vadd.f32 %v4106_v38, %v4096_v11  ;;  %v3851_v63 = vrot.slane %v7786_v25, %v7592_v45  ;;  %v7834_v44 = vmul.f32 %v7545_v59, %v7604_v51  ;;  %v4130_v57 = vmul.f32 %v7684_v50, %v4125_v33  ;;  %v7848_v59 = vld [vmem:[%s7599_s6 + $0x98] sm:$0xff]  ;;  %v7857_v50 = vld [vmem:[%s7599_s6 + $0xa0] sm:$0xff] }
 0x400   : > { %v3793_v54 = vadd.f32 %v3791_v30, %v3776_v20  ;;  %v4137_v20 = vrot.slane %v7752_v0, %v7660_v41  ;;  %v3536_v30 = vrot.slane %v3535_v22, 4  ;;  %v4149_v38 = vrot.slane %v7752_v0, %v7674_v8  ;;  %9047 = vst [vmem:[#allocation23_spill] sm:$0xff] %v7848_v59  ;;  %9048 = vst [vmem:[#allocation24_spill] sm:$0xff] %v7857_v50 }
 0x401   : > { %v4120_v11 = vadd.f32 %v4118_v16, %v4108_v55  ;;  %v3842_v3 = vmul.f32 %v7817_v48, %v3834_v31  ;;  %v3885_v52 = vrot.slane %v7786_v25, %v7611_v4  ;;  %v4161_v0 = vrot.slane %v7821_v2, %v7589_v17 }
 0x402   : > { %v3810_v13 = vadd.f32 %v3808_v10, %v3793_v54  ;;  %v3868_v10 = vrot.slane %v7786_v25, %v7602_v43  ;;  %v4142_v33 = vmul.f32 %v7700_v39, %v4137_v20  ;;  %v4413_v55 = vadd.f32 %v4412_v14, %v4411_v35 }
 0x403   : > { %v4132_v51 = vadd.f32 %v4130_v57, %v4120_v11  ;;  %v3859_v31 = vmul.f32 %v7830_v28, %v3851_v63  ;;  %v4154_v6 = vmul.f32 %v7706_v42, %v4149_v38  ;;  %v4173_v20 = vrot.slane %v7821_v2, %v7592_v45 }
 0x404   : > { %v3827_v54 = vadd.f32 %v3825_v37, %v3810_v13  ;;  %v3902_v13 = vrot.slane %v7786_v25, %v7616_v24  ;;  %v3537_v37 = vadd.f32 %v3536_v30, %v3535_v22  ;;  %v4751_v11 = vmax.f32 %v7754_v60, %v4750_v56  ;;  %v7868_v22 = vld [vmem:[%s7599_s6 + $0xa8] sm:$0xff] }
 0x405   : > { %v4144_v15 = vadd.f32 %v4142_v33, %v4132_v51  ;;  %v3876_v35 = vmul.f32 %v7845_v1, %v3868_v10  ;;  %v3893_v14 = vmul.f32 %v7848_v59, %v3885_v52  ;;  %v3919_v63 = vrot.slane %v7786_v25, %v7646_v27  ;;  %9049 = vst [vmem:[#allocation25_spill] sm:$0xff] %v7868_v22 }
 0x406   : > { %v3844_v16 = vadd.f32 %v3842_v3, %v3827_v54  ;;  %v4166_v54 = vmul.f32 %v7715_v53, %v4161_v0  ;;  %v4185_v38 = vrot.slane %v7821_v2, %v7602_v43  ;;  %v4414_v3 = vrot.slane %v4413_v55, 1  ;;  %v7880_v0 = vld [vmem:[%s7599_s6 + $0xb0] sm:$0xff] }
 0x407   : > { %v4156_v30 = vadd.f32 %v4154_v6, %v4144_v15  ;;  %v3910_v60 = vmul.f32 %v7857_v50, %v3902_v13  ;;  %v3936_v56 = vrot.slane %v7786_v25, %v7660_v41  ;;  %v3538_v10 = vrot.slane %v3537_v37, 2  ;;  %9050 = vst [vmem:[#allocation26_spill] sm:$0xff] %v7880_v0 }
 0x408   : > { %v3861_v57 = vadd.f32 %v3859_v31, %v3844_v16  ;;  %v4178_v33 = vmul.f32 %v7728_v34, %v4173_v20  ;;  %v4197_v6 = vrot.slane %v7821_v2, %v7611_v4  ;;  %v4415_v15 = vadd.f32 %v4414_v3, %v4413_v55  ;;  %v7893_v3 = vld [vmem:[%s7599_s6 + $0xb8] sm:$0xff] }
 0x409   : > { %v4168_v52 = vadd.f32 %v4166_v54, %v4156_v30  ;;  %v3927_v31 = vmul.f32 %v7868_v22, %v3919_v63  ;;  %v3953_v13 = vrot.slane %v7786_v25, %v7674_v8  ;;  %v4190_v30 = vmul.f32 %v7736_v26, %v4185_v38  ;;  %9051 = vst [vmem:[#allocation27_spill] sm:$0xff] %v7893_v3 }
 0x40a   : > { %v3878_v51 = vadd.f32 %v3876_v35, %v3861_v57  ;;  %v4762_v57 = vsub.f32 %v7552_v18, %v4751_v11  ;;  %v4209_v20 = vrot.slane %v7821_v2, %v7616_v24  ;;  %5757 = vrcp.f32 %v4415_v15 }
 0x40b   : > { %v4180_v35 = vadd.f32 %v4178_v33, %v4168_v52  ;;  %v3970_v55 = vrot.slane %v7834_v44, %v7589_v17  ;;  %v4764_v63 = vsub.f32 %v7566_v47, %v4751_v11  ;;  %v3944_v25 = vmul.f32 %v7880_v0, %v3936_v56  ;;  %v7902_v44 = vld [vmem:[%s7599_s6 + $0xc0] sm:$0xff] }
 0x40c   : > { %v3895_v16 = vadd.f32 %v3893_v14, %v3878_v51  ;;  %v3539_v14 = vadd.f32 %v3538_v10, %v3537_v37  ;;  %v4202_v51 = vmul.f32 %v7748_v32, %v4197_v6  ;;  %v4221_v38 = vrot.slane %v7821_v2, %v7646_v27  ;;  %9052 = vst [vmem:[#allocation28_spill] sm:$0xff] %v7902_v44 }
 0x40d   : > { %v4192_v18 = vadd.f32 %v4190_v30, %v4180_v35  ;;  %v4766_v33 = vsub.f32 %v7575_v36, %v4751_v11  ;;  %v7906_v47 = vmul.f32 %v7560_v5, %v7738_v29  ;;  %v4214_v56 = vmul.f32 %v7765_v62, %v4209_v20 }
 0x40e   : > { %v3912_v54 = vadd.f32 %v3910_v60, %v3895_v16  ;;  %v4768_v60 = vsub.f32 %v7584_v19, %v4751_v11  ;;  %v4770_v16 = vmul.f32 1.442695, %v4762_v57  ;;  %v4233_v10 = vrot.slane %v7821_v2, %v7660_v41 }
 0x40f   : > { %v4204_v37 = vadd.f32 %v4202_v51, %v4192_v18  ;;  %v3540_v35 = vrot.slane %v3539_v14, 1  ;;  %v4774_v36 = vmul.f32 1.442695, %v4764_v63  ;;  %v4226_v19 = vmul.f32 %v7782_v12, %v4221_v38 }
 0x410   : > { %v3929_v52 = vadd.f32 %v3927_v31, %v3912_v54  ;;  %v3961_v31 = vmul.f32 %v7893_v3, %v3953_v13  ;;  %v4245_v11 = vrot.slane %v7821_v2, %v7674_v8  ;;  %v9053_v5 = vrot.slane %v7730_v40, 2 }
 0x411   : > { %v4216_v30 = vadd.f32 %v4214_v56, %v4204_v37  ;;  %v3978_v20 = vmul.f32 %v7902_v44, %v3970_v55  ;;  %v4778_v18 = vmul.f32 1.442695, %v4766_v33  ;;  %v4782_v51 = vmul.f32 1.442695, %v4768_v60 }
 0x412   : > { %v3946_v6 = vadd.f32 %v3944_v25, %v3929_v52  ;;  %v3999_v57 = vmax.f32 %v7730_v40, %v9053_v5  ;;  %v4238_v13 = vmul.f32 %v7796_v49, %v4233_v10  ;;  %v4257_v63 = vrot.slane %v7906_v47, %v7589_v17 }
 0x413   : > { %v4228_v25 = vadd.f32 %v4226_v19, %v4216_v30  ;;  %5759 = vpow2.f32 %v4770_v16  ;;  %v7924_v52 = vadd.f32 %v3540_v35, %v3539_v14  ;;  %v4250_v40 = vmul.f32 %v7807_v7, %v4245_v11 }
 0x414   : > { %v3963_v54 = vadd.f32 %v3961_v31, %v3946_v6  ;;  %5761 = vpow2.f32 %v4774_v36  ;;  %v5758_v2 = vpop.eup %5757  ;;  %v4269_v55 = vrot.slane %v7906_v47, %v7592_v45  ;;  %v4000_v60 = vrot.slane %v3999_v57, 1 }
 0x415   : > { %v4240_v37 = vadd.f32 %v4238_v13, %v4228_v25  ;;  %v4428_v33 = vmul.f32 %v5758_v2, %v4415_v15  ;;  %5763 = vpow2.f32 %v4778_v18  ;;  %v4374_v56 = vmax.f32 %v7681_v58, %v7775_v9 }
 0x416   : > { %v7922_v38 = vadd.f32 %v3978_v20, %v3963_v54  ;;  %v4262_v16 = vmul.f32 %v7817_v48, %v4257_v63  ;;  %v4281_v14 = vrot.slane %v7906_v47, %v7602_v43  ;;  %5765 = vpow2.f32 %v4782_v51 }
 0x417   : > { %v4252_v10 = vadd.f32 %v4250_v40, %v4240_v37  ;;  %v4430_v6 = vsub.f32 2.0, %v4428_v33  ;;  %5767 = vrcp.f32 %v7924_v52  ;;  %v4372_v31 = vmax.f32 %v7640_v46, %v7712_v23 }
 0x418   : > { %v4060_v15 = vmul.f32 %v7564_v21, %v7738_v29  ;;  %v4274_v36 = vmul.f32 %v7830_v28, %v4269_v55  ;;  %v4293_v9 = vrot.slane %v7906_v47, %v7611_v4  ;;  %v4305_v30 = vrot.slane %v7906_v47, %v7616_v24 }
 0x419   : > { %v4264_v35 = vadd.f32 %v4262_v16, %v4252_v10  ;;  %v7944_v19 = vmul.f32 %v5758_v2, %v4430_v6  ;;  %v4375_v11 = vmax.f32 %v4372_v31, %v4374_v56  ;;  %v4286_v54 = vmul.f32 %v7845_v1, %v4281_v14  ;;  %v9058_v14 = vld [vmem:[#allocation7_spill] sm:$0xff]  ;;  %v9059_v31 = vld [vmem:[#allocation8_spill] sm:$0xff] }
 0x41a   : > { %v4317_v20 = vrot.slane %v7906_v47, %v7646_v27  ;;  %v7949_v18 = vmax.f32 %v3999_v57, %v4000_v60  ;;  %v4329_v21 = vrot.slane %v7906_v47, %v7660_v41  ;;  %v4298_v13 = vmul.f32 %v7848_v59, %v4293_v9 }
 0x41b   : > { %v4276_v5 = vadd.f32 %v4274_v36, %v4264_v35  ;;  %v7955_v29 = vmul.f32 %v7654_v61, %v7944_v19  ;;  %v4341_v63 = vrot.slane %v7906_v47, %v7674_v8  ;;  %v4353_v2 = vrot.slane %v4060_v15, %v7589_v17  ;;  %v9056_v47 = vld [vmem:[#allocation10_spill] sm:$0xff]  ;;  %v9060_v36 = vld [vmem:[#allocation4_spill] sm:$0xff] }
 0x41c   : > { %v4310_v57 = vmul.f32 %v7857_v50, %v4305_v30  ;;  %v4322_v60 = vmul.f32 %v7868_v22, %v4317_v20  ;;  %v4003_v56 = vsub.f32 %v9056_v47, %v7949_v18  ;;  %v4376_v10 = vrot.slane %v4375_v11, 4  ;;  %v9062_v47 = vld [vmem:[#allocation9_spill] sm:$0xff] }
 0x41d   : > { %v7957_v51 = vpop.eup %5759  ;;  %v4288_v25 = vadd.f32 %v4286_v54, %v4276_v5  ;;  %v4445_v40 = vrot.slane %v7955_v29, %v7589_v17  ;;  %v4457_v61 = vrot.slane %v7955_v29, %v7592_v45  ;;  %v4469_v55 = vrot.slane %v7955_v29, %v7602_v43 }
 0x41e   : > { %9054 = vst [vmem:[#allocation29_spill] sm:$0xff] %v7957_v51  ;;  %v7963_v37 = vpop.eup %5761  ;;  %v4481_v35 = vrot.slane %v7955_v29, %v7611_v4  ;;  %v4005_v9 = vsub.f32 %v9060_v36, %v7949_v18  ;;  %v4334_v54 = vmul.f32 %v7880_v0, %v4329_v21  ;;  %v4346_v20 = vmul.f32 %v7893_v3, %v4341_v63  ;;  %v7993_v36 = vpop.trf.xlu1  ;;  %v9064_v0 = vld [vmem:[#allocation11_spill] sm:$0xff] }
 0x41f   : > { %9055 = vst [vmem:[#allocation30_spill] sm:$0xff] %v7963_v37  ;;  %v4300_v33 = vadd.f32 %v4298_v13, %v4288_v25  ;;  %v7975_v16 = vpop.eup %5763  ;;  %v4450_v6 = vmul.f32 %v4445_v40, %v9058_v14  ;;  %v4462_v15 = vmul.f32 %v9059_v31, %v4457_v61  ;;  %v4786_v25 = vadd.f32 %v7963_v37, %v7957_v51 }
 0x420   : > { %9057 = vst [vmem:[#allocation10_spill] sm:$0xff] %v7975_v16  ;;  %v7983_v30 = vpop.eup %5765  ;;  %v4358_v40 = vmul.f32 %v7902_v44, %v4353_v2  ;;  %v4474_v22 = vmul.f32 %v9062_v47, %v4469_v55  ;;  %v4493_v50 = vrot.slane %v7955_v29, %v7616_v24  ;;  %v4377_v63 = vmax.f32 %v4375_v11, %v4376_v10  ;;  %v9066_v11 = vld [vmem:[#allocation13_spill] sm:$0xff] }
 0x421   : > { %9061 = vst [vmem:[#allocation7_spill] sm:$0xff] %v7983_v30  ;;  %v4312_v5 = vadd.f32 %v4310_v57, %v4300_v33  ;;  %v5768_v13 = vpop.eup %5767  ;;  %v4464_v61 = vadd.f32 %v4462_v15, %v4450_v6  ;;  %v9063_v57 = vld [vmem:[#allocation5_spill] sm:$0xff]  ;;  %v4012_v33 = vmul.f32 1.442695, %v4003_v56  ;;  %v4486_v37 = vmul.f32 %v9064_v0, %v4481_v35 }
 0x422   : > { %v4007_v21 = vsub.f32 %v9063_v57, %v7949_v18  ;;  %v4505_v2 = vrot.slane %v7955_v29, %v7646_v27  ;;  %v4016_v6 = vmul.f32 1.442695, %v4005_v9  ;;  %v3545_v15 = vmul.f32 %v5768_v13, %v7924_v52 }
 0x423   : > { %v4324_v59 = vadd.f32 %v4322_v60, %v4312_v5  ;;  %v4476_v3 = vadd.f32 %v4474_v22, %v4464_v61  ;;  %v4787_v51 = vadd.f32 %v7975_v16, %v4786_v25  ;;  %v4788_v60 = vsel %vm3478_vm2, %v7983_v30, 0.0  ;;  %v9065_v5 = vld [vmem:[#allocation12_spill] sm:$0xff]  ;;  %v9068_v25 = vld [vmem:[#allocation14_spill] sm:$0xff] }
 0x424   : > { %v8006_v56 = vmul.f32 %v9065_v5, %v7944_v19  ;;  %v4498_v10 = vmul.f32 %v9066_v11, %v4493_v50  ;;  %v4517_v35 = vrot.slane %v7955_v29, %v7660_v41  ;;  %5769 = vpow2.f32 %v4012_v33 }
 0x425   : > { %v4336_v55 = vadd.f32 %v4334_v54, %v4324_v59  ;;  %v4488_v22 = vadd.f32 %v4486_v37, %v4476_v3  ;;  %v9067_v59 = vld [vmem:[#allocation6_spill] sm:$0xff]  ;;  %v4378_v52 = vrot.slane %v4377_v63, 2  ;;  %v4510_v57 = vmul.f32 %v9068_v25, %v4505_v2  ;;  %v8017_v3 = vpop.trf.xlu1 }
 0x426   : > { %v4009_v9 = vsub.f32 %v9067_v59, %v7949_v18  ;;  %v4529_v5 = vrot.slane %v7955_v29, %v7674_v8  ;;  %5771 = vpow2.f32 %v4016_v6  ;;  %v4789_v37 = vadd.f32 %v4788_v60, %v4787_v51 }
 0x427   : > { %v4348_v61 = vadd.f32 %v4346_v20, %v4336_v55  ;;  %v4500_v54 = vadd.f32 %v4498_v10, %v4488_v22  ;;  %v4020_v30 = vmul.f32 1.442695, %v4007_v21  ;;  %v4522_v20 = vmul.f32 %v7700_v39, %v4517_v35 }
 0x428   : > { %v4541_v18 = vrot.slane %v8006_v56, %v7589_v17  ;;  %v3547_v33 = vsub.f32 2.0, %v3545_v15  ;;  %v4024_v2 = vmul.f32 1.442695, %v4009_v9  ;;  %v4379_v6 = vmax.f32 %v4377_v63, %v4378_v52 }
 0x429   : > { %v4360_v50 = vadd.f32 %v4358_v40, %v4348_v61  ;;  %v4512_v16 = vadd.f32 %v4510_v57, %v4500_v54  ;;  %v4534_v51 = vmul.f32 %v7706_v42, %v4529_v5  ;;  %v4553_v40 = vrot.slane %v8006_v56, %v7592_v45 }
 0x42a   : > { %v4790_v60 = vrot.slane %v4789_v37, 4  ;;  %5773 = vpow2.f32 %v4020_v30  ;;  %v4546_v22 = vmul.f32 %v7715_v53, %v4541_v18  ;;  %v4565_v10 = vrot.slane %v8006_v56, %v7602_v43 }
 0x42b   : > { %v5124_v29 = vrot.slane %v4360_v50, 4  ;;  %v4524_v55 = vadd.f32 %v4522_v20, %v4512_v16  ;;  %v8036_v35 = vmul.f32 %v5768_v13, %v3547_v33  ;;  %v8038_v16 = vpop.trf.xlu1  ;;  %v4577_v63 = vrot.slane %v8006_v56, %v7611_v4  ;;  %v9072_v13 = vld [vmem:[#allocation17_spill] sm:$0xff] }
 0x42c   : > { %v8044_v61 = vcombine.high %v9058_v14, %v9058_v14  ;;  %5775 = vpow2.f32 %v4024_v2  ;;  %v4558_v59 = vmul.f32 %v7728_v34, %v4553_v40  ;;  %v8049_v9 = vcombine.high %v9059_v31, %v9059_v31 }
 0x42d   : > { %v5134_v21 = vsel %vm9069_vm15, %v7922_v38, %v5124_v29  ;;  %v4536_v15 = vadd.f32 %v4534_v51, %v4524_v55  ;;  %v4380_v38 = vrot.slane %v4379_v6, 1  ;;  %v8053_v52 = vmul.f32 %v9072_v13, %v8036_v35 }
 0x42e   : > { %5138 = vst [vmem:[%s8025_s9] sm:$0xff] %v5134_v21  ;;  %9070 = vst [vmem:[#allocation8_spill] sm:$0xff] %v8044_v61  ;;  %v8055_v54 = vpop.eup %5769  ;;  %v4589_v57 = vrot.slane %v8006_v56, %v7616_v24  ;;  %v4791_v5 = vadd.f32 %v4790_v60, %v4789_v37  ;;  %v4570_v18 = vmul.f32 %v7736_v26, %v4565_v10 }
 0x42f   : > { %v4548_v30 = vadd.f32 %v4546_v22, %v4536_v15  ;;  %9071 = vst [vmem:[#allocation4_spill] sm:$0xff] %v8049_v9  ;;  %9073 = vst [vmem:[#allocation9_spill] sm:$0xff] %v8055_v54  ;;  %v3566_v33 = vrot.slane %v8053_v52, %v7589_v17  ;;  %v3583_v29 = vrot.slane %v8053_v52, %v7592_v45  ;;  %v8077_v15 = vpop.trf.xlu1  ;;  %v9077_v22 = vld [vmem:[#allocation15_spill] sm:$0xff] }
 0x430   : > { %v8059_v50 = vpop.eup %5771  ;;  %v4582_v2 = vmul.f32 %v7748_v32, %v4577_v63  ;;  %v8069_v55 = vcombine.high %v9062_v47, %v9062_v47  ;;  %v8071_v51 = vmax.f32 %v4379_v6, %v4380_v38  ;;  %v4601_v40 = vrot.slane %v8006_v56, %v7646_v27  ;;  %9076 = vst [vmem:[#allocation12_spill] sm:$0xff] %v8077_v15 }
 0x431   : > { %9074 = vst [vmem:[#allocation5_spill] sm:$0xff] %v8059_v50  ;;  %v4560_v20 = vadd.f32 %v4558_v59, %v4548_v30  ;;  %v3571_v21 = vmul.f32 %v8044_v61, %v3566_v33  ;;  %v3588_v60 = vmul.f32 %v8049_v9, %v3583_v29  ;;  %v8081_v10 = vmul.f32 %v9077_v22, %v7944_v19 }
 0x432   : > { %9075 = vst [vmem:[#allocation11_spill] sm:$0xff] %v8069_v55  ;;  %v4613_v63 = vrot.slane %v8006_v56, %v7660_v41  ;;  %v8087_v6 = vcombine.high %v9064_v0, %v9064_v0  ;;  %v4036_v38 = vadd.f32 %v8059_v50, %v8055_v54  ;;  %v4594_v59 = vmul.f32 %v7765_v62, %v4589_v57 }
 0x433   : > { %v4572_v37 = vadd.f32 %v4570_v18, %v4560_v20  ;;  %v3600_v13 = vrot.slane %v8053_v52, %v7602_v43  ;;  %v4792_v20 = vrot.slane %v4791_v5, 2  ;;  %v8098_v33 = vcombine.high %v9066_v11, %v9066_v11 }
 0x434   : > { %v8094_v18 = vpop.eup %5773  ;;  %v8102_v29 = vcombine.high %v9068_v25, %v9068_v25  ;;  %v4383_v22 = vsub.f32 %v7640_v46, %v8071_v51  ;;  %v4753_v57 = vsel %vm3478_vm2, %v8077_v15, -inf  ;;  %v4625_v50 = vrot.slane %v8006_v56, %v7674_v8 }
 0x435   : > { %v4584_v30 = vadd.f32 %v4582_v2, %v4572_v37  ;;  %9078 = vst [vmem:[#allocation6_spill] sm:$0xff] %v8094_v18  ;;  %9079 = vst [vmem:[#allocation17_spill] sm:$0xff] %v8098_v33  ;;  %v4606_v37 = vmul.f32 %v7782_v12, %v4601_v40  ;;  %v3590_v9 = vadd.f32 %v3588_v60, %v3571_v21 }
 0x436   : > { %v8111_v61 = vpop.eup %5775  ;;  %v4618_v54 = vmul.f32 %v7796_v49, %v4613_v63  ;;  %v4637_v25 = vrot.slane %v8081_v10, %v7589_v17  ;;  %v4037_v11 = vadd.f32 %v8094_v18, %v4036_v38  ;;  %v4385_v46 = vsub.f32 %v7681_v58, %v8071_v51 }
 0x437   : > { %v4596_v2 = vadd.f32 %v4594_v59, %v4584_v30  ;;  %9080 = vst [vmem:[#allocation15_spill] sm:$0xff] %v8111_v61  ;;  %v3605_v30 = vmul.f32 %v8069_v55, %v3600_v13  ;;  %v3617_v40 = vrot.slane %v8053_v52, %v7611_v4  ;;  %v4793_v56 = vadd.f32 %v4792_v20, %v4791_v5 }
 0x438   : > { %v4649_v21 = vrot.slane %v8081_v10, %v7592_v45  ;;  %v4392_v60 = vmul.f32 1.442695, %v4383_v22  ;;  %v4752_v63 = vmax.f32 %v7993_v36, %v8038_v16  ;;  %v4754_v59 = vmax.f32 %v8017_v3, %v4753_v57 }
 0x439   : > { %v4608_v15 = vadd.f32 %v4606_v37, %v4596_v2  ;;  %v4630_v18 = vmul.f32 %v7807_v7, %v4625_v50  ;;  %v3607_v58 = vadd.f32 %v3605_v30, %v3590_v9  ;;  %v4038_v13 = vsel %vm3478_vm2, %v8111_v61, 0.0  ;;  %v9081_v50 = vld [vmem:[#allocation19_spill] sm:$0xff] }
 0x43a   : > { %v4642_v2 = vmul.f32 %v7817_v48, %v4637_v25  ;;  %v4661_v5 = vrot.slane %v8081_v10, %v7602_v43  ;;  %v4039_v20 = vadd.f32 %v4038_v13, %v4037_v11  ;;  %v4396_v37 = vmul.f32 1.442695, %v4385_v46 }
 0x43b   : > { %v4620_v38 = vadd.f32 %v4618_v54, %v4608_v15  ;;  %v3622_v55 = vmul.f32 %v8087_v6, %v3617_v40  ;;  %v3634_v57 = vrot.slane %v8053_v52, %v7616_v24  ;;  %v4794_v54 = vrot.slane %v4793_v56, 1 }
 0x43c   : > { %v4387_v9 = vsub.f32 %v7712_v23, %v8071_v51  ;;  %v4389_v15 = vsub.f32 %v9081_v50, %v8071_v51  ;;  %5777 = vpow2.f32 %v4392_v60  ;;  %v4755_v25 = vmax.f32 %v4752_v63, %v4754_v59 }
 0x43d   : > { %v4632_v22 = vadd.f32 %v4630_v18, %v4620_v38  ;;  %v4654_v61 = vmul.f32 %v7830_v28, %v4649_v21  ;;  %v4673_v11 = vrot.slane %v8081_v10, %v7611_v4  ;;  %v3624_v18 = vadd.f32 %v3622_v55, %v3607_v58 }
 0x43e   : > { %v4666_v46 = vmul.f32 %v7845_v1, %v4661_v5  ;;  %v4685_v40 = vrot.slane %v8081_v10, %v7616_v24  ;;  %v4040_v38 = vrot.slane %v4039_v20, 4  ;;  %5779 = vpow2.f32 %v4396_v37  ;;  %v9083_v37 = vld [vmem:[#allocation16_spill] sm:$0xff] }
 0x43f   : > { %v4644_v30 = vadd.f32 %v4642_v2, %v4632_v22  ;;  %v3639_v13 = vmul.f32 %v8098_v33, %v3634_v57  ;;  %v3651_v51 = vrot.slane %v8053_v52, %v7646_v27  ;;  %v4795_v60 = vadd.f32 %v4794_v54, %v4793_v56  ;;  %v9082_v2 = vld [vmem:[#allocation23_spill] sm:$0xff] }
 0x440   : > { %v4697_v21 = vrot.slane %v8081_v10, %v7646_v27  ;;  %v4400_v63 = vmul.f32 1.442695, %v4387_v9  ;;  %v4404_v59 = vmul.f32 1.442695, %v4389_v15  ;;  %v4756_v55 = vrot.slane %v4755_v25, 4  ;;  %v9085_v9 = vld [vmem:[#allocation24_spill] sm:$0xff] }
 0x441   : > { %v4656_v23 = vadd.f32 %v4654_v61, %v4644_v30  ;;  %v4678_v5 = vmul.f32 %v9082_v2, %v4673_v11  ;;  %v3641_v22 = vadd.f32 %v3639_v13, %v3624_v18  ;;  %5781 = vrcp.f32 %v4795_v60 }
 0x442   : > { %v4440_v61 = vmul.f32 %v9083_v37, %v7944_v19  ;;  %v4709_v57 = vrot.slane %v8081_v10, %v7660_v41  ;;  %v8158_v56 = vcombine.high %v7700_v39, %v7700_v39  ;;  %v4041_v54 = vadd.f32 %v4040_v38, %v4039_v20  ;;  %v9088_v20 = vld [vmem:[#allocation26_spill] sm:$0xff] }
 0x443   : > { %v4668_v58 = vadd.f32 %v4666_v46, %v4656_v23  ;;  %v4690_v15 = vmul.f32 %v9085_v9, %v4685_v40  ;;  %v3656_v30 = vmul.f32 %v8102_v29, %v3651_v51  ;;  %v3668_v11 = vrot.slane %v8053_v52, %v7660_v41  ;;  %v9086_v23 = vld [vmem:[#allocation25_spill] sm:$0xff] }
 0x444   : > { %9084 = vst [vmem:[#allocation19_spill] sm:$0xff] %v8158_v56  ;;  %v4721_v18 = vrot.slane %v8081_v10, %v7674_v8  ;;  %5783 = vpow2.f32 %v4400_v63  ;;  %v4757_v19 = vmax.f32 %v4755_v25, %v4756_v55  ;;  %v4702_v13 = vmul.f32 %v9086_v23, %v4697_v21  ;;  %v9090_v10 = vld [vmem:[#allocation18_spill] sm:$0xff] }
 0x445   : > { %v4680_v50 = vadd.f32 %v4678_v5, %v4668_v58  ;;  %v3658_v37 = vadd.f32 %v3656_v30, %v3641_v22  ;;  %5785 = vpow2.f32 %v4404_v59  ;;  %v4714_v38 = vmul.f32 %v9088_v20, %v4709_v57  ;;  %v9092_v22 = vld [vmem:[#allocation27_spill] sm:$0xff] }
 0x446   : > { %v8167_v33 = vpop.eup %5777  ;;  %v4733_v40 = vrot.slane %v4440_v61, %v7589_v17  ;;  %v8173_v51 = vcombine.high %v7706_v42, %v7706_v42  ;;  %v4042_v58 = vrot.slane %v4041_v54, 2  ;;  %v8177_v25 = vmul.f32 %v9090_v10, %v8036_v35 }
 0x447   : > { %v4692_v46 = vadd.f32 %v4690_v15, %v4680_v50  ;;  %9087 = vst [vmem:[#allocation16_spill] sm:$0xff] %v8167_v33  ;;  %v3673_v21 = vmul.f32 %v8158_v56, %v3668_v11  ;;  %v3685_v63 = vrot.slane %v8053_v52, %v7674_v8  ;;  %v4726_v61 = vmul.f32 %v9092_v22, %v4721_v18 }
 0x448   : > { %9089 = vst [vmem:[#allocation31_spill] sm:$0xff] %v8173_v51  ;;  %v8182_v59 = vpop.eup %5779  ;;  %v4758_v50 = vrot.slane %v4757_v19, 2  ;;  %v4738_v15 = vmul.f32 %v7902_v44, %v4733_v40  ;;  %v8188_v30 = vcombine.high %v7715_v53, %v7715_v53  ;;  %v3702_v52 = vrot.slane %v8177_v25, %v7589_v17  ;;  %v9101_v44 = vld [vmem:[#allocation29_spill] sm:$0xff] }
 0x449   : > { %v4704_v5 = vadd.f32 %v4702_v13, %v4692_v46  ;;  %9091 = vst [vmem:[#allocation18_spill] sm:$0xff] %v8182_v59  ;;  %v3675_v57 = vadd.f32 %v3673_v21, %v3658_v37  ;;  %v4043_v46 = vadd.f32 %v4042_v58, %v4041_v54  ;;  %v3690_v11 = vmul.f32 %v8173_v51, %v3685_v63 }
 0x44a   : > { %9093 = vst [vmem:[#allocation27_spill] sm:$0xff] %v8188_v30  ;;  %v8199_v40 = vcombine.high %v7728_v34, %v7728_v34  ;;  %v4759_v21 = vmax.f32 %v4757_v19, %v4758_v50  ;;  %v8205_v58 = vcombine.high %v7736_v26, %v7736_v26  ;;  %v8209_v63 = vcombine.high %v7748_v32, %v7748_v32 }
 0x44b   : > { %v4716_v55 = vadd.f32 %v4714_v38, %v4704_v5  ;;  %v5782_v13 = vpop.eup %5781  ;;  %v4416_v38 = vadd.f32 %v8182_v59, %v8167_v33  ;;  %v3692_v5 = vadd.f32 %v3690_v11, %v3675_v57  ;;  %v3707_v19 = vmul.f32 %v8188_v30, %v3702_v52 }
 0x44c   : > { %v4808_v18 = vmul.f32 %v5782_v13, %v4795_v60  ;;  %9095 = vst [vmem:[#allocation33_spill] sm:$0xff] %v8199_v40  ;;  %9097 = vst [vmem:[#allocation35_spill] sm:$0xff] %v8205_v58  ;;  %v4044_v60 = vrot.slane %v4043_v46, 1  ;;  %v3719_v57 = vrot.slane %v8177_v25, %v7592_v45  ;;  %v8227_v11 = vcombine.high %v7796_v49, %v7796_v49 }
 0x44d   : > { %v4728_v10 = vadd.f32 %v4726_v61, %v4716_v55  ;;  %9098 = vst [vmem:[#allocation36_spill] sm:$0xff] %v8209_v63  ;;  %v8237_v52 = vcombine.high %v7817_v48, %v7817_v48  ;;  %v8245_v33 = vcombine.high %v7845_v1, %v7845_v1  ;;  %v8257_v51 = vcombine.high %v9082_v2, %v9082_v2 }
 0x44e   : > { %v8201_v54 = vpop.eup %5783  ;;  %v4810_v55 = vsub.f32 2.0, %v4808_v18  ;;  %v8231_v18 = vcombine.high %v7807_v7, %v7807_v7  ;;  %v8264_v56 = vcombine.high %v9085_v9, %v9085_v9  ;;  %v8287_v2 = vcombine.high %v9088_v20, %v9088_v20 }
 0x44f   : > { %v8195_v37 = vadd.f32 %v4738_v15, %v4728_v10  ;;  %9096 = vst [vmem:[#allocation34_spill] sm:$0xff] %v8201_v54  ;;  %v8211_v61 = vpop.eup %5785  ;;  %v8215_v15 = vcombine.high %v7765_v62, %v7765_v62  ;;  %v4417_v50 = vadd.f32 %v8201_v54, %v4416_v38  ;;  %v8223_v10 = vcombine.high %v7782_v12, %v7782_v12 }
 0x450   : > { %9099 = vst [vmem:[#allocation37_spill] sm:$0xff] %v8211_v61  ;;  %v8233_v59 = vmul.f32 %v5782_v13, %v4810_v55  ;;  %v8241_v38 = vcombine.high %v7830_v28, %v7830_v28  ;;  %v3709_v54 = vadd.f32 %v3707_v19, %v3692_v5  ;;  %v8251_v13 = vadd.f32 %v4044_v60, %v4043_v46 }
 0x451   : > { %9094 = vst [vmem:[#allocation32_spill] sm:$0xff] %v8195_v37  ;;  %9100 = vst [vmem:[#allocation38_spill] sm:$0xff] %v8215_v15  ;;  %v4760_v37 = vrot.slane %v4759_v21, 1  ;;  %v4418_v55 = vsel %vm3478_vm2, %v8211_v61, 0.0  ;;  %v3724_v5 = vmul.f32 %v8199_v40, %v3719_v57  ;;  %v3736_v19 = vrot.slane %v8177_v25, %v7602_v43 }
 0x452   : > { %v8249_v30 = vmul.f32 %v9101_v44, %v8233_v59  ;;  %v4419_v1 = vadd.f32 %v4418_v55, %v4417_v50  ;;  %9102 = vst [vmem:[#allocation29_spill] sm:$0xff] %v8264_v56  ;;  %v8274_v57 = vcombine.high %v9086_v23, %v9086_v23  ;;  %v3753_v50 = vrot.slane %v8177_v25, %v7611_v4 }
 0x453   : > { %v3726_v61 = vadd.f32 %v3724_v5, %v3709_v54  ;;  %v8278_v55 = vmax.f32 %v4759_v21, %v4760_v37  ;;  %5787 = vrcp.f32 %v8251_v13  ;;  %9104 = vst [vmem:[#allocation40_spill] sm:$0xff] %v8287_v2  ;;  %v3741_v54 = vmul.f32 %v8205_v58, %v3736_v19  ;;  %v9107_v19 = vld [vmem:[#allocation21_spill] sm:$0xff] }
 0x454   : > { %v4825_v44 = vrot.slane %v8249_v30, %v7589_v17  ;;  %v4837_v46 = vrot.slane %v8249_v30, %v7592_v45  ;;  %v4849_v60 = vrot.slane %v8249_v30, %v7602_v43  ;;  %9103 = vst [vmem:[#allocation39_spill] sm:$0xff] %v8274_v57  ;;  %v4861_v9 = vrot.slane %v8249_v30, %v7611_v4 }
 0x455   : > { %v3770_v5 = vrot.slane %v8177_v25, %v7616_v24  ;;  %v4420_v37 = vrot.slane %v4419_v1, 4  ;;  %v8305_v2 = vmul.f32 %v9107_v19, %v8036_v35  ;;  %v3743_v58 = vadd.f32 %v3741_v54, %v3726_v61  ;;  %v9109_v61 = vld [vmem:[#allocation30_spill] sm:$0xff] }
 0x456   : > { %v4830_v56 = vmul.f32 %v4825_v44, %v9058_v14  ;;  %v4842_v40 = vmul.f32 %v9059_v31, %v4837_v46  ;;  %v8294_v14 = vcombine.high %v9092_v22, %v9092_v22  ;;  %v4854_v21 = vmul.f32 %v9062_v47, %v4849_v60  ;;  %v9106_v46 = vld [vmem:[#allocation20_spill] sm:$0xff] }
 0x457   : > { %v4873_v44 = vrot.slane %v8249_v30, %v7616_v24  ;;  %v8301_v57 = vmul.f32 %v9106_v46, %v8036_v35  ;;  %9108 = vst [vmem:[#allocation20_spill] sm:$0xff] %v8305_v2  ;;  %v3758_v20 = vmul.f32 %v8209_v63, %v3753_v50  ;;  %v4885_v47 = vrot.slane %v8249_v30, %v7646_v27  ;;  %v9112_v2 = vld [vmem:[#allocation12_spill] sm:$0xff] }
 0x458   : > { %9105 = vst [vmem:[#allocation41_spill] sm:$0xff] %v8294_v14  ;;  %v4844_v31 = vadd.f32 %v4842_v40, %v4830_v56  ;;  %v4866_v14 = vmul.f32 %v9064_v0, %v4861_v9  ;;  %v4763_v56 = vsub.f32 %v7993_v36, %v8278_v55  ;;  %v3775_v40 = vmul.f32 %v8215_v15, %v3770_v5  ;;  %v9110_v9 = vld [vmem:[#allocation13_spill] sm:$0xff] }
 0x459   : > { %v3787_v60 = vrot.slane %v8177_v25, %v7646_v27  ;;  %v4421_v46 = vadd.f32 %v4420_v37, %v4419_v1  ;;  %v4765_v35 = vsub.f32 %v8017_v3, %v8278_v55  ;;  %v8320_v50 = vmul.f32 %v9109_v61, %v8233_v59 }
 0x45a   : > { %v4856_v23 = vadd.f32 %v4854_v21, %v4844_v31  ;;  %v4878_v54 = vmul.f32 %v9110_v9, %v4873_v44  ;;  %v4897_v31 = vrot.slane %v8249_v30, %v7660_v41  ;;  %v3760_v36 = vadd.f32 %v3758_v20, %v3743_v58  ;;  %v9111_v21 = vld [vmem:[#allocation14_spill] sm:$0xff] }
 0x45b   : > { %v3804_v5 = vrot.slane %v8177_v25, %v7660_v41  ;;  %v3821_v1 = vrot.slane %v8177_v25, %v7674_v8  ;;  %v3838_v3 = vrot.slane %v8301_v57, %v7589_v17  ;;  %v4890_v19 = vmul.f32 %v9111_v21, %v4885_v47 }
 0x45c   : > { %v4868_v0 = vadd.f32 %v4866_v14, %v4856_v23  ;;  %v4909_v23 = vrot.slane %v8249_v30, %v7674_v8  ;;  %v4772_v14 = vmul.f32 1.442695, %v4763_v56  ;;  %v3855_v44 = vrot.slane %v8301_v57, %v7592_v45 }
 0x45d   : > { %v3872_v20 = vrot.slane %v8301_v57, %v7602_v43  ;;  %v4767_v58 = vsub.f32 %v8038_v16, %v8278_v55  ;;  %v4776_v25 = vmul.f32 1.442695, %v4765_v35  ;;  %v5788_v61 = vpop.eup %5787  ;;  %v4921_v47 = vrot.slane %v8320_v50, %v7589_v17 }
 0x45e   : > { %v4880_v37 = vadd.f32 %v4878_v54, %v4868_v0  ;;  %v4902_v0 = vmul.f32 %v7700_v39, %v4897_v31  ;;  %v4422_v54 = vrot.slane %v4421_v46, 2  ;;  %v3777_v30 = vadd.f32 %v3775_v40, %v3760_v36 }
 0x45f   : > { %v3792_v56 = vmul.f32 %v8223_v10, %v3787_v60  ;;  %v3809_v21 = vmul.f32 %v8227_v11, %v3804_v5  ;;  %v4769_v15 = vsub.f32 %v9112_v2, %v8278_v55  ;;  %v4914_v16 = vmul.f32 %v7706_v42, %v4909_v23 }
 0x460   : > { %v4892_v9 = vadd.f32 %v4890_v19, %v4880_v37  ;;  %v4933_v35 = vrot.slane %v8320_v50, %v7592_v45  ;;  %5789 = vpow2.f32 %v4772_v14  ;;  %v3826_v39 = vmul.f32 %v8231_v18, %v3821_v1 }
 0x461   : > { %v4049_v31 = vmul.f32 %v5788_v61, %v8251_v13  ;;  %5791 = vpow2.f32 %v4776_v25  ;;  %v4780_v40 = vmul.f32 1.442695, %v4767_v58  ;;  %v4926_v60 = vmul.f32 %v7715_v53, %v4921_v47 }
 0x462   : > { %v4904_v63 = vadd.f32 %v4902_v0, %v4892_v9  ;;  %v4945_v5 = vrot.slane %v8320_v50, %v7602_v43  ;;  %v4423_v2 = vadd.f32 %v4422_v54, %v4421_v46  ;;  %v3794_v55 = vadd.f32 %v3792_v56, %v3777_v30  ;;  %v9113_v9 = vld [vmem:[#allocation9_spill] sm:$0xff] }
 0x463   : > { %v3843_v42 = vmul.f32 %v8237_v52, %v3838_v3  ;;  %v4051_v37 = vsub.f32 2.0, %v4049_v31  ;;  %v4784_v19 = vmul.f32 1.442695, %v4769_v15  ;;  %v4938_v14 = vmul.f32 %v7728_v34, %v4933_v35  ;;  %v9129_v54 = vld [vmem:[#allocation25_spill] sm:$0xff] }
 0x464   : > { %v4916_v36 = vadd.f32 %v4914_v16, %v4904_v63  ;;  %v4957_v13 = vrot.slane %v8320_v50, %v7611_v4  ;;  %v4424_v1 = vrot.slane %v4423_v2, 1  ;;  %v8360_v63 = vmul.f32 %v8241_v38, %v3855_v44 }
 0x465   : > { %v8363_v53 = vmul.f32 %v8245_v33, %v3872_v20  ;;  %v3889_v46 = vrot.slane %v8301_v57, %v7611_v4  ;;  %v8367_v58 = vmul.f32 %v5788_v61, %v4051_v37  ;;  %v4950_v15 = vmul.f32 %v7736_v26, %v4945_v5  ;;  %v9116_v37 = vld [vmem:[#allocation4_spill] sm:$0xff] }
 0x466   : > { %v4928_v23 = vadd.f32 %v4926_v60, %v4916_v36  ;;  %v4969_v34 = vrot.slane %v8320_v50, %v7616_v24  ;;  %5793 = vpow2.f32 %v4780_v40  ;;  %v3811_v25 = vadd.f32 %v3809_v21, %v3794_v55 }
 0x467   : > { %v8376_v20 = vmul.f32 %v9113_v9, %v8367_v58  ;;  %5795 = vpow2.f32 %v4784_v19  ;;  %v4962_v61 = vmul.f32 %v7748_v32, %v4957_v13  ;;  %v4981_v47 = vrot.slane %v8320_v50, %v7646_v27  ;;  %v9114_v32 = vld [vmem:[#allocation10_spill] sm:$0xff] }
 0x468   : > { %v4940_v3 = vadd.f32 %v4938_v14, %v4928_v23  ;;  %v8381_v26 = vadd.f32 %v4424_v1, %v4423_v2  ;;  %v8395_v35 = vmul.f32 %v9114_v32, %v8233_v59  ;;  %v4974_v40 = vmul.f32 %v7765_v62, %v4969_v34  ;;  %v9115_v2 = vld [vmem:[#allocation8_spill] sm:$0xff] }
 0x469   : > { %v4069_v30 = vrot.slane %v8376_v20, %v7589_v17  ;;  %v4081_v56 = vrot.slane %v8376_v20, %v7592_v45  ;;  %v4093_v21 = vrot.slane %v8376_v20, %v7602_v43  ;;  %v4993_v36 = vrot.slane %v8320_v50, %v7660_v41 }
 0x46a   : > { %v4952_v0 = vadd.f32 %v4950_v15, %v4940_v3  ;;  %v8391_v16 = vpop.eup %5789  ;;  %v3828_v5 = vadd.f32 %v3826_v39, %v3811_v25  ;;  %v4105_v23 = vrot.slane %v8376_v20, %v7611_v4  ;;  %v4986_v13 = vmul.f32 %v7782_v12, %v4981_v47  ;;  %v9117_v39 = vld [vmem:[#allocation11_spill] sm:$0xff] }
 0x46b   : > { %v8400_v60 = vpop.eup %5791  ;;  %v4071_v55 = vmul.f32 %v4069_v30, %v9115_v2  ;;  %v4083_v19 = vmul.f32 %v4081_v56, %v9116_v37  ;;  %v5005_v1 = vrot.slane %v8320_v50, %v7674_v8  ;;  %5797 = vrcp.f32 %v8381_v26 }
 0x46c   : > { %v4964_v31 = vadd.f32 %v4962_v61, %v4952_v0  ;;  %v4095_v15 = vmul.f32 %v4093_v21, %v9117_v39  ;;  %v4117_v34 = vrot.slane %v8376_v20, %v7616_v24  ;;  %v4998_v9 = vmul.f32 %v7796_v49, %v4993_v36 }
 0x46d   : > { %v4085_v3 = vadd.f32 %v4083_v19, %v4071_v55  ;;  %v5017_v12 = vrot.slane %v8395_v35, %v7589_v17  ;;  %v4796_v50 = vadd.f32 %v8400_v60, %v8391_v16  ;;  %v8421_v0 = vmul.f32 %v8257_v51, %v3889_v46  ;;  %v9119_v46 = vld [vmem:[#allocation5_spill] sm:$0xff] }
 0x46e   : > { %v4976_v14 = vadd.f32 %v4974_v40, %v4964_v31  ;;  %v4107_v47 = vmul.f32 %v4105_v23, %v8087_v6  ;;  %v4129_v30 = vrot.slane %v8376_v20, %v7646_v27  ;;  %v3845_v21 = vadd.f32 %v3843_v42, %v3828_v5  ;;  %v9120_v19 = vld [vmem:[#allocation17_spill] sm:$0xff] }
 0x46f   : > { %v4097_v61 = vadd.f32 %v4095_v15, %v4085_v3  ;;  %v5010_v49 = vmul.f32 %v7807_v7, %v5005_v1  ;;  %v5029_v31 = vrot.slane %v8395_v35, %v7592_v45  ;;  %v8435_v36 = vmul.f32 %v9119_v46, %v8367_v58  ;;  %v9121_v1 = vld [vmem:[#allocation7_spill] sm:$0xff] }
 0x470   : > { %v4988_v25 = vadd.f32 %v4986_v13, %v4976_v14  ;;  %v8426_v56 = vpop.eup %5793  ;;  %v4119_v23 = vmul.f32 %v4117_v34, %v9120_v19  ;;  %v4141_v14 = vrot.slane %v8376_v20, %v7660_v41  ;;  %v5022_v42 = vmul.f32 %v7817_v48, %v5017_v12 }
 0x471   : > { %v8431_v40 = vpop.eup %5795  ;;  %v4109_v55 = vadd.f32 %v4107_v47, %v4097_v61  ;;  %v5041_v7 = vrot.slane %v8395_v35, %v7602_v43  ;;  %v4797_v5 = vadd.f32 %v8426_v56, %v4796_v50  ;;  %v4820_v3 = vmul.f32 %v9121_v1, %v8233_v59  ;;  %v9125_v1 = vld [vmem:[#allocation23_spill] sm:$0xff] }
 0x472   : > { %v5000_v32 = vadd.f32 %v4998_v9, %v4988_v25  ;;  %9118 = vst [vmem:[#allocation21_spill] sm:$0xff] %v8431_v40  ;;  %v4131_v25 = vmul.f32 %v4129_v30, %v8102_v29  ;;  %v4153_v34 = vrot.slane %v8376_v20, %v7674_v8  ;;  %v3862_v9 = vadd.f32 %v8360_v63, %v3845_v21  ;;  %v9123_v20 = vld [vmem:[#allocation22_spill] sm:$0xff] }
 0x473   : > { %v4121_v15 = vadd.f32 %v4119_v23, %v4109_v55  ;;  %v5034_v47 = vmul.f32 %v7830_v28, %v5029_v31  ;;  %v5053_v48 = vrot.slane %v8395_v35, %v7611_v4  ;;  %v4165_v59 = vrot.slane %v8435_v36, %v7589_v17  ;;  %v9124_v23 = vld [vmem:[#allocation31_spill] sm:$0xff] }
 0x474   : > { %v5012_v13 = vadd.f32 %v5010_v49, %v5000_v32  ;;  %v9122_v32 = vld [vmem:[#allocation19_spill] sm:$0xff]  ;;  %v4798_v30 = vsel %vm3478_vm2, %v8431_v40, 0.0  ;;  %v5046_v55 = vmul.f32 %v9123_v20, %v5041_v7  ;;  %v5065_v63 = vrot.slane %v8395_v35, %v7616_v24  ;;  %v9134_v40 = vld [vmem:[#allocation16_spill] sm:$0xff] }
 0x475   : > { %v4133_v12 = vadd.f32 %v4131_v25, %v4121_v15  ;;  %v4143_v50 = vmul.f32 %v4141_v14, %v9122_v32  ;;  %v5798_v49 = vpop.eup %5797  ;;  %v4799_v28 = vadd.f32 %v4798_v30, %v4797_v5  ;;  %v5077_v21 = vrot.slane %v8395_v35, %v7646_v27  ;;  %v9126_v5 = vld [vmem:[#allocation27_spill] sm:$0xff]  ;;  %v9127_v30 = vld [vmem:[#allocation24_spill] sm:$0xff] }
 0x476   : > { %v5024_v61 = vadd.f32 %v5022_v42, %v5012_v13  ;;  %v4155_v14 = vmul.f32 %v4153_v34, %v9124_v23  ;;  %v4177_v13 = vrot.slane %v8435_v36, %v7592_v45  ;;  %v5058_v15 = vmul.f32 %v9125_v1, %v5053_v48  ;;  %v9128_v1 = vld [vmem:[#allocation33_spill] sm:$0xff] }
 0x477   : > { %v4145_v31 = vadd.f32 %v4143_v50, %v4133_v12  ;;  %v5089_v25 = vrot.slane %v8395_v35, %v7660_v41  ;;  %v5101_v7 = vrot.slane %v8395_v35, %v7674_v8  ;;  %v4189_v12 = vrot.slane %v8435_v36, %v7602_v43 }
 0x478   : > { %v5036_v46 = vadd.f32 %v5034_v47, %v5024_v61  ;;  %v4167_v47 = vmul.f32 %v4165_v59, %v9126_v5  ;;  %v4429_v34 = vmul.f32 %v5798_v49, %v8381_v26  ;;  %v5070_v20 = vmul.f32 %v9127_v30, %v5065_v63 }
 0x479   : > { %v4157_v61 = vadd.f32 %v4155_v14, %v4145_v31  ;;  %v4800_v48 = vrot.slane %v4799_v28, 4  ;;  %v4179_v62 = vmul.f32 %v4177_v13, %v9128_v1  ;;  %v4201_v35 = vrot.slane %v8435_v36, %v7611_v4 }
 0x47a   : > { %v5048_v42 = vadd.f32 %v5046_v55, %v5036_v46  ;;  %v5113_v46 = vrot.slane %v4820_v3, %v7589_v17  ;;  %v4431_v31 = vsub.f32 2.0, %v4429_v34  ;;  %v3879_v59 = vadd.f32 %v8363_v53, %v3862_v9  ;;  %v9131_v3 = vld [vmem:[#allocation35_spill] sm:$0xff]  ;;  %v9132_v9 = vld [vmem:[#allocation28_spill] sm:$0xff] }
 0x47b   : > { %v4169_v55 = vadd.f32 %v4167_v47, %v4157_v61  ;;  %v5082_v44 = vmul.f32 %v9129_v54, %v5077_v21  ;;  %v4213_v26 = vrot.slane %v8435_v36, %v7616_v24  ;;  %v4191_v30 = vmul.f32 %v4189_v12, %v9131_v3  ;;  %v9133_v21 = vld [vmem:[#allocation36_spill] sm:$0xff] }
 0x47c   : > { %v5060_v50 = vadd.f32 %v5058_v15, %v5048_v42  ;;  %v9130_v42 = vld [vmem:[#allocation26_spill] sm:$0xff]  ;;  %v8486_v61 = vmul.f32 %v5798_v49, %v4431_v31  ;;  %v5106_v47 = vmul.f32 %v9092_v22, %v5101_v7  ;;  %v4225_v34 = vrot.slane %v8435_v36, %v7646_v27 }
 0x47d   : > { %v5094_v63 = vmul.f32 %v9130_v42, %v5089_v25  ;;  %v4181_v15 = vadd.f32 %v4179_v62, %v4169_v55  ;;  %v4801_v53 = vadd.f32 %v4800_v48, %v4799_v28  ;;  %v9135_v49 = vld [vmem:[#allocation6_spill] sm:$0xff]  ;;  %v4237_v7 = vrot.slane %v8435_v36, %v7660_v41 }
 0x47e   : > { %v5072_v14 = vadd.f32 %v5070_v20, %v5060_v50  ;;  %v5118_v50 = vmul.f32 %v9132_v9, %v5113_v46  ;;  %v4203_v20 = vmul.f32 %v4201_v35, %v9133_v21  ;;  %v8495_v25 = vmul.f32 %v9134_v40, %v8486_v61 }
 0x47f   : > { %v4193_v54 = vadd.f32 %v4191_v30, %v4181_v15  ;;  %v8499_v12 = vmul.f32 %v9135_v49, %v8367_v58  ;;  %v4227_v35 = vmul.f32 %v4225_v34, %v8223_v10  ;;  %v4249_v31 = vrot.slane %v8435_v36, %v7674_v8 }
 0x480   : > { %v5084_v13 = vadd.f32 %v5082_v44, %v5072_v14  ;;  %v9136_v44 = vld [vmem:[#allocation38_spill] sm:$0xff]  ;;  %v4449_v46 = vrot.slane %v8495_v25, %v7589_v17  ;;  %v4461_v48 = vrot.slane %v8495_v25, %v7592_v45  ;;  %v4473_v40 = vrot.slane %v8495_v25, %v7602_v43 }
 0x481   : > { %v4215_v22 = vmul.f32 %v4213_v26, %v9136_v44  ;;  %v4205_v28 = vadd.f32 %v4203_v20, %v4193_v54  ;;  %v4802_v14 = vrot.slane %v4801_v53, 2  ;;  %v4485_v15 = vrot.slane %v8495_v25, %v7611_v4 }
 0x482   : > { %v5096_v62 = vadd.f32 %v5094_v63, %v5084_v13  ;;  %v4451_v42 = vmul.f32 %v4449_v46, %v9115_v2  ;;  %v4463_v63 = vmul.f32 %v4461_v48, %v9116_v37  ;;  %v3896_v30 = vadd.f32 %v8421_v0, %v3879_v59  ;;  %v9137_v46 = vld [vmem:[#allocation32_spill] sm:$0xff] }
 0x483   : > { %v4217_v26 = vadd.f32 %v4215_v22, %v4205_v28  ;;  %v4239_v9 = vmul.f32 %v4237_v7, %v8227_v11  ;;  %v4475_v54 = vmul.f32 %v4473_v40, %v9117_v39  ;;  %v4497_v20 = vrot.slane %v8495_v25, %v7616_v24 }
 0x484   : > { %v5108_v55 = vadd.f32 %v5106_v47, %v5096_v62  ;;  %v4261_v47 = vrot.slane %v8499_v12, %v7589_v17  ;;  %v4465_v36 = vadd.f32 %v4463_v63, %v4451_v42  ;;  %v4251_v49 = vmul.f32 %v4249_v31, %v8231_v18 }
 0x485   : > { %v4229_v34 = vadd.f32 %v4227_v35, %v4217_v26  ;;  %v4273_v0 = vrot.slane %v8499_v12, %v7592_v45  ;;  %v4803_v59 = vadd.f32 %v4802_v14, %v4801_v53  ;;  %v4487_v7 = vmul.f32 %v4485_v15, %v8087_v6  ;;  %v9139_v35 = vld [vmem:[#allocation18_spill] sm:$0xff]  ;;  %v9141_v15 = vld [vmem:[#allocation29_spill] sm:$0xff] }
 0x486   : > { %v5120_v13 = vadd.f32 %v5118_v50, %v5108_v55  ;;  %v4477_v22 = vadd.f32 %v4475_v54, %v4465_v36  ;;  %v4509_v28 = vrot.slane %v8495_v25, %v7646_v27  ;;  %v4263_v40 = vmul.f32 %v4261_v47, %v8237_v52 }
 0x487   : > { %v4241_v50 = vadd.f32 %v4239_v9, %v4229_v34  ;;  %v4285_v55 = vrot.slane %v8499_v12, %v7602_v43  ;;  %v8537_v31 = vmul.f32 %v9139_v35, %v8486_v61  ;;  %v4499_v26 = vmul.f32 %v4497_v20, %v9120_v19 }
 0x488   : > { %v5130_v62 = vrot.slane %v5120_v13, 4  ;;  %v4489_v14 = vadd.f32 %v4487_v7, %v4477_v22  ;;  %v4521_v42 = vrot.slane %v8495_v25, %v7660_v41  ;;  %v9140_v63 = vrot.slane %v8301_v57, %v7616_v24 }
 0x489   : > { %v4253_v53 = vadd.f32 %v4251_v49, %v4241_v50  ;;  %v4275_v9 = vmul.f32 %v4273_v0, %v8241_v38  ;;  %v4297_v47 = vrot.slane %v8499_v12, %v7611_v4  ;;  %v4804_v34 = vrot.slane %v4803_v59, 1 }
 0x48a   : > { %v5136_v48 = vsel %vm9138_vm8, %v9137_v46, %v5130_v62  ;;  %v3911_v13 = vmul.f32 %v9141_v15, %v9140_v63  ;;  %v4501_v54 = vadd.f32 %v4499_v26, %v4489_v14  ;;  %v4511_v62 = vmul.f32 %v4509_v28, %v8102_v29 }
 0x48b   : > { %5140 = vst [vmem:[%s8025_s9 + $0x10] sm:$0xff] %v5136_v48  ;;  %v4265_v36 = vadd.f32 %v4263_v40, %v4253_v53  ;;  %v4533_v20 = vrot.slane %v8495_v25, %v7674_v8  ;;  %v3957_v50 = vrot.slane %v8301_v57, %v7674_v8  ;;  %v4287_v22 = vmul.f32 %v4285_v55, %v8245_v33  ;;  %v9143_v25 = vld [vmem:[#allocation39_spill] sm:$0xff] }
 0x48c   : > { %v3913_v49 = vadd.f32 %v3911_v13, %v3896_v30  ;;  %v4309_v0 = vrot.slane %v8499_v12, %v7616_v24  ;;  %v4513_v46 = vadd.f32 %v4511_v62, %v4501_v54  ;;  %v4523_v48 = vmul.f32 %v4521_v42, %v9122_v32 }
 0x48d   : > { %v4277_v7 = vadd.f32 %v4275_v9, %v4265_v36  ;;  %v4545_v40 = vrot.slane %v8537_v31, %v7589_v17  ;;  %v9142_v28 = vrot.slane %v8301_v57, %v7646_v27  ;;  %v4299_v35 = vmul.f32 %v4297_v47, %v8257_v51  ;;  %v9144_v9 = vld [vmem:[#allocation15_spill] sm:$0xff] }
 0x48e   : > { %v4321_v55 = vrot.slane %v8499_v12, %v7646_v27  ;;  %v4805_v53 = vadd.f32 %v4804_v34, %v4803_v59  ;;  %v4525_v26 = vadd.f32 %v4523_v48, %v4513_v46  ;;  %v4535_v63 = vmul.f32 %v4533_v20, %v9124_v23 }
 0x48f   : > { %v3928_v30 = vmul.f32 %v9143_v25, %v9142_v28  ;;  %v4289_v14 = vadd.f32 %v4287_v22, %v4277_v7  ;;  %v4557_v42 = vrot.slane %v8537_v31, %v7592_v45  ;;  %v4061_v36 = vmul.f32 %v9144_v9, %v8367_v58  ;;  %v9146_v22 = vld [vmem:[#allocation40_spill] sm:$0xff] }
 0x490   : > { %v4311_v54 = vmul.f32 %v4309_v0, %v9141_v15  ;;  %v4333_v47 = vrot.slane %v8499_v12, %v7660_v41  ;;  %v4537_v28 = vadd.f32 %v4535_v63, %v4525_v26  ;;  %v4547_v59 = vmul.f32 %v4545_v40, %v9126_v5  ;;  %v5801_v63 = vld [vmem:[%s7599_s6 + $0xc0] sm:$0xff] }
 0x491   : > { %v3930_v13 = vadd.f32 %v3928_v30, %v3913_v49  ;;  %v4301_v62 = vadd.f32 %v4299_v35, %v4289_v14  ;;  %v4569_v34 = vrot.slane %v8537_v31, %v7602_v43  ;;  %v9145_v20 = vrot.slane %v8301_v57, %v7660_v41 }
 0x492   : > { %v4323_v58 = vmul.f32 %v4321_v55, %v9143_v25  ;;  %v4345_v0 = vrot.slane %v8499_v12, %v7674_v8  ;;  %5799 = vrcp.f32 %v4805_v53  ;;  %v4549_v46 = vadd.f32 %v4547_v59, %v4537_v28 }
 0x493   : > { %v3945_v49 = vmul.f32 %v9146_v22, %v9145_v20  ;;  %v4313_v7 = vadd.f32 %v4311_v54, %v4301_v62  ;;  %v4559_v48 = vmul.f32 %v4557_v42, %v9128_v1  ;;  %v4581_v40 = vrot.slane %v8537_v31, %v7611_v4  ;;  %v9147_v54 = vld [vmem:[#allocation41_spill] sm:$0xff]  ;;  %v9148_v62 = vld [vmem:[#allocation20_spill] sm:$0xff] }
 0x494   : > { %v4335_v35 = vmul.f32 %v4333_v47, %v9146_v22  ;;  %v4357_v57 = vrot.slane %v4061_v36, %v7589_v17  ;;  %v4571_v55 = vmul.f32 %v4569_v34, %v9131_v3  ;;  %v4593_v12 = vrot.slane %v8537_v31, %v7616_v24 }
 0x495   : > { %v3947_v30 = vadd.f32 %v3945_v49, %v3930_v13  ;;  %v4325_v14 = vadd.f32 %v4323_v58, %v4313_v7  ;;  %v4561_v26 = vadd.f32 %v4559_v48, %v4549_v46  ;;  %v8595_v9 = vcombine.high %v5801_v63, %v5801_v63  ;;  %v9149_v58 = vld [vmem:[#allocation34_spill] sm:$0xff] }
 0x496   : > { %v3962_v42 = vmul.f32 %v9147_v54, %v3957_v50  ;;  %v3974_v28 = vrot.slane %v9148_v62, %v7589_v17  ;;  %v4347_v13 = vmul.f32 %v4345_v0, %v9147_v54  ;;  %v4583_v36 = vmul.f32 %v4581_v40, %v9133_v21 }
 0x497   : > { %v4337_v47 = vadd.f32 %v4335_v35, %v4325_v14  ;;  %v4573_v59 = vadd.f32 %v4571_v55, %v4561_v26  ;;  %v4605_v34 = vrot.slane %v8537_v31, %v7646_v27  ;;  %v4359_v49 = vmul.f32 %v4357_v57, %v8595_v9 }
 0x498   : > { %v3964_v20 = vadd.f32 %v3962_v42, %v3947_v30  ;;  %v8607_v7 = vmul.f32 %v9149_v58, %v8486_v61  ;;  %v4595_v48 = vmul.f32 %v4593_v12, %v9136_v44  ;;  %v4617_v0 = vrot.slane %v8537_v31, %v7660_v41 }
 0x499   : > { %v4349_v50 = vadd.f32 %v4347_v13, %v4337_v47  ;;  %v4585_v46 = vadd.f32 %v4583_v36, %v4573_v59  ;;  %v3979_v35 = vmul.f32 %v8595_v9, %v3974_v28  ;;  %v4629_v40 = vrot.slane %v8537_v31, %v7674_v8 }
 0x49a   : > { %v4607_v57 = vmul.f32 %v4605_v34, %v8223_v10  ;;  %v4641_v63 = vrot.slane %v8607_v7, %v7589_v17  ;;  %v4619_v62 = vmul.f32 %v4617_v0, %v8227_v11  ;;  %v4653_v59 = vrot.slane %v8607_v7, %v7592_v45 }
 0x49b   : > { %v4361_v30 = vadd.f32 %v4359_v49, %v4349_v50  ;;  %v4597_v14 = vadd.f32 %v4595_v48, %v4585_v46  ;;  %v3981_v55 = vadd.f32 %v3979_v35, %v3964_v20  ;;  %v4631_v28 = vmul.f32 %v4629_v40, %v8231_v18 }
 0x49c   : > { %v5800_v26 = vpop.eup %5799  ;;  %v4665_v34 = vrot.slane %v8607_v7, %v7602_v43  ;;  %v4643_v49 = vmul.f32 %v4641_v63, %v8237_v52  ;;  %v4655_v46 = vmul.f32 %v4653_v59, %v8241_v38  ;;  %v4689_v35 = vrot.slane %v8607_v7, %v7616_v24 }
 0x49d   : > { %v5125_v42 = vrot.slane %v4361_v30, 4  ;;  %v4609_v12 = vadd.f32 %v4607_v57, %v4597_v14  ;;  %v4809_v13 = vmul.f32 %v5800_v26, %v4805_v53  ;;  %v4677_v53 = vrot.slane %v8607_v7, %v7611_v4 }
 0x49e   : > { %v4667_v0 = vmul.f32 %v4665_v34, %v8245_v33 }
 0x49f   : > { %v5135_v47 = vsel %vm9150_vm4, %v3981_v55, %v5125_v42  ;;  %v4621_v31 = vadd.f32 %v4619_v62, %v4609_v12  ;;  %v4811_v36 = vsub.f32 2.0, %v4809_v13  ;;  %v4701_v55 = vrot.slane %v8607_v7, %v7646_v27  ;;  %v9151_v62 = vld [vmem:[#allocation37_spill] sm:$0xff] }
 0x4a0   : > { %5139 = vst [vmem:[%s8025_s9 + $0x8] sm:$0xff] %v5135_v47  ;;  %v4441_v13 = vmul.f32 %v9151_v62, %v8486_v61  ;;  %v4713_v47 = vrot.slane %v8607_v7, %v7660_v41 }
 0x4a1   : > { %v4633_v20 = vadd.f32 %v4631_v28, %v4621_v31  ;;  %v8627_v58 = vmul.f32 %v5800_v26, %v4811_v36  ;;  %v4679_v26 = vmul.f32 %v4677_v53, %v8257_v51  ;;  %v4691_v28 = vmul.f32 %v4689_v35, %v9141_v15 }
 0x4a3   : > { %v4645_v50 = vadd.f32 %v4643_v49, %v4633_v20  ;;  %v4815_v48 = vmul.f32 %v8391_v16, %v8627_v58 }
 0x4a5   : > { %v4657_v40 = vadd.f32 %v4655_v46, %v4645_v50  ;;  %v4829_v30 = vrot.slane %v4815_v48, %v7589_v17  ;;  %v4841_v14 = vrot.slane %v4815_v48, %v7592_v45  ;;  %v4853_v57 = vrot.slane %v4815_v48, %v7602_v43 }
 0x4a6   : > { %v4865_v12 = vrot.slane %v4815_v48, %v7611_v4  ;;  %v4877_v34 = vrot.slane %v4815_v48, %v7616_v24  ;;  %v4889_v53 = vrot.slane %v4815_v48, %v7646_v27  ;;  %v4715_v50 = vmul.f32 %v4713_v47, %v9146_v22 }
 0x4a7   : > { %v4669_v63 = vadd.f32 %v4667_v0, %v4657_v40  ;;  %v4831_v16 = vmul.f32 %v4829_v30, %v9115_v2  ;;  %v4843_v42 = vmul.f32 %v4841_v14, %v9116_v37  ;;  %v4855_v36 = vmul.f32 %v4853_v57, %v9117_v39 }
 0x4a8   : > { %v4703_v2 = vmul.f32 %v4701_v55, %v9143_v25  ;;  %v4725_v37 = vrot.slane %v8607_v7, %v7674_v8  ;;  %v4867_v61 = vmul.f32 %v4865_v12, %v8087_v6  ;;  %v4737_v46 = vrot.slane %v4441_v13, %v7589_v17 }
 0x4a9   : > { %v4681_v31 = vadd.f32 %v4679_v26, %v4669_v63  ;;  %v4845_v59 = vadd.f32 %v4843_v42, %v4831_v16  ;;  %v4817_v39 = vmul.f32 %v8400_v60, %v8627_v58  ;;  %v4879_v40 = vmul.f32 %v4877_v34, %v9120_v19 }
 0x4aa   : > { %v4901_v30 = vrot.slane %v4815_v48, %v7660_v41  ;;  %v4727_v7 = vmul.f32 %v4725_v37, %v9147_v54  ;;  %v4891_v6 = vmul.f32 %v4889_v53, %v8102_v29  ;;  %v4913_v26 = vrot.slane %v4815_v48, %v7674_v8 }
 0x4ab   : > { %v4693_v20 = vadd.f32 %v4691_v28, %v4681_v31  ;;  %v4857_v49 = vadd.f32 %v4855_v36, %v4845_v59  ;;  %v4739_v55 = vmul.f32 %v4737_v46, %v8595_v9  ;;  %v4925_v42 = vrot.slane %v4817_v39, %v7589_v17 }
 0x4ac   : > { %v4903_v60 = vmul.f32 %v4901_v30, %v9122_v32  ;;  %v4915_v62 = vmul.f32 %v4913_v26, %v9124_v23  ;;  %v4937_v13 = vrot.slane %v4817_v39, %v7592_v45  ;;  %v4949_v29 = vrot.slane %v4817_v39, %v7602_v43  ;;  %v9152_v26 = vld [vmem:[#allocation21_spill] sm:$0xff] }
 0x4ad   : > { %v4705_v0 = vadd.f32 %v4703_v2, %v4693_v20  ;;  %v4869_v35 = vadd.f32 %v4867_v61, %v4857_v49  ;;  %v4927_v47 = vmul.f32 %v4925_v42, %v9126_v5  ;;  %v4961_v59 = vrot.slane %v4817_v39, %v7611_v4 }
 0x4ae   : > { %v4939_v31 = vmul.f32 %v4937_v13, %v9128_v1  ;;  %v4951_v32 = vmul.f32 %v4949_v29, %v9131_v3  ;;  %v4973_v34 = vrot.slane %v4817_v39, %v7616_v24  ;;  %v4985_v37 = vrot.slane %v4817_v39, %v7646_v27 }
 0x4af   : > { %v4717_v14 = vadd.f32 %v4715_v50, %v4705_v0  ;;  %v4881_v57 = vadd.f32 %v4879_v40, %v4869_v35  ;;  %v4963_v23 = vmul.f32 %v4961_v59, %v9133_v21  ;;  %v4819_v5 = vmul.f32 %v8426_v56, %v8627_v58 }
 0x4b0   : > { %v4975_v49 = vmul.f32 %v4973_v34, %v9136_v44  ;;  %v4997_v1 = vrot.slane %v4817_v39, %v7660_v41  ;;  %v4987_v53 = vmul.f32 %v4985_v37, %v8223_v10  ;;  %v5009_v3 = vrot.slane %v4817_v39, %v7674_v8 }
 0x4b1   : > { %v4729_v63 = vadd.f32 %v4727_v7, %v4717_v14  ;;  %v4893_v16 = vadd.f32 %v4891_v6, %v4881_v57  ;;  %v5021_v21 = vrot.slane %v4819_v5, %v7589_v17  ;;  %v5033_v56 = vrot.slane %v4819_v5, %v7592_v45 }
 0x4b2   : > { %v4999_v46 = vmul.f32 %v4997_v1, %v8227_v11  ;;  %v5011_v35 = vmul.f32 %v5009_v3, %v8231_v18  ;;  %v5045_v30 = vrot.slane %v4819_v5, %v7602_v43  ;;  %v5057_v39 = vrot.slane %v4819_v5, %v7611_v4 }
 0x4b3   : > { %v4741_v12 = vadd.f32 %v4739_v55, %v4729_v63  ;;  %v4905_v19 = vadd.f32 %v4903_v60, %v4893_v16  ;;  %v5023_v44 = vmul.f32 %v5021_v21, %v8237_v52  ;;  %v5035_v10 = vmul.f32 %v5033_v56, %v8241_v38 }
 0x4b4   : > { %v5047_v11 = vmul.f32 %v5045_v30, %v8245_v33  ;;  %v5069_v57 = vrot.slane %v4819_v5, %v7616_v24  ;;  %v5059_v18 = vmul.f32 %v5057_v39, %v8257_v51  ;;  %v5081_v45 = vrot.slane %v4819_v5, %v7646_v27 }
 0x4b5   : > { %v4917_v28 = vadd.f32 %v4915_v62, %v4905_v19  ;;  %v4821_v52 = vmul.f32 %v9152_v26, %v8627_v58  ;;  %v5093_v38 = vrot.slane %v4819_v5, %v7660_v41  ;;  %v5105_v33 = vrot.slane %v4819_v5, %v7674_v8 }
 0x4b6   : > { %v5071_v43 = vmul.f32 %v5069_v57, %v9141_v15  ;;  %v5083_v63 = vmul.f32 %v5081_v45, %v9143_v25 }
 0x4b7   : > { %v4929_v48 = vadd.f32 %v4927_v47, %v4917_v28  ;;  %v5095_v16 = vmul.f32 %v5093_v38, %v9146_v22  ;;  %v5117_v51 = vrot.slane %v4821_v52, %v7589_v17  ;;  %v5107_v60 = vmul.f32 %v5105_v33, %v9147_v54 }
 0x4b9   : > { %v4941_v36 = vadd.f32 %v4939_v31, %v4929_v48  ;;  %v5119_v42 = vmul.f32 %v5117_v51, %v8595_v9 }
 0x4bb   : > { %v4953_v2 = vadd.f32 %v4951_v32, %v4941_v36 }
 0x4bd   : > { %v4965_v20 = vadd.f32 %v4963_v23, %v4953_v2 }
 0x4bf   : > { %v4977_v61 = vadd.f32 %v4975_v49, %v4965_v20 }
 0x4c1   : > { %v4989_v50 = vadd.f32 %v4987_v53, %v4977_v61 }
 0x4c3   : > { %v5001_v0 = vadd.f32 %v4999_v46, %v4989_v50 }
 0x4c5   : > { %v5013_v40 = vadd.f32 %v5011_v35, %v5001_v0 }
 0x4c7   : > { %v5025_v7 = vadd.f32 %v5023_v44, %v5013_v40 }
 0x4c9   : > { %v5037_v14 = vadd.f32 %v5035_v10, %v5025_v7 }
 0x4cb   : > { %v5049_v6 = vadd.f32 %v5047_v11, %v5037_v14 }
 0x4cd   : > { %v5061_v55 = vadd.f32 %v5059_v18, %v5049_v6 }
 0x4cf   : > { %v5073_v4 = vadd.f32 %v5071_v43, %v5061_v55 }
 0x4d1   : > { %v5085_v24 = vadd.f32 %v5083_v63, %v5073_v4 }
 0x4d3   : > { %v5097_v27 = vadd.f32 %v5095_v16, %v5085_v24 }
 0x4d5   : > { %v5109_v58 = vadd.f32 %v5107_v60, %v5097_v27 }
 0x4d7   : > { %v5121_v19 = vadd.f32 %v5119_v42, %v5109_v58 }
 0x4d9   : > { %v5131_v15 = vrot.slane %v5121_v19, 4 }
 0x4db   : > { %v5137_v41 = vsel %vm9153_vm12, %v4741_v12, %v5131_v15 }
 0x4dc   : > { %5141 = vst [vmem:[%s8025_s9 + $0x18] sm:$0xff] %v5137_v41 }
 0x4dd PF: > { %s14_s15 = sadd.s32 1, %s5808_s15  }
 0x4de   : > { %p11_p4 = scmp.ge.s32.totalorder %s14_s15, 4  }
 0x4e0   :  { %13 = sbr.rel (!%p11_p4) target bundleno = 1 (0x1), region = 93 }

</bundles_post_ra>
